<compile_context>
chip_gen: v7x
topology: tpu7x:2x2x1
jax: 0.10.0
libtpu: 0.0.40
codegen_flags: <defaults>
</compile_context>

<pallas_src>
import functools

import numpy as np

import jax
import jax.numpy as jnp
from jax.experimental import pallas as pl
from jax.experimental.pallas import tpu as pltpu


# ----------------------------------------------------------------------------
# Fused kernel: conv1 -> ReLU -> pool -> conv2 -> ReLU -> pool -> Linear
# ----------------------------------------------------------------------------
def _cnn_fused_kernel(x4_ref, t1_ref, t2_ref, wfc_ref, b1_ref, b2_ref, bfc_ref,
                      o_ref,
                      xrow1_ref, h1e_ref, h1o_ref, xrow2_ref, fc_ref, *, BC):
    """Shapes (per grid step, BC images):

      x4_ref   (BC, 4, 8, 32)   padded input rows split mod 4: x4[b,m,r,c] = xpad[b,4r+m,c]
      t1_ref   (2, 160, 224)    conv1 Toeplitz weights, [q][kh*32+c, jj*16+co]
      t2_ref   (2, 1440, 224)   conv2 Toeplitz weights, [q2][kh*288+cp*16+ci, jj2*32+co]
      wfc_ref  (1568, 10)       FC weight in (ii2, jj2, co) row order
      b1_ref   (1, 224)  b2_ref (1, 224)  bfc_ref (1, 10)
      o_ref    (BC, 10)
      scratch: xrow1 (BC*7,256), h1e/h1o (BC*9,288), xrow2 (BC*7,1728), fc (BC,1568)
    """
    f32 = jnp.float32

    # ---------------- conv1 LHS staging ---------------------------------
    # xrow1[b*7 + ii1, d1*32 + c] = xpad[b, 4*ii1 + d1, c]    (d1 = 0..7)
    for b in range(BC):
        for d1 in range(8):
            xrow1_ref[b * 7:(b + 1) * 7, d1 * 32:(d1 + 1) * 32] = (
                x4_ref[b, d1 % 4, d1 // 4:d1 // 4 + 7, :])

    # zero the padded conv1-output planes (borders stay zero below)
    h1e_ref[...] = jnp.zeros((BC * 9, 288), f32)
    h1o_ref[...] = jnp.zeros((BC * 9, 288), f32)

    b1t = b1_ref[...]                                        # (1, 224)

    # ---------------- conv1 + ReLU + MaxPool(2) --------------------------
    # Pre-pool pixel (i, j) with i = 4*ii1 + 2*s1 + p, j = 2*jj + q.
    # Both pools fold into max over (p, q); the per-s1 result is one parity
    # plane of the padded conv1 output.
    for s1 in range(2):
        m = None
        for p in range(2):
            e = 2 * s1 + p
            lhs = xrow1_ref[:, e * 32:e * 32 + 160]          # (BC*7, 160)
            for q in range(2):
                a = jnp.dot(lhs, t1_ref[q], preferred_element_type=f32)
                m = a if m is None else jnp.maximum(m, a)
        pooled1 = jnp.maximum(m + b1t, 0.0)                  # (BC*7, 224)
        dst = h1e_ref if s1 == 0 else h1o_ref
        for b in range(BC):
            # padded rows 2..15 (parity-split), padded cols 2..15 -> lanes 32..255
            dst[b * 9 + 1:b * 9 + 8, 32:256] = pooled1[b * 7:(b + 1) * 7, :]

    # ---------------- conv2 LHS staging ----------------------------------
    # xrow2[b*7 + ii2, d2*288 + cp*16 + ci] = h1pad[b, ci, 2*ii2 + d2, cp]
    for b in range(BC):
        for d2 in range(6):
            src = h1e_ref if d2 % 2 == 0 else h1o_ref
            xrow2_ref[b * 7:(b + 1) * 7, d2 * 288:(d2 + 1) * 288] = (
                src[b * 9 + d2 // 2:b * 9 + d2 // 2 + 7, :])

    b2t = b2_ref[...]                                        # (1, 224)

    # ---------------- conv2 + ReLU + MaxPool(2) ---------------------------
    # Pre-pool pixel (i2, j2) with i2 = 2*ii2 + p2, j2 = 2*jj2 + q2.
    m2 = None
    for p2 in range(2):
        lhs = xrow2_ref[:, p2 * 288:p2 * 288 + 1440]         # (BC*7, 1440)
        for q2 in range(2):
            a = jnp.dot(lhs, t2_ref[q2], preferred_element_type=f32)
            m2 = a if m2 is None else jnp.maximum(m2, a)
    pooled2 = jnp.maximum(m2 + b2t, 0.0)                     # (BC*7, 224)

    # ---------------- flatten + Linear (batched over BC) ------------------
    # fc[b, ii2*224 + jj2*32 + co] = h2[b, co, ii2, jj2]
    for b in range(BC):
        for ii2 in range(7):
            fc_ref[b:b + 1, ii2 * 224:(ii2 + 1) * 224] = (
                pooled2[b * 7 + ii2:b * 7 + ii2 + 1, :])
    logits = jnp.dot(fc_ref[...], wfc_ref[...],
                     preferred_element_type=f32) + bfc_ref[...]
    o_ref[...] = logits.astype(o_ref.dtype)


# ----------------------------------------------------------------------------
# pallas_call wrapper
# ----------------------------------------------------------------------------
def _cnn_pallas(x4, t1, t2, wfc_r, b1t, b2t, bfcr, *, BC):
    B = x4.shape[0]
    G = B // BC
    kernel = functools.partial(_cnn_fused_kernel, BC=BC)
    return pl.pallas_call(
        kernel,
        out_shape=jax.ShapeDtypeStruct((B, 10), jnp.float32),
        grid=(G,),
        in_specs=[
            pl.BlockSpec((BC, 4, 8, 32), lambda g: (g, 0, 0, 0)),   # input tile
            pl.BlockSpec((2, 160, 224), lambda g: (0, 0, 0)),       # T1
            pl.BlockSpec((2, 1440, 224), lambda g: (0, 0, 0)),      # T2
            pl.BlockSpec((1568, 10), lambda g: (0, 0)),             # FC weight
            pl.BlockSpec((1, 224), lambda g: (0, 0)),               # b1 tiled
            pl.BlockSpec((1, 224), lambda g: (0, 0)),               # b2 tiled
            pl.BlockSpec((1, 10), lambda g: (0, 0)),                # bfc
        ],
        out_specs=pl.BlockSpec((BC, 10), lambda g: (g, 0)),
        scratch_shapes=[
            pltpu.VMEM((BC * 7, 256), jnp.float32),    # conv1 row-window LHS
            pltpu.VMEM((BC * 9, 288), jnp.float32),    # padded h1, even rows
            pltpu.VMEM((BC * 9, 288), jnp.float32),    # padded h1, odd rows
            pltpu.VMEM((BC * 7, 1728), jnp.float32),   # conv2 row-window LHS
            pltpu.VMEM((BC, 1568), jnp.float32),       # FC LHS
        ],
        compiler_params=pltpu.CompilerParams(
            dimension_semantics=("parallel",)),
    )(x4, t1, t2, wfc_r, b1t, b2t, bfcr)


# ----------------------------------------------------------------------------
# One-time weight preparation (outside the per-call jit) — PyTorch layouts in.
# ----------------------------------------------------------------------------
def prepare_params(params):
    w1, b1, w2, b2, wfc, bfc = [p.astype(jnp.float32) for p in params]

    # conv1 "width-Toeplitz" matrices:
    #   T1[q][kh*32 + c, jj*16 + co] = w1[co, 0, kh, c - 2*jj - q]  (0 <= . <= 4)
    E1 = np.zeros((2, 5, 32, 14), np.float32)
    for q in range(2):
        for kw in range(5):
            for jj in range(14):
                E1[q, kw, 2 * jj + q + kw, jj] = 1.0
    t1 = jnp.einsum('ohw,qwcj->qhcjo', w1[:, 0], jnp.asarray(E1))
    t1 = t1.reshape(2, 160, 224)

    # conv2:
    #   T2[q2][kh*288 + cp*16 + ci, jj2*32 + co] = w2[co, ci, kh, cp - 2*jj2 - q2]
    E2 = np.zeros((2, 5, 18, 7), np.float32)
    for q in range(2):
        for kw in range(5):
            for jj in range(7):
                E2[q, kw, 2 * jj + q + kw, jj] = 1.0
    t2 = jnp.einsum('oihw,qwcj->qhcijo', w2, jnp.asarray(E2))
    t2 = t2.reshape(2, 1440, 224)

    # FC weight: torch flatten order is (co, ii2, jj2); kernel feeds rows in
    # (ii2, jj2, co) order -> permute once here.
    wfc_r = jnp.transpose(wfc.reshape(10, 32, 7, 7), (2, 3, 1, 0)).reshape(1568, 10)

    b1t = jnp.tile(b1, 14).reshape(1, 224)     # [0, jj*16+co]  = b1[co]
    b2t = jnp.tile(b2, 7).reshape(1, 224)      # [0, jj2*32+co] = b2[co]
    bfcr = bfc.reshape(1, 10)
    return (t1, t2, wfc_r, b1t, b2t, bfcr)


# ----------------------------------------------------------------------------
# Forward pass (matches CNN.forward)
# ----------------------------------------------------------------------------
@jax.jit
def cnn_forward(x_nchw, prepared):
    t1, t2, wfc_r, b1t, b2t, bfcr = prepared
    B = x_nchw.shape[0]
    x = x_nchw.reshape(B, 28, 28).astype(jnp.float32)       # squeeze Ci=1
    xp = jnp.pad(x, ((0, 0), (2, 2), (2, 2)))               # (B, 32, 32)
    # Split padded rows mod 4 so every pooled conv1 row reads contiguous slices.
    x4 = xp.reshape(B, 8, 4, 32).transpose(0, 2, 1, 3)      # (B, 4, 8, 32)
    BC = 8 if (B % 8 == 0) else B                           # per-step batch tile
    return _cnn_pallas(x4, t1, t2, wfc_r, b1t, b2t, bfcr, BC=BC)


# ----------------------------------------------------------------------------
# Params (PyTorch layouts) and a pure-JAX reference for verification.
# ----------------------------------------------------------------------------
def init_params(key):
    k1, k2, k3, k4, k5, k6 = jax.random.split(key, 6)
    w1 = jax.random.normal(k1, (16, 1, 5, 5), jnp.float32) * 0.1
    b1 = jax.random.normal(k2, (16,), jnp.float32) * 0.01
    w2 = jax.random.normal(k3, (32, 16, 5, 5), jnp.float32) * 0.05
    b2 = jax.random.normal(k4, (32,), jnp.float32) * 0.01
    wfc = jax.random.normal(k5, (10, 32 * 7 * 7), jnp.float32) * 0.02
    bfc = jax.random.normal(k6, (10,), jnp.float32) * 0.01
    return (w1, b1, w2, b2, wfc, bfc)


def cnn_reference(x, params):
    w1, b1, w2, b2, wfc, bfc = params
    dn = ('NCHW', 'OIHW', 'NCHW')
    y1 = jax.lax.conv_general_dilated(x, w1, (1, 1), ((2, 2), (2, 2)),
                                      dimension_numbers=dn)
    y1 = jnp.maximum(y1 + b1[None, :, None, None], 0.0)
    h1 = jax.lax.reduce_window(y1, -jnp.inf, jax.lax.max,
                               (1, 1, 2, 2), (1, 1, 2, 2), 'VALID')
    y2 = jax.lax.conv_general_dilated(h1, w2, (1, 1), ((2, 2), (2, 2)),
                                      dimension_numbers=dn)
    y2 = jnp.maximum(y2 + b2[None, :, None, None], 0.0)
    h2 = jax.lax.reduce_window(y2, -jnp.inf, jax.lax.max,
                               (1, 1, 2, 2), (1, 1, 2, 2), 'VALID')
    f = h2.reshape(x.shape[0], -1)
    return f @ wfc.T + bfc


if __name__ == "__main__":
    key = jax.random.PRNGKey(0)
    pkey, xkey = jax.random.split(key)
    params = init_params(pkey)
    prepared = prepare_params(params)              # one-time weight re-layout
    # Linear(32*7*7, 10) forces 28x28 spatial input; keep batch small.
    x = jax.random.normal(xkey, (2, 1, 28, 28), jnp.float32)

    out = jax.block_until_ready(cnn_forward(x, prepared))
    ref = jax.block_until_ready(cnn_reference(x, params))

    assert out.shape == (2, 10), out.shape
    assert jnp.allclose(out, ref, atol=2e-3, rtol=2e-3), (out, ref)
    print("KERNEL_OK")
</pallas_src>

<mosaic_0001>
module attributes {stable_mosaic.version = 11 : i64} {
  func.func @_cnn_fused_kernel(%arg0: i32, %arg1: memref<2x4x8x32xf32, #tpu.memory_space<vmem>>, %arg2: memref<2x160x224xf32, #tpu.memory_space<vmem>>, %arg3: memref<2x1440x224xf32, #tpu.memory_space<vmem>>, %arg4: memref<1568x10xf32, #tpu.memory_space<vmem>>, %arg5: memref<1x224xf32, #tpu.memory_space<vmem>>, %arg6: memref<1x224xf32, #tpu.memory_space<vmem>>, %arg7: memref<1x10xf32, #tpu.memory_space<vmem>>, %arg8: memref<2x10xf32, #tpu.memory_space<vmem>>, %arg9: memref<14x256xf32, #tpu.memory_space<vmem>>, %arg10: memref<18x288xf32, #tpu.memory_space<vmem>>, %arg11: memref<18x288xf32, #tpu.memory_space<vmem>>, %arg12: memref<14x1728xf32, #tpu.memory_space<vmem>>, %arg13: memref<2x1568xf32, #tpu.memory_space<vmem>>) attributes {dimension_semantics = [#tpu.dimension_semantics<parallel>], iteration_bounds = array<i64: 1>, scalar_prefetch = 0 : i64, scratch_operands = 5 : i64, tpu.core_type = #tpu.core_type<tc>, window_params = [{transform_indices = @transform_0, window_bounds = array<i64: 2, 4, 8, 32>}, {pipeline_mode = #tpu.pipeline_mode<synchronous>, transform_indices = @transform_1, window_bounds = array<i64: 2, 160, 224>}, {pipeline_mode = #tpu.pipeline_mode<synchronous>, transform_indices = @transform_2, window_bounds = array<i64: 2, 1440, 224>}, {pipeline_mode = #tpu.pipeline_mode<synchronous>, transform_indices = @transform_3, window_bounds = array<i64: 1568, 10>}, {pipeline_mode = #tpu.pipeline_mode<synchronous>, transform_indices = @transform_4, window_bounds = array<i64: 1, 224>}, {pipeline_mode = #tpu.pipeline_mode<synchronous>, transform_indices = @transform_5, window_bounds = array<i64: 1, 224>}, {pipeline_mode = #tpu.pipeline_mode<synchronous>, transform_indices = @transform_6, window_bounds = array<i64: 1, 10>}, {transform_indices = @transform_7, window_bounds = array<i64: 2, 10>}]} {
    %c0 = arith.constant 0 : index
    %c0_0 = arith.constant 0 : index
    %c0_1 = arith.constant 0 : index
    %c0_2 = arith.constant 0 : index
    %0 = vector.load %arg1[%c0, %c0_0, %c0_1, %c0_2] : memref<2x4x8x32xf32, #tpu.memory_space<vmem>>, vector<1x1x7x32xf32>
    %1 = vector.shape_cast %0 : vector<1x1x7x32xf32> to vector<7x32xf32>
    %c0_3 = arith.constant 0 : index
    %c0_4 = arith.constant 0 : index
    %2 = vector.load %arg9[%c0_3, %c0_4] : memref<14x256xf32, #tpu.memory_space<vmem>>, vector<7x32xf32>
    tpu.vector_store %arg9[%c0_3, %c0_4], %1 {strides = array<i32>} : memref<14x256xf32, #tpu.memory_space<vmem>>, vector<7x32xf32>,
    %c0_5 = arith.constant 0 : index
    %c1 = arith.constant 1 : index
    %c0_6 = arith.constant 0 : index
    %c0_7 = arith.constant 0 : index
    %3 = vector.load %arg1[%c0_5, %c1, %c0_6, %c0_7] : memref<2x4x8x32xf32, #tpu.memory_space<vmem>>, vector<1x1x7x32xf32>
    %4 = vector.shape_cast %3 : vector<1x1x7x32xf32> to vector<7x32xf32>
    %c0_8 = arith.constant 0 : index
    %c32 = arith.constant 32 : index
    %5 = vector.load %arg9[%c0_8, %c32] : memref<14x256xf32, #tpu.memory_space<vmem>>, vector<7x32xf32>
    tpu.vector_store %arg9[%c0_8, %c32], %4 {strides = array<i32>} : memref<14x256xf32, #tpu.memory_space<vmem>>, vector<7x32xf32>,
    %c0_9 = arith.constant 0 : index
    %c2 = arith.constant 2 : index
    %c0_10 = arith.constant 0 : index
    %c0_11 = arith.constant 0 : index
    %6 = vector.load %arg1[%c0_9, %c2, %c0_10, %c0_11] : memref<2x4x8x32xf32, #tpu.memory_space<vmem>>, vector<1x1x7x32xf32>
    %7 = vector.shape_cast %6 : vector<1x1x7x32xf32> to vector<7x32xf32>
    %c0_12 = arith.constant 0 : index
    %c64 = arith.constant 64 : index
    %8 = vector.load %arg9[%c0_12, %c64] : memref<14x256xf32, #tpu.memory_space<vmem>>, vector<7x32xf32>
    tpu.vector_store %arg9[%c0_12, %c64], %7 {strides = array<i32>} : memref<14x256xf32, #tpu.memory_space<vmem>>, vector<7x32xf32>,
    %c0_13 = arith.constant 0 : index
    %c3 = arith.constant 3 : index
    %c0_14 = arith.constant 0 : index
    %c0_15 = arith.constant 0 : index
    %9 = vector.load %arg1[%c0_13, %c3, %c0_14, %c0_15] : memref<2x4x8x32xf32, #tpu.memory_space<vmem>>, vector<1x1x7x32xf32>
    %10 = vector.shape_cast %9 : vector<1x1x7x32xf32> to vector<7x32xf32>
    %c0_16 = arith.constant 0 : index
    %c96 = arith.constant 96 : index
    %11 = vector.load %arg9[%c0_16, %c96] : memref<14x256xf32, #tpu.memory_space<vmem>>, vector<7x32xf32>
    tpu.vector_store %arg9[%c0_16, %c96], %10 {strides = array<i32>} : memref<14x256xf32, #tpu.memory_space<vmem>>, vector<7x32xf32>,
    %c0_17 = arith.constant 0 : index
    %c0_18 = arith.constant 0 : index
    %c1_19 = arith.constant 1 : index
    %c0_20 = arith.constant 0 : index
    %12 = vector.load %arg1[%c0_17, %c0_18, %c1_19, %c0_20] : memref<2x4x8x32xf32, #tpu.memory_space<vmem>>, vector<1x1x7x32xf32>
    %13 = vector.shape_cast %12 : vector<1x1x7x32xf32> to vector<7x32xf32>
    %c0_21 = arith.constant 0 : index
    %c128 = arith.constant 128 : index
    %14 = vector.load %arg9[%c0_21, %c128] : memref<14x256xf32, #tpu.memory_space<vmem>>, vector<7x32xf32>
    tpu.vector_store %arg9[%c0_21, %c128], %13 {strides = array<i32>} : memref<14x256xf32, #tpu.memory_space<vmem>>, vector<7x32xf32>,
    %c0_22 = arith.constant 0 : index
    %c1_23 = arith.constant 1 : index
    %c1_24 = arith.constant 1 : index
    %c0_25 = arith.constant 0 : index
    %15 = vector.load %arg1[%c0_22, %c1_23, %c1_24, %c0_25] : memref<2x4x8x32xf32, #tpu.memory_space<vmem>>, vector<1x1x7x32xf32>
    %16 = vector.shape_cast %15 : vector<1x1x7x32xf32> to vector<7x32xf32>
    %c0_26 = arith.constant 0 : index
    %c160 = arith.constant 160 : index
    %17 = vector.load %arg9[%c0_26, %c160] : memref<14x256xf32, #tpu.memory_space<vmem>>, vector<7x32xf32>
    tpu.vector_store %arg9[%c0_26, %c160], %16 {strides = array<i32>} : memref<14x256xf32, #tpu.memory_space<vmem>>, vector<7x32xf32>,
    %c0_27 = arith.constant 0 : index
    %c2_28 = arith.constant 2 : index
    %c1_29 = arith.constant 1 : index
    %c0_30 = arith.constant 0 : index
    %18 = vector.load %arg1[%c0_27, %c2_28, %c1_29, %c0_30] : memref<2x4x8x32xf32, #tpu.memory_space<vmem>>, vector<1x1x7x32xf32>
    %19 = vector.shape_cast %18 : vector<1x1x7x32xf32> to vector<7x32xf32>
    %c0_31 = arith.constant 0 : index
    %c192 = arith.constant 192 : index
    %20 = vector.load %arg9[%c0_31, %c192] : memref<14x256xf32, #tpu.memory_space<vmem>>, vector<7x32xf32>
    tpu.vector_store %arg9[%c0_31, %c192], %19 {strides = array<i32>} : memref<14x256xf32, #tpu.memory_space<vmem>>, vector<7x32xf32>,
    %c0_32 = arith.constant 0 : index
    %c3_33 = arith.constant 3 : index
    %c1_34 = arith.constant 1 : index
    %c0_35 = arith.constant 0 : index
    %21 = vector.load %arg1[%c0_32, %c3_33, %c1_34, %c0_35] : memref<2x4x8x32xf32, #tpu.memory_space<vmem>>, vector<1x1x7x32xf32>
    %22 = vector.shape_cast %21 : vector<1x1x7x32xf32> to vector<7x32xf32>
    %c0_36 = arith.constant 0 : index
    %c224 = arith.constant 224 : index
    %23 = vector.load %arg9[%c0_36, %c224] : memref<14x256xf32, #tpu.memory_space<vmem>>, vector<7x32xf32>
    tpu.vector_store %arg9[%c0_36, %c224], %22 {strides = array<i32>} : memref<14x256xf32, #tpu.memory_space<vmem>>, vector<7x32xf32>,
    %c1_37 = arith.constant 1 : index
    %c0_38 = arith.constant 0 : index
    %c0_39 = arith.constant 0 : index
    %c0_40 = arith.constant 0 : index
    %24 = vector.load %arg1[%c1_37, %c0_38, %c0_39, %c0_40] : memref<2x4x8x32xf32, #tpu.memory_space<vmem>>, vector<1x1x7x32xf32>
    %25 = vector.shape_cast %24 : vector<1x1x7x32xf32> to vector<7x32xf32>
    %c7 = arith.constant 7 : index
    %c0_41 = arith.constant 0 : index
    %26 = vector.load %arg9[%c7, %c0_41] : memref<14x256xf32, #tpu.memory_space<vmem>>, vector<7x32xf32>
    tpu.vector_store %arg9[%c7, %c0_41], %25 {strides = array<i32>} : memref<14x256xf32, #tpu.memory_space<vmem>>, vector<7x32xf32>,
    %c1_42 = arith.constant 1 : index
    %c1_43 = arith.constant 1 : index
    %c0_44 = arith.constant 0 : index
    %c0_45 = arith.constant 0 : index
    %27 = vector.load %arg1[%c1_42, %c1_43, %c0_44, %c0_45] : memref<2x4x8x32xf32, #tpu.memory_space<vmem>>, vector<1x1x7x32xf32>
    %28 = vector.shape_cast %27 : vector<1x1x7x32xf32> to vector<7x32xf32>
    %c7_46 = arith.constant 7 : index
    %c32_47 = arith.constant 32 : index
    %29 = vector.load %arg9[%c7_46, %c32_47] : memref<14x256xf32, #tpu.memory_space<vmem>>, vector<7x32xf32>
    tpu.vector_store %arg9[%c7_46, %c32_47], %28 {strides = array<i32>} : memref<14x256xf32, #tpu.memory_space<vmem>>, vector<7x32xf32>,
    %c1_48 = arith.constant 1 : index
    %c2_49 = arith.constant 2 : index
    %c0_50 = arith.constant 0 : index
    %c0_51 = arith.constant 0 : index
    %30 = vector.load %arg1[%c1_48, %c2_49, %c0_50, %c0_51] : memref<2x4x8x32xf32, #tpu.memory_space<vmem>>, vector<1x1x7x32xf32>
    %31 = vector.shape_cast %30 : vector<1x1x7x32xf32> to vector<7x32xf32>
    %c7_52 = arith.constant 7 : index
    %c64_53 = arith.constant 64 : index
    %32 = vector.load %arg9[%c7_52, %c64_53] : memref<14x256xf32, #tpu.memory_space<vmem>>, vector<7x32xf32>
    tpu.vector_store %arg9[%c7_52, %c64_53], %31 {strides = array<i32>} : memref<14x256xf32, #tpu.memory_space<vmem>>, vector<7x32xf32>,
    %c1_54 = arith.constant 1 : index
    %c3_55 = arith.constant 3 : index
    %c0_56 = arith.constant 0 : index
    %c0_57 = arith.constant 0 : index
    %33 = vector.load %arg1[%c1_54, %c3_55, %c0_56, %c0_57] : memref<2x4x8x32xf32, #tpu.memory_space<vmem>>, vector<1x1x7x32xf32>
    %34 = vector.shape_cast %33 : vector<1x1x7x32xf32> to vector<7x32xf32>
    %c7_58 = arith.constant 7 : index
    %c96_59 = arith.constant 96 : index
    %35 = vector.load %arg9[%c7_58, %c96_59] : memref<14x256xf32, #tpu.memory_space<vmem>>, vector<7x32xf32>
    tpu.vector_store %arg9[%c7_58, %c96_59], %34 {strides = array<i32>} : memref<14x256xf32, #tpu.memory_space<vmem>>, vector<7x32xf32>,
    %c1_60 = arith.constant 1 : index
    %c0_61 = arith.constant 0 : index
    %c1_62 = arith.constant 1 : index
    %c0_63 = arith.constant 0 : index
    %36 = vector.load %arg1[%c1_60, %c0_61, %c1_62, %c0_63] : memref<2x4x8x32xf32, #tpu.memory_space<vmem>>, vector<1x1x7x32xf32>
    %37 = vector.shape_cast %36 : vector<1x1x7x32xf32> to vector<7x32xf32>
    %c7_64 = arith.constant 7 : index
    %c128_65 = arith.constant 128 : index
    %38 = vector.load %arg9[%c7_64, %c128_65] : memref<14x256xf32, #tpu.memory_space<vmem>>, vector<7x32xf32>
    tpu.vector_store %arg9[%c7_64, %c128_65], %37 {strides = array<i32>} : memref<14x256xf32, #tpu.memory_space<vmem>>, vector<7x32xf32>,
    %c1_66 = arith.constant 1 : index
    %c1_67 = arith.constant 1 : index
    %c1_68 = arith.constant 1 : index
    %c0_69 = arith.constant 0 : index
    %39 = vector.load %arg1[%c1_66, %c1_67, %c1_68, %c0_69] : memref<2x4x8x32xf32, #tpu.memory_space<vmem>>, vector<1x1x7x32xf32>
    %40 = vector.shape_cast %39 : vector<1x1x7x32xf32> to vector<7x32xf32>
    %c7_70 = arith.constant 7 : index
    %c160_71 = arith.constant 160 : index
    %41 = vector.load %arg9[%c7_70, %c160_71] : memref<14x256xf32, #tpu.memory_space<vmem>>, vector<7x32xf32>
    tpu.vector_store %arg9[%c7_70, %c160_71], %40 {strides = array<i32>} : memref<14x256xf32, #tpu.memory_space<vmem>>, vector<7x32xf32>,
    %c1_72 = arith.constant 1 : index
    %c2_73 = arith.constant 2 : index
    %c1_74 = arith.constant 1 : index
    %c0_75 = arith.constant 0 : index
    %42 = vector.load %arg1[%c1_72, %c2_73, %c1_74, %c0_75] : memref<2x4x8x32xf32, #tpu.memory_space<vmem>>, vector<1x1x7x32xf32>
    %43 = vector.shape_cast %42 : vector<1x1x7x32xf32> to vector<7x32xf32>
    %c7_76 = arith.constant 7 : index
    %c192_77 = arith.constant 192 : index
    %44 = vector.load %arg9[%c7_76, %c192_77] : memref<14x256xf32, #tpu.memory_space<vmem>>, vector<7x32xf32>
    tpu.vector_store %arg9[%c7_76, %c192_77], %43 {strides = array<i32>} : memref<14x256xf32, #tpu.memory_space<vmem>>, vector<7x32xf32>,
    %c1_78 = arith.constant 1 : index
    %c3_79 = arith.constant 3 : index
    %c1_80 = arith.constant 1 : index
    %c0_81 = arith.constant 0 : index
    %45 = vector.load %arg1[%c1_78, %c3_79, %c1_80, %c0_81] : memref<2x4x8x32xf32, #tpu.memory_space<vmem>>, vector<1x1x7x32xf32>
    %46 = vector.shape_cast %45 : vector<1x1x7x32xf32> to vector<7x32xf32>
    %c7_82 = arith.constant 7 : index
    %c224_83 = arith.constant 224 : index
    %47 = vector.load %arg9[%c7_82, %c224_83] : memref<14x256xf32, #tpu.memory_space<vmem>>, vector<7x32xf32>
    tpu.vector_store %arg9[%c7_82, %c224_83], %46 {strides = array<i32>} : memref<14x256xf32, #tpu.memory_space<vmem>>, vector<7x32xf32>,
    %cst = arith.constant 0.000000e+00 : f32
    %48 = vector.broadcast %cst : f32 to vector<18x288xf32>
    %c0_84 = arith.constant 0 : index
    %c0_85 = arith.constant 0 : index
    %49 = vector.load %arg10[%c0_84, %c0_85] : memref<18x288xf32, #tpu.memory_space<vmem>>, vector<18x288xf32>
    tpu.vector_store %arg10[%c0_84, %c0_85], %48 {strides = array<i32>} : memref<18x288xf32, #tpu.memory_space<vmem>>, vector<18x288xf32>,
    %cst_86 = arith.constant 0.000000e+00 : f32
    %50 = vector.broadcast %cst_86 : f32 to vector<18x288xf32>
    %c0_87 = arith.constant 0 : index
    %c0_88 = arith.constant 0 : index
    %51 = vector.load %arg11[%c0_87, %c0_88] : memref<18x288xf32, #tpu.memory_space<vmem>>, vector<18x288xf32>
    tpu.vector_store %arg11[%c0_87, %c0_88], %50 {strides = array<i32>} : memref<18x288xf32, #tpu.memory_space<vmem>>, vector<18x288xf32>,
    %c0_89 = arith.constant 0 : index
    %c0_90 = arith.constant 0 : index
    %52 = vector.load %arg5[%c0_89, %c0_90] : memref<1x224xf32, #tpu.memory_space<vmem>>, vector<1x224xf32>
    %c0_91 = arith.constant 0 : index
    %c0_92 = arith.constant 0 : index
    %53 = vector.load %arg9[%c0_91, %c0_92] : memref<14x256xf32, #tpu.memory_space<vmem>>, vector<14x160xf32>
    %c0_93 = arith.constant 0 : index
    %c0_94 = arith.constant 0 : index
    %c0_95 = arith.constant 0 : index
    %54 = vector.load %arg2[%c0_93, %c0_94, %c0_95] : memref<2x160x224xf32, #tpu.memory_space<vmem>>, vector<1x160x224xf32>
    %55 = vector.shape_cast %54 : vector<1x160x224xf32> to vector<160x224xf32>
    %cst_96 = arith.constant dense<0.000000e+00> : vector<14x224xf32>
    %56 = tpu.matmul %53, %55, %cst_96 {dimension_numbers = #tpu.dot_dimension_numbers<[1], [0], [0], [1], [0, 0, 1, 1], [], []>} : vector<14x160xf32>, vector<160x224xf32>, vector<14x224xf32> -> vector<14x224xf32>
    %c1_97 = arith.constant 1 : index
    %c0_98 = arith.constant 0 : index
    %c0_99 = arith.constant 0 : index
    %57 = vector.load %arg2[%c1_97, %c0_98, %c0_99] : memref<2x160x224xf32, #tpu.memory_space<vmem>>, vector<1x160x224xf32>
    %58 = vector.shape_cast %57 : vector<1x160x224xf32> to vector<160x224xf32>
    %cst_100 = arith.constant dense<0.000000e+00> : vector<14x224xf32>
    %59 = tpu.matmul %53, %58, %cst_100 {dimension_numbers = #tpu.dot_dimension_numbers<[1], [0], [0], [1], [0, 0, 1, 1], [], []>} : vector<14x160xf32>, vector<160x224xf32>, vector<14x224xf32> -> vector<14x224xf32>
    %60 = arith.maximumf %56, %59 : vector<14x224xf32>
    %c0_101 = arith.constant 0 : index
    %c32_102 = arith.constant 32 : index
    %61 = vector.load %arg9[%c0_101, %c32_102] : memref<14x256xf32, #tpu.memory_space<vmem>>, vector<14x160xf32>
    %c0_103 = arith.constant 0 : index
    %c0_104 = arith.constant 0 : index
    %c0_105 = arith.constant 0 : index
    %62 = vector.load %arg2[%c0_103, %c0_104, %c0_105] : memref<2x160x224xf32, #tpu.memory_space<vmem>>, vector<1x160x224xf32>
    %63 = vector.shape_cast %62 : vector<1x160x224xf32> to vector<160x224xf32>
    %cst_106 = arith.constant dense<0.000000e+00> : vector<14x224xf32>
    %64 = tpu.matmul %61, %63, %cst_106 {dimension_numbers = #tpu.dot_dimension_numbers<[1], [0], [0], [1], [0, 0, 1, 1], [], []>} : vector<14x160xf32>, vector<160x224xf32>, vector<14x224xf32> -> vector<14x224xf32>
    %65 = arith.maximumf %60, %64 : vector<14x224xf32>
    %c1_107 = arith.constant 1 : index
    %c0_108 = arith.constant 0 : index
    %c0_109 = arith.constant 0 : index
    %66 = vector.load %arg2[%c1_107, %c0_108, %c0_109] : memref<2x160x224xf32, #tpu.memory_space<vmem>>, vector<1x160x224xf32>
    %67 = vector.shape_cast %66 : vector<1x160x224xf32> to vector<160x224xf32>
    %cst_110 = arith.constant dense<0.000000e+00> : vector<14x224xf32>
    %68 = tpu.matmul %61, %67, %cst_110 {dimension_numbers = #tpu.dot_dimension_numbers<[1], [0], [0], [1], [0, 0, 1, 1], [], []>} : vector<14x160xf32>, vector<160x224xf32>, vector<14x224xf32> -> vector<14x224xf32>
    %69 = arith.maximumf %65, %68 : vector<14x224xf32>
    %70 = vector.broadcast %52 : vector<1x224xf32> to vector<14x224xf32>
    %71 = arith.addf %69, %70 : vector<14x224xf32>
    %cst_111 = arith.constant 0.000000e+00 : f32
    %72 = vector.broadcast %cst_111 : f32 to vector<14x224xf32>
    %73 = arith.maximumf %71, %72 : vector<14x224xf32>
    %74 = vector.extract_strided_slice %73 {offsets = [0, 0], sizes = [7, 224], strides = [1, 1]} : vector<14x224xf32> to vector<7x224xf32>
    %c1_112 = arith.constant 1 : index
    %c32_113 = arith.constant 32 : index
    %75 = vector.load %arg10[%c1_112, %c32_113] : memref<18x288xf32, #tpu.memory_space<vmem>>, vector<7x224xf32>
    tpu.vector_store %arg10[%c1_112, %c32_113], %74 {strides = array<i32>} : memref<18x288xf32, #tpu.memory_space<vmem>>, vector<7x224xf32>,
    %76 = vector.extract_strided_slice %73 {offsets = [7, 0], sizes = [7, 224], strides = [1, 1]} : vector<14x224xf32> to vector<7x224xf32>
    %c10 = arith.constant 10 : index
    %c32_114 = arith.constant 32 : index
    %77 = vector.load %arg10[%c10, %c32_114] : memref<18x288xf32, #tpu.memory_space<vmem>>, vector<7x224xf32>
    tpu.vector_store %arg10[%c10, %c32_114], %76 {strides = array<i32>} : memref<18x288xf32, #tpu.memory_space<vmem>>, vector<7x224xf32>,
    %c0_115 = arith.constant 0 : index
    %c64_116 = arith.constant 64 : index
    %78 = vector.load %arg9[%c0_115, %c64_116] : memref<14x256xf32, #tpu.memory_space<vmem>>, vector<14x160xf32>
    %c0_117 = arith.constant 0 : index
    %c0_118 = arith.constant 0 : index
    %c0_119 = arith.constant 0 : index
    %79 = vector.load %arg2[%c0_117, %c0_118, %c0_119] : memref<2x160x224xf32, #tpu.memory_space<vmem>>, vector<1x160x224xf32>
    %80 = vector.shape_cast %79 : vector<1x160x224xf32> to vector<160x224xf32>
    %cst_120 = arith.constant dense<0.000000e+00> : vector<14x224xf32>
    %81 = tpu.matmul %78, %80, %cst_120 {dimension_numbers = #tpu.dot_dimension_numbers<[1], [0], [0], [1], [0, 0, 1, 1], [], []>} : vector<14x160xf32>, vector<160x224xf32>, vector<14x224xf32> -> vector<14x224xf32>
    %c1_121 = arith.constant 1 : index
    %c0_122 = arith.constant 0 : index
    %c0_123 = arith.constant 0 : index
    %82 = vector.load %arg2[%c1_121, %c0_122, %c0_123] : memref<2x160x224xf32, #tpu.memory_space<vmem>>, vector<1x160x224xf32>
    %83 = vector.shape_cast %82 : vector<1x160x224xf32> to vector<160x224xf32>
    %cst_124 = arith.constant dense<0.000000e+00> : vector<14x224xf32>
    %84 = tpu.matmul %78, %83, %cst_124 {dimension_numbers = #tpu.dot_dimension_numbers<[1], [0], [0], [1], [0, 0, 1, 1], [], []>} : vector<14x160xf32>, vector<160x224xf32>, vector<14x224xf32> -> vector<14x224xf32>
    %85 = arith.maximumf %81, %84 : vector<14x224xf32>
    %c0_125 = arith.constant 0 : index
    %c96_126 = arith.constant 96 : index
    %86 = vector.load %arg9[%c0_125, %c96_126] : memref<14x256xf32, #tpu.memory_space<vmem>>, vector<14x160xf32>
    %c0_127 = arith.constant 0 : index
    %c0_128 = arith.constant 0 : index
    %c0_129 = arith.constant 0 : index
    %87 = vector.load %arg2[%c0_127, %c0_128, %c0_129] : memref<2x160x224xf32, #tpu.memory_space<vmem>>, vector<1x160x224xf32>
    %88 = vector.shape_cast %87 : vector<1x160x224xf32> to vector<160x224xf32>
    %cst_130 = arith.constant dense<0.000000e+00> : vector<14x224xf32>
    %89 = tpu.matmul %86, %88, %cst_130 {dimension_numbers = #tpu.dot_dimension_numbers<[1], [0], [0], [1], [0, 0, 1, 1], [], []>} : vector<14x160xf32>, vector<160x224xf32>, vector<14x224xf32> -> vector<14x224xf32>
    %90 = arith.maximumf %85, %89 : vector<14x224xf32>
    %c1_131 = arith.constant 1 : index
    %c0_132 = arith.constant 0 : index
    %c0_133 = arith.constant 0 : index
    %91 = vector.load %arg2[%c1_131, %c0_132, %c0_133] : memref<2x160x224xf32, #tpu.memory_space<vmem>>, vector<1x160x224xf32>
    %92 = vector.shape_cast %91 : vector<1x160x224xf32> to vector<160x224xf32>
    %cst_134 = arith.constant dense<0.000000e+00> : vector<14x224xf32>
    %93 = tpu.matmul %86, %92, %cst_134 {dimension_numbers = #tpu.dot_dimension_numbers<[1], [0], [0], [1], [0, 0, 1, 1], [], []>} : vector<14x160xf32>, vector<160x224xf32>, vector<14x224xf32> -> vector<14x224xf32>
    %94 = arith.maximumf %90, %93 : vector<14x224xf32>
    %95 = vector.broadcast %52 : vector<1x224xf32> to vector<14x224xf32>
    %96 = arith.addf %94, %95 : vector<14x224xf32>
    %cst_135 = arith.constant 0.000000e+00 : f32
    %97 = vector.broadcast %cst_135 : f32 to vector<14x224xf32>
    %98 = arith.maximumf %96, %97 : vector<14x224xf32>
    %99 = vector.extract_strided_slice %98 {offsets = [0, 0], sizes = [7, 224], strides = [1, 1]} : vector<14x224xf32> to vector<7x224xf32>
    %c1_136 = arith.constant 1 : index
    %c32_137 = arith.constant 32 : index
    %100 = vector.load %arg11[%c1_136, %c32_137] : memref<18x288xf32, #tpu.memory_space<vmem>>, vector<7x224xf32>
    tpu.vector_store %arg11[%c1_136, %c32_137], %99 {strides = array<i32>} : memref<18x288xf32, #tpu.memory_space<vmem>>, vector<7x224xf32>,
    %101 = vector.extract_strided_slice %98 {offsets = [7, 0], sizes = [7, 224], strides = [1, 1]} : vector<14x224xf32> to vector<7x224xf32>
    %c10_138 = arith.constant 10 : index
    %c32_139 = arith.constant 32 : index
    %102 = vector.load %arg11[%c10_138, %c32_139] : memref<18x288xf32, #tpu.memory_space<vmem>>, vector<7x224xf32>
    tpu.vector_store %arg11[%c10_138, %c32_139], %101 {strides = array<i32>} : memref<18x288xf32, #tpu.memory_space<vmem>>, vector<7x224xf32>,
    %c0_140 = arith.constant 0 : index
    %c0_141 = arith.constant 0 : index
    %103 = vector.load %arg10[%c0_140, %c0_141] : memref<18x288xf32, #tpu.memory_space<vmem>>, vector<7x288xf32>
    %c0_142 = arith.constant 0 : index
    %c0_143 = arith.constant 0 : index
    %104 = vector.load %arg12[%c0_142, %c0_143] : memref<14x1728xf32, #tpu.memory_space<vmem>>, vector<7x288xf32>
    tpu.vector_store %arg12[%c0_142, %c0_143], %103 {strides = array<i32>} : memref<14x1728xf32, #tpu.memory_space<vmem>>, vector<7x288xf32>,
    %c0_144 = arith.constant 0 : index
    %c0_145 = arith.constant 0 : index
    %105 = vector.load %arg11[%c0_144, %c0_145] : memref<18x288xf32, #tpu.memory_space<vmem>>, vector<7x288xf32>
    %c0_146 = arith.constant 0 : index
    %c288 = arith.constant 288 : index
    %106 = vector.load %arg12[%c0_146, %c288] : memref<14x1728xf32, #tpu.memory_space<vmem>>, vector<7x288xf32>
    tpu.vector_store %arg12[%c0_146, %c288], %105 {strides = array<i32>} : memref<14x1728xf32, #tpu.memory_space<vmem>>, vector<7x288xf32>,
    %c1_147 = arith.constant 1 : index
    %c0_148 = arith.constant 0 : index
    %107 = vector.load %arg10[%c1_147, %c0_148] : memref<18x288xf32, #tpu.memory_space<vmem>>, vector<7x288xf32>
    %c0_149 = arith.constant 0 : index
    %c576 = arith.constant 576 : index
    %108 = vector.load %arg12[%c0_149, %c576] : memref<14x1728xf32, #tpu.memory_space<vmem>>, vector<7x288xf32>
    tpu.vector_store %arg12[%c0_149, %c576], %107 {strides = array<i32>} : memref<14x1728xf32, #tpu.memory_space<vmem>>, vector<7x288xf32>,
    %c1_150 = arith.constant 1 : index
    %c0_151 = arith.constant 0 : index
    %109 = vector.load %arg11[%c1_150, %c0_151] : memref<18x288xf32, #tpu.memory_space<vmem>>, vector<7x288xf32>
    %c0_152 = arith.constant 0 : index
    %c864 = arith.constant 864 : index
    %110 = vector.load %arg12[%c0_152, %c864] : memref<14x1728xf32, #tpu.memory_space<vmem>>, vector<7x288xf32>
    tpu.vector_store %arg12[%c0_152, %c864], %109 {strides = array<i32>} : memref<14x1728xf32, #tpu.memory_space<vmem>>, vector<7x288xf32>,
    %c2_153 = arith.constant 2 : index
    %c0_154 = arith.constant 0 : index
    %111 = vector.load %arg10[%c2_153, %c0_154] : memref<18x288xf32, #tpu.memory_space<vmem>>, vector<7x288xf32>
    %c0_155 = arith.constant 0 : index
    %c1152 = arith.constant 1152 : index
    %112 = vector.load %arg12[%c0_155, %c1152] : memref<14x1728xf32, #tpu.memory_space<vmem>>, vector<7x288xf32>
    tpu.vector_store %arg12[%c0_155, %c1152], %111 {strides = array<i32>} : memref<14x1728xf32, #tpu.memory_space<vmem>>, vector<7x288xf32>,
    %c2_156 = arith.constant 2 : index
    %c0_157 = arith.constant 0 : index
    %113 = vector.load %arg11[%c2_156, %c0_157] : memref<18x288xf32, #tpu.memory_space<vmem>>, vector<7x288xf32>
    %c0_158 = arith.constant 0 : index
    %c1440 = arith.constant 1440 : index
    %114 = vector.load %arg12[%c0_158, %c1440] : memref<14x1728xf32, #tpu.memory_space<vmem>>, vector<7x288xf32>
    tpu.vector_store %arg12[%c0_158, %c1440], %113 {strides = array<i32>} : memref<14x1728xf32, #tpu.memory_space<vmem>>, vector<7x288xf32>,
    %c9 = arith.constant 9 : index
    %c0_159 = arith.constant 0 : index
    %115 = vector.load %arg10[%c9, %c0_159] : memref<18x288xf32, #tpu.memory_space<vmem>>, vector<7x288xf32>
    %c7_160 = arith.constant 7 : index
    %c0_161 = arith.constant 0 : index
    %116 = vector.load %arg12[%c7_160, %c0_161] : memref<14x1728xf32, #tpu.memory_space<vmem>>, vector<7x288xf32>
    tpu.vector_store %arg12[%c7_160, %c0_161], %115 {strides = array<i32>} : memref<14x1728xf32, #tpu.memory_space<vmem>>, vector<7x288xf32>,
    %c9_162 = arith.constant 9 : index
    %c0_163 = arith.constant 0 : index
    %117 = vector.load %arg11[%c9_162, %c0_163] : memref<18x288xf32, #tpu.memory_space<vmem>>, vector<7x288xf32>
    %c7_164 = arith.constant 7 : index
    %c288_165 = arith.constant 288 : index
    %118 = vector.load %arg12[%c7_164, %c288_165] : memref<14x1728xf32, #tpu.memory_space<vmem>>, vector<7x288xf32>
    tpu.vector_store %arg12[%c7_164, %c288_165], %117 {strides = array<i32>} : memref<14x1728xf32, #tpu.memory_space<vmem>>, vector<7x288xf32>,
    %c10_166 = arith.constant 10 : index
    %c0_167 = arith.constant 0 : index
    %119 = vector.load %arg10[%c10_166, %c0_167] : memref<18x288xf32, #tpu.memory_space<vmem>>, vector<7x288xf32>
    %c7_168 = arith.constant 7 : index
    %c576_169 = arith.constant 576 : index
    %120 = vector.load %arg12[%c7_168, %c576_169] : memref<14x1728xf32, #tpu.memory_space<vmem>>, vector<7x288xf32>
    tpu.vector_store %arg12[%c7_168, %c576_169], %119 {strides = array<i32>} : memref<14x1728xf32, #tpu.memory_space<vmem>>, vector<7x288xf32>,
    %c10_170 = arith.constant 10 : index
    %c0_171 = arith.constant 0 : index
    %121 = vector.load %arg11[%c10_170, %c0_171] : memref<18x288xf32, #tpu.memory_space<vmem>>, vector<7x288xf32>
    %c7_172 = arith.constant 7 : index
    %c864_173 = arith.constant 864 : index
    %122 = vector.load %arg12[%c7_172, %c864_173] : memref<14x1728xf32, #tpu.memory_space<vmem>>, vector<7x288xf32>
    tpu.vector_store %arg12[%c7_172, %c864_173], %121 {strides = array<i32>} : memref<14x1728xf32, #tpu.memory_space<vmem>>, vector<7x288xf32>,
    %c11 = arith.constant 11 : index
    %c0_174 = arith.constant 0 : index
    %123 = vector.load %arg10[%c11, %c0_174] : memref<18x288xf32, #tpu.memory_space<vmem>>, vector<7x288xf32>
    %c7_175 = arith.constant 7 : index
    %c1152_176 = arith.constant 1152 : index
    %124 = vector.load %arg12[%c7_175, %c1152_176] : memref<14x1728xf32, #tpu.memory_space<vmem>>, vector<7x288xf32>
    tpu.vector_store %arg12[%c7_175, %c1152_176], %123 {strides = array<i32>} : memref<14x1728xf32, #tpu.memory_space<vmem>>, vector<7x288xf32>,
    %c11_177 = arith.constant 11 : index
    %c0_178 = arith.constant 0 : index
    %125 = vector.load %arg11[%c11_177, %c0_178] : memref<18x288xf32, #tpu.memory_space<vmem>>, vector<7x288xf32>
    %c7_179 = arith.constant 7 : index
    %c1440_180 = arith.constant 1440 : index
    %126 = vector.load %arg12[%c7_179, %c1440_180] : memref<14x1728xf32, #tpu.memory_space<vmem>>, vector<7x288xf32>
    tpu.vector_store %arg12[%c7_179, %c1440_180], %125 {strides = array<i32>} : memref<14x1728xf32, #tpu.memory_space<vmem>>, vector<7x288xf32>,
    %c0_181 = arith.constant 0 : index
    %c0_182 = arith.constant 0 : index
    %127 = vector.load %arg6[%c0_181, %c0_182] : memref<1x224xf32, #tpu.memory_space<vmem>>, vector<1x224xf32>
    %c0_183 = arith.constant 0 : index
    %c0_184 = arith.constant 0 : index
    %128 = vector.load %arg12[%c0_183, %c0_184] : memref<14x1728xf32, #tpu.memory_space<vmem>>, vector<14x1440xf32>
    %c0_185 = arith.constant 0 : index
    %c0_186 = arith.constant 0 : index
    %c0_187 = arith.constant 0 : index
    %129 = vector.load %arg3[%c0_185, %c0_186, %c0_187] : memref<2x1440x224xf32, #tpu.memory_space<vmem>>, vector<1x1440x224xf32>
    %130 = vector.shape_cast %129 : vector<1x1440x224xf32> to vector<1440x224xf32>
    %cst_188 = arith.constant dense<0.000000e+00> : vector<14x224xf32>
    %131 = tpu.matmul %128, %130, %cst_188 {dimension_numbers = #tpu.dot_dimension_numbers<[1], [0], [0], [1], [0, 0, 1, 1], [], []>} : vector<14x1440xf32>, vector<1440x224xf32>, vector<14x224xf32> -> vector<14x224xf32>
    %c1_189 = arith.constant 1 : index
    %c0_190 = arith.constant 0 : index
    %c0_191 = arith.constant 0 : index
    %132 = vector.load %arg3[%c1_189, %c0_190, %c0_191] : memref<2x1440x224xf32, #tpu.memory_space<vmem>>, vector<1x1440x224xf32>
    %133 = vector.shape_cast %132 : vector<1x1440x224xf32> to vector<1440x224xf32>
    %cst_192 = arith.constant dense<0.000000e+00> : vector<14x224xf32>
    %134 = tpu.matmul %128, %133, %cst_192 {dimension_numbers = #tpu.dot_dimension_numbers<[1], [0], [0], [1], [0, 0, 1, 1], [], []>} : vector<14x1440xf32>, vector<1440x224xf32>, vector<14x224xf32> -> vector<14x224xf32>
    %135 = arith.maximumf %131, %134 : vector<14x224xf32>
    %c0_193 = arith.constant 0 : index
    %c288_194 = arith.constant 288 : index
    %136 = vector.load %arg12[%c0_193, %c288_194] : memref<14x1728xf32, #tpu.memory_space<vmem>>, vector<14x1440xf32>
    %c0_195 = arith.constant 0 : index
    %c0_196 = arith.constant 0 : index
    %c0_197 = arith.constant 0 : index
    %137 = vector.load %arg3[%c0_195, %c0_196, %c0_197] : memref<2x1440x224xf32, #tpu.memory_space<vmem>>, vector<1x1440x224xf32>
    %138 = vector.shape_cast %137 : vector<1x1440x224xf32> to vector<1440x224xf32>
    %cst_198 = arith.constant dense<0.000000e+00> : vector<14x224xf32>
    %139 = tpu.matmul %136, %138, %cst_198 {dimension_numbers = #tpu.dot_dimension_numbers<[1], [0], [0], [1], [0, 0, 1, 1], [], []>} : vector<14x1440xf32>, vector<1440x224xf32>, vector<14x224xf32> -> vector<14x224xf32>
    %140 = arith.maximumf %135, %139 : vector<14x224xf32>
    %c1_199 = arith.constant 1 : index
    %c0_200 = arith.constant 0 : index
    %c0_201 = arith.constant 0 : index
    %141 = vector.load %arg3[%c1_199, %c0_200, %c0_201] : memref<2x1440x224xf32, #tpu.memory_space<vmem>>, vector<1x1440x224xf32>
    %142 = vector.shape_cast %141 : vector<1x1440x224xf32> to vector<1440x224xf32>
    %cst_202 = arith.constant dense<0.000000e+00> : vector<14x224xf32>
    %143 = tpu.matmul %136, %142, %cst_202 {dimension_numbers = #tpu.dot_dimension_numbers<[1], [0], [0], [1], [0, 0, 1, 1], [], []>} : vector<14x1440xf32>, vector<1440x224xf32>, vector<14x224xf32> -> vector<14x224xf32>
    %144 = arith.maximumf %140, %143 : vector<14x224xf32>
    %145 = vector.broadcast %127 : vector<1x224xf32> to vector<14x224xf32>
    %146 = arith.addf %144, %145 : vector<14x224xf32>
    %cst_203 = arith.constant 0.000000e+00 : f32
    %147 = vector.broadcast %cst_203 : f32 to vector<14x224xf32>
    %148 = arith.maximumf %146, %147 : vector<14x224xf32>
    %149 = vector.extract_strided_slice %148 {offsets = [0, 0], sizes = [1, 224], strides = [1, 1]} : vector<14x224xf32> to vector<1x224xf32>
    %c0_204 = arith.constant 0 : index
    %c0_205 = arith.constant 0 : index
    %150 = vector.load %arg13[%c0_204, %c0_205] : memref<2x1568xf32, #tpu.memory_space<vmem>>, vector<1x224xf32>
    tpu.vector_store %arg13[%c0_204, %c0_205], %149 {strides = array<i32>} : memref<2x1568xf32, #tpu.memory_space<vmem>>, vector<1x224xf32>,
    %151 = vector.extract_strided_slice %148 {offsets = [1, 0], sizes = [1, 224], strides = [1, 1]} : vector<14x224xf32> to vector<1x224xf32>
    %c0_206 = arith.constant 0 : index
    %c224_207 = arith.constant 224 : index
    %152 = vector.load %arg13[%c0_206, %c224_207] : memref<2x1568xf32, #tpu.memory_space<vmem>>, vector<1x224xf32>
    tpu.vector_store %arg13[%c0_206, %c224_207], %151 {strides = array<i32>} : memref<2x1568xf32, #tpu.memory_space<vmem>>, vector<1x224xf32>,
    %153 = vector.extract_strided_slice %148 {offsets = [2, 0], sizes = [1, 224], strides = [1, 1]} : vector<14x224xf32> to vector<1x224xf32>
    %c0_208 = arith.constant 0 : index
    %c448 = arith.constant 448 : index
    %154 = vector.load %arg13[%c0_208, %c448] : memref<2x1568xf32, #tpu.memory_space<vmem>>, vector<1x224xf32>
    tpu.vector_store %arg13[%c0_208, %c448], %153 {strides = array<i32>} : memref<2x1568xf32, #tpu.memory_space<vmem>>, vector<1x224xf32>,
    %155 = vector.extract_strided_slice %148 {offsets = [3, 0], sizes = [1, 224], strides = [1, 1]} : vector<14x224xf32> to vector<1x224xf32>
    %c0_209 = arith.constant 0 : index
    %c672 = arith.constant 672 : index
    %156 = vector.load %arg13[%c0_209, %c672] : memref<2x1568xf32, #tpu.memory_space<vmem>>, vector<1x224xf32>
    tpu.vector_store %arg13[%c0_209, %c672], %155 {strides = array<i32>} : memref<2x1568xf32, #tpu.memory_space<vmem>>, vector<1x224xf32>,
    %157 = vector.extract_strided_slice %148 {offsets = [4, 0], sizes = [1, 224], strides = [1, 1]} : vector<14x224xf32> to vector<1x224xf32>
    %c0_210 = arith.constant 0 : index
    %c896 = arith.constant 896 : index
    %158 = vector.load %arg13[%c0_210, %c896] : memref<2x1568xf32, #tpu.memory_space<vmem>>, vector<1x224xf32>
    tpu.vector_store %arg13[%c0_210, %c896], %157 {strides = array<i32>} : memref<2x1568xf32, #tpu.memory_space<vmem>>, vector<1x224xf32>,
    %159 = vector.extract_strided_slice %148 {offsets = [5, 0], sizes = [1, 224], strides = [1, 1]} : vector<14x224xf32> to vector<1x224xf32>
    %c0_211 = arith.constant 0 : index
    %c1120 = arith.constant 1120 : index
    %160 = vector.load %arg13[%c0_211, %c1120] : memref<2x1568xf32, #tpu.memory_space<vmem>>, vector<1x224xf32>
    tpu.vector_store %arg13[%c0_211, %c1120], %159 {strides = array<i32>} : memref<2x1568xf32, #tpu.memory_space<vmem>>, vector<1x224xf32>,
    %161 = vector.extract_strided_slice %148 {offsets = [6, 0], sizes = [1, 224], strides = [1, 1]} : vector<14x224xf32> to vector<1x224xf32>
    %c0_212 = arith.constant 0 : index
    %c1344 = arith.constant 1344 : index
    %162 = vector.load %arg13[%c0_212, %c1344] : memref<2x1568xf32, #tpu.memory_space<vmem>>, vector<1x224xf32>
    tpu.vector_store %arg13[%c0_212, %c1344], %161 {strides = array<i32>} : memref<2x1568xf32, #tpu.memory_space<vmem>>, vector<1x224xf32>,
    %163 = vector.extract_strided_slice %148 {offsets = [7, 0], sizes = [1, 224], strides = [1, 1]} : vector<14x224xf32> to vector<1x224xf32>
    %c1_213 = arith.constant 1 : index
    %c0_214 = arith.constant 0 : index
    %164 = vector.load %arg13[%c1_213, %c0_214] : memref<2x1568xf32, #tpu.memory_space<vmem>>, vector<1x224xf32>
    tpu.vector_store %arg13[%c1_213, %c0_214], %163 {strides = array<i32>} : memref<2x1568xf32, #tpu.memory_space<vmem>>, vector<1x224xf32>,
    %165 = vector.extract_strided_slice %148 {offsets = [8, 0], sizes = [1, 224], strides = [1, 1]} : vector<14x224xf32> to vector<1x224xf32>
    %c1_215 = arith.constant 1 : index
    %c224_216 = arith.constant 224 : index
    %166 = vector.load %arg13[%c1_215, %c224_216] : memref<2x1568xf32, #tpu.memory_space<vmem>>, vector<1x224xf32>
    tpu.vector_store %arg13[%c1_215, %c224_216], %165 {strides = array<i32>} : memref<2x1568xf32, #tpu.memory_space<vmem>>, vector<1x224xf32>,
    %167 = vector.extract_strided_slice %148 {offsets = [9, 0], sizes = [1, 224], strides = [1, 1]} : vector<14x224xf32> to vector<1x224xf32>
    %c1_217 = arith.constant 1 : index
    %c448_218 = arith.constant 448 : index
    %168 = vector.load %arg13[%c1_217, %c448_218] : memref<2x1568xf32, #tpu.memory_space<vmem>>, vector<1x224xf32>
    tpu.vector_store %arg13[%c1_217, %c448_218], %167 {strides = array<i32>} : memref<2x1568xf32, #tpu.memory_space<vmem>>, vector<1x224xf32>,
    %169 = vector.extract_strided_slice %148 {offsets = [10, 0], sizes = [1, 224], strides = [1, 1]} : vector<14x224xf32> to vector<1x224xf32>
    %c1_219 = arith.constant 1 : index
    %c672_220 = arith.constant 672 : index
    %170 = vector.load %arg13[%c1_219, %c672_220] : memref<2x1568xf32, #tpu.memory_space<vmem>>, vector<1x224xf32>
    tpu.vector_store %arg13[%c1_219, %c672_220], %169 {strides = array<i32>} : memref<2x1568xf32, #tpu.memory_space<vmem>>, vector<1x224xf32>,
    %171 = vector.extract_strided_slice %148 {offsets = [11, 0], sizes = [1, 224], strides = [1, 1]} : vector<14x224xf32> to vector<1x224xf32>
    %c1_221 = arith.constant 1 : index
    %c896_222 = arith.constant 896 : index
    %172 = vector.load %arg13[%c1_221, %c896_222] : memref<2x1568xf32, #tpu.memory_space<vmem>>, vector<1x224xf32>
    tpu.vector_store %arg13[%c1_221, %c896_222], %171 {strides = array<i32>} : memref<2x1568xf32, #tpu.memory_space<vmem>>, vector<1x224xf32>,
    %173 = vector.extract_strided_slice %148 {offsets = [12, 0], sizes = [1, 224], strides = [1, 1]} : vector<14x224xf32> to vector<1x224xf32>
    %c1_223 = arith.constant 1 : index
    %c1120_224 = arith.constant 1120 : index
    %174 = vector.load %arg13[%c1_223, %c1120_224] : memref<2x1568xf32, #tpu.memory_space<vmem>>, vector<1x224xf32>
    tpu.vector_store %arg13[%c1_223, %c1120_224], %173 {strides = array<i32>} : memref<2x1568xf32, #tpu.memory_space<vmem>>, vector<1x224xf32>,
    %175 = vector.extract_strided_slice %148 {offsets = [13, 0], sizes = [1, 224], strides = [1, 1]} : vector<14x224xf32> to vector<1x224xf32>
    %c1_225 = arith.constant 1 : index
    %c1344_226 = arith.constant 1344 : index
    %176 = vector.load %arg13[%c1_225, %c1344_226] : memref<2x1568xf32, #tpu.memory_space<vmem>>, vector<1x224xf32>
    tpu.vector_store %arg13[%c1_225, %c1344_226], %175 {strides = array<i32>} : memref<2x1568xf32, #tpu.memory_space<vmem>>, vector<1x224xf32>,
    %c0_227 = arith.constant 0 : index
    %c0_228 = arith.constant 0 : index
    %177 = vector.load %arg13[%c0_227, %c0_228] : memref<2x1568xf32, #tpu.memory_space<vmem>>, vector<2x1568xf32>
    %c0_229 = arith.constant 0 : index
    %c0_230 = arith.constant 0 : index
    %178 = vector.load %arg4[%c0_229, %c0_230] : memref<1568x10xf32, #tpu.memory_space<vmem>>, vector<1568x10xf32>
    %cst_231 = arith.constant dense<0.000000e+00> : vector<2x10xf32>
    %179 = tpu.matmul %177, %178, %cst_231 {dimension_numbers = #tpu.dot_dimension_numbers<[1], [0], [0], [1], [0, 0, 1, 1], [], []>} : vector<2x1568xf32>, vector<1568x10xf32>, vector<2x10xf32> -> vector<2x10xf32>
    %c0_232 = arith.constant 0 : index
    %c0_233 = arith.constant 0 : index
    %180 = vector.load %arg7[%c0_232, %c0_233] : memref<1x10xf32, #tpu.memory_space<vmem>>, vector<1x10xf32>
    %181 = vector.broadcast %180 : vector<1x10xf32> to vector<2x10xf32>
    %182 = arith.addf %179, %181 : vector<2x10xf32>
    %c0_234 = arith.constant 0 : index
    %c0_235 = arith.constant 0 : index
    %183 = vector.load %arg8[%c0_234, %c0_235] : memref<2x10xf32, #tpu.memory_space<vmem>>, vector<2x10xf32>
    tpu.vector_store %arg8[%c0_234, %c0_235], %182 {strides = array<i32>} : memref<2x10xf32, #tpu.memory_space<vmem>>, vector<2x10xf32>,
    return
  }
  func.func @transform_0(%arg0: i32) -> (i32, i32, i32, i32) {
    %c0_i32 = arith.constant 0 : i32
    %c0_i32_0 = arith.constant 0 : i32
    %c0_i32_1 = arith.constant 0 : i32
    %c0_i32_2 = arith.constant 0 : i32
    return %arg0, %c0_i32, %c0_i32_0, %c0_i32_1 : i32, i32, i32, i32
  }
  func.func @transform_1(%arg0: i32) -> (i32, i32, i32) {
    %c0_i32 = arith.constant 0 : i32
    %c0_i32_0 = arith.constant 0 : i32
    %c0_i32_1 = arith.constant 0 : i32
    %c0_i32_2 = arith.constant 0 : i32
    return %c0_i32, %c0_i32_0, %c0_i32_1 : i32, i32, i32
  }
  func.func @transform_2(%arg0: i32) -> (i32, i32, i32) {
    %c0_i32 = arith.constant 0 : i32
    %c0_i32_0 = arith.constant 0 : i32
    %c0_i32_1 = arith.constant 0 : i32
    %c0_i32_2 = arith.constant 0 : i32
    return %c0_i32, %c0_i32_0, %c0_i32_1 : i32, i32, i32
  }
  func.func @transform_3(%arg0: i32) -> (i32, i32) {
    %c0_i32 = arith.constant 0 : i32
    %c0_i32_0 = arith.constant 0 : i32
    %c0_i32_1 = arith.constant 0 : i32
    return %c0_i32, %c0_i32_0 : i32, i32
  }
  func.func @transform_4(%arg0: i32) -> (i32, i32) {
    %c0_i32 = arith.constant 0 : i32
    %c0_i32_0 = arith.constant 0 : i32
    %c0_i32_1 = arith.constant 0 : i32
    return %c0_i32, %c0_i32_0 : i32, i32
  }
  func.func @transform_5(%arg0: i32) -> (i32, i32) {
    %c0_i32 = arith.constant 0 : i32
    %c0_i32_0 = arith.constant 0 : i32
    %c0_i32_1 = arith.constant 0 : i32
    return %c0_i32, %c0_i32_0 : i32, i32
  }
  func.func @transform_6(%arg0: i32) -> (i32, i32) {
    %c0_i32 = arith.constant 0 : i32
    %c0_i32_0 = arith.constant 0 : i32
    %c0_i32_1 = arith.constant 0 : i32
    return %c0_i32, %c0_i32_0 : i32, i32
  }
  func.func @transform_7(%arg0: i32) -> (i32, i32) {
    %c0_i32 = arith.constant 0 : i32
    %c0_i32_0 = arith.constant 0 : i32
    return %arg0, %c0_i32 : i32, i32
  }
}

</mosaic_0001>

<bundles_post_ra>
// kernel: cnn_forward.1
= control target key start
LH: loop header
LB: loop body
LE: loop exit
PB: predicated region body
PF: predicated region fallthrough
CT: control target
= control target key end

     0   :  { %s8111_s28 = smov 32   ;;  %s8112_s20 = smov 64   ;;  %vm28_vm0 = vcmask 260096   ;;  %vm79_vm1 = vcmask 261127   ;;  %vm81_vm2 = vcmask 259072   ;;  %s13636_s0 = inlined_call_operand.vmem [shape: f32[2,4,8,32], index: 0, kind: input, shape index: {}]   ;;  %s13637_s1 = inlined_call_operand.vmem [shape: f32[2,160,224], index: 1, kind: input, shape index: {}]   ;;  %s13638_s2 = inlined_call_operand.vmem [shape: f32[2,1440,224], index: 2, kind: input, shape index: {}]   ;;  %s13639_s3 = inlined_call_operand.vmem [shape: f32[1568,10], index: 3, kind: input, shape index: {}]   ;;  %s13640_s4 = inlined_call_operand.vmem [shape: f32[1,224], index: 4, kind: input, shape index: {}]   ;;  %s13641_s5 = inlined_call_operand.vmem [shape: f32[1,224], index: 5, kind: input, shape index: {}]   ;;  %s13642_s6 = inlined_call_operand.vmem [shape: f32[1,10], index: 6, kind: input, shape index: {}]   ;;  %s13643_s7 = inlined_call_operand.hbm [shape: f32[2,10], index: 7, kind: output, shape index: {}]  }
   0x1   :  { %v5280_v0 = vld [vmem:[%s13636_s0 + $0x8] sm:$0x7f]  ;;  %v5281_v7 = vld [vmem:[%s13636_s0 + $0x10] sm:$0x7f]  ;;  %v174_v9 = vld [vmem:[%s13637_s1 + $0x18] sm:$0xff]  ;;  %s8113_s13 = smov 96  }
   0x2   :  { %v5287_v1 = vld [vmem:[%s13636_s0 + $0x28] sm:$0x7f]  ;;  %33 = vrot.lane.b32.xlu0 %v5280_v0, %s8111_s28  ;;  %v5288_v8 = vld [vmem:[%s13636_s0 + $0x30] sm:$0x7f]  ;;  %v5299_v14 = vld [vmem:[%s13637_s1 + $0x158] sm:$0xff] }
   0x3   :  { %v86_v2 = vrot.slane %v5287_v1, 1  ;;  %v5291_v3 = vld [vmem:[%s13636_s0 + $0x29] sm:$0x7f]  ;;  %v5284_v11 = vld [vmem:[%s13636_s0 + $0x11] sm:$0x7f]  ;;  %v171_v15 = vld [vmem:[%s13637_s1] sm:$0xff] }
   0x4   :  { %v5283_v4 = vld [vmem:[%s13636_s0 + $0x9] sm:$0x7f]  ;;  %v124_v5 = vrot.slane %v5291_v3, 1  ;;  %v8196_v12 = vld [vmem:[%s13636_s0 + $0x31] sm:$0x7f]  ;;  %v5296_v19 = vld [vmem:[%s13637_s1 + $0x140] sm:$0xff] }
   0x5   :  { %87 = vrot.lane.b32.xlu1 %v86_v2, %s8111_s28  ;;  %v172_v6 = vld [vmem:[%s13637_s1 + $0x8] sm:$0xff]  ;;  %v173_v16 = vld [vmem:[%s13637_s1 + $0x10] sm:$0xff]  ;;  %v178_v23 = vld [vmem:[%s13637_s1 + $0x38] sm:$0xff]  ;;  %v97_v26 = vrot.slane %v5288_v8, 1  ;;  %v132_v36 = vrot.slane %v8196_v12, 1 }
   0x6   :  { %58 = vrot.lane.b32.xlu0 %v5283_v4, %s8111_s28  ;;  %v5297_v10 = vld [vmem:[%s13637_s1 + $0x148] sm:$0xff]  ;;  %v8198_v13 = vpack.c.bf16 %v174_v9, %v172_v6  ;;  %v8212_v18 = vpack.c.bf16 %v173_v16, %v171_v15  ;;  %v5298_v20 = vld [vmem:[%s13637_s1 + $0x150] sm:$0xff]  ;;  %v5303_v25 = vld [vmem:[%s13637_s1 + $0x178] sm:$0xff] }
   0x7   :  { %v8210_v17 = vpack.c.bf16 %v5299_v14, %v5297_v10  ;;  %v176_v21 = vld [vmem:[%s13637_s1 + $0x28] sm:$0xff]  ;;  %v8224_v22 = vpack.c.bf16 %v5298_v20, %v5296_v19  ;;  %v175_v29 = vld [vmem:[%s13637_s1 + $0x20] sm:$0xff]  ;;  %v177_v30 = vld [vmem:[%s13637_s1 + $0x30] sm:$0xff] }
   0x8   :  { %5988 = vmatprep.subr.bf16.mxu0 %v8198_v13  ;;  %v5301_v24 = vld [vmem:[%s13637_s1 + $0x168] sm:$0xff]  ;;  %v8237_v27 = vpack.c.bf16 %v178_v23, %v176_v21  ;;  %v5300_v31 = vld [vmem:[%s13637_s1 + $0x160] sm:$0xff]  ;;  %v8252_v32 = vpack.c.bf16 %v177_v30, %v175_v29  ;;  %v5302_v33 = vld [vmem:[%s13637_s1 + $0x170] sm:$0xff] }
   0x9   :  { %125 = vrot.lane.b32.xlu1 %v124_v5, %s8111_s28  ;;  %6028 = vmatprep.subr.bf16.mxu1 %v8210_v17  ;;  %v8239_v28 = vpack.c.bf16 %v5303_v25, %v5301_v24  ;;  %v180_v34 = vld [vmem:[%s13637_s1 + $0x48] sm:$0xff]  ;;  %v182_v35 = vld [vmem:[%s13637_s1 + $0x58] sm:$0xff]  ;;  %v8266_v37 = vpack.c.bf16 %v5302_v33, %v5300_v31  ;;  %v27_v41 = vld [vmem:[%s13636_s0] sm:$0x7f] }
   0xa   :  { %41 = vrot.lane.b32.xlu0 %v5281_v7, %s8112_s20  ;;  %5990 = vmatpush1.bf16.msra.mxu0 %v8212_v18  ;;  %v8268_v38 = vpack.c.bf16 %v182_v35, %v180_v34  ;;  %v5305_v39 = vld [vmem:[%s13637_s1 + $0x188] sm:$0xff]  ;;  %v5307_v40 = vld [vmem:[%s13637_s1 + $0x198] sm:$0xff]  ;;  %29 = vst.msk [vmem:[#allocation2] sm:$0x7f] %vm28_vm0, %v27_v41  ;;  %v179_v45 = vld [vmem:[%s13637_s1 + $0x40] sm:$0xff] }
   0xb   :  { %6030 = vmatpush1.bf16.msra.mxu1 %v8224_v22  ;;  %5992 = vmatprep.subr.bf16.mxu0 %v8237_v27  ;;  %v5282_v42 = vld [vmem:[%s13636_s0 + $0x18] sm:$0x7f]  ;;  %v8288_v44 = vpack.c.bf16 %v5307_v40, %v5305_v39  ;;  %v181_v46 = vld [vmem:[%s13637_s1 + $0x50] sm:$0xff]  ;;  %v5304_v47 = vld [vmem:[%s13637_s1 + $0x180] sm:$0xff] }
   0xc   :  { %v8285_v43 = vld [vmem:[%s13636_s0 + $0x38] sm:$0x7f]  ;;  %6032 = vmatprep.subr.bf16.mxu1 %v8239_v28  ;;  %v5306_v48 = vld [vmem:[%s13637_s1 + $0x190] sm:$0xff]  ;;  %v5286_v49 = vld [vmem:[%s13636_s0 + $0x20] sm:$0x7f]  ;;  %v8318_v53 = vpack.c.bf16 %v181_v46, %v179_v45 }
   0xd   :  { %64 = vrot.lane.b32.xlu1 %v5284_v11, %s8112_s20  ;;  %v184_v50 = vld [vmem:[%s13637_s1 + $0x68] sm:$0xff]  ;;  %v5285_v51 = vld [vmem:[%s13636_s0 + $0x19] sm:$0x7f]  ;;  %v8320_v54 = vpack.c.bf16 %v5306_v48, %v5304_v47  ;;  %v77_v55 = vrot.slane %v5286_v49, 1  ;;  %v54_v60 = vld [vmem:[%s13636_s0 + $0x1] sm:$0x7f] }
   0xe   :  { %98 = vrot.lane.b32.xlu0 %v97_v26, %s8112_s20  ;;  %v5293_v52 = vld [vmem:[%s13636_s0 + $0x39] sm:$0x7f]  ;;  %5994 = vmatpush1.bf16.msra.mxu0 %v8252_v32  ;;  %v5309_v57 = vld [vmem:[%s13637_s1 + $0x1a8] sm:$0xff]  ;;  %v183_v61 = vld [vmem:[%s13637_s1 + $0x60] sm:$0xff]  ;;  %55 = vst.msk [vmem:[#allocation2 + $0x8] sm:$0x7f] %vm28_vm0, %v54_v60 }
   0xf   :  { %6034 = vmatpush1.bf16.msra.mxu1 %v8266_v37  ;;  %v186_v56 = vld [vmem:[%s13637_s1 + $0x78] sm:$0xff]  ;;  %5996 = vmatprep.subr.bf16.mxu0 %v8268_v38  ;;  %v185_v62 = vld [vmem:[%s13637_s1 + $0x70] sm:$0xff]  ;;  %80 = vst.msk [vmem:[#allocation2] sm:$0x80] %vm79_vm1, %v77_v55  ;;  %v5308_v0 = vld [vmem:[%s13637_s1 + $0x1a0] sm:$0xff]  ;;  %v108_v3 = vrot.slane %v8285_v43, 1 }
  0x10   :  { %v5311_v58 = vld [vmem:[%s13637_s1 + $0x1b8] sm:$0xff]  ;;  %v8333_v59 = vpack.c.bf16 %v186_v56, %v184_v50  ;;  %6036 = vmatprep.subr.bf16.mxu1 %v8288_v44  ;;  %82 = vst.msk [vmem:[#allocation2 + $0x10] sm:$0x3f] %vm81_vm2, %v77_v55  ;;  %v5310_v1 = vld [vmem:[%s13637_s1 + $0x1b0] sm:$0xff]  ;;  %v5290_v2 = vld [vmem:[%s13636_s0 + $0x21] sm:$0x7f]  ;;  %v8372_v8 = vpack.c.bf16 %v185_v62, %v183_v61 }
  0x11   :  { %133 = vrot.lane.b32.xlu1 %v132_v36, %s8112_s20  ;;  %v8347_v63 = vpack.c.bf16 %v5311_v58, %v5309_v57  ;;  %v118_v4 = vrot.slane %v5290_v2, 1  ;;  %v188_v5 = vld [vmem:[%s13637_s1 + $0x88] sm:$0xff]  ;;  %v190_v6 = vld [vmem:[%s13637_s1 + $0x98] sm:$0xff]  ;;  %v8374_v9 = vpack.c.bf16 %v5310_v1, %v5308_v0  ;;  %v187_v11 = vld [vmem:[%s13637_s1 + $0x80] sm:$0xff]  ;;  %v140_v14 = vrot.slane %v5293_v52, 1 }
  0x12   :  { %49 = vrot.lane.b32.xlu0 %v5282_v42, %s8113_s13  ;;  %v5313_v7 = vld [vmem:[%s13637_s1 + $0x1c8] sm:$0xff]  ;;  %5998 = vmatpush1.bf16.msra.mxu0 %v8318_v53  ;;  %v5315_v10 = vld [vmem:[%s13637_s1 + $0x1d8] sm:$0xff]  ;;  %v189_v12 = vld [vmem:[%s13637_s1 + $0x90] sm:$0xff]  ;;  %v8389_v15 = vpack.c.bf16 %v190_v6, %v188_v5 }
  0x13   :  { %6038 = vmatpush1.bf16.msra.mxu1 %v8320_v54  ;;  %6000 = vmatprep.subr.bf16.mxu0 %v8333_v59  ;;  %120 = vst.msk [vmem:[#allocation2 + $0x8] sm:$0x80] %vm79_vm1, %v118_v4  ;;  %v5312_v16 = vld [vmem:[%s13637_s1 + $0x1c0] sm:$0xff]  ;;  %v5314_v19 = vld [vmem:[%s13637_s1 + $0x1d0] sm:$0xff]  ;;  %v192_v20 = vld [vmem:[%s13637_s1 + $0xa8] sm:$0xff]  ;;  %v8401_v21 = vpack.c.bf16 %v5315_v10, %v5313_v7  ;;  %v8415_v26 = vpack.c.bf16 %v189_v12, %v187_v11 }
  0x14   :  { %121 = vst.msk [vmem:[#allocation2 + $0x18] sm:$0x3f] %vm81_vm2, %v118_v4  ;;  %6040 = vmatprep.subr.bf16.mxu1 %v8347_v63  ;;  %v194_v23 = vld [vmem:[%s13637_s1 + $0xb8] sm:$0xff]  ;;  %v5317_v24 = vld [vmem:[%s13637_s1 + $0x1e8] sm:$0xff]  ;;  %v8417_v29 = vpack.c.bf16 %v5314_v19, %v5312_v16  ;;  %v191_v30 = vld [vmem:[%s13637_s1 + $0xa0] sm:$0xff] }
  0x15   :  { %70 = vrot.lane.b32.xlu1 %v5285_v51, %s8113_s13  ;;  %v5319_v25 = vld [vmem:[%s13637_s1 + $0x1f8] sm:$0xff]  ;;  %v193_v31 = vld [vmem:[%s13637_s1 + $0xb0] sm:$0xff]  ;;  %v8427_v33 = vpack.c.bf16 %v194_v23, %v192_v20  ;;  %v5316_v35 = vld [vmem:[%s13637_s1 + $0x1e0] sm:$0xff] }
  0x16   :  { %109 = vrot.lane.b32.xlu0 %v108_v3, %s8113_s13  ;;  %6002 = vmatpush1.bf16.msra.mxu0 %v8372_v8  ;;  %v8429_v34 = vpack.c.bf16 %v5319_v25, %v5317_v24  ;;  %v5318_v36 = vld [vmem:[%s13637_s1 + $0x1f0] sm:$0xff]  ;;  %v196_v39 = vld [vmem:[%s13637_s1 + $0xc8] sm:$0xff]  ;;  %v198_v40 = vld [vmem:[%s13637_s1 + $0xd8] sm:$0xff]  ;;  %v8452_v43 = vpack.c.bf16 %v193_v31, %v191_v30 }
  0x17   :  { %6042 = vmatpush1.bf16.msra.mxu1 %v8374_v9  ;;  %6004 = vmatprep.subr.bf16.mxu0 %v8389_v15  ;;  %v5321_v41 = vld [vmem:[%s13637_s1 + $0x208] sm:$0xff]  ;;  %v5323_v42 = vld [vmem:[%s13637_s1 + $0x218] sm:$0xff]  ;;  %v8454_v45 = vpack.c.bf16 %v5318_v36, %v5316_v35  ;;  %v195_v46 = vld [vmem:[%s13637_s1 + $0xc0] sm:$0xff]  ;;  %v8464_v48 = vpack.c.bf16 %v198_v40, %v196_v39 }
  0x18   :  { %6044 = vmatprep.subr.bf16.mxu1 %v8401_v21  ;;  %v197_v47 = vld [vmem:[%s13637_s1 + $0xd0] sm:$0xff]  ;;  %v8466_v49 = vpack.c.bf16 %v5323_v42, %v5321_v41  ;;  %v5320_v50 = vld [vmem:[%s13637_s1 + $0x200] sm:$0xff]  ;;  %v200_v52 = vld [vmem:[%s13637_s1 + $0xe8] sm:$0xff] }
  0x19   :  { %141 = vrot.lane.b32.xlu1 %v140_v14, %s8113_s13  ;;  %v5322_v51 = vld [vmem:[%s13637_s1 + $0x210] sm:$0xff]  ;;  %v202_v55 = vld [vmem:[%s13637_s1 + $0xf8] sm:$0xff]  ;;  %v5325_v56 = vld [vmem:[%s13637_s1 + $0x228] sm:$0xff]  ;;  %v8488_v58 = vpack.c.bf16 %v197_v47, %v195_v46 }
  0x1a   :  { %6006 = vmatpush1.bf16.msra.mxu0 %v8415_v26  ;;  %v5327_v57 = vld [vmem:[%s13637_s1 + $0x238] sm:$0xff]  ;;  %v8490_v60 = vpack.c.bf16 %v5322_v51, %v5320_v50  ;;  %v199_v61 = vld [vmem:[%s13637_s1 + $0xe0] sm:$0xff]  ;;  %v201_v62 = vld [vmem:[%s13637_s1 + $0xf0] sm:$0xff]  ;;  %v8500_v0 = vpack.c.bf16 %v202_v55, %v200_v52 }
  0x1b   :  { %6046 = vmatpush1.bf16.msra.mxu1 %v8417_v29  ;;  %6008 = vmatprep.subr.bf16.mxu0 %v8427_v33  ;;  %v8502_v1 = vpack.c.bf16 %v5327_v57, %v5325_v56  ;;  %v5324_v2 = vld [vmem:[%s13637_s1 + $0x220] sm:$0xff]  ;;  %v5326_v3 = vld [vmem:[%s13637_s1 + $0x230] sm:$0xff]  ;;  %v204_v4 = vld [vmem:[%s13637_s1 + $0x108] sm:$0xff] }
  0x1c   :  { %6048 = vmatprep.subr.bf16.mxu1 %v8429_v34  ;;  %v206_v5 = vld [vmem:[%s13637_s1 + $0x118] sm:$0xff]  ;;  %v5329_v6 = vld [vmem:[%s13637_s1 + $0x248] sm:$0xff] }
  0x1d   :  { %v5331_v7 = vld [vmem:[%s13637_s1 + $0x258] sm:$0xff] }
  0x1e   :  { %6010 = vmatpush1.bf16.msra.mxu0 %v8452_v43 }
  0x1f   :  { %6050 = vmatpush1.bf16.msra.mxu1 %v8454_v45  ;;  %6012 = vmatprep.subr.bf16.mxu0 %v8464_v48 }
  0x20   :  { %6052 = vmatprep.subr.bf16.mxu1 %v8466_v49 }
  0x21   :  { %12 = vsyncpa [#allocation8], 0  ;;  %v8524_v10 = vpack.c.bf16 %v201_v62, %v199_v61  ;;  %v8526_v11 = vpack.c.bf16 %v5326_v3, %v5324_v2  ;;  %v203_v12 = vld [vmem:[%s13637_s1 + $0x100] sm:$0xff]  ;;  %v205_v14 = vld [vmem:[%s13637_s1 + $0x110] sm:$0xff]  ;;  %v8536_v16 = vpack.c.bf16 %v206_v5, %v204_v4  ;;  %v8538_v19 = vpack.c.bf16 %v5331_v7, %v5329_v6 }
  0x22   :  { %6014 = vmatpush1.bf16.msra.mxu0 %v8488_v58  ;;  %v5328_v20 = vld [vmem:[%s13637_s1 + $0x240] sm:$0xff]  ;;  %v5330_v23 = vld [vmem:[%s13637_s1 + $0x250] sm:$0xff]  ;;  %v208_v24 = vld [vmem:[%s13637_s1 + $0x128] sm:$0xff]  ;;  %v8560_v35 = vpack.c.bf16 %v205_v14, %v203_v12  ;;  %vm36_vm3 = vcmask 522496   ;;  %vm90_vm4 = vcmask 523527   ;;  %vm92_vm5 = vcmask 521472  }
  0x23   :  { %6054 = vmatpush1.bf16.msra.mxu1 %v8490_v60  ;;  %6016 = vmatprep.subr.bf16.mxu0 %v8500_v0  ;;  %v210_v25 = vld [vmem:[%s13637_s1 + $0x138] sm:$0xff]  ;;  %v5333_v30 = vld [vmem:[%s13637_s1 + $0x268] sm:$0xff]  ;;  %v8562_v36 = vpack.c.bf16 %v5330_v23, %v5328_v20  ;;  %v207_v39 = vld [vmem:[%s13637_s1 + $0x120] sm:$0xff]  ;;  %vm44_vm6 = vcmask 784896   ;;  %vm101_vm7 = vcmask 785927   ;;  %vm103_vm8 = vcmask 783872  }
  0x24   :  { %6056 = vmatprep.subr.bf16.mxu1 %v8502_v1  ;;  %v5335_v31 = vld [vmem:[%s13637_s1 + $0x278] sm:$0xff]  ;;  %v8569_v40 = vpack.c.bf16 %v210_v25, %v208_v24  ;;  %v209_v42 = vld [vmem:[%s13637_s1 + $0x130] sm:$0xff]  ;;  %v5332_v46 = vld [vmem:[%s13637_s1 + $0x260] sm:$0xff]  ;;  %vm52_vm9 = vcmask 1047296   ;;  %vm112_vm10 = vcmask 1048327   ;;  %vm114_vm11 = vcmask 1046272  }
  0x25   :  { %v8571_v41 = vpack.c.bf16 %v5335_v31, %v5333_v30  ;;  %v5334_v47 = vld [vmem:[%s13637_s1 + $0x270] sm:$0xff]  ;;  %v8584_v50 = vpack.c.bf16 %v209_v42, %v207_v39  ;;  %vm148_vm12 = vcmask 261120   ;;  %vm426_vm13 = vcmask 785408  }
  0x26   :  { %6018 = vmatpush1.bf16.msra.mxu0 %v8524_v10  ;;  %v8586_v51 = vpack.c.bf16 %v5334_v47, %v5332_v46  ;;  %vm715_vm14 = vcmask 523264   ;;  %vm632_vm15 = vcmask 1042432  }
  0x27   :  { %6058 = vmatpush1.bf16.msra.mxu1 %v8526_v11  ;;  %6020 = vmatprep.subr.bf16.mxu0 %v8536_v16 }
  0x28   :  { %6060 = vmatprep.subr.bf16.mxu1 %v8538_v19 }
  0x2a   :  { %6022 = vmatpush1.bf16.msra.mxu0 %v8560_v35 }
  0x2b   :  { %6062 = vmatpush1.bf16.msra.mxu1 %v8562_v36  ;;  %6024 = vmatprep.subr.bf16.mxu0 %v8569_v40 }
  0x2c   :  { %6064 = vmatprep.subr.bf16.mxu1 %v8571_v41 }
  0x2e   :  { %6026 = vmatpush1.bf16.msra.mxu0 %v8584_v50 }
  0x2f   :  { %6066 = vmatpush1.bf16.msra.mxu1 %v8586_v51  ;;  %6068 = vmatprep.subr.bf16.mxu0 %v8198_v13 }
  0x30   :  { %6108 = vmatprep.subr.bf16.mxu1 %v8210_v17 }
  0x74   :  { %v34_v52 = vpop.permute.xlu0 %33 }
  0x75   :  { %37 = vst.msk [vmem:[#allocation2] sm:$0x7f] %vm36_vm3, %v34_v52 }
  0x77   :  { %v88_v55 = vpop.permute.xlu1 %87 }
  0x78   :  { %91 = vst.msk [vmem:[#allocation2] sm:$0x80] %vm90_vm4, %v88_v55  ;;  %v59_v56 = vpop.permute.xlu0 %58 }
  0x79   :  { %93 = vst.msk [vmem:[#allocation2 + $0x10] sm:$0x3f] %vm92_vm5, %v88_v55 }
  0x7a   :  { %61 = vst.msk [vmem:[#allocation2 + $0x8] sm:$0x7f] %vm36_vm3, %v59_v56  ;;  %vm627_vm3 = vcmask 1047809  }
  0x7b   :  { %v126_v57 = vpop.permute.xlu1 %125 }
  0x7c   :  { %128 = vst.msk [vmem:[#allocation2 + $0x8] sm:$0x80] %vm90_vm4, %v126_v57  ;;  %v42_v61 = vpop.permute.xlu0 %41  ;;  %vm653_vm4 = vcmask 1047810  }
  0x7d   :  { %129 = vst.msk [vmem:[#allocation2 + $0x18] sm:$0x3f] %vm92_vm5, %v126_v57  ;;  %vm1235_vm5 = vcmask 1045504  }
  0x7e   :  { %45 = vst.msk [vmem:[#allocation2] sm:$0x7f] %vm44_vm6, %v42_v61 }
  0x7f   :  { %v65_v62 = vpop.permute.xlu1 %64 }
  0x80   :  { %67 = vst.msk [vmem:[#allocation2 + $0x8] sm:$0x7f] %vm44_vm6, %v65_v62  ;;  %v99_v2 = vpop.permute.xlu0 %98  ;;  %vm155_vm6 = vcmask 254976  }
  0x81   :  { %102 = vst.msk [vmem:[#allocation2] sm:$0x80] %vm101_vm7, %v99_v2 }
  0x82   :  { %104 = vst.msk [vmem:[#allocation2 + $0x10] sm:$0x3f] %vm103_vm8, %v99_v2  ;;  %v5398_v2 = vld [vmem:[%s13638_s2 + $0xb70] sm:$0xff] }
  0x83   :  { %v134_v3 = vpop.permute.xlu1 %133 }
  0x84   :  { %136 = vst.msk [vmem:[#allocation2 + $0x8] sm:$0x80] %vm101_vm7, %v134_v3  ;;  %v50_v4 = vpop.permute.xlu0 %49  ;;  %vm13751_vm7 = vcmask 1046784  }
  0x85   :  { %137 = vst.msk [vmem:[#allocation2 + $0x18] sm:$0x3f] %vm103_vm8, %v134_v3  ;;  %vm13743_vm8 = vcmask 1047815  }
  0x86   :  { %53 = vst.msk [vmem:[#allocation2] sm:$0x7f] %vm52_vm9, %v50_v4  ;;  %v1554_v4 = vld [vmem:[%s13638_s2 + $0x48] sm:$0xff] }
  0x87   :  { %v71_v5 = vpop.permute.xlu1 %70 }
  0x88   :  { %73 = vst.msk [vmem:[#allocation2 + $0x8] sm:$0x7f] %vm52_vm9, %v71_v5  ;;  %v110_v6 = vpop.permute.xlu0 %109  ;;  %v1556_v5 = vld [vmem:[%s13638_s2 + $0x58] sm:$0xff] }
  0x89   :  { %113 = vst.msk [vmem:[#allocation2] sm:$0x80] %vm112_vm10, %v110_v6 }
  0x8a   :  { %115 = vst.msk [vmem:[#allocation2 + $0x10] sm:$0x3f] %vm114_vm11, %v110_v6  ;;  %v5401_v6 = vld [vmem:[%s13638_s2 + $0xb88] sm:$0xff] }
  0x8b   :  { %v142_v7 = vpop.permute.xlu1 %141 }
  0x8c   :  { %144 = vst.msk [vmem:[#allocation2 + $0x8] sm:$0x80] %vm112_vm10, %v142_v7 }
  0x8d   :  { %145 = vst.msk [vmem:[#allocation2 + $0x18] sm:$0x3f] %vm114_vm11, %v142_v7  ;;  %v8857_v7 = vpack.c.bf16 %v1556_v5, %v1554_v4  ;;  %v1567_v4 = vld [vmem:[%s13638_s2 + $0xb0] sm:$0xff]  ;;  %v5412_v5 = vld [vmem:[%s13638_s2 + $0xbe0] sm:$0xff] }
  0x90   :  { %v167_v12 = vld [vmem:[#allocation2] sm:$0xff] }
  0x91   :  { %418 = vrot.lane.b32.xlu0 %v167_v12, %s8113_s13  ;;  %v169_v20 = vld [vmem:[#allocation2 + $0x10] sm:$0x3f] }
  0x92   :  { %v661_v24 = vld [vmem:[#allocation2 + $0x10] sm:$0x3f] }
  0x93   :  { %v168_v14 = vld [vmem:[#allocation2 + $0x8] sm:$0xff] }
  0x94   :  { %420 = vrot.lane.b32.xlu1 %v168_v14, %s8113_s13  ;;  %5294 = vmatprep.mubr.msk.f32.mxu0 %vm148_vm12, %v168_v14  ;;  %v170_v23 = vld [vmem:[#allocation2 + $0x18] sm:$0x3f] }
  0x95   :  { %5336 = vmatprep.mubr.msk.f32.mxu1 %vm148_vm12, %v168_v14  ;;  %282 = vmatmul.mubr.f32.vlgmr.msra.gmra.mrb[0].mxu0 %v167_v12  ;;  %v662_v25 = vld [vmem:[#allocation2 + $0x18] sm:$0x3f] }
  0x96   :  { %400 = vmatmul.mubr.f32.vlgmr.msra.gmra.mrb[0].mxu1 %v167_v12  ;;  %422 = vrot.lane.b32.xlu0 %v169_v20, %s8113_s13 }
  0x97   :  { %5295 = vmatprep.mubr.msk.f32.mxu0 %vm148_vm12, %v170_v23  ;;  %5337 = vmatprep.mubr.msk.f32.mxu1 %vm148_vm12, %v170_v23 }
  0x98   :  { %424 = vrot.lane.b32.xlu1 %v170_v23, %s8113_s13  ;;  %6070 = vmatpush1.bf16.msra.mxu0 %v8212_v18 }
  0x99   :  { %288 = vmatmul.mubr.f32.gmra.mrb[2].mxu0 %v169_v20  ;;  %6110 = vmatpush1.bf16.msra.mxu1 %v8224_v22 }
  0x9a   :  { %406 = vmatmul.mubr.f32.gmra.mrb[2].mxu1 %v169_v20  ;;  %707 = vrot.lane.b32.xlu0 %v167_v12, %s8112_s20  ;;  %v1555_v20 = vld [vmem:[%s13638_s2 + $0x50] sm:$0xff] }
  0x9b   :  { %6072 = vmatprep.subr.bf16.mxu0 %v8237_v27  ;;  %6112 = vmatprep.subr.bf16.mxu1 %v8239_v28 }
  0x9c   :  { %709 = vrot.lane.b32.xlu1 %v168_v14, %s8112_s20  ;;  %6074 = vmatpush1.bf16.msra.mxu0 %v8252_v32 }
  0x9d   :  { %6114 = vmatpush1.bf16.msra.mxu1 %v8266_v37  ;;  %6076 = vmatprep.subr.bf16.mxu0 %v8268_v38 }
  0x9e   :  { %711 = vrot.lane.b32.xlu0 %v661_v24, %s8112_s20  ;;  %6116 = vmatprep.subr.bf16.mxu1 %v8288_v44 }
  0xa0   :  { %713 = vrot.lane.b32.xlu1 %v662_v25, %s8112_s20  ;;  %6078 = vmatpush1.bf16.msra.mxu0 %v8318_v53 }
  0xa1   :  { %6118 = vmatpush1.bf16.msra.mxu1 %v8320_v54  ;;  %6080 = vmatprep.subr.bf16.mxu0 %v8333_v59 }
  0xa2   :  { %922 = vrot.lane.b32.xlu0 %v167_v12, %s8111_s28  ;;  %6120 = vmatprep.subr.bf16.mxu1 %v8347_v63  ;;  %v5403_v12 = vld [vmem:[%s13638_s2 + $0xb98] sm:$0xff] }
  0xa3   :  { %v8868_v23 = vpack.c.bf16 %v5403_v12, %v5401_v6  ;;  %v5414_v12 = vld [vmem:[%s13638_s2 + $0xbf0] sm:$0xff] }
  0xa4   :  { %924 = vrot.lane.b32.xlu1 %v168_v14, %s8111_s28  ;;  %6082 = vmatpush1.bf16.msra.mxu0 %v8372_v8  ;;  %v1553_v14 = vld [vmem:[%s13638_s2 + $0x40] sm:$0xff] }
  0xa5   :  { %6122 = vmatpush1.bf16.msra.mxu1 %v8374_v9  ;;  %6084 = vmatprep.subr.bf16.mxu0 %v8389_v15 }
  0xa6   :  { %926 = vrot.lane.b32.xlu0 %v661_v24, %s8111_s28  ;;  %6124 = vmatprep.subr.bf16.mxu1 %v8401_v21  ;;  %v8870_v24 = vpack.c.bf16 %v1555_v20, %v1553_v14  ;;  %v1570_v14 = vld [vmem:[%s13638_s2 + $0xc8] sm:$0xff]  ;;  %v1572_v20 = vld [vmem:[%s13638_s2 + $0xd8] sm:$0xff] }
  0xa8   :  { %928 = vrot.lane.b32.xlu1 %v662_v25, %s8111_s28  ;;  %6086 = vmatpush1.bf16.msra.mxu0 %v8415_v26  ;;  %v5400_v25 = vld [vmem:[%s13638_s2 + $0xb80] sm:$0xff] }
  0xa9   :  { %6126 = vmatpush1.bf16.msra.mxu1 %v8417_v29  ;;  %6088 = vmatprep.subr.bf16.mxu0 %v8427_v33 }
  0xaa   :  { %6128 = vmatprep.subr.bf16.mxu1 %v8429_v34 }
  0xac   :  { %6090 = vmatpush1.bf16.msra.mxu0 %v8452_v43 }
  0xad   :  { %6130 = vmatpush1.bf16.msra.mxu1 %v8454_v45  ;;  %6092 = vmatprep.subr.bf16.mxu0 %v8464_v48 }
  0xae   :  { %6132 = vmatprep.subr.bf16.mxu1 %v8466_v49 }
  0xb0   :  { %6094 = vmatpush1.bf16.msra.mxu0 %v8488_v58 }
  0xb1   :  { %6134 = vmatpush1.bf16.msra.mxu1 %v8490_v60  ;;  %6096 = vmatprep.subr.bf16.mxu0 %v8500_v0 }
  0xb2   :  { %6136 = vmatprep.subr.bf16.mxu1 %v8502_v1 }
  0xb4   :  { %6098 = vmatpush1.bf16.msra.mxu0 %v8524_v10 }
  0xb5   :  { %6138 = vmatpush1.bf16.msra.mxu1 %v8526_v11  ;;  %6100 = vmatprep.subr.bf16.mxu0 %v8536_v16 }
  0xb6   :  { %6140 = vmatprep.subr.bf16.mxu1 %v8538_v19 }
  0xb8   :  { %6102 = vmatpush1.bf16.msra.mxu0 %v8560_v35 }
  0xb9   :  { %6142 = vmatpush1.bf16.msra.mxu1 %v8562_v36  ;;  %6104 = vmatprep.subr.bf16.mxu0 %v8569_v40 }
  0xba   :  { %6144 = vmatprep.subr.bf16.mxu1 %v8571_v41 }
  0xbc   :  { %6106 = vmatpush1.bf16.msra.mxu0 %v8584_v50 }
  0xbd   :  { %6146 = vmatpush1.bf16.msra.mxu1 %v8586_v51  ;;  %6148 = vmatprep.subr.bf16.mxu0 %v8198_v13 }
  0xbe   :  { %6188 = vmatprep.subr.bf16.mxu1 %v8210_v17 }
 0x103   :  { %v419_v30 = vpop.permute.xlu0 %418 }
 0x106   :  { %v421_v31 = vpop.permute.xlu1 %420 }
 0x107   :  { %v427_v39 = vsel %vm426_vm13, %v419_v30, %v421_v31  ;;  %5338 = vmatprep.mubr.msk.f32.mxu0 %vm148_vm12, %v421_v31  ;;  %5340 = vmatprep.mubr.msk.f32.mxu1 %vm148_vm12, %v421_v31  ;;  %v5402_v30 = vld [vmem:[%s13638_s2 + $0xb90] sm:$0xff] }
 0x108   :  { %500 = vmatmul.mubr.f32.vlgmr.msra.gmra.mrb[4].mxu0 %v427_v39  ;;  %581 = vmatmul.mubr.f32.vlgmr.msra.gmra.mrb[4].mxu1 %v427_v39  ;;  %v423_v42 = vpop.permute.xlu0 %422  ;;  %v8879_v31 = vpack.c.bf16 %v5402_v30, %v5400_v25  ;;  %v1558_v39 = vld [vmem:[%s13638_s2 + $0x68] sm:$0xff]  ;;  %v9013_v25 = vpack.c.bf16 %v5414_v12, %v5412_v5  ;;  %v9015_v30 = vpack.c.bf16 %v1572_v20, %v1570_v14  ;;  %v5427_v5 = vld [vmem:[%s13638_s2 + $0xc58] sm:$0xff] }
 0x109   :  { %6150 = vmatpush1.bf16.msra.mxu0 %v8212_v18  ;;  %6190 = vmatpush1.bf16.msra.mxu1 %v8224_v22 }
 0x10a   :  { %v425_v46 = vpop.permute.xlu1 %424  ;;  %6152 = vmatprep.subr.bf16.mxu0 %v8237_v27  ;;  %6192 = vmatprep.subr.bf16.mxu1 %v8239_v28 }
 0x10b   :  { %5339 = vmatprep.mubr.msk.f32.mxu0 %vm148_vm12, %v425_v46  ;;  %5341 = vmatprep.mubr.msk.f32.mxu1 %vm148_vm12, %v425_v46  ;;  %v428_v47 = vsel %vm426_vm13, %v423_v42, %v425_v46  ;;  %v1560_v42 = vld [vmem:[%s13638_s2 + $0x78] sm:$0xff]  ;;  %v5405_v46 = vld [vmem:[%s13638_s2 + $0xba8] sm:$0xff] }
 0x10c   :  { %506 = vmatmul.mubr.f32.gmra.mrb[6].mxu0 %v428_v47  ;;  %587 = vmatmul.mubr.f32.gmra.mrb[6].mxu1 %v428_v47  ;;  %v708_v55 = vpop.permute.xlu0 %707  ;;  %v8893_v47 = vpack.c.bf16 %v1560_v42, %v1558_v39  ;;  %v5417_v39 = vld [vmem:[%s13638_s2 + $0xc08] sm:$0xff]  ;;  %v5419_v42 = vld [vmem:[%s13638_s2 + $0xc18] sm:$0xff] }
 0x10d   :  { %6154 = vmatpush1.bf16.msra.mxu0 %v8252_v32  ;;  %6194 = vmatpush1.bf16.msra.mxu1 %v8266_v37 }
 0x10e   :  { %v710_v52 = vpop.permute.xlu1 %709  ;;  %6156 = vmatprep.subr.bf16.mxu0 %v8268_v38  ;;  %6196 = vmatprep.subr.bf16.mxu1 %v8288_v44 }
 0x10f   :  { %5342 = vmatprep.mubr.msk.f32.mxu0 %vm148_vm12, %v710_v52  ;;  %5384 = vmatprep.mubr.msk.f32.mxu1 %vm148_vm12, %v710_v52  ;;  %v716_v57 = vsel %vm715_vm14, %v708_v55, %v710_v52  ;;  %v5407_v52 = vld [vmem:[%s13638_s2 + $0xbb8] sm:$0xff]  ;;  %v1557_v55 = vld [vmem:[%s13638_s2 + $0x60] sm:$0xff] }
 0x110   :  { %v712_v61 = vpop.permute.xlu0 %711 }
 0x111   :  { %6158 = vmatpush1.bf16.msra.mxu0 %v8318_v53  ;;  %6198 = vmatpush1.bf16.msra.mxu1 %v8320_v54 }
 0x112   :  { %6160 = vmatprep.subr.bf16.mxu0 %v8333_v59  ;;  %6200 = vmatprep.subr.bf16.mxu1 %v8347_v63  ;;  %v714_v56 = vpop.permute.xlu1 %713 }
 0x113   :  { %v717_v62 = vsel %vm715_vm14, %v712_v61, %v714_v56 }
 0x115   :  { %6162 = vmatpush1.bf16.msra.mxu0 %v8372_v8  ;;  %6202 = vmatpush1.bf16.msra.mxu1 %v8374_v9 }
 0x116   :  { %6164 = vmatprep.subr.bf16.mxu0 %v8389_v15  ;;  %6204 = vmatprep.subr.bf16.mxu1 %v8401_v21 }
 0x119   :  { %6166 = vmatpush1.bf16.msra.mxu0 %v8415_v26  ;;  %6206 = vmatpush1.bf16.msra.mxu1 %v8417_v29 }
 0x11a   :  { %6168 = vmatprep.subr.bf16.mxu0 %v8427_v33  ;;  %6208 = vmatprep.subr.bf16.mxu1 %v8429_v34 }
 0x11d   :  { %6170 = vmatpush1.bf16.msra.mxu0 %v8452_v43  ;;  %6210 = vmatpush1.bf16.msra.mxu1 %v8454_v45 }
 0x11e   :  { %6172 = vmatprep.subr.bf16.mxu0 %v8464_v48  ;;  %6212 = vmatprep.subr.bf16.mxu1 %v8466_v49 }
 0x121   :  { %6174 = vmatpush1.bf16.msra.mxu0 %v8488_v58  ;;  %6214 = vmatpush1.bf16.msra.mxu1 %v8490_v60 }
 0x122   :  { %6176 = vmatprep.subr.bf16.mxu0 %v8500_v0  ;;  %6216 = vmatprep.subr.bf16.mxu1 %v8502_v1 }
 0x125   :  { %6178 = vmatpush1.bf16.msra.mxu0 %v8524_v10  ;;  %6218 = vmatpush1.bf16.msra.mxu1 %v8526_v11 }
 0x126   :  { %6180 = vmatprep.subr.bf16.mxu0 %v8536_v16  ;;  %6220 = vmatprep.subr.bf16.mxu1 %v8538_v19 }
 0x129   :  { %6182 = vmatpush1.bf16.msra.mxu0 %v8560_v35  ;;  %6222 = vmatpush1.bf16.msra.mxu1 %v8562_v36 }
 0x12a   :  { %6184 = vmatprep.subr.bf16.mxu0 %v8569_v40  ;;  %6224 = vmatprep.subr.bf16.mxu1 %v8571_v41 }
 0x12d   :  { %6186 = vmatpush1.bf16.msra.mxu0 %v8584_v50  ;;  %6226 = vmatpush1.bf16.msra.mxu1 %v8586_v51 }
 0x12e   :  { %6228 = vmatprep.subr.bf16.mxu0 %v8198_v13  ;;  %6268 = vmatprep.subr.bf16.mxu1 %v8210_v17  ;;  %v925_v13 = vpop.permute.xlu1 %924  ;;  %v923_v17 = vpop.permute.xlu0 %922 }
 0x130   :  { %789 = vmatmul.mubr.f32.vlgmr.msra.gmra.mrb[8].mxu0 %v716_v57  ;;  %906 = vmatmul.mubr.f32.vlgmr.msra.gmra.mrb[8].mxu1 %v716_v57  ;;  %v8904_v57 = vpack.c.bf16 %v5407_v52, %v5405_v46  ;;  %v1569_v46 = vld [vmem:[%s13638_s2 + $0xc0] sm:$0xff]  ;;  %v9027_v52 = vpack.c.bf16 %v5419_v42, %v5417_v39  ;;  %v1579_v42 = vld [vmem:[%s13638_s2 + $0x110] sm:$0xff] }
 0x131   :  { %5343 = vmatprep.mubr.msk.f32.mxu0 %vm148_vm12, %v714_v56  ;;  %5385 = vmatprep.mubr.msk.f32.mxu1 %vm148_vm12, %v714_v56  ;;  %v1559_v56 = vld [vmem:[%s13638_s2 + $0x70] sm:$0xff]  ;;  %v1577_v39 = vld [vmem:[%s13638_s2 + $0x100] sm:$0xff] }
 0x132   :  { %6230 = vmatpush1.bf16.msra.mxu0 %v8212_v18  ;;  %6270 = vmatpush1.bf16.msra.mxu1 %v8224_v22  ;;  %v930_v18 = vsel %vm148_vm12, %v923_v17, %v925_v13  ;;  %v929_v22 = vpop.permute.xlu1 %928  ;;  %v8906_v61 = vpack.c.bf16 %v1559_v56, %v1557_v55  ;;  %v1571_v55 = vld [vmem:[%s13638_s2 + $0xd0] sm:$0xff]  ;;  %v5416_v56 = vld [vmem:[%s13638_s2 + $0xc00] sm:$0xff] }
 0x133   :  { %6232 = vmatprep.subr.bf16.mxu0 %v8237_v27  ;;  %6272 = vmatprep.subr.bf16.mxu1 %v8239_v28  ;;  %v927_v27 = vpop.permute.xlu0 %926 }
 0x134   :  { %795 = vmatmul.mubr.f32.gmra.mrb[10].mxu0 %v717_v62  ;;  %912 = vmatmul.mubr.f32.gmra.mrb[10].mxu1 %v717_v62  ;;  %v931_v28 = vsel %vm148_vm12, %v927_v27, %v929_v22  ;;  %v5404_v62 = vld [vmem:[%s13638_s2 + $0xba0] sm:$0xff]  ;;  %v5409_v27 = vld [vmem:[%s13638_s2 + $0xbc8] sm:$0xff] }
 0x135   :  { %5386 = vmatprep.mubr.msk.f32.mxu0 %vm148_vm12, %v925_v13  ;;  %5388 = vmatprep.mubr.msk.f32.mxu1 %vm148_vm12, %v925_v13  ;;  %v5406_v13 = vld [vmem:[%s13638_s2 + $0xbb0] sm:$0xff] }
 0x136   :  { %6234 = vmatpush1.bf16.msra.mxu0 %v8252_v32  ;;  %6274 = vmatpush1.bf16.msra.mxu1 %v8266_v37  ;;  %v8915_v17 = vpack.c.bf16 %v5406_v13, %v5404_v62  ;;  %v5418_v62 = vld [vmem:[%s13638_s2 + $0xc10] sm:$0xff]  ;;  %v1574_v13 = vld [vmem:[%s13638_s2 + $0xe8] sm:$0xff] }
 0x137   :  { %6236 = vmatprep.subr.bf16.mxu0 %v8268_v38  ;;  %6276 = vmatprep.subr.bf16.mxu1 %v8288_v44 }
 0x13a   :  { %6238 = vmatpush1.bf16.msra.mxu0 %v8318_v53  ;;  %6278 = vmatpush1.bf16.msra.mxu1 %v8320_v54 }
 0x13b   :  { %6240 = vmatprep.subr.bf16.mxu0 %v8333_v59  ;;  %6280 = vmatprep.subr.bf16.mxu1 %v8347_v63 }
 0x13e   :  { %6242 = vmatpush1.bf16.msra.mxu0 %v8372_v8  ;;  %6282 = vmatpush1.bf16.msra.mxu1 %v8374_v9 }
 0x13f   :  { %6244 = vmatprep.subr.bf16.mxu0 %v8389_v15  ;;  %6284 = vmatprep.subr.bf16.mxu1 %v8401_v21  ;;  %v1587_v21 = vld [vmem:[%s13638_s2 + $0x150] sm:$0xff] }
 0x142   :  { %6246 = vmatpush1.bf16.msra.mxu0 %v8415_v26  ;;  %6286 = vmatpush1.bf16.msra.mxu1 %v8417_v29  ;;  %v1546_v26 = vld [vmem:[%s13638_s2 + $0x8] sm:$0xff]  ;;  %v1548_v29 = vld [vmem:[%s13638_s2 + $0x18] sm:$0xff] }
 0x143   :  { %6248 = vmatprep.subr.bf16.mxu0 %v8427_v33  ;;  %6288 = vmatprep.subr.bf16.mxu1 %v8429_v34  ;;  %v5393_v33 = vld [vmem:[%s13638_s2 + $0xb48] sm:$0xff]  ;;  %v8785_v34 = vpack.c.bf16 %v1548_v29, %v1546_v26  ;;  %v5411_v26 = vld [vmem:[%s13638_s2 + $0xbd8] sm:$0xff]  ;;  %v1561_v29 = vld [vmem:[%s13638_s2 + $0x80] sm:$0xff] }
 0x146   :  { %6250 = vmatpush1.bf16.msra.mxu0 %v8452_v43  ;;  %6290 = vmatpush1.bf16.msra.mxu1 %v8454_v45  ;;  %v5395_v43 = vld [vmem:[%s13638_s2 + $0xb58] sm:$0xff]  ;;  %v1545_v45 = vld [vmem:[%s13638_s2] sm:$0xff] }
 0x147   :  { %6252 = vmatprep.subr.bf16.mxu0 %v8464_v48  ;;  %6292 = vmatprep.subr.bf16.mxu1 %v8466_v49  ;;  %v1547_v48 = vld [vmem:[%s13638_s2 + $0x10] sm:$0xff]  ;;  %v8796_v49 = vpack.c.bf16 %v5395_v43, %v5393_v33  ;;  %v13646_v43 = vmov 0.0  }
 0x148   :  { %v1563_v33 = vld [vmem:[%s13638_s2 + $0x90] sm:$0xff]  ;;  %146 = vst [vmem:[#allocation3] sm:$0xff] %v13646_v43  ;;  %147 = vst [vmem:[#allocation3 + $0x8] sm:$0xff] %v13646_v43 }
 0x149   :  { %149 = vst.msk [vmem:[#allocation3 + $0x10] sm:$0xff] %vm148_vm12, %v13646_v43  ;;  %150 = vst [vmem:[#allocation3 + $0x18] sm:$0xff] %v13646_v43 }
 0x14a   :  { %6254 = vmatpush1.bf16.msra.mxu0 %v8488_v58  ;;  %6294 = vmatpush1.bf16.msra.mxu1 %v8490_v60  ;;  %v8798_v58 = vpack.c.bf16 %v1547_v48, %v1545_v45  ;;  %v5392_v60 = vld [vmem:[%s13638_s2 + $0xb40] sm:$0xff]  ;;  %151 = vst [vmem:[#allocation3 + $0x20] sm:$0xff] %v13646_v43  ;;  %152 = vst.msk [vmem:[#allocation3 + $0x28] sm:$0xff] %vm148_vm12, %v13646_v43  ;;  %v8960_v45 = vpack.c.bf16 %v5411_v26, %v5409_v27  ;;  %v5423_v26 = vld [vmem:[%s13638_s2 + $0xc38] sm:$0xff] }
 0x14b   :  { %6256 = vmatprep.subr.bf16.mxu0 %v8500_v0  ;;  %6296 = vmatprep.subr.bf16.mxu1 %v8502_v1  ;;  %v5394_v0 = vld [vmem:[%s13638_s2 + $0xb50] sm:$0xff]  ;;  %153 = vst [vmem:[#allocation3 + $0x30] sm:$0x3] %v13646_v43  ;;  %154 = vst [vmem:[#allocation3 + $0x38] sm:$0x3] %v13646_v43  ;;  %v8962_v48 = vpack.c.bf16 %v1563_v33, %v1561_v29  ;;  %v9048_v27 = vpack.c.bf16 %v1571_v55, %v1569_v46  ;;  %v5424_v46 = vld [vmem:[%s13638_s2 + $0xc40] sm:$0xff]  ;;  %v13644_v55 = vlaneseq }
 0x14c   :  { %v8807_v1 = vpack.c.bf16 %v5394_v0, %v5392_v60  ;;  %157 = vst [vmem:[#allocation4] sm:$0xff] %v13646_v43  ;;  %158 = vst [vmem:[#allocation4 + $0x8] sm:$0xff] %v13646_v43  ;;  %v5408_v60 = vld [vmem:[%s13638_s2 + $0xbc0] sm:$0xff]  ;;  %v5410_v0 = vld [vmem:[%s13638_s2 + $0xbd0] sm:$0xff]  ;;  %v9055_v29 = vpack.c.bf16 %v5418_v62, %v5416_v56 }
 0x14d   :  { %159 = vst.msk [vmem:[#allocation4 + $0x10] sm:$0xff] %vm148_vm12, %v13646_v43  ;;  %160 = vst [vmem:[#allocation4 + $0x18] sm:$0xff] %v13646_v43  ;;  %v5426_v62 = vld [vmem:[%s13638_s2 + $0xc50] sm:$0xff] }
 0x14e   :  { %6258 = vmatpush1.bf16.msra.mxu0 %v8524_v10  ;;  %6298 = vmatpush1.bf16.msra.mxu1 %v8526_v11  ;;  %v1550_v10 = vld [vmem:[%s13638_s2 + $0x28] sm:$0xff]  ;;  %v1552_v11 = vld [vmem:[%s13638_s2 + $0x38] sm:$0xff]  ;;  %161 = vst [vmem:[#allocation4 + $0x20] sm:$0xff] %v13646_v43  ;;  %162 = vst.msk [vmem:[#allocation4 + $0x28] sm:$0xff] %vm148_vm12, %v13646_v43 }
 0x14f   :  { %6260 = vmatprep.subr.bf16.mxu0 %v8536_v16  ;;  %6300 = vmatprep.subr.bf16.mxu1 %v8538_v19  ;;  %v5397_v16 = vld [vmem:[%s13638_s2 + $0xb68] sm:$0xff]  ;;  %v8821_v19 = vpack.c.bf16 %v1552_v11, %v1550_v10  ;;  %163 = vst [vmem:[#allocation4 + $0x30] sm:$0x3] %v13646_v43  ;;  %164 = vst [vmem:[#allocation4 + $0x38] sm:$0x3] %v13646_v43  ;;  %v8974_v11 = vpack.c.bf16 %v5410_v0, %v5408_v60  ;;  %v1573_v60 = vld [vmem:[%s13638_s2 + $0xe0] sm:$0xff] }
 0x150   :  { %v1566_v10 = vld [vmem:[%s13638_s2 + $0xa8] sm:$0xff]  ;;  %v1575_v0 = vld [vmem:[%s13638_s2 + $0xf0] sm:$0xff]  ;;  %v1585_v43 = vld [vmem:[%s13638_s2 + $0x140] sm:$0xff] }
 0x151   :  { %v9087_v12 = vpack.c.bf16 %v1575_v0, %v1573_v60  ;;  %v9123_v60 = vpack.c.bf16 %v1579_v42, %v1577_v39  ;;  %v9127_v0 = vpack.c.bf16 %v5426_v62, %v5424_v46  ;;  %v5430_v39 = vld [vmem:[%s13638_s2 + $0xc70] sm:$0xff] }
 0x152   :  { %6262 = vmatpush1.bf16.msra.mxu0 %v8560_v35  ;;  %6302 = vmatpush1.bf16.msra.mxu1 %v8562_v36  ;;  %v5399_v35 = vld [vmem:[%s13638_s2 + $0xb78] sm:$0xff]  ;;  %v1549_v36 = vld [vmem:[%s13638_s2 + $0x20] sm:$0xff] }
 0x153   :  { %6264 = vmatprep.subr.bf16.mxu0 %v8569_v40  ;;  %6304 = vmatprep.subr.bf16.mxu1 %v8571_v41  ;;  %v1551_v40 = vld [vmem:[%s13638_s2 + $0x30] sm:$0xff]  ;;  %v8832_v41 = vpack.c.bf16 %v5399_v35, %v5397_v16  ;;  %v1568_v16 = vld [vmem:[%s13638_s2 + $0xb8] sm:$0xff]  ;;  %v5413_v35 = vld [vmem:[%s13638_s2 + $0xbe8] sm:$0xff]  ;;  %13970 = vst [vmem:[#allocation13_spill] sm:$0xff] %v9123_v60 }
 0x154   :  { %13971 = vst [vmem:[#allocation14_spill] sm:$0xff] %v9127_v0 }
 0x156   :  { %6266 = vmatpush1.bf16.msra.mxu0 %v8584_v50  ;;  %6306 = vmatpush1.bf16.msra.mxu1 %v8586_v51  ;;  %v8834_v50 = vpack.c.bf16 %v1551_v40, %v1549_v36  ;;  %v5396_v51 = vld [vmem:[%s13638_s2 + $0xb60] sm:$0xff]  ;;  %v5415_v36 = vld [vmem:[%s13638_s2 + $0xbf8] sm:$0xff]  ;;  %v8986_v40 = vpack.c.bf16 %v1568_v16, %v1566_v10 }
 0x157   :  { %6308 = vmatprep.subr.bf16.mxu0 %v8785_v34  ;;  %6668 = vmatprep.subr.bf16.mxu1 %v8796_v49  ;;  %v8843_v3 = vpack.c.bf16 %v5398_v2, %v5396_v51  ;;  %v8988_v51 = vpack.c.bf16 %v5415_v36, %v5413_v35  ;;  %v1565_v2 = vld [vmem:[%s13638_s2 + $0xa0] sm:$0xff]  ;;  %v5422_v35 = vld [vmem:[%s13638_s2 + $0xc30] sm:$0xff]  ;;  %v1578_v36 = vld [vmem:[%s13638_s2 + $0x108] sm:$0xff] }
 0x158   :  { %v9000_v6 = vpack.c.bf16 %v1567_v4, %v1565_v2  ;;  %v5420_v10 = vld [vmem:[%s13638_s2 + $0xc20] sm:$0xff]  ;;  %v1580_v2 = vld [vmem:[%s13638_s2 + $0x118] sm:$0xff]  ;;  %v5425_v4 = vld [vmem:[%s13638_s2 + $0xc48] sm:$0xff] }
 0x159   :  { %1003 = vmatmul.mubr.f32.vlgmr.msra.gmra.mrb[12].mxu0 %v930_v18  ;;  %1084 = vmatmul.mubr.f32.vlgmr.msra.gmra.mrb[12].mxu1 %v930_v18  ;;  %v1562_v18 = vld [vmem:[%s13638_s2 + $0x88] sm:$0xff]  ;;  %v9091_v14 = vpack.c.bf16 %v5422_v35, %v5420_v10  ;;  %v9093_v20 = vpack.c.bf16 %v1580_v2, %v1578_v36  ;;  %v9105_v56 = vpack.c.bf16 %v5427_v5, %v5425_v4  ;;  %v1581_v35 = vld [vmem:[%s13638_s2 + $0x120] sm:$0xff]  ;;  %v1583_v36 = vld [vmem:[%s13638_s2 + $0x130] sm:$0xff]  ;;  %v9138_v2 = vshrl.u32 %v13644_v55, 7 }
 0x15a   :  { %5387 = vmatprep.mubr.msk.f32.mxu0 %vm148_vm12, %v929_v22  ;;  %5389 = vmatprep.mubr.msk.f32.mxu1 %vm148_vm12, %v929_v22  ;;  %v1564_v22 = vld [vmem:[%s13638_s2 + $0x98] sm:$0xff]  ;;  %v5428_v5 = vld [vmem:[%s13638_s2 + $0xc60] sm:$0xff]  ;;  %v9150_v42 = vpack.c.bf16 %v1583_v36, %v1581_v35  ;;  %v5433_v35 = vld [vmem:[%s13638_s2 + $0xc88] sm:$0xff] }
 0x15b   :  { %6310 = vmatpush1.bf16.msra.mxu0 %v8798_v58  ;;  %6670 = vmatpush1.bf16.msra.mxu1 %v8807_v1  ;;  %13967 = vst [vmem:[#allocation10_spill] sm:$0xff] %v9091_v14  ;;  %13968 = vst [vmem:[#allocation11_spill] sm:$0xff] %v9093_v20  ;;  %v9154_v46 = vpack.c.bf16 %v5430_v39, %v5428_v5  ;;  %v13651_v62 = vsub.s32 0, %v9138_v2  ;;  %v5435_v55 = vld [vmem:[%s13638_s2 + $0xc98] sm:$0xff] }
 0x15c   :  { %6312 = vmatprep.subr.bf16.mxu0 %v8821_v19  ;;  %6672 = vmatprep.subr.bf16.mxu1 %v8832_v41  ;;  %13969 = vst [vmem:[#allocation12_spill] sm:$0xff] %v9105_v56  ;;  %13973 = vst [vmem:[#allocation16_spill] sm:$0xff] %v9138_v2  ;;  %v9191_v54 = vpack.c.bf16 %v5435_v55, %v5433_v35  ;;  %v1590_v55 = vld [vmem:[%s13638_s2 + $0x168] sm:$0xff]  ;;  %v5439_v35 = vld [vmem:[%s13638_s2 + $0xcb8] sm:$0xff] }
 0x15d   :  { %1009 = vmatmul.mubr.f32.gmra.mrb[14].mxu0 %v931_v28  ;;  %1090 = vmatmul.mubr.f32.gmra.mrb[14].mxu1 %v931_v28  ;;  %v8928_v28 = vpack.c.bf16 %v1564_v22, %v1562_v18  ;;  %v1576_v18 = vld [vmem:[%s13638_s2 + $0xf8] sm:$0xff]  ;;  %v5421_v22 = vld [vmem:[%s13638_s2 + $0xc28] sm:$0xff]  ;;  %13975 = vst [vmem:[#allocation18_spill] sm:$0xff] %v9150_v42  ;;  %13976 = vst [vmem:[#allocation19_spill] sm:$0xff] %v9154_v46 }
 0x15e   :  { %v9057_v33 = vpack.c.bf16 %v1576_v18, %v1574_v13  ;;  %v9069_v16 = vpack.c.bf16 %v5423_v26, %v5421_v22  ;;  %v1582_v13 = vld [vmem:[%s13638_s2 + $0x128] sm:$0xff]  ;;  %v1584_v18 = vld [vmem:[%s13638_s2 + $0x138] sm:$0xff]  ;;  %13978 = vst [vmem:[#allocation21_spill] sm:$0xff] %v9191_v54 }
 0x15f   :  { %6314 = vmatpush1.bf16.msra.mxu0 %v8834_v50  ;;  %6674 = vmatpush1.bf16.msra.mxu1 %v8843_v3  ;;  %v5429_v22 = vld [vmem:[%s13638_s2 + $0xc68] sm:$0xff]  ;;  %v5431_v26 = vld [vmem:[%s13638_s2 + $0xc78] sm:$0xff]  ;;  %v9129_v10 = vpack.c.bf16 %v1584_v18, %v1582_v13  ;;  %v166_v13 = vld [vmem:[%s13640_s4] sm:$0x3] }
 0x160   :  { %6316 = vmatprep.subr.bf16.mxu0 %v8857_v7  ;;  %6676 = vmatprep.subr.bf16.mxu1 %v8868_v23  ;;  %v9141_v4 = vpack.c.bf16 %v5431_v26, %v5429_v22  ;;  %v1586_v22 = vld [vmem:[%s13638_s2 + $0x148] sm:$0xff]  ;;  %v1588_v26 = vld [vmem:[%s13638_s2 + $0x158] sm:$0xff] }
 0x161   :  { %13972 = vst [vmem:[#allocation15_spill] sm:$0xff] %v9129_v10  ;;  %v9173_v39 = vpack.c.bf16 %v1588_v26, %v1586_v22  ;;  %v9189_v22 = vrot.slane %v166_v13, %v13651_v62 }
 0x162   :  { %13974 = vst [vmem:[#allocation17_spill] sm:$0xff] %v9141_v4 }
 0x163   :  { %6318 = vmatpush1.bf16.msra.mxu0 %v8870_v24  ;;  %6678 = vmatpush1.bf16.msra.mxu1 %v8879_v31  ;;  %13977 = vst [vmem:[#allocation20_spill] sm:$0xff] %v9173_v39 }
 0x164   :  { %6320 = vmatprep.subr.bf16.mxu0 %v8893_v47  ;;  %6680 = vmatprep.subr.bf16.mxu1 %v8904_v57 }
 0x167   :  { %6322 = vmatpush1.bf16.msra.mxu0 %v8906_v61  ;;  %6682 = vmatpush1.bf16.msra.mxu1 %v8915_v17 }
 0x168   :  { %v8752_v32 = vpop.f32.mrb[0].mxu0  ;;  %6324 = vmatprep.subr.bf16.mxu0 %v8928_v28  ;;  %6684 = vmatprep.subr.bf16.mxu1 %v8960_v45 }
 0x169   :  { %v8754_v37 = vpop.f32.mrb[0].mxu1  ;;  %v8756_v38 = vpop.f32.mrb[1].mxu0 }
 0x16a   :  { %v412_v44 = vmax.f32 %v8752_v32, %v8754_v37  ;;  %v8760_v53 = vpop.f32.mrb[1].mxu1 }
 0x16b   :  { %6326 = vmatpush1.bf16.msra.mxu0 %v8962_v48  ;;  %6686 = vmatpush1.bf16.msra.mxu1 %v8974_v11  ;;  %v13980_v32 = vmax.f32 %v8756_v38, %v8760_v53  ;;  %v1592_v38 = vld [vmem:[%s13638_s2 + $0x178] sm:$0xff]  ;;  %v5437_v53 = vld [vmem:[%s13638_s2 + $0xca8] sm:$0xff] }
 0x16c   :  { %v8764_v59 = vpop.f32.mrb[2].mxu0  ;;  %6328 = vmatprep.subr.bf16.mxu0 %v8986_v40  ;;  %6688 = vmatprep.subr.bf16.mxu1 %v8988_v51 }
 0x16d   :  { %v8766_v63 = vpop.f32.mrb[2].mxu1  ;;  %v8768_v8 = vpop.f32.mrb[3].mxu0 }
 0x16e   :  { %v8772_v15 = vpop.f32.mrb[3].mxu1 }
 0x16f   :  { %6330 = vmatpush1.bf16.msra.mxu0 %v9000_v6  ;;  %6690 = vmatpush1.bf16.msra.mxu1 %v9013_v25 }
 0x170   :  { %6332 = vmatprep.subr.bf16.mxu0 %v9015_v30  ;;  %6692 = vmatprep.subr.bf16.mxu1 %v9027_v52 }
 0x173   :  { %6334 = vmatpush1.bf16.msra.mxu0 %v9048_v27  ;;  %6694 = vmatpush1.bf16.msra.mxu1 %v9055_v29 }
 0x174   :  { %6336 = vmatprep.subr.bf16.mxu0 %v9057_v33  ;;  %6696 = vmatprep.subr.bf16.mxu1 %v9069_v16 }
 0x177   :  { %6338 = vmatpush1.bf16.msra.mxu0 %v9087_v12  ;;  %6698 = vmatpush1.bf16.msra.mxu1 %v9091_v14  ;;  %v10393_v14 = vld [vmem:[#allocation4 + $0x18] sm:$0x1] }
 0x178   :  { %6340 = vmatprep.subr.bf16.mxu0 %v9093_v20  ;;  %6700 = vmatprep.subr.bf16.mxu1 %v9105_v56  ;;  %v1701_v20 = vld [vmem:[%s13638_s2 + $0x4e0] sm:$0xff] }
 0x17b   :  { %6342 = vmatpush1.bf16.msra.mxu0 %v9123_v60  ;;  %6702 = vmatpush1.bf16.msra.mxu1 %v9127_v0 }
 0x17c   :  { %6344 = vmatprep.subr.bf16.mxu0 %v9129_v10  ;;  %6704 = vmatprep.subr.bf16.mxu1 %v9141_v4  ;;  %v5434_v4 = vld [vmem:[%s13638_s2 + $0xc90] sm:$0xff] }
 0x17d   :  { %v1149_v10 = vld [vmem:[#allocation3 + $0x10] sm:$0x7f] }
 0x17e   :  { %1152 = vst.msk [vmem:[#allocation5 + $0x10] sm:$0x7f] %vm28_vm0, %v1149_v10 }
 0x17f   :  { %6346 = vmatpush1.bf16.msra.mxu0 %v9150_v42  ;;  %6706 = vmatpush1.bf16.msra.mxu1 %v9154_v46  ;;  %v9193_v46 = vpack.c.bf16 %v1587_v21, %v1585_v43  ;;  %v5432_v42 = vld [vmem:[%s13638_s2 + $0xc80] sm:$0xff] }
 0x180   :  { %6348 = vmatprep.subr.bf16.mxu0 %v9173_v39  ;;  %v9209_v21 = vpack.c.bf16 %v5434_v4, %v5432_v42  ;;  %6708 = vmatprep.subr.bf16.mxu1 %v9191_v54 }
 0x181   :  { %13979 = vst [vmem:[#allocation22_spill] sm:$0xff] %v9193_v46 }
 0x182   :  { %13982 = vst [vmem:[#allocation23_spill] sm:$0xff] %v9209_v21 }
 0x183   :  { %6350 = vmatpush1.bf16.msra.mxu0 %v9193_v46  ;;  %6710 = vmatpush1.bf16.msra.mxu1 %v9209_v21  ;;  %v5438_v21 = vld [vmem:[%s13638_s2 + $0xcb0] sm:$0xff] }
 0x1db   :  { %v501_v36 = vpop.f32.mrb[4].mxu0  ;;  %v582_v5 = vpop.f32.mrb[4].mxu1 }
 0x1dc   :  { %v512_v9 = vmax.f32 %v412_v44, %v501_v36  ;;  %v503_v26 = vpop.f32.mrb[5].mxu0  ;;  %v584_v18 = vpop.f32.mrb[5].mxu1  ;;  %v13981_v44 = vsub.s32 1, %v9138_v2  ;;  %v5436_v2 = vld [vmem:[%s13638_s2 + $0xca0] sm:$0xff] }
 0x1dd   :  { %v513_v37 = vmax.f32 %v13980_v32, %v503_v26  ;;  %v1591_v26 = vld [vmem:[%s13638_s2 + $0x170] sm:$0xff]  ;;  %v13984_v32 = vmax.f32 %v8764_v59, %v8766_v63  ;;  %v13987_v59 = vmax.f32 %v8768_v8, %v8772_v15  ;;  %v5441_v8 = vld [vmem:[%s13638_s2 + $0xcc8] sm:$0xff] }
 0x1de   :  { %v9206_v36 = vrot.slane %v166_v13, %v13981_v44  ;;  %v593_v43 = vmax.f32 %v512_v9, %v582_v5  ;;  %v9223_v9 = vpack.c.bf16 %v1592_v38, %v1590_v55  ;;  %v1589_v5 = vld [vmem:[%s13638_s2 + $0x160] sm:$0xff]  ;;  %v9238_v38 = vpack.c.bf16 %v5439_v35, %v5437_v53 }
 0x1df   :  { %v594_v13 = vmax.f32 %v513_v37, %v584_v18  ;;  %v507_v4 = vpop.f32.mrb[6].mxu0  ;;  %v588_v42 = vpop.f32.mrb[6].mxu1  ;;  %v9240_v62 = vpack.c.bf16 %v1591_v26, %v1589_v5  ;;  %v9253_v53 = vpack.c.bf16 %v5438_v21, %v5436_v2  ;;  %v1594_v5 = vld [vmem:[%s13638_s2 + $0x188] sm:$0xff]  ;;  %v1593_v26 = vld [vmem:[%s13638_s2 + $0x180] sm:$0xff] }
 0x1e0   :  { %13983 = vst [vmem:[#allocation24_spill] sm:$0xff] %v9223_v9  ;;  %v608_v18 = vadd.f32 %v9189_v22, %v593_v43  ;;  %v514_v37 = vmax.f32 %v13984_v32, %v507_v4  ;;  %v509_v44 = vpop.f32.mrb[7].mxu0  ;;  %v590_v55 = vpop.f32.mrb[7].mxu1  ;;  %13985 = vst [vmem:[#allocation25_spill] sm:$0xff] %v9238_v38  ;;  %6352 = vmatprep.subr.bf16.mxu0 %v9223_v9  ;;  %6712 = vmatprep.subr.bf16.mxu1 %v9238_v38 }
 0x1e1   :  { %13986 = vst [vmem:[#allocation26_spill] sm:$0xff] %v9240_v62  ;;  %v609_v43 = vadd.f32 %v9206_v36, %v594_v13  ;;  %v515_v63 = vmax.f32 %v13987_v59, %v509_v44  ;;  %13988 = vst [vmem:[#allocation27_spill] sm:$0xff] %v9253_v53  ;;  %6354 = vmatpush1.bf16.msra.mxu0 %v9240_v62  ;;  %v1596_v13 = vld [vmem:[%s13638_s2 + $0x198] sm:$0xff]  ;;  %6714 = vmatpush1.bf16.msra.mxu1 %v9253_v53 }
 0x1e2   :  { %v612_v4 = vmax.f32 %v608_v18, 0.0  ;;  %v595_v35 = vmax.f32 %v514_v37, %v588_v42  ;;  %v9267_v21 = vpack.c.bf16 %v1596_v13, %v1594_v5  ;;  %v5443_v42 = vld [vmem:[%s13638_s2 + $0xcd8] sm:$0xff]  ;;  %v1595_v18 = vld [vmem:[%s13638_s2 + $0x190] sm:$0xff] }
 0x1e3   :  { %v613_v15 = vmax.f32 %v609_v43, 0.0  ;;  %v596_v2 = vmax.f32 %v515_v63, %v590_v55  ;;  %v9279_v44 = vpack.c.bf16 %v5443_v42, %v5441_v8  ;;  %v5440_v55 = vld [vmem:[%s13638_s2 + $0xcc0] sm:$0xff]  ;;  %v5442_v43 = vld [vmem:[%s13638_s2 + $0xcd0] sm:$0xff]  ;;  %v9289_v5 = vpack.c.bf16 %v1595_v18, %v1593_v26  ;;  %v1598_v8 = vld [vmem:[%s13638_s2 + $0x1a8] sm:$0xff] }
 0x1e4   :  { %13989 = vst [vmem:[#allocation28_spill] sm:$0xff] %v9267_v21  ;;  %v610_v32 = vadd.f32 %v9189_v22, %v595_v35  ;;  %v618_v37 = vrot.slane %v612_v4, 7  ;;  %6356 = vmatprep.subr.bf16.mxu0 %v9267_v21  ;;  %v9293_v35 = vpack.c.bf16 %v5442_v43, %v5440_v55  ;;  %v5445_v42 = vld [vmem:[%s13638_s2 + $0xce8] sm:$0xff]  ;;  %v1599_v55 = vld [vmem:[%s13638_s2 + $0x1b0] sm:$0xff]  ;;  %v633_v43 = vrot.slane %v612_v4, 5 }
 0x1e5   :  { %13990 = vst [vmem:[#allocation29_spill] sm:$0xff] %v9279_v44  ;;  %v611_v59 = vadd.f32 %v9206_v36, %v596_v2  ;;  %v619_v63 = vrot.slane %v613_v15, 7  ;;  %13991 = vst [vmem:[#allocation30_spill] sm:$0xff] %v9289_v5  ;;  %6716 = vmatprep.subr.bf16.mxu1 %v9279_v44  ;;  %v1600_v2 = vld [vmem:[%s13638_s2 + $0x1b8] sm:$0xff]  ;;  %6358 = vmatpush1.bf16.msra.mxu0 %v9289_v5  ;;  %v5446_v5 = vld [vmem:[%s13638_s2 + $0xcf0] sm:$0xff]  ;;  %v636_v44 = vrot.slane %v613_v15, 5 }
 0x1e6   :  { %v614_v13 = vmax.f32 %v610_v32, 0.0  ;;  %620 = vrot.lane.b32.xlu0 %v618_v37, %s8111_s28  ;;  %13992 = vst [vmem:[#allocation31_spill] sm:$0xff] %v9293_v35  ;;  %v9306_v18 = vpack.c.bf16 %v1600_v2, %v1598_v8  ;;  %v5447_v32 = vld [vmem:[%s13638_s2 + $0xcf8] sm:$0xff]  ;;  %v1597_v37 = vld [vmem:[%s13638_s2 + $0x1a0] sm:$0xff]  ;;  %6718 = vmatpush1.bf16.msra.mxu1 %v9293_v35  ;;  %v5449_v15 = vld [vmem:[%s13638_s2 + $0xd08] sm:$0xff] }
 0x1e7   :  { %v615_v26 = vmax.f32 %v611_v59, 0.0  ;;  %622 = vrot.lane.b32.xlu1 %v619_v63, %s8111_s28  ;;  %v9320_v63 = vpack.c.bf16 %v5447_v32, %v5445_v42  ;;  %v9322_v8 = vpack.c.bf16 %v1599_v55, %v1597_v37  ;;  %v5444_v2 = vld [vmem:[%s13638_s2 + $0xce0] sm:$0xff]  ;;  %v1602_v42 = vld [vmem:[%s13638_s2 + $0x1c8] sm:$0xff]  ;;  %v1604_v32 = vld [vmem:[%s13638_s2 + $0x1d8] sm:$0xff] }
 0x1e8   :  { %13993 = vst [vmem:[#allocation32_spill] sm:$0xff] %v9306_v18  ;;  %v9317_v59 = vrot.slane %v614_v13, 5  ;;  %6360 = vmatprep.subr.bf16.mxu0 %v9306_v18  ;;  %v9333_v4 = vpack.c.bf16 %v5446_v5, %v5444_v2  ;;  %v5451_v37 = vld [vmem:[%s13638_s2 + $0xd18] sm:$0xff]  ;;  %v1601_v55 = vld [vmem:[%s13638_s2 + $0x1c0] sm:$0xff] }
 0x1e9   :  { %13994 = vst [vmem:[#allocation33_spill] sm:$0xff] %v9320_v63  ;;  %13995 = vst [vmem:[#allocation34_spill] sm:$0xff] %v9322_v8  ;;  %v9330_v21 = vrot.slane %v615_v26, 5  ;;  %6720 = vmatprep.subr.bf16.mxu1 %v9320_v63  ;;  %6362 = vmatpush1.bf16.msra.mxu0 %v9322_v8  ;;  %v9351_v26 = vpack.c.bf16 %v1604_v32, %v1602_v42  ;;  %v5450_v42 = vld [vmem:[%s13638_s2 + $0xd10] sm:$0xff]  ;;  %v1606_v32 = vld [vmem:[%s13638_s2 + $0x1e8] sm:$0xff] }
 0x1ea   :  { %13996 = vst [vmem:[#allocation35_spill] sm:$0xff] %v9333_v4  ;;  %v635_v13 = vsel %vm632_vm15, %v633_v43, %v9317_v59  ;;  %v1603_v43 = vld [vmem:[%s13638_s2 + $0x1d0] sm:$0xff]  ;;  %6722 = vmatpush1.bf16.msra.mxu1 %v9333_v4 }
 0x1eb   :  { %639 = vrot.lane.b32.xlu0 %v635_v13, %s8111_s28  ;;  %v638_v5 = vsel %vm632_vm15, %v636_v44, %v9330_v21  ;;  %13997 = vst [vmem:[#allocation36_spill] sm:$0xff] %v9351_v26  ;;  %v9364_v44 = vpack.c.bf16 %v5451_v37, %v5449_v15  ;;  %v9366_v2 = vpack.c.bf16 %v1603_v43, %v1601_v55  ;;  %v5448_v13 = vld [vmem:[%s13638_s2 + $0xd00] sm:$0xff]  ;;  %v1608_v15 = vld [vmem:[%s13638_s2 + $0x1f8] sm:$0xff]  ;;  %v5453_v37 = vld [vmem:[%s13638_s2 + $0xd28] sm:$0xff] }
 0x1ec   :  { %641 = vrot.lane.b32.xlu1 %v638_v5, %s8111_s28  ;;  %6364 = vmatprep.subr.bf16.mxu0 %v9351_v26  ;;  %v9378_v5 = vpack.c.bf16 %v5450_v42, %v5448_v13  ;;  %v5455_v55 = vld [vmem:[%s13638_s2 + $0xd38] sm:$0xff]  ;;  %v9390_v43 = vpack.c.bf16 %v1608_v15, %v1606_v32  ;;  %v1605_v13 = vld [vmem:[%s13638_s2 + $0x1e0] sm:$0xff]  ;;  %v1607_v42 = vld [vmem:[%s13638_s2 + $0x1f0] sm:$0xff] }
 0x1ed   :  { %13998 = vst [vmem:[#allocation37_spill] sm:$0xff] %v9364_v44  ;;  %13999 = vst [vmem:[#allocation38_spill] sm:$0xff] %v9366_v2  ;;  %6724 = vmatprep.subr.bf16.mxu1 %v9364_v44  ;;  %v9392_v4 = vpack.c.bf16 %v5455_v55, %v5453_v37  ;;  %v5452_v26 = vld [vmem:[%s13638_s2 + $0xd20] sm:$0xff]  ;;  %6366 = vmatpush1.bf16.msra.mxu0 %v9366_v2  ;;  %v9404_v8 = vpack.c.bf16 %v1607_v42, %v1605_v13  ;;  %v5454_v32 = vld [vmem:[%s13638_s2 + $0xd30] sm:$0xff] }
 0x1ee   :  { %14000 = vst [vmem:[#allocation39_spill] sm:$0xff] %v9378_v5  ;;  %14001 = vst [vmem:[#allocation40_spill] sm:$0xff] %v9390_v43  ;;  %6726 = vmatpush1.bf16.msra.mxu1 %v9378_v5  ;;  %6368 = vmatprep.subr.bf16.mxu0 %v9390_v43  ;;  %v9411_v15 = vpack.c.bf16 %v5454_v32, %v5452_v26 }
 0x1ef   :  { %14002 = vst [vmem:[#allocation41_spill] sm:$0xff] %v9392_v4  ;;  %14003 = vst [vmem:[#allocation42_spill] sm:$0xff] %v9404_v8  ;;  %6728 = vmatprep.subr.bf16.mxu1 %v9392_v4 }
 0x1f0   :  { %14004 = vst [vmem:[#allocation43_spill] sm:$0xff] %v9411_v15 }
 0x1f1   :  { %6370 = vmatpush1.bf16.msra.mxu0 %v9404_v8 }
 0x1f2   :  { %6730 = vmatpush1.bf16.msra.mxu1 %v9411_v15 }
 0x203   :  { %v790_v37 = vpop.f32.mrb[8].mxu0  ;;  %v907_v55 = vpop.f32.mrb[8].mxu1 }
 0x204   :  { %v918_v13 = vmax.f32 %v790_v37, %v907_v55  ;;  %v792_v42 = vpop.f32.mrb[9].mxu0  ;;  %v909_v2 = vpop.f32.mrb[9].mxu1 }
 0x205   :  { %v919_v44 = vmax.f32 %v792_v42, %v909_v2 }
 0x207   :  { %v796_v63 = vpop.f32.mrb[10].mxu0  ;;  %v913_v18 = vpop.f32.mrb[10].mxu1 }
 0x208   :  { %v920_v35 = vmax.f32 %v796_v63, %v913_v18  ;;  %v798_v5 = vpop.f32.mrb[11].mxu0  ;;  %v915_v53 = vpop.f32.mrb[11].mxu1 }
 0x209   :  { %v921_v43 = vmax.f32 %v798_v5, %v915_v53 }
 0x22c   :  { %v1004_v26 = vpop.f32.mrb[12].mxu0  ;;  %v1085_v32 = vpop.f32.mrb[12].mxu1 }
 0x22d   :  { %v1015_v62 = vmax.f32 %v918_v13, %v1004_v26  ;;  %v1006_v4 = vpop.f32.mrb[13].mxu0  ;;  %v1087_v38 = vpop.f32.mrb[13].mxu1 }
 0x22e   :  { %v1016_v8 = vmax.f32 %v919_v44, %v1006_v4 }
 0x22f   :  { %v1096_v9 = vmax.f32 %v1015_v62, %v1085_v32 }
 0x230   :  { %v1097_v15 = vmax.f32 %v1016_v8, %v1087_v38  ;;  %v1010_v46 = vpop.f32.mrb[14].mxu0  ;;  %v1091_v54 = vpop.f32.mrb[14].mxu1 }
 0x231   :  { %v1100_v37 = vadd.f32 %v1096_v9, %v9189_v22  ;;  %v1017_v55 = vmax.f32 %v920_v35, %v1010_v46  ;;  %v1012_v2 = vpop.f32.mrb[15].mxu0  ;;  %v1093_v42 = vpop.f32.mrb[15].mxu1 }
 0x232   :  { %v1101_v18 = vadd.f32 %v1097_v15, %v9206_v36  ;;  %v1018_v63 = vmax.f32 %v921_v43, %v1012_v2  ;;  %v1612_v43 = vld [vmem:[%s13638_s2 + $0x218] sm:$0xff]  ;;  %v5457_v15 = vld [vmem:[%s13638_s2 + $0xd48] sm:$0xff] }
 0x233   :  { %v1098_v39 = vmax.f32 %v1017_v55, %v1091_v54  ;;  %v1104_v5 = vmax.f32 %v1100_v37, 0.0  ;;  %v5459_v37 = vld [vmem:[%s13638_s2 + $0xd58] sm:$0xff] }
 0x234   :  { %v1099_v53 = vmax.f32 %v1018_v63, %v1093_v42  ;;  %v1105_v26 = vmax.f32 %v1101_v18, 0.0  ;;  %v9446_v55 = vpack.c.bf16 %v5459_v37, %v5457_v15  ;;  %v5463_v15 = vld [vmem:[%s13638_s2 + $0xd78] sm:$0xff]  ;;  %v1613_v37 = vld [vmem:[%s13638_s2 + $0x220] sm:$0xff] }
 0x235   :  { %v1102_v13 = vadd.f32 %v1098_v39, %v9189_v22  ;;  %v1123_v8 = vrot.slane %v1104_v5, 5  ;;  %v1110_v39 = vrot.slane %v1104_v5, 7 }
 0x236   :  { %v1103_v4 = vadd.f32 %v1099_v53, %v9206_v36  ;;  %v1126_v9 = vrot.slane %v1105_v26, 5  ;;  %v1111_v22 = vrot.slane %v1105_v26, 7  ;;  %v1610_v36 = vld [vmem:[%s13638_s2 + $0x208] sm:$0xff]  ;;  %14006 = vst [vmem:[#allocation45_spill] sm:$0xff] %v9446_v55  ;;  %6732 = vmatprep.subr.bf16.mxu1 %v9446_v55 }
 0x237   :  { %v1106_v62 = vmax.f32 %v1102_v13, 0.0  ;;  %v9441_v32 = vpack.c.bf16 %v1612_v43, %v1610_v36  ;;  %v1616_v36 = vld [vmem:[%s13638_s2 + $0x238] sm:$0xff]  ;;  %v5461_v43 = vld [vmem:[%s13638_s2 + $0xd68] sm:$0xff] }
 0x238   :  { %v1107_v38 = vmax.f32 %v1103_v4, 0.0 }
 0x239   :  { %v9420_v44 = vrot.slane %v1106_v62, 5  ;;  %14005 = vst [vmem:[#allocation44_spill] sm:$0xff] %v9441_v32  ;;  %6372 = vmatprep.subr.bf16.mxu0 %v9441_v32  ;;  %v1626_v32 = vld [vmem:[%s13638_s2 + $0x288] sm:$0xff] }
 0x23a   :  { %v9422_v46 = vrot.slane %v1107_v38, 5 }
 0x23b   :  { %v1125_v35 = vsel %vm632_vm15, %v1123_v8, %v9420_v44 }
 0x23c   :  { %1129 = vrot.lane.b32.xlu0 %v1125_v35, %s8111_s28  ;;  %v1128_v54 = vsel %vm632_vm15, %v1126_v9, %v9422_v46  ;;  %v1609_v9 = vld [vmem:[%s13638_s2 + $0x200] sm:$0xff]  ;;  %v1611_v35 = vld [vmem:[%s13638_s2 + $0x210] sm:$0xff]  ;;  %vm13740_vm15 = vcmask 1045760  }
 0x23d   :  { %1131 = vrot.lane.b32.xlu1 %v1128_v54, %s8111_s28  ;;  %v5456_v54 = vld [vmem:[%s13638_s2 + $0xd40] sm:$0xff] }
 0x240   :  { %1112 = vrot.lane.b32.xlu0 %v1110_v39, %s8111_s28  ;;  %v5458_v39 = vld [vmem:[%s13638_s2 + $0xd50] sm:$0xff] }
 0x241   :  { %1114 = vrot.lane.b32.xlu1 %v1111_v22, %s8111_s28  ;;  %v1614_v22 = vld [vmem:[%s13638_s2 + $0x228] sm:$0xff] }
 0x258   :  { %v621_v2 = vpop.permute.xlu0 %620 }
 0x259   :  { %628 = vst.msk [vmem:[#allocation3] sm:$0xfe] %vm627_vm3, %v621_v2  ;;  %v623_v42 = vpop.permute.xlu1 %622 }
 0x25a   :  { %v624_v18 = vsel %vm148_vm12, %v621_v2, %v623_v42  ;;  %v1615_v2 = vld [vmem:[%s13638_s2 + $0x230] sm:$0xff] }
 0x25b   :  { %629 = vst [vmem:[#allocation3 + $0x8] sm:$0xfe] %v624_v18  ;;  %v9484_v18 = vpack.c.bf16 %v1611_v35, %v1609_v9  ;;  %v5465_v9 = vld [vmem:[%s13638_s2 + $0xd88] sm:$0xff]  ;;  %v5467_v35 = vld [vmem:[%s13638_s2 + $0xd98] sm:$0xff] }
 0x25d   :  { %v640_v63 = vpop.permute.xlu0 %639  ;;  %14007 = vst [vmem:[#allocation46_spill] sm:$0xff] %v9484_v18 }
 0x25e   :  { %654 = vst.msk [vmem:[#allocation3 + $0x18] sm:$0xfc] %vm653_vm4, %v640_v63  ;;  %v642_v53 = vpop.permute.xlu1 %641 }
 0x25f   :  { %v647_v5 = vsel %vm148_vm12, %v640_v63, %v642_v53  ;;  %v9486_v63 = vpack.c.bf16 %v5458_v39, %v5456_v54  ;;  %v5460_v53 = vld [vmem:[%s13638_s2 + $0xd60] sm:$0xff]  ;;  %v1226_v54 = vld [vmem:[#allocation3 + $0x18] sm:$0x1] }
 0x260   :  { %v1147_v13 = vld [vmem:[#allocation3] sm:$0x7f]  ;;  %655 = vst [vmem:[#allocation3 + $0x20] sm:$0xfc] %v647_v5  ;;  %v5462_v5 = vld [vmem:[%s13638_s2 + $0xd70] sm:$0xff] }
 0x261   :  { %1150 = vst [vmem:[#allocation5] sm:$0x7f] %v1147_v13  ;;  %14008 = vst [vmem:[#allocation47_spill] sm:$0xff] %v9486_v63  ;;  %v1227_v39 = vld [vmem:[#allocation3 + $0x20] sm:$0x1] }
 0x262   :  { %v1148_v26 = vld [vmem:[#allocation3 + $0x8] sm:$0x7f]  ;;  %v1223_v0 = vld [vmem:[#allocation3] sm:$0xfc] }
 0x263   :  { %1151 = vst [vmem:[#allocation5 + $0x8] sm:$0x7f] %v1148_v26  ;;  %v9494_v26 = vpack.c.bf16 %v1616_v36, %v1614_v22  ;;  %v9512_v22 = vpack.c.bf16 %v1615_v2, %v1613_v37  ;;  %v9514_v36 = vpack.c.bf16 %v5462_v5, %v5460_v53  ;;  %v9529_v2 = vpack.c.bf16 %v5467_v35, %v5465_v9  ;;  %v5466_v53 = vld [vmem:[%s13638_s2 + $0xd90] sm:$0xff]  ;;  %v1622_v5 = vld [vmem:[%s13638_s2 + $0x268] sm:$0xff]  ;;  %v1621_v9 = vld [vmem:[%s13638_s2 + $0x260] sm:$0xff] }
 0x264   :  { %v1623_v35 = vld [vmem:[%s13638_s2 + $0x270] sm:$0xff]  ;;  %v1224_v60 = vld [vmem:[#allocation3 + $0x8] sm:$0xfc] }
 0x265   :  { %v1286_v4 = vld [vmem:[#allocation3 + $0x18] sm:$0xfe]  ;;  %14009 = vst [vmem:[#allocation48_spill] sm:$0xff] %v9494_v26  ;;  %14011 = vst [vmem:[#allocation50_spill] sm:$0xff] %v9512_v22 }
 0x266   :  { %v1292_v62 = vrot.slane %v1286_v4, 2  ;;  %v9496_v4 = vpack.c.bf16 %v5463_v15, %v5461_v43  ;;  %14012 = vst [vmem:[#allocation51_spill] sm:$0xff] %v9514_v36  ;;  %v1617_v43 = vld [vmem:[%s13638_s2 + $0x240] sm:$0xff]  ;;  %v1619_v15 = vld [vmem:[%s13638_s2 + $0x250] sm:$0xff]  ;;  %14014 = vst [vmem:[#allocation53_spill] sm:$0xff] %v9529_v2 }
 0x267   :  { %v1287_v38 = vld [vmem:[#allocation3 + $0x20] sm:$0xfe] }
 0x268   :  { %1298 = vst [vmem:[#allocation5] sm:$0x80] %v1292_v62  ;;  %1301 = vst [vmem:[#allocation5 + $0x70] sm:$0x3f] %v1292_v62  ;;  %v1293_v8 = vrot.slane %v1287_v38, 2  ;;  %v1618_v62 = vld [vmem:[%s13638_s2 + $0x248] sm:$0xff] }
 0x269   :  { %14010 = vst [vmem:[#allocation49_spill] sm:$0xff] %v9496_v4  ;;  %v1620_v38 = vld [vmem:[%s13638_s2 + $0x258] sm:$0xff] }
 0x26a   :  { %1299 = vst [vmem:[#allocation5 + $0x8] sm:$0x80] %v1293_v8  ;;  %1302 = vst [vmem:[#allocation5 + $0x78] sm:$0x3f] %v1293_v8  ;;  %v9527_v37 = vpack.c.bf16 %v1620_v38, %v1618_v62  ;;  %v5469_v62 = vld [vmem:[%s13638_s2 + $0xda8] sm:$0xff]  ;;  %v5471_v38 = vld [vmem:[%s13638_s2 + $0xdb8] sm:$0xff] }
 0x26c   :  { %14013 = vst [vmem:[#allocation52_spill] sm:$0xff] %v9527_v37 }
 0x26f   :  { %v1521_v13 = vld [vmem:[#allocation5] sm:$0xff] }
 0x271   :  { %v1522_v42 = vld [vmem:[#allocation5 + $0x8] sm:$0xff]  ;;  %v1534_v8 = vld [vmem:[#allocation5 + $0x78] sm:$0x3f] }
 0x272   :  { %1975 = vmatprep.mubr.f32.mxu0 %v1522_v42  ;;  %2798 = vmatprep.mubr.f32.mxu1 %v1522_v42  ;;  %v5464_v42 = vld [vmem:[%s13638_s2 + $0xd80] sm:$0xff] }
 0x273   :  { %1976 = vmatmul.mubr.f32.vlgmr.msra.gmra.mrb[16].mxu0 %v1521_v13  ;;  %2799 = vmatmul.mubr.f32.vlgmr.msra.gmra.mrb[16].mxu1 %v1521_v13  ;;  %v1533_v13 = vld [vmem:[#allocation5 + $0x70] sm:$0x3f]  ;;  %v9562_v55 = vpack.c.bf16 %v5466_v53, %v5464_v42  ;;  %v9574_v42 = vld [vmem:[#allocation3 + $0x18] sm:$0xf8] }
 0x274   :  { %1981 = vmatprep.mubr.f32.mxu0 %v1534_v8  ;;  %2804 = vmatprep.mubr.f32.mxu1 %v1534_v8  ;;  %v1624_v8 = vld [vmem:[%s13638_s2 + $0x278] sm:$0xff]  ;;  %v9576_v53 = vld [vmem:[#allocation3 + $0x20] sm:$0xf8]  ;;  %v13690_v10 = vrot.slane %v9574_v42, 4 }
 0x275   :  { %6374 = vmatpush1.bf16.msra.mxu0 %v9484_v18  ;;  %6734 = vmatpush1.bf16.msra.mxu1 %v9486_v63  ;;  %v1240_v63 = vrot.slane %v1227_v39, 2  ;;  %v9560_v18 = vpack.c.bf16 %v1619_v15, %v1617_v43  ;;  %14016 = vst [vmem:[#allocation55_spill] sm:$0xff] %v9562_v55  ;;  %v9571_v39 = vpack.c.bf16 %v5471_v38, %v5469_v62  ;;  %v1236_v43 = vrot.slane %v1223_v0, 2 }
 0x276   :  { %6376 = vmatprep.subr.bf16.mxu0 %v9494_v26  ;;  %6736 = vmatprep.subr.bf16.mxu1 %v9496_v4  ;;  %v5470_v4 = vld [vmem:[%s13638_s2 + $0xdb0] sm:$0xff]  ;;  %v1237_v26 = vrot.slane %v1226_v54, 2  ;;  %v9569_v54 = vpack.c.bf16 %v1624_v8, %v1622_v5  ;;  %v1239_v15 = vrot.slane %v1224_v60, 2  ;;  %v5475_v5 = vld [vmem:[%s13638_s2 + $0xdd8] sm:$0xff]  ;;  %v9593_v62 = vpack.c.bf16 %v1623_v35, %v1621_v9  ;;  %1465 = vst [vmem:[#allocation5 + $0x48] sm:$0x80] %v13690_v10 }
 0x277   :  { %1982 = vmatmul.mubr.f32.gmra.mrb[18].mxu0 %v1533_v13  ;;  %2805 = vmatmul.mubr.f32.gmra.mrb[18].mxu1 %v1533_v13  ;;  %v5468_v13 = vld [vmem:[%s13638_s2 + $0xda0] sm:$0xff]  ;;  %14015 = vst [vmem:[#allocation54_spill] sm:$0xff] %v9560_v18  ;;  %14018 = vst [vmem:[#allocation57_spill] sm:$0xff] %v9571_v39  ;;  %v1627_v60 = vld [vmem:[%s13638_s2 + $0x290] sm:$0xff] }
 0x278   :  { %14017 = vst [vmem:[#allocation56_spill] sm:$0xff] %v9569_v54  ;;  %v1238_v0 = vsel %vm1235_vm5, %v1236_v43, %v1237_v26  ;;  %v1241_v8 = vsel %vm1235_vm5, %v1239_v15, %v1240_v63  ;;  %14019 = vst [vmem:[#allocation58_spill] sm:$0xff] %v9593_v62  ;;  %v9595_v38 = vpack.c.bf16 %v5470_v4, %v5468_v13  ;;  %v14021_v63 = vrot.slane %v9576_v53, 4  ;;  %v5472_v9 = vld [vmem:[%s13638_s2 + $0xdc0] sm:$0xff]  ;;  %v5474_v35 = vld [vmem:[%s13638_s2 + $0xdd0] sm:$0xff] }
 0x279   :  { %6378 = vmatpush1.bf16.msra.mxu0 %v9512_v22  ;;  %6738 = vmatpush1.bf16.msra.mxu1 %v9514_v36  ;;  %v1628_v36 = vld [vmem:[%s13638_s2 + $0x298] sm:$0xff]  ;;  %1248 = vst [vmem:[#allocation5 + $0x48] sm:$0x7f] %v1238_v0  ;;  %1249 = vst [vmem:[#allocation5 + $0x50] sm:$0x7f] %v1241_v8  ;;  %v1630_v13 = vld [vmem:[%s13638_s2 + $0x2a8] sm:$0xff]  ;;  %v9635_v15 = vpack.c.bf16 %v5474_v35, %v5472_v9 }
 0x27a   :  { %6380 = vmatprep.subr.bf16.mxu0 %v9527_v37  ;;  %6740 = vmatprep.subr.bf16.mxu1 %v9529_v2  ;;  %v5473_v2 = vld [vmem:[%s13638_s2 + $0xdc8] sm:$0xff]  ;;  %14020 = vst [vmem:[#allocation59_spill] sm:$0xff] %v9595_v38  ;;  %v1625_v37 = vld [vmem:[%s13638_s2 + $0x280] sm:$0xff]  ;;  %1466 = vst [vmem:[#allocation5 + $0x50] sm:$0x80] %v14021_v63  ;;  %v9609_v26 = vpack.c.bf16 %v1628_v36, %v1626_v32  ;;  %v14080_v22 = vrot.slane %v9574_v42, 4 }
 0x27b   :  { %v9611_v4 = vpack.c.bf16 %v5475_v5, %v5473_v2  ;;  %v1632_v43 = vld [vmem:[%s13638_s2 + $0x2b8] sm:$0xff]  ;;  %v5477_v32 = vld [vmem:[%s13638_s2 + $0xde8] sm:$0xff]  ;;  %v9633_v2 = vpack.c.bf16 %v1627_v60, %v1625_v37  ;;  %14025 = vst [vmem:[#allocation63_spill] sm:$0xff] %v9635_v15  ;;  %v1629_v5 = vld [vmem:[%s13638_s2 + $0x2a0] sm:$0xff] }
 0x27c   :  { %14022 = vst [vmem:[#allocation60_spill] sm:$0xff] %v9609_v26  ;;  %v5479_v36 = vld [vmem:[%s13638_s2 + $0xdf8] sm:$0xff]  ;;  %v1631_v0 = vld [vmem:[%s13638_s2 + $0x2b0] sm:$0xff]  ;;  %v9645_v8 = vpack.c.bf16 %v1632_v43, %v1630_v13  ;;  %v5476_v37 = vld [vmem:[%s13638_s2 + $0xde0] sm:$0xff] }
 0x27d   :  { %6382 = vmatpush1.bf16.msra.mxu0 %v9560_v18  ;;  %6742 = vmatpush1.bf16.msra.mxu1 %v9562_v55  ;;  %14023 = vst [vmem:[#allocation61_spill] sm:$0xff] %v9611_v4  ;;  %14024 = vst [vmem:[#allocation62_spill] sm:$0xff] %v9633_v2  ;;  %v9647_v63 = vpack.c.bf16 %v5479_v36, %v5477_v32  ;;  %v5478_v60 = vld [vmem:[%s13638_s2 + $0xdf0] sm:$0xff]  ;;  %v1634_v9 = vld [vmem:[%s13638_s2 + $0x2c8] sm:$0xff]  ;;  %v9669_v32 = vpack.c.bf16 %v1631_v0, %v1629_v5 }
 0x27e   :  { %6384 = vmatprep.subr.bf16.mxu0 %v9569_v54  ;;  %6744 = vmatprep.subr.bf16.mxu1 %v9571_v39  ;;  %14026 = vst [vmem:[#allocation64_spill] sm:$0xff] %v9645_v8  ;;  %v1636_v35 = vld [vmem:[%s13638_s2 + $0x2d8] sm:$0xff]  ;;  %v5481_v13 = vld [vmem:[%s13638_s2 + $0xe08] sm:$0xff]  ;;  %v9671_v36 = vpack.c.bf16 %v5478_v60, %v5476_v37  ;;  %v1633_v10 = vld [vmem:[%s13638_s2 + $0x2c0] sm:$0xff] }
 0x27f   :  { %14027 = vst [vmem:[#allocation65_spill] sm:$0xff] %v9647_v63  ;;  %v5483_v43 = vld [vmem:[%s13638_s2 + $0xe18] sm:$0xff]  ;;  %14028 = vst [vmem:[#allocation66_spill] sm:$0xff] %v9669_v32  ;;  %v5480_v5 = vld [vmem:[%s13638_s2 + $0xe00] sm:$0xff] }
 0x280   :  { %14029 = vst [vmem:[#allocation67_spill] sm:$0xff] %v9671_v36  ;;  %v5482_v0 = vld [vmem:[%s13638_s2 + $0xe10] sm:$0xff]  ;;  %v1638_v37 = vld [vmem:[%s13638_s2 + $0x2e8] sm:$0xff]  ;;  %v1640_v60 = vld [vmem:[%s13638_s2 + $0x2f8] sm:$0xff] }
 0x281   :  { %6386 = vmatpush1.bf16.msra.mxu0 %v9593_v62  ;;  %6746 = vmatpush1.bf16.msra.mxu1 %v9595_v38  ;;  %v1682_v54 = vld [vmem:[%s13638_s2 + $0x448] sm:$0xff]  ;;  %v5531_v18 = vld [vmem:[%s13638_s2 + $0xf98] sm:$0xff] }
 0x282   :  { %6388 = vmatprep.subr.bf16.mxu0 %v9609_v26  ;;  %6748 = vmatprep.subr.bf16.mxu1 %v9611_v4  ;;  %v1635_v4 = vld [vmem:[%s13638_s2 + $0x2d0] sm:$0xff]  ;;  %v9681_v26 = vpack.c.bf16 %v1636_v35, %v1634_v9  ;;  %v5485_v9 = vld [vmem:[%s13638_s2 + $0xe28] sm:$0xff]  ;;  %v5487_v35 = vld [vmem:[%s13638_s2 + $0xe38] sm:$0xff] }
 0x284   :  { %14030 = vst [vmem:[#allocation68_spill] sm:$0xff] %v9681_v26 }
 0x285   :  { %6390 = vmatpush1.bf16.msra.mxu0 %v9633_v2  ;;  %6750 = vmatpush1.bf16.msra.mxu1 %v9635_v15  ;;  %v9683_v2 = vpack.c.bf16 %v5483_v43, %v5481_v13  ;;  %v9705_v13 = vpack.c.bf16 %v1635_v4, %v1633_v10  ;;  %v9707_v43 = vpack.c.bf16 %v5482_v0, %v5480_v5  ;;  %v5484_v10 = vld [vmem:[%s13638_s2 + $0xe20] sm:$0xff]  ;;  %v5486_v4 = vld [vmem:[%s13638_s2 + $0xe30] sm:$0xff]  ;;  %v1642_v5 = vld [vmem:[%s13638_s2 + $0x308] sm:$0xff] }
 0x286   :  { %6392 = vmatprep.subr.bf16.mxu0 %v9645_v8  ;;  %6752 = vmatprep.subr.bf16.mxu1 %v9647_v63  ;;  %v1637_v63 = vld [vmem:[%s13638_s2 + $0x2e0] sm:$0xff]  ;;  %v1639_v8 = vld [vmem:[%s13638_s2 + $0x2f0] sm:$0xff]  ;;  %v9717_v15 = vpack.c.bf16 %v1640_v60, %v1638_v37  ;;  %v1644_v0 = vld [vmem:[%s13638_s2 + $0x318] sm:$0xff] }
 0x287   :  { %14031 = vst [vmem:[#allocation69_spill] sm:$0xff] %v9683_v2  ;;  %14032 = vst [vmem:[#allocation70_spill] sm:$0xff] %v9705_v13  ;;  %v5489_v37 = vld [vmem:[%s13638_s2 + $0xe48] sm:$0xff]  ;;  %v5491_v60 = vld [vmem:[%s13638_s2 + $0xe58] sm:$0xff] }
 0x288   :  { %14033 = vst [vmem:[#allocation71_spill] sm:$0xff] %v9707_v43  ;;  %14034 = vst [vmem:[#allocation72_spill] sm:$0xff] %v9717_v15 }
 0x289   :  { %6394 = vmatpush1.bf16.msra.mxu0 %v9669_v32  ;;  %6754 = vmatpush1.bf16.msra.mxu1 %v9671_v36  ;;  %v9719_v32 = vpack.c.bf16 %v5487_v35, %v5485_v9  ;;  %v9741_v9 = vpack.c.bf16 %v1639_v8, %v1637_v63  ;;  %v9743_v35 = vpack.c.bf16 %v5486_v4, %v5484_v10  ;;  %v5488_v8 = vld [vmem:[%s13638_s2 + $0xe40] sm:$0xff]  ;;  %v5490_v63 = vld [vmem:[%s13638_s2 + $0xe50] sm:$0xff]  ;;  %v1646_v10 = vld [vmem:[%s13638_s2 + $0x328] sm:$0xff] }
 0x28a   :  { %6396 = vmatprep.subr.bf16.mxu0 %v9681_v26  ;;  %6756 = vmatprep.subr.bf16.mxu1 %v9683_v2  ;;  %v1641_v2 = vld [vmem:[%s13638_s2 + $0x300] sm:$0xff]  ;;  %v1643_v26 = vld [vmem:[%s13638_s2 + $0x310] sm:$0xff]  ;;  %v9753_v36 = vpack.c.bf16 %v1644_v0, %v1642_v5  ;;  %v1648_v4 = vld [vmem:[%s13638_s2 + $0x338] sm:$0xff] }
 0x28b   :  { %14035 = vst [vmem:[#allocation73_spill] sm:$0xff] %v9719_v32  ;;  %14036 = vst [vmem:[#allocation74_spill] sm:$0xff] %v9741_v9  ;;  %v5493_v5 = vld [vmem:[%s13638_s2 + $0xe68] sm:$0xff]  ;;  %v5495_v0 = vld [vmem:[%s13638_s2 + $0xe78] sm:$0xff] }
 0x28c   :  { %14037 = vst [vmem:[#allocation75_spill] sm:$0xff] %v9743_v35  ;;  %14038 = vst [vmem:[#allocation76_spill] sm:$0xff] %v9753_v36 }
 0x28d   :  { %6398 = vmatpush1.bf16.msra.mxu0 %v9705_v13  ;;  %6758 = vmatpush1.bf16.msra.mxu1 %v9707_v43  ;;  %v9755_v13 = vpack.c.bf16 %v5491_v60, %v5489_v37  ;;  %v9777_v37 = vpack.c.bf16 %v1643_v26, %v1641_v2  ;;  %v9779_v60 = vpack.c.bf16 %v5490_v63, %v5488_v8  ;;  %v5492_v26 = vld [vmem:[%s13638_s2 + $0xe60] sm:$0xff]  ;;  %v5494_v2 = vld [vmem:[%s13638_s2 + $0xe70] sm:$0xff]  ;;  %v1650_v8 = vld [vmem:[%s13638_s2 + $0x348] sm:$0xff] }
 0x28e   :  { %6400 = vmatprep.subr.bf16.mxu0 %v9717_v15  ;;  %6760 = vmatprep.subr.bf16.mxu1 %v9719_v32  ;;  %v1645_v32 = vld [vmem:[%s13638_s2 + $0x320] sm:$0xff]  ;;  %v1647_v15 = vld [vmem:[%s13638_s2 + $0x330] sm:$0xff]  ;;  %v9789_v43 = vpack.c.bf16 %v1648_v4, %v1646_v10  ;;  %v1652_v63 = vld [vmem:[%s13638_s2 + $0x358] sm:$0xff] }
 0x28f   :  { %14039 = vst [vmem:[#allocation77_spill] sm:$0xff] %v9755_v13  ;;  %14040 = vst [vmem:[#allocation78_spill] sm:$0xff] %v9777_v37  ;;  %v5497_v10 = vld [vmem:[%s13638_s2 + $0xe88] sm:$0xff]  ;;  %v5499_v4 = vld [vmem:[%s13638_s2 + $0xe98] sm:$0xff] }
 0x290   :  { %14041 = vst [vmem:[#allocation79_spill] sm:$0xff] %v9779_v60  ;;  %14042 = vst [vmem:[#allocation80_spill] sm:$0xff] %v9789_v43 }
 0x291   :  { %6402 = vmatpush1.bf16.msra.mxu0 %v9741_v9  ;;  %6762 = vmatpush1.bf16.msra.mxu1 %v9743_v35  ;;  %v9791_v9 = vpack.c.bf16 %v5495_v0, %v5493_v5  ;;  %v9813_v5 = vpack.c.bf16 %v1647_v15, %v1645_v32  ;;  %v9815_v0 = vpack.c.bf16 %v5494_v2, %v5492_v26  ;;  %v5496_v15 = vld [vmem:[%s13638_s2 + $0xe80] sm:$0xff]  ;;  %v5498_v32 = vld [vmem:[%s13638_s2 + $0xe90] sm:$0xff]  ;;  %v1654_v26 = vld [vmem:[%s13638_s2 + $0x368] sm:$0xff] }
 0x292   :  { %6404 = vmatprep.subr.bf16.mxu0 %v9753_v36  ;;  %6764 = vmatprep.subr.bf16.mxu1 %v9755_v13  ;;  %v1649_v13 = vld [vmem:[%s13638_s2 + $0x340] sm:$0xff]  ;;  %v1651_v36 = vld [vmem:[%s13638_s2 + $0x350] sm:$0xff]  ;;  %v9825_v35 = vpack.c.bf16 %v1652_v63, %v1650_v8  ;;  %v1656_v2 = vld [vmem:[%s13638_s2 + $0x378] sm:$0xff] }
 0x293   :  { %14043 = vst [vmem:[#allocation81_spill] sm:$0xff] %v9791_v9  ;;  %14044 = vst [vmem:[#allocation82_spill] sm:$0xff] %v9813_v5  ;;  %v5501_v8 = vld [vmem:[%s13638_s2 + $0xea8] sm:$0xff]  ;;  %v5503_v63 = vld [vmem:[%s13638_s2 + $0xeb8] sm:$0xff] }
 0x294   :  { %14045 = vst [vmem:[#allocation83_spill] sm:$0xff] %v9815_v0  ;;  %14046 = vst [vmem:[#allocation84_spill] sm:$0xff] %v9825_v35 }
 0x295   :  { %6406 = vmatpush1.bf16.msra.mxu0 %v9777_v37  ;;  %6766 = vmatpush1.bf16.msra.mxu1 %v9779_v60  ;;  %v9827_v37 = vpack.c.bf16 %v5499_v4, %v5497_v10  ;;  %v9849_v10 = vpack.c.bf16 %v1651_v36, %v1649_v13  ;;  %v9851_v4 = vpack.c.bf16 %v5498_v32, %v5496_v15  ;;  %v5500_v36 = vld [vmem:[%s13638_s2 + $0xea0] sm:$0xff]  ;;  %v5502_v13 = vld [vmem:[%s13638_s2 + $0xeb0] sm:$0xff] }
 0x296   :  { %6408 = vmatprep.subr.bf16.mxu0 %v9789_v43  ;;  %6768 = vmatprep.subr.bf16.mxu1 %v9791_v9  ;;  %v1653_v9 = vld [vmem:[%s13638_s2 + $0x360] sm:$0xff]  ;;  %v9858_v43 = vpack.c.bf16 %v1656_v2, %v1654_v26  ;;  %v9860_v60 = vpack.c.bf16 %v5503_v63, %v5501_v8  ;;  %v9875_v32 = vpack.c.bf16 %v5502_v13, %v5500_v36  ;;  %v1658_v26 = vld [vmem:[%s13638_s2 + $0x388] sm:$0xff]  ;;  %v1660_v2 = vld [vmem:[%s13638_s2 + $0x398] sm:$0xff] }
 0x297   :  { %14047 = vst [vmem:[#allocation85_spill] sm:$0xff] %v9827_v37  ;;  %14048 = vst [vmem:[#allocation86_spill] sm:$0xff] %v9849_v10  ;;  %v5507_v8 = vld [vmem:[%s13638_s2 + $0xed8] sm:$0xff]  ;;  %v1657_v63 = vld [vmem:[%s13638_s2 + $0x380] sm:$0xff] }
 0x298   :  { %14049 = vst [vmem:[#allocation87_spill] sm:$0xff] %v9851_v4  ;;  %14050 = vst [vmem:[#allocation88_spill] sm:$0xff] %v9858_v43  ;;  %v1659_v36 = vld [vmem:[%s13638_s2 + $0x390] sm:$0xff] }
 0x299   :  { %6410 = vmatpush1.bf16.msra.mxu0 %v9813_v5  ;;  %6770 = vmatpush1.bf16.msra.mxu1 %v9815_v0  ;;  %14051 = vst [vmem:[#allocation89_spill] sm:$0xff] %v9860_v60  ;;  %v1655_v0 = vld [vmem:[%s13638_s2 + $0x370] sm:$0xff]  ;;  %14053 = vst [vmem:[#allocation91_spill] sm:$0xff] %v9875_v32 }
 0x29a   :  { %6412 = vmatprep.subr.bf16.mxu0 %v9825_v35  ;;  %6772 = vmatprep.subr.bf16.mxu1 %v9827_v37  ;;  %v9873_v15 = vpack.c.bf16 %v1655_v0, %v1653_v9  ;;  %v5505_v9 = vld [vmem:[%s13638_s2 + $0xec8] sm:$0xff]  ;;  %v9890_v0 = vpack.c.bf16 %v1660_v2, %v1658_v26  ;;  %v5504_v26 = vld [vmem:[%s13638_s2 + $0xec0] sm:$0xff]  ;;  %v5506_v2 = vld [vmem:[%s13638_s2 + $0xed0] sm:$0xff] }
 0x29b   :  { %v9901_v13 = vpack.c.bf16 %v5507_v8, %v5505_v9  ;;  %v1288_v9 = vld [vmem:[#allocation3 + $0x28] sm:$0xfe] }
 0x29c   :  { %14052 = vst [vmem:[#allocation90_spill] sm:$0xff] %v9873_v15  ;;  %14054 = vst [vmem:[#allocation92_spill] sm:$0xff] %v9890_v0  ;;  %v1662_v8 = vld [vmem:[%s13638_s2 + $0x3a8] sm:$0xff] }
 0x29d   :  { %6414 = vmatpush1.bf16.msra.mxu0 %v9849_v10  ;;  %6774 = vmatpush1.bf16.msra.mxu1 %v9851_v4  ;;  %14055 = vst [vmem:[#allocation93_spill] sm:$0xff] %v9901_v13  ;;  %v5524_v10 = vld [vmem:[%s13638_s2 + $0xf60] sm:$0xff] }
 0x29e   :  { %6416 = vmatprep.subr.bf16.mxu0 %v9858_v43  ;;  %6776 = vmatprep.subr.bf16.mxu1 %v9860_v60 }
 0x2a1   :  { %6418 = vmatpush1.bf16.msra.mxu0 %v9873_v15  ;;  %6778 = vmatpush1.bf16.msra.mxu1 %v9875_v32  ;;  %v9903_v32 = vpack.c.bf16 %v1659_v36, %v1657_v63  ;;  %v9912_v15 = vpack.c.bf16 %v5506_v2, %v5504_v26  ;;  %v1664_v63 = vld [vmem:[%s13638_s2 + $0x3b8] sm:$0xff]  ;;  %v1294_v26 = vrot.slane %v1288_v9, 2  ;;  %v1663_v9 = vld [vmem:[%s13638_s2 + $0x3b0] sm:$0xff] }
 0x2a2   :  { %6420 = vmatprep.subr.bf16.mxu0 %v9890_v0  ;;  %6780 = vmatprep.subr.bf16.mxu1 %v9901_v13  ;;  %v9924_v2 = vpack.c.bf16 %v1664_v63, %v1662_v8  ;;  %v5511_v13 = vld [vmem:[%s13638_s2 + $0xef8] sm:$0xff]  ;;  %v1661_v0 = vld [vmem:[%s13638_s2 + $0x3a0] sm:$0xff]  ;;  %v5510_v63 = vld [vmem:[%s13638_s2 + $0xef0] sm:$0xff] }
 0x2a3   :  { %14056 = vst [vmem:[#allocation94_spill] sm:$0xff] %v9903_v32  ;;  %14057 = vst [vmem:[#allocation95_spill] sm:$0xff] %v9912_v15  ;;  %v5508_v8 = vld [vmem:[%s13638_s2 + $0xee0] sm:$0xff] }
 0x2a4   :  { %14058 = vst [vmem:[#allocation96_spill] sm:$0xff] %v9924_v2  ;;  %1300 = vst.msk [vmem:[#allocation5 + $0x10] sm:$0x80] %vm79_vm1, %v1294_v26 }
 0x2a5   :  { %6422 = vmatpush1.bf16.msra.mxu0 %v9903_v32  ;;  %6782 = vmatpush1.bf16.msra.mxu1 %v9912_v15  ;;  %v5509_v32 = vld [vmem:[%s13638_s2 + $0xee8] sm:$0xff]  ;;  %1303 = vst.msk [vmem:[#allocation5 + $0x80] sm:$0x3f] %vm81_vm2, %v1294_v26 }
 0x2a6   :  { %v9936_v4 = vpack.c.bf16 %v5511_v13, %v5509_v32  ;;  %6424 = vmatprep.subr.bf16.mxu0 %v9924_v2  ;;  %v9952_v32 = vpack.c.bf16 %v5510_v63, %v5508_v8  ;;  %v5513_v26 = vld [vmem:[%s13638_s2 + $0xf08] sm:$0xff]  ;;  %v5515_v8 = vld [vmem:[%s13638_s2 + $0xf18] sm:$0xff]  ;;  %v1665_v63 = vld [vmem:[%s13638_s2 + $0x3c0] sm:$0xff] }
 0x2a7   :  { %v9979_v15 = vpack.c.bf16 %v5515_v8, %v5513_v26  ;;  %v1669_v8 = vld [vmem:[%s13638_s2 + $0x3e0] sm:$0xff] }
 0x2a8   :  { %14059 = vst [vmem:[#allocation97_spill] sm:$0xff] %v9936_v4  ;;  %14061 = vst [vmem:[#allocation99_spill] sm:$0xff] %v9952_v32  ;;  %6784 = vmatprep.subr.bf16.mxu1 %v9936_v4  ;;  %v1667_v4 = vld [vmem:[%s13638_s2 + $0x3d0] sm:$0xff] }
 0x2a9   :  { %6786 = vmatpush1.bf16.msra.mxu1 %v9952_v32  ;;  %14063 = vst [vmem:[#allocation101_spill] sm:$0xff] %v9979_v15 }
 0x2aa   :  { %6788 = vmatprep.subr.bf16.mxu1 %v9979_v15  ;;  %v1676_v15 = vld [vmem:[%s13638_s2 + $0x418] sm:$0xff] }
 0x2ae   :  { %v1130_v60 = vpop.permute.xlu0 %1129 }
 0x2af   :  { %1143 = vst.msk [vmem:[#allocation4 + $0x18] sm:$0xfc] %vm653_vm4, %v1130_v60  ;;  %v1132_v36 = vpop.permute.xlu1 %1131  ;;  %vm13742_vm4 = vcmask 522240  }
 0x2b0   :  { %v1137_v43 = vsel %vm148_vm12, %v1130_v60, %v1132_v36  ;;  %v9950_v60 = vpack.c.bf16 %v1663_v9, %v1661_v0  ;;  %v1666_v36 = vld [vmem:[%s13638_s2 + $0x3c8] sm:$0xff] }
 0x2b1   :  { %1144 = vst [vmem:[#allocation4 + $0x20] sm:$0xfc] %v1137_v43  ;;  %v1668_v43 = vld [vmem:[%s13638_s2 + $0x3d8] sm:$0xff] }
 0x2b2   :  { %14060 = vst [vmem:[#allocation98_spill] sm:$0xff] %v9950_v60  ;;  %v1113_v13 = vpop.permute.xlu0 %1112  ;;  %6426 = vmatpush1.bf16.msra.mxu0 %v9950_v60  ;;  %v9967_v9 = vpack.c.bf16 %v1668_v43, %v1666_v36  ;;  %v9981_v60 = vpack.c.bf16 %v1667_v4, %v1665_v63  ;;  %v5512_v36 = vld [vmem:[%s13638_s2 + $0xf00] sm:$0xff]  ;;  %v5514_v43 = vld [vmem:[%s13638_s2 + $0xf10] sm:$0xff]  ;;  %v1670_v4 = vld [vmem:[%s13638_s2 + $0x3e8] sm:$0xff] }
 0x2b3   :  { %1119 = vst.msk [vmem:[#allocation4] sm:$0xfe] %vm627_vm3, %v1113_v13  ;;  %v1115_v0 = vpop.permute.xlu1 %1114  ;;  %v9990_v32 = vpack.c.bf16 %v5514_v43, %v5512_v36  ;;  %v1671_v36 = vld [vmem:[%s13638_s2 + $0x3f0] sm:$0xff]  ;;  %v5516_v43 = vld [vmem:[%s13638_s2 + $0xf20] sm:$0xff]  ;;  %vm656_vm3 = vcmask 1040640  }
 0x2b4   :  { %14062 = vst [vmem:[#allocation100_spill] sm:$0xff] %v9967_v9  ;;  %v1116_v2 = vsel %vm148_vm12, %v1113_v13, %v1115_v0  ;;  %14064 = vst [vmem:[#allocation102_spill] sm:$0xff] %v9981_v60  ;;  %6428 = vmatprep.subr.bf16.mxu0 %v9967_v9  ;;  %v1672_v13 = vld [vmem:[%s13638_s2 + $0x3f8] sm:$0xff] }
 0x2b5   :  { %1120 = vst [vmem:[#allocation4 + $0x8] sm:$0xfe] %v1116_v2  ;;  %14065 = vst [vmem:[#allocation103_spill] sm:$0xff] %v9990_v32  ;;  %6790 = vmatpush1.bf16.msra.mxu1 %v9990_v32  ;;  %v10001_v26 = vpack.c.bf16 %v1672_v13, %v1670_v4  ;;  %v5517_v2 = vld [vmem:[%s13638_s2 + $0xf28] sm:$0xff]  ;;  %v5519_v0 = vld [vmem:[%s13638_s2 + $0xf38] sm:$0xff]  ;;  %v10021_v13 = vpack.c.bf16 %v1671_v36, %v1669_v8 }
 0x2b6   :  { %6430 = vmatpush1.bf16.msra.mxu0 %v9981_v60  ;;  %v10012_v63 = vpack.c.bf16 %v5519_v0, %v5517_v2  ;;  %v1304_v4 = vld [vmem:[#allocation4 + $0x18] sm:$0xfe]  ;;  %v5518_v32 = vld [vmem:[%s13638_s2 + $0xf30] sm:$0xff]  ;;  %v1674_v0 = vld [vmem:[%s13638_s2 + $0x408] sm:$0xff] }
 0x2b7   :  { %14066 = vst [vmem:[#allocation104_spill] sm:$0xff] %v10001_v26  ;;  %6432 = vmatprep.subr.bf16.mxu0 %v10001_v26  ;;  %14068 = vst [vmem:[#allocation106_spill] sm:$0xff] %v10021_v13  ;;  %v10027_v2 = vpack.c.bf16 %v5518_v32, %v5516_v43  ;;  %v10037_v8 = vpack.c.bf16 %v1676_v15, %v1674_v0  ;;  %v5521_v36 = vld [vmem:[%s13638_s2 + $0xf48] sm:$0xff]  ;;  %v5523_v32 = vld [vmem:[%s13638_s2 + $0xf58] sm:$0xff] }
 0x2b8   :  { %14067 = vst [vmem:[#allocation105_spill] sm:$0xff] %v10012_v63  ;;  %6792 = vmatprep.subr.bf16.mxu1 %v10012_v63  ;;  %v1305_v63 = vld [vmem:[#allocation4 + $0x20] sm:$0xfe]  ;;  %v10046_v26 = vpack.c.bf16 %v5523_v32, %v5521_v36  ;;  %v1155_v0 = vld [vmem:[#allocation4 + $0x10] sm:$0x7f] }
 0x2b9   :  { %14069 = vst [vmem:[#allocation107_spill] sm:$0xff] %v10027_v2  ;;  %14070 = vst [vmem:[#allocation108_spill] sm:$0xff] %v10037_v8  ;;  %6794 = vmatpush1.bf16.msra.mxu1 %v10027_v2  ;;  %v1311_v15 = vrot.slane %v1305_v63, 2  ;;  %v1176_v36 = vld [vmem:[#allocation3 + $0x8] sm:$0xfe] }
 0x2ba   :  { %v1153_v60 = vld [vmem:[#allocation4] sm:$0x7f]  ;;  %6434 = vmatpush1.bf16.msra.mxu0 %v10021_v13  ;;  %14071 = vst [vmem:[#allocation109_spill] sm:$0xff] %v10046_v26  ;;  %6796 = vmatprep.subr.bf16.mxu1 %v10046_v26  ;;  %v1175_v13 = vld [vmem:[#allocation3] sm:$0xfe] }
 0x2bb   :  { %1159 = vrot.lane.b32.xlu0 %v1153_v60, %s8111_s28  ;;  %v1310_v60 = vrot.slane %v1304_v4, 2  ;;  %6436 = vmatprep.subr.bf16.mxu0 %v10037_v8  ;;  %v1306_v32 = vld [vmem:[#allocation4 + $0x28] sm:$0xfe]  ;;  %v1181_v4 = vrot.slane %v1175_v13, 1  ;;  %v10059_v63 = vld [vmem:[#allocation3 + $0x18] sm:$0xfc] }
 0x2bc   :  { %v1154_v43 = vld [vmem:[#allocation4 + $0x8] sm:$0x7f]  ;;  %v5525_v26 = vld [vmem:[%s13638_s2 + $0xf68] sm:$0xff] }
 0x2bd   :  { %1161 = vrot.lane.b32.xlu1 %v1154_v43, %s8111_s28  ;;  %v1182_v43 = vrot.slane %v1176_v36, 1 }
 0x2bf   :  { %1313 = vrot.lane.b32.xlu0 %v1310_v60, %s8111_s28  ;;  %v1312_v60 = vrot.slane %v1306_v32, 2 }
 0x2c1   :  { %1315 = vrot.lane.b32.xlu1 %v1311_v15, %s8111_s28  ;;  %v14072_v15 = vmov 0.0  }
 0x2c2   :  { %156 = vst.msk [vmem:[#allocation3 + $0x40] sm:$0x3] %vm155_vm6, %v14072_v15  ;;  %165 = vst.msk [vmem:[#allocation4 + $0x40] sm:$0x3] %vm155_vm6, %v14072_v15  ;;  %vm1195_vm6 = vcmask 1047040   ;;  %v1680_v15 = vld [vmem:[%s13638_s2 + $0x438] sm:$0xff] }
 0x2c3   :  { %643 = vrot.lane.b32.xlu0 %v9317_v59, %s8111_s28  ;;  %v10062_v59 = vld [vmem:[#allocation3 + $0x20] sm:$0xfc] }
 0x2c4   :  { %v13733_v13 = vrot.slane %v10062_v59, 3 }
 0x2c5   :  { %645 = vrot.lane.b32.xlu1 %v9330_v21, %s8111_s28  ;;  %v13734_v21 = vrot.slane %v10059_v63, 3 }
 0x2c7   :  { %1163 = vrot.lane.b32.xlu0 %v1155_v0, %s8111_s28 }
 0x2c9   :  { %1184 = vrot.lane.b32.xlu1 %v1181_v4, %s8112_s20 }
 0x2cb   :  { %1186 = vrot.lane.b32.xlu0 %v1182_v43, %s8112_s20 }
 0x2cd   :  { %1317 = vrot.lane.b32.xlu1 %v1312_v60, %s8111_s28 }
 0x2cf   :  { %1356 = vrot.lane.b32.xlu0 %v13734_v21, %s8112_s20 }
 0x2d1   :  { %1358 = vrot.lane.b32.xlu1 %v13733_v13, %s8112_s20  ;;  %v1675_v13 = vld [vmem:[%s13638_s2 + $0x410] sm:$0xff] }
 0x2d3   :  { %1133 = vrot.lane.b32.xlu0 %v9420_v44, %s8111_s28 }
 0x2d5   :  { %1135 = vrot.lane.b32.xlu1 %v9422_v46, %s8111_s28 }
 0x32d   :  { %v1160_v0 = vpop.permute.xlu0 %1159 }
 0x32e   :  { %1171 = vst.msk [vmem:[#allocation5 + $0x10] sm:$0x7f] %vm13751_vm7, %v1160_v0  ;;  %vm1378_vm7 = vcmask 1048071  }
 0x32f   :  { %v1162_v36 = vpop.permute.xlu1 %1161 }
 0x330   :  { %v1165_v32 = vsel %vm148_vm12, %v1160_v0, %v1162_v36  ;;  %v1673_v0 = vld [vmem:[%s13638_s2 + $0x400] sm:$0xff] }
 0x331   :  { %1172 = vst [vmem:[#allocation5 + $0x18] sm:$0x7f] %v1165_v32  ;;  %v1314_v4 = vpop.permute.xlu0 %1313  ;;  %v10115_v2 = vpack.c.bf16 %v1675_v13, %v1673_v0  ;;  %v5526_v13 = vld [vmem:[%s13638_s2 + $0xf70] sm:$0xff] }
 0x332   :  { %1325 = vst.msk [vmem:[#allocation5 + $0x10] sm:$0x80] %vm13743_vm8, %v1314_v4  ;;  %vm1346_vm8 = vcmask 1044480   ;;  %v10133_v0 = vld [vmem:[#allocation3 + $0x10] sm:$0xfe]  ;;  %v10162_v55 = vpack.c.bf16 %v5526_v13, %v5524_v10 }
 0x333   :  { %1330 = vst.msk [vmem:[#allocation5 + $0x80] sm:$0x3f] %vm13740_vm15, %v1314_v4  ;;  %v10083_v43 = vpop.permute.xlu1 %1315  ;;  %14073 = vst [vmem:[#allocation110_spill] sm:$0xff] %v10115_v2  ;;  %vm1327_vm15 = vcmask 523271   ;;  %v1183_v10 = vrot.slane %v10133_v0, 1  ;;  %v1683_v13 = vld [vmem:[%s13638_s2 + $0x450] sm:$0xff] }
 0x334   :  { %v1319_v44 = vsel %vm148_vm12, %v1314_v4, %v10083_v43  ;;  %v5520_v4 = vld [vmem:[%s13638_s2 + $0xf40] sm:$0xff]  ;;  %14078 = vst [vmem:[#allocation115_spill] sm:$0xff] %v10162_v55 }
 0x335   :  { %1326 = vst [vmem:[#allocation5 + $0x18] sm:$0x80] %v1319_v44  ;;  %1331 = vst [vmem:[#allocation5 + $0x88] sm:$0x3f] %v1319_v44  ;;  %v644_v46 = vpop.permute.xlu0 %643  ;;  %v5522_v44 = vld [vmem:[%s13638_s2 + $0xf50] sm:$0xff]  ;;  %v5528_v0 = vld [vmem:[%s13638_s2 + $0xf80] sm:$0xff] }
 0x336   :  { %657 = vst.msk [vmem:[#allocation3 + $0x30] sm:$0x1] %vm656_vm3, %v644_v46  ;;  %v10117_v9 = vpack.c.bf16 %v5522_v44, %v5520_v4 }
 0x337   :  { %v646_v60 = vpop.permute.xlu1 %645 }
 0x338   :  { %v648_v32 = vsel %vm148_vm12, %v644_v46, %v646_v60  ;;  %v1678_v46 = vld [vmem:[%s13638_s2 + $0x428] sm:$0xff]  ;;  %14074 = vst [vmem:[#allocation111_spill] sm:$0xff] %v10117_v9 }
 0x339   :  { %658 = vst [vmem:[#allocation3 + $0x38] sm:$0x1] %v648_v32  ;;  %v1164_v21 = vpop.permute.xlu0 %1163  ;;  %v5527_v32 = vld [vmem:[%s13638_s2 + $0xf78] sm:$0xff]  ;;  %v10139_v44 = vld [vmem:[#allocation5 + $0x10] sm:$0xff]  ;;  %v10141_v35 = vpack.c.bf16 %v1680_v15, %v1678_v46  ;;  %v5529_v46 = vld [vmem:[%s13638_s2 + $0xf88] sm:$0xff] }
 0x33a   :  { %v1166_v60 = vsel %vm148_vm12, %v1162_v36, %v1164_v21  ;;  %v1677_v21 = vld [vmem:[%s13638_s2 + $0x420] sm:$0xff]  ;;  %v1679_v36 = vld [vmem:[%s13638_s2 + $0x430] sm:$0xff]  ;;  %v10147_v39 = vpack.c.bf16 %v5527_v32, %v5525_v26  ;;  %v1684_v15 = vld [vmem:[%s13638_s2 + $0x458] sm:$0xff] }
 0x33b   :  { %1174 = vst.msk [vmem:[#allocation5 + $0x20] sm:$0x7f] %vm13742_vm4, %v1166_v60  ;;  %v1185_v8 = vpop.permute.xlu1 %1184  ;;  %vm1332_vm4 = vcmask 521216   ;;  %14075 = vst [vmem:[#allocation112_spill] sm:$0xff] %v10141_v35  ;;  %v10160_v32 = vpack.c.bf16 %v1679_v36, %v1677_v21 }
 0x33c   :  { %1196 = vst.msk [vmem:[#allocation5 + $0x20] sm:$0x7f] %vm1195_vm6, %v1185_v8  ;;  %v10128_v60 = vld [vmem:[#allocation5 + $0x18] sm:$0xff]  ;;  %vm1449_vm6 = vcmask 1043456   ;;  %14076 = vst [vmem:[#allocation113_spill] sm:$0xff] %v10147_v39 }
 0x33d   :  { %v10135_v4 = vpop.permute.xlu0 %1186  ;;  %2052 = vmatprep.mubr.f32.mxu0 %v10128_v60  ;;  %2875 = vmatprep.mubr.f32.mxu1 %v10128_v60  ;;  %v1337_v37 = vld [vmem:[#allocation3 + $0x30] sm:$0x1]  ;;  %14077 = vst [vmem:[#allocation114_spill] sm:$0xff] %v10160_v32 }
 0x33e   :  { %v1440_v5 = vld [vmem:[#allocation3 + $0x30] sm:$0x3]  ;;  %v1190_v38 = vsel %vm715_vm14, %v1185_v8, %v10135_v4  ;;  %2053 = vmatmul.mubr.f32.vlgmr.msra.gmra.mrb[16].mxu0 %v10139_v44  ;;  %2876 = vmatmul.mubr.f32.vlgmr.msra.gmra.mrb[16].mxu1 %v10139_v44  ;;  %v1350_v62 = vrot.slane %v1337_v37, 3  ;;  %v1536_v37 = vld [vmem:[#allocation5 + $0x88] sm:$0x3f] }
 0x33f   :  { %v1453_v8 = vrot.slane %v1440_v5, 4  ;;  %1197 = vst [vmem:[#allocation5 + $0x28] sm:$0x7f] %v1190_v38  ;;  %6438 = vmatpush1.bf16.msra.mxu0 %v10115_v2  ;;  %6798 = vmatpush1.bf16.msra.mxu1 %v10117_v9  ;;  %v1318_v26 = vpop.permute.xlu1 %1317  ;;  %v1681_v5 = vld [vmem:[%s13638_s2 + $0x440] sm:$0xff]  ;;  %v14079_v9 = vrot.slane %v10059_v63, 3 }
 0x340   :  { %2058 = vmatprep.mubr.f32.mxu0 %v1536_v37  ;;  %2881 = vmatprep.mubr.f32.mxu1 %v1536_v37  ;;  %v1320_v38 = vsel %vm148_vm12, %v10083_v43, %v1318_v26  ;;  %v1338_v36 = vld [vmem:[#allocation3 + $0x38] sm:$0x1]  ;;  %v10186_v43 = vpack.c.bf16 %v1684_v15, %v1682_v54  ;;  %v1686_v54 = vld [vmem:[%s13638_s2 + $0x468] sm:$0xff]  ;;  %v10210_v26 = vpack.c.bf16 %v1683_v13, %v1681_v5  ;;  %v1201_v13 = vld [vmem:[#allocation4 + $0x8] sm:$0xfe] }
 0x341   :  { %v1351_v21 = vsel %vm1346_vm8, %v14079_v9, %v1350_v62  ;;  %v1441_v2 = vld [vmem:[#allocation3 + $0x38] sm:$0x3]  ;;  %v1454_v56 = vsel %vm1449_vm6, %v14080_v22, %v1453_v8  ;;  %1328 = vst.msk [vmem:[#allocation5 + $0x20] sm:$0x80] %vm1327_vm15, %v1320_v38  ;;  %v1357_v63 = vpop.permute.xlu0 %1356  ;;  %6440 = vmatprep.subr.bf16.mxu0 %v10141_v35  ;;  %v1535_v62 = vld [vmem:[#allocation5 + $0x80] sm:$0x3f]  ;;  %6800 = vmatprep.subr.bf16.mxu1 %v10147_v39 }
 0x342   :  { %1333 = vst.msk [vmem:[#allocation5 + $0x90] sm:$0x3f] %vm1332_vm4, %v1320_v38  ;;  %1362 = vrot.lane.b32.xlu0 %v1351_v21, %s8112_s20  ;;  %v1352_v9 = vrot.slane %v1338_v36, 3  ;;  %14081 = vst [vmem:[#allocation116_spill] sm:$0xff] %v10186_v43  ;;  %v5530_v22 = vld [vmem:[%s13638_s2 + $0xf90] sm:$0xff]  ;;  %v1455_v42 = vrot.slane %v1441_v2, 4  ;;  %2059 = vmatmul.mubr.f32.gmra.mrb[18].mxu0 %v1535_v62  ;;  %v10196_v8 = vpack.c.bf16 %v5531_v18, %v5529_v46 }
 0x343   :  { %1468 = vst [vmem:[#allocation5 + $0xb8] sm:$0x3f] %v1454_v56  ;;  %1379 = vst.msk [vmem:[#allocation5 + $0x20] sm:$0x80] %vm1378_vm7, %v1357_v63  ;;  %v1688_v15 = vld [vmem:[%s13638_s2 + $0x478] sm:$0xff]  ;;  %6442 = vmatpush1.bf16.msra.mxu0 %v10160_v32  ;;  %2882 = vmatmul.mubr.f32.gmra.mrb[18].mxu1 %v1535_v62  ;;  %v10205_v2 = vpop.permute.xlu1 %1358  ;;  %v14083_v56 = vrot.slane %v10062_v59, 3  ;;  %v10225_v5 = vpack.c.bf16 %v5530_v22, %v5528_v0 }
 0x344   :  { %14082 = vst [vmem:[#allocation117_spill] sm:$0xff] %v10196_v8  ;;  %14084 = vst [vmem:[#allocation118_spill] sm:$0xff] %v10210_v26  ;;  %v1200_v18 = vld [vmem:[#allocation4] sm:$0xfe]  ;;  %v5535_v38 = vld [vmem:[%s13638_s2 + $0xfb8] sm:$0xff]  ;;  %v14085_v21 = vrot.slane %v9576_v53, 4  ;;  %6802 = vmatpush1.bf16.msra.mxu1 %v10162_v55  ;;  %v1368_v59 = vsel %vm715_vm14, %v1357_v63, %v10205_v2  ;;  %6444 = vmatprep.subr.bf16.mxu0 %v10186_v43  ;;  %v10235_v63 = vpack.c.bf16 %v1688_v15, %v1686_v54 }
 0x345   :  { %v1353_v37 = vsel %vm1346_vm8, %v14083_v56, %v1352_v9  ;;  %v5533_v46 = vld [vmem:[%s13638_s2 + $0xfa8] sm:$0xff]  ;;  %14086 = vst [vmem:[#allocation119_spill] sm:$0xff] %v10225_v5  ;;  %v1685_v62 = vld [vmem:[%s13638_s2 + $0x460] sm:$0xff]  ;;  %v1687_v53 = vld [vmem:[%s13638_s2 + $0x470] sm:$0xff]  ;;  %v1134_v9 = vpop.permute.xlu0 %1133  ;;  %6804 = vmatprep.subr.bf16.mxu1 %v10196_v8  ;;  %v1206_v56 = vrot.slane %v1200_v18, 1  ;;  %vm14214_vm7 = vcmask 1045760  }
 0x346   :  { %v1456_v36 = vsel %vm1449_vm6, %v14085_v21, %v1455_v42  ;;  %1364 = vrot.lane.b32.xlu1 %v1353_v37, %s8112_s20  ;;  %1380 = vst [vmem:[#allocation5 + $0x28] sm:$0x80] %v1368_v59  ;;  %1188 = vrot.lane.b32.xlu0 %v1183_v10, %s8112_s20  ;;  %14087 = vst [vmem:[#allocation120_spill] sm:$0xff] %v10235_v63  ;;  %v5532_v0 = vld [vmem:[%s13638_s2 + $0xfa0] sm:$0xff]  ;;  %v5534_v22 = vld [vmem:[%s13638_s2 + $0xfb0] sm:$0xff]  ;;  %v10245_v10 = vpack.c.bf16 %v5535_v38, %v5533_v46  ;;  %v1207_v21 = vrot.slane %v1201_v13, 1 }
 0x347   :  { %1469 = vst [vmem:[#allocation5 + $0xc0] sm:$0x3f] %v1456_v36  ;;  %v1336_v42 = vld [vmem:[#allocation3 + $0x28] sm:$0xfc]  ;;  %1145 = vst.msk [vmem:[#allocation4 + $0x30] sm:$0x1] %vm656_vm3, %v1134_v9  ;;  %6446 = vmatpush1.bf16.msra.mxu0 %v10210_v26  ;;  %v1136_v37 = vpop.permute.xlu1 %1135  ;;  %v10254_v36 = vpack.c.bf16 %v1687_v53, %v1685_v62  ;;  %v10265_v26 = vpack.c.bf16 %v5534_v22, %v5532_v0 }
 0x348   :  { %14088 = vst [vmem:[#allocation121_spill] sm:$0xff] %v10245_v10  ;;  %v1690_v54 = vld [vmem:[%s13638_s2 + $0x488] sm:$0xff]  ;;  %v1692_v15 = vld [vmem:[%s13638_s2 + $0x498] sm:$0xff]  ;;  %v1339_v38 = vld [vmem:[#allocation3 + $0x40] sm:$0x1]  ;;  %6806 = vmatpush1.bf16.msra.mxu1 %v10225_v5  ;;  %v1138_v59 = vsel %vm148_vm12, %v1134_v9, %v1136_v37  ;;  %v1349_v13 = vrot.slane %v1336_v42, 3  ;;  %6448 = vmatprep.subr.bf16.mxu0 %v10235_v63 }
 0x349   :  { %14089 = vst [vmem:[#allocation122_spill] sm:$0xff] %v10254_v36  ;;  %v5537_v18 = vld [vmem:[%s13638_s2 + $0xfc8] sm:$0xff]  ;;  %v5539_v46 = vld [vmem:[%s13638_s2 + $0xfd8] sm:$0xff]  ;;  %14090 = vst [vmem:[#allocation123_spill] sm:$0xff] %v10265_v26  ;;  %v10277_v9 = vpack.c.bf16 %v1692_v15, %v1690_v54  ;;  %6808 = vmatprep.subr.bf16.mxu1 %v10245_v10  ;;  %v1354_v37 = vrot.slane %v1339_v38, 3 }
 0x34a   :  { %1209 = vrot.lane.b32.xlu1 %v1206_v56, %s8113_s13  ;;  %v10267_v62 = vld [vmem:[#allocation4 + $0x18] sm:$0xfc]  ;;  %v1691_v8 = vld [vmem:[%s13638_s2 + $0x490] sm:$0xff]  ;;  %1146 = vst [vmem:[#allocation4 + $0x38] sm:$0x1] %v1138_v59  ;;  %1211 = vrot.lane.b32.xlu0 %v1207_v21, %s8113_s13  ;;  %v10288_v56 = vpack.c.bf16 %v5539_v46, %v5537_v18  ;;  %v1694_v54 = vld [vmem:[%s13638_s2 + $0x4a8] sm:$0xff] }
 0x34b   :  { %v1689_v53 = vld [vmem:[%s13638_s2 + $0x480] sm:$0xff]  ;;  %14091 = vst [vmem:[#allocation124_spill] sm:$0xff] %v10277_v9  ;;  %v5538_v22 = vld [vmem:[%s13638_s2 + $0xfd0] sm:$0xff]  ;;  %v10285_v42 = vld [vmem:[#allocation4 + $0x20] sm:$0xfc]  ;;  %6450 = vmatpush1.bf16.msra.mxu0 %v10254_v36  ;;  %v1400_v59 = vrot.slane %v10267_v62, 3  ;;  %v1355_v43 = vsel %vm1346_vm8, %v1349_v13, %v1354_v37 }
 0x34c   :  { %v5536_v0 = vld [vmem:[%s13638_s2 + $0xfc0] sm:$0xff]  ;;  %14092 = vst [vmem:[#allocation125_spill] sm:$0xff] %v10288_v56  ;;  %v1696_v15 = vld [vmem:[%s13638_s2 + $0x4b8] sm:$0xff]  ;;  %v5541_v21 = vld [vmem:[%s13638_s2 + $0xfe8] sm:$0xff]  ;;  %v10301_v10 = vpack.c.bf16 %v1691_v8, %v1689_v53  ;;  %6810 = vmatpush1.bf16.msra.mxu1 %v10265_v26  ;;  %6452 = vmatprep.subr.bf16.mxu0 %v10277_v9  ;;  %v1401_v5 = vrot.slane %v10285_v42, 3 }
 0x34d   :  { %v5543_v18 = vld [vmem:[%s13638_s2 + $0xff8] sm:$0xff]  ;;  %v1693_v46 = vld [vmem:[%s13638_s2 + $0x4a0] sm:$0xff]  ;;  %v1695_v38 = vld [vmem:[%s13638_s2 + $0x4b0] sm:$0xff]  ;;  %v10316_v8 = vpack.c.bf16 %v5538_v22, %v5536_v0  ;;  %v10326_v63 = vpack.c.bf16 %v1696_v15, %v1694_v54  ;;  %6812 = vmatprep.subr.bf16.mxu1 %v10288_v56 }
 0x34e   :  { %14093 = vst [vmem:[#allocation126_spill] sm:$0xff] %v10301_v10  ;;  %1360 = vrot.lane.b32.xlu1 %v1349_v13, %s8112_s20  ;;  %v10314_v36 = vld [vmem:[#allocation5 + $0x28] sm:$0xff]  ;;  %v5540_v62 = vld [vmem:[%s13638_s2 + $0xfe0] sm:$0xff]  ;;  %v5542_v53 = vld [vmem:[%s13638_s2 + $0xff0] sm:$0xff]  ;;  %1409 = vrot.lane.b32.xlu0 %v1400_v59, %s8113_s13  ;;  %v10338_v9 = vpack.c.bf16 %v5543_v18, %v5541_v21  ;;  %v10351_v42 = vpack.c.bf16 %v1695_v38, %v1693_v46 }
 0x34f   :  { %14094 = vst [vmem:[#allocation127_spill] sm:$0xff] %v10316_v8  ;;  %14095 = vst [vmem:[#allocation128_spill] sm:$0xff] %v10326_v63  ;;  %v1391_v26 = vld [vmem:[#allocation4 + $0x30] sm:$0x1]  ;;  %v1698_v0 = vld [vmem:[%s13638_s2 + $0x4c8] sm:$0xff]  ;;  %2129 = vmatprep.mubr.f32.mxu0 %v10314_v36  ;;  %2952 = vmatprep.mubr.f32.mxu1 %v10314_v36 }
 0x350   :  { %v1700_v22 = vld [vmem:[%s13638_s2 + $0x4d8] sm:$0xff]  ;;  %14096 = vst [vmem:[#allocation129_spill] sm:$0xff] %v10338_v9  ;;  %v5545_v54 = vld [vmem:[%s13638_s2 + $0x1008] sm:$0xff]  ;;  %v1697_v55 = vld [vmem:[%s13638_s2 + $0x4c0] sm:$0xff]  ;;  %6454 = vmatpush1.bf16.msra.mxu0 %v10301_v10  ;;  %v1403_v13 = vrot.slane %v1391_v26, 3  ;;  %6814 = vmatpush1.bf16.msra.mxu1 %v10316_v8  ;;  %v10364_v10 = vpack.c.bf16 %v5542_v53, %v5540_v62 }
 0x351   :  { %v5547_v15 = vld [vmem:[%s13638_s2 + $0x1018] sm:$0xff]  ;;  %14097 = vst [vmem:[#allocation130_spill] sm:$0xff] %v10351_v42  ;;  %v1699_v37 = vld [vmem:[%s13638_s2 + $0x4d0] sm:$0xff]  ;;  %v5544_v21 = vld [vmem:[%s13638_s2 + $0x1000] sm:$0xff]  ;;  %6456 = vmatprep.subr.bf16.mxu0 %v10326_v63  ;;  %v10371_v56 = vpack.c.bf16 %v1700_v22, %v1698_v0  ;;  %6816 = vmatprep.subr.bf16.mxu1 %v10338_v9 }
 0x352   :  { %v5546_v18 = vld [vmem:[%s13638_s2 + $0x1010] sm:$0xff]  ;;  %1411 = vrot.lane.b32.xlu1 %v1401_v5, %s8113_s13  ;;  %v1392_v46 = vld [vmem:[#allocation4 + $0x38] sm:$0x1]  ;;  %v1202_v26 = vld [vmem:[#allocation4 + $0x10] sm:$0xfe]  ;;  %1366 = vrot.lane.b32.xlu0 %v1355_v43, %s8112_s20  ;;  %v10373_v32 = vpack.c.bf16 %v5547_v15, %v5545_v54  ;;  %v1404_v15 = vsel %vm1346_vm8, %v1400_v59, %v1403_v13  ;;  %v10388_v63 = vpack.c.bf16 %v1699_v37, %v1697_v55 }
 0x353   :  { %v1702_v38 = vld [vmem:[%s13638_s2 + $0x4e8] sm:$0xff]  ;;  %v1405_v39 = vrot.slane %v1392_v46, 3  ;;  %v1704_v62 = vld [vmem:[%s13638_s2 + $0x4f8] sm:$0xff]  ;;  %v1225_v53 = vld [vmem:[#allocation3 + $0x10] sm:$0xfc] }
 0x354   :  { %v1228_v8 = vld [vmem:[#allocation3 + $0x28] sm:$0x1]  ;;  %v5551_v43 = vld [vmem:[%s13638_s2 + $0x1038] sm:$0xff]  ;;  %v1242_v22 = vrot.slane %v1225_v53, 2  ;;  %6458 = vmatpush1.bf16.msra.mxu0 %v10351_v42  ;;  %v1390_v9 = vld [vmem:[#allocation4 + $0x28] sm:$0xfc]  ;;  %6818 = vmatpush1.bf16.msra.mxu1 %v10364_v10  ;;  %v10399_v42 = vpack.c.bf16 %v1704_v62, %v1702_v38 }
 0x355   :  { %v5549_v35 = vld [vmem:[%s13638_s2 + $0x1028] sm:$0xff]  ;;  %v1243_v54 = vrot.slane %v1228_v8, 2  ;;  %v1406_v46 = vsel %vm1346_vm8, %v1401_v5, %v1405_v39  ;;  %v10397_v8 = vpack.c.bf16 %v5546_v18, %v5544_v21  ;;  %v1208_v53 = vrot.slane %v1202_v26, 1  ;;  %v1703_v55 = vld [vmem:[%s13638_s2 + $0x4f0] sm:$0xff]  ;;  %v1442_v13 = vld [vmem:[#allocation3 + $0x40] sm:$0x3]  ;;  %6460 = vmatprep.subr.bf16.mxu0 %v10371_v56  ;;  %6820 = vmatprep.subr.bf16.mxu1 %v10373_v32 }
 0x356   :  { %v1393_v0 = vld [vmem:[#allocation4 + $0x40] sm:$0x1]  ;;  %1415 = vrot.lane.b32.xlu1 %v1404_v15, %s8113_s13  ;;  %14099 = vst [vmem:[#allocation132_spill] sm:$0xff] %v10399_v42  ;;  %v1251_v39 = vld [vmem:[#allocation4] sm:$0xfc]  ;;  %v10407_v37 = vpack.c.bf16 %v5551_v43, %v5549_v35  ;;  %v5548_v21 = vld [vmem:[%s13638_s2 + $0x1020] sm:$0xff]  ;;  %1417 = vrot.lane.b32.xlu0 %v1406_v46, %s8113_s13  ;;  %v10430_v15 = vpack.c.bf16 %v1703_v55, %v1701_v20 }
 0x357   :  { %14098 = vst [vmem:[#allocation131_spill] sm:$0xff] %v10397_v8  ;;  %v1244_v5 = vsel %vm1235_vm5, %v1242_v22, %v1243_v54  ;;  %v1439_v59 = vld [vmem:[#allocation3 + $0x28] sm:$0xf8]  ;;  %v5550_v18 = vld [vmem:[%s13638_s2 + $0x1030] sm:$0xff]  ;;  %v1407_v26 = vrot.slane %v1393_v0, 3  ;;  %v1457_v22 = vrot.slane %v1442_v13, 4 }
 0x358   :  { %14100 = vst [vmem:[#allocation133_spill] sm:$0xff] %v10407_v37  ;;  %v1706_v38 = vld [vmem:[%s13638_s2 + $0x508] sm:$0xff]  ;;  %1250 = vst.msk [vmem:[#allocation5 + $0x58] sm:$0x7f] %vm28_vm0, %v1244_v5  ;;  %v1452_v62 = vrot.slane %v1439_v59, 4  ;;  %v1402_v35 = vrot.slane %v1390_v9, 3  ;;  %6462 = vmatpush1.bf16.msra.mxu0 %v10388_v63  ;;  %6822 = vmatpush1.bf16.msra.mxu1 %v10397_v8  ;;  %v10436_v46 = vpack.c.bf16 %v5550_v18, %v5548_v21 }
 0x359   :  { %v1708_v43 = vld [vmem:[%s13638_s2 + $0x518] sm:$0xff]  ;;  %v5553_v54 = vld [vmem:[%s13638_s2 + $0x1048] sm:$0xff]  ;;  %14101 = vst [vmem:[#allocation134_spill] sm:$0xff] %v10430_v15  ;;  %v1264_v5 = vrot.slane %v10393_v14, 2  ;;  %v1705_v59 = vld [vmem:[%s13638_s2 + $0x500] sm:$0xff]  ;;  %6464 = vmatprep.subr.bf16.mxu0 %v10399_v42  ;;  %6824 = vmatprep.subr.bf16.mxu1 %v10407_v37  ;;  %v1263_v21 = vrot.slane %v1251_v39, 2 }
 0x35a   :  { %v5555_v0 = vld [vmem:[%s13638_s2 + $0x1058] sm:$0xff]  ;;  %1467 = vst.msk [vmem:[#allocation5 + $0x58] sm:$0x80] %vm79_vm1, %v1452_v62  ;;  %v1458_v9 = vsel %vm1449_vm6, %v1452_v62, %v1457_v22  ;;  %1213 = vrot.lane.b32.xlu1 %v1208_v53, %s8113_s13  ;;  %14102 = vst [vmem:[#allocation135_spill] sm:$0xff] %v10436_v46  ;;  %v1707_v20 = vld [vmem:[%s13638_s2 + $0x510] sm:$0xff]  ;;  %v1408_v14 = vsel %vm1346_vm8, %v1402_v35, %v1407_v26  ;;  %v10452_v53 = vpack.c.bf16 %v1708_v43, %v1706_v38  ;;  %vm1383_vm0 = vcmask 1046016  }
 0x35b   :  { %v5552_v55 = vld [vmem:[%s13638_s2 + $0x1040] sm:$0xff]  ;;  %1470 = vst.msk [vmem:[#allocation5 + $0xc8] sm:$0x3f] %vm81_vm2, %v1458_v9  ;;  %v10454_v13 = vpack.c.bf16 %v5555_v0, %v5553_v54  ;;  %v5554_v18 = vld [vmem:[%s13638_s2 + $0x1050] sm:$0xff]  ;;  %v1710_v62 = vld [vmem:[%s13638_s2 + $0x528] sm:$0xff]  ;;  %1413 = vrot.lane.b32.xlu0 %v1402_v35, %s8113_s13  ;;  %v10473_v43 = vpack.c.bf16 %v1707_v20, %v1705_v59  ;;  %v1265_v59 = vsel %vm1235_vm5, %v1263_v21, %v1264_v5  ;;  %vm1198_vm1 = vcmask 784384  }
 0x35c   :  { %14103 = vst [vmem:[#allocation136_spill] sm:$0xff] %v10452_v53  ;;  %v1712_v22 = vld [vmem:[%s13638_s2 + $0x538] sm:$0xff]  ;;  %v5557_v26 = vld [vmem:[%s13638_s2 + $0x1068] sm:$0xff]  ;;  %6466 = vmatpush1.bf16.msra.mxu0 %v10430_v15  ;;  %v1471_v54 = vld [vmem:[#allocation4 + $0x18] sm:$0xf8]  ;;  %6826 = vmatpush1.bf16.msra.mxu1 %v10436_v46  ;;  %v10477_v0 = vpack.c.bf16 %v5554_v18, %v5552_v55  ;;  %vm1381_vm2 = vcmask 785415  }
 0x35d   :  { %14104 = vst [vmem:[#allocation137_spill] sm:$0xff] %v10454_v13  ;;  %v5559_v39 = vld [vmem:[%s13638_s2 + $0x1078] sm:$0xff]  ;;  %14105 = vst [vmem:[#allocation138_spill] sm:$0xff] %v10473_v43  ;;  %v1709_v35 = vld [vmem:[%s13638_s2 + $0x520] sm:$0xff]  ;;  %6468 = vmatprep.subr.bf16.mxu0 %v10452_v53  ;;  %6828 = vmatprep.subr.bf16.mxu1 %v10454_v13  ;;  %v10488_v20 = vpack.c.bf16 %v1712_v22, %v1710_v62  ;;  %v1483_v5 = vrot.slane %v1471_v54, 4 }
 0x35e   :  { %v1474_v38 = vld [vmem:[#allocation4 + $0x30] sm:$0x3]  ;;  %1419 = vrot.lane.b32.xlu1 %v1408_v14, %s8113_s13  ;;  %14106 = vst [vmem:[#allocation139_spill] sm:$0xff] %v10477_v0  ;;  %v1711_v9 = vld [vmem:[%s13638_s2 + $0x530] sm:$0xff]  ;;  %v10490_v46 = vpack.c.bf16 %v5559_v39, %v5557_v26  ;;  %v5556_v14 = vld [vmem:[%s13638_s2 + $0x1060] sm:$0xff] }
 0x35f   :  { %14107 = vst [vmem:[#allocation140_spill] sm:$0xff] %v10488_v20  ;;  %v1486_v55 = vrot.slane %v1474_v38, 4  ;;  %v5558_v18 = vld [vmem:[%s13638_s2 + $0x1070] sm:$0xff]  ;;  %v1714_v53 = vld [vmem:[%s13638_s2 + $0x548] sm:$0xff]  ;;  %1272 = vrot.lane.b32.xlu0 %v1265_v59, %s8111_s28  ;;  %v1716_v21 = vld [vmem:[%s13638_s2 + $0x558] sm:$0xff]  ;;  %v10512_v26 = vpack.c.bf16 %v1711_v9, %v1709_v35 }
 0x360   :  { %14108 = vst [vmem:[#allocation141_spill] sm:$0xff] %v10490_v46  ;;  %v5561_v62 = vld [vmem:[%s13638_s2 + $0x1088] sm:$0xff]  ;;  %v5563_v22 = vld [vmem:[%s13638_s2 + $0x1098] sm:$0xff]  ;;  %6470 = vmatpush1.bf16.msra.mxu0 %v10473_v43  ;;  %v10514_v39 = vld [vmem:[#allocation5 + $0x20] sm:$0xff]  ;;  %6830 = vmatpush1.bf16.msra.mxu1 %v10477_v0  ;;  %v10518_v38 = vpack.c.bf16 %v5558_v18, %v5556_v14  ;;  %v10532_v14 = vpack.c.bf16 %v1716_v21, %v1714_v53 }
 0x361   :  { %14109 = vst [vmem:[#allocation142_spill] sm:$0xff] %v10512_v26  ;;  %v1713_v54 = vld [vmem:[%s13638_s2 + $0x540] sm:$0xff]  ;;  %v1715_v59 = vld [vmem:[%s13638_s2 + $0x550] sm:$0xff]  ;;  %6472 = vmatprep.subr.bf16.mxu0 %v10488_v20  ;;  %6832 = vmatprep.subr.bf16.mxu1 %v10490_v46  ;;  %v1487_v9 = vsel %vm1449_vm6, %v1483_v5, %v1486_v55  ;;  %v10534_v18 = vpack.c.bf16 %v5563_v22, %v5561_v62  ;;  %v1718_v43 = vld [vmem:[%s13638_s2 + $0x568] sm:$0xff] }
 0x362   :  { %1492 = vrot.lane.b32.xlu1 %v1483_v5, %s8111_s28  ;;  %14110 = vst [vmem:[#allocation143_spill] sm:$0xff] %v10518_v38  ;;  %v5560_v35 = vld [vmem:[%s13638_s2 + $0x1080] sm:$0xff]  ;;  %14111 = vst [vmem:[#allocation144_spill] sm:$0xff] %v10532_v14  ;;  %v5562_v0 = vld [vmem:[%s13638_s2 + $0x1090] sm:$0xff]  ;;  %v8034_v53 = vpack.i.bf16 %v10514_v39, %v10128_v60  ;;  %v10555_v21 = vpack.c.bf16 %v1715_v59, %v1713_v54 }
 0x363   :  { %14112 = vst [vmem:[#allocation145_spill] sm:$0xff] %v10534_v18  ;;  %v1720_v20 = vld [vmem:[%s13638_s2 + $0x578] sm:$0xff]  ;;  %1498 = vrot.lane.b32.xlu0 %v1487_v9, %s8111_s28  ;;  %v5565_v55 = vld [vmem:[%s13638_s2 + $0x10a8] sm:$0xff]  ;;  %v10559_v62 = vpack.c.bf16 %v5562_v0, %v5560_v35  ;;  %v1717_v60 = vld [vmem:[%s13638_s2 + $0x560] sm:$0xff] }
 0x364   :  { %v5567_v5 = vld [vmem:[%s13638_s2 + $0x10b8] sm:$0xff]  ;;  %6474 = vmatpush1.bf16.msra.mxu0 %v10512_v26  ;;  %14113 = vst [vmem:[#allocation146_spill] sm:$0xff] %v10555_v21  ;;  %6834 = vmatpush1.bf16.msra.mxu1 %v10518_v38  ;;  %v10561_v22 = vpack.c.bf16 %v1720_v20, %v1718_v43  ;;  %v1719_v9 = vld [vmem:[%s13638_s2 + $0x570] sm:$0xff]  ;;  %v5564_v54 = vld [vmem:[%s13638_s2 + $0x10a0] sm:$0xff] }
 0x365   :  { %14114 = vst [vmem:[#allocation147_spill] sm:$0xff] %v10559_v62  ;;  %6476 = vmatprep.subr.bf16.mxu0 %v10532_v14  ;;  %6836 = vmatprep.subr.bf16.mxu1 %v10534_v18  ;;  %v10574_v0 = vpack.c.bf16 %v5567_v5, %v5565_v55  ;;  %v5566_v43 = vld [vmem:[%s13638_s2 + $0x10b0] sm:$0xff]  ;;  %v1722_v20 = vld [vmem:[%s13638_s2 + $0x588] sm:$0xff]  ;;  %v1724_v59 = vld [vmem:[%s13638_s2 + $0x598] sm:$0xff]  ;;  %v10594_v5 = vpack.c.bf16 %v1719_v9, %v1717_v60 }
 0x366   :  { %8035 = vrot.lane.b32.xlu1 %v8034_v53, %s8113_s13  ;;  %14115 = vst [vmem:[#allocation148_spill] sm:$0xff] %v10561_v22  ;;  %v5569_v35 = vld [vmem:[%s13638_s2 + $0x10c8] sm:$0xff]  ;;  %v5571_v53 = vld [vmem:[%s13638_s2 + $0x10d8] sm:$0xff]  ;;  %v3212_v55 = vld [vmem:[#allocation5 + $0x80] sm:$0x3f]  ;;  %v10601_v14 = vpack.c.bf16 %v1724_v59, %v1722_v20 }
 0x367   :  { %14116 = vst [vmem:[#allocation149_spill] sm:$0xff] %v10574_v0  ;;  %3248 = vrot.lane.b32.xlu0 %v10139_v44, %s8113_s13  ;;  %14117 = vst [vmem:[#allocation150_spill] sm:$0xff] %v10594_v5  ;;  %v8039_v18 = vpack.i.bf16 %v10314_v36, %v3212_v55  ;;  %v10599_v44 = vpack.c.bf16 %v5566_v43, %v5564_v54  ;;  %v1721_v38 = vld [vmem:[%s13638_s2 + $0x580] sm:$0xff]  ;;  %v10613_v9 = vpack.c.bf16 %v5571_v53, %v5569_v35  ;;  %v5570_v36 = vld [vmem:[%s13638_s2 + $0x10d0] sm:$0xff] }
 0x368   :  { %6478 = vmatpush1.bf16.msra.mxu0 %v10555_v21  ;;  %6838 = vmatpush1.bf16.msra.mxu1 %v10559_v62  ;;  %14119 = vst [vmem:[#allocation152_spill] sm:$0xff] %v10601_v14  ;;  %v1723_v21 = vld [vmem:[%s13638_s2 + $0x590] sm:$0xff]  ;;  %v5568_v60 = vld [vmem:[%s13638_s2 + $0x10c0] sm:$0xff]  ;;  %v1726_v54 = vld [vmem:[%s13638_s2 + $0x5a8] sm:$0xff] }
 0x369   :  { %6480 = vmatprep.subr.bf16.mxu0 %v10561_v22  ;;  %14118 = vst [vmem:[#allocation151_spill] sm:$0xff] %v10599_v44  ;;  %6840 = vmatprep.subr.bf16.mxu1 %v10574_v0  ;;  %14120 = vst [vmem:[#allocation153_spill] sm:$0xff] %v10613_v9  ;;  %v1728_v43 = vld [vmem:[%s13638_s2 + $0x5b8] sm:$0xff]  ;;  %v5573_v20 = vld [vmem:[%s13638_s2 + $0x10e8] sm:$0xff]  ;;  %v10632_v35 = vpack.c.bf16 %v1723_v21, %v1721_v38  ;;  %v10636_v53 = vpack.c.bf16 %v5570_v36, %v5568_v60 }
 0x36a   :  { %v5575_v59 = vld [vmem:[%s13638_s2 + $0x10f8] sm:$0xff]  ;;  %v10638_v55 = vpack.c.bf16 %v1728_v43, %v1726_v54  ;;  %v1727_v0 = vld [vmem:[%s13638_s2 + $0x5b0] sm:$0xff]  ;;  %v5572_v38 = vld [vmem:[%s13638_s2 + $0x10e0] sm:$0xff] }
 0x36b   :  { %8040 = vrot.lane.b32.xlu0 %v8039_v18, %s8113_s13  ;;  %14121 = vst [vmem:[#allocation154_spill] sm:$0xff] %v10632_v35  ;;  %14122 = vst [vmem:[#allocation155_spill] sm:$0xff] %v10636_v53  ;;  %v1725_v18 = vld [vmem:[%s13638_s2 + $0x5a0] sm:$0xff]  ;;  %v10650_v21 = vpack.c.bf16 %v5575_v59, %v5573_v20  ;;  %v5574_v60 = vld [vmem:[%s13638_s2 + $0x10f0] sm:$0xff] }
 0x36c   :  { %6482 = vmatpush1.bf16.msra.mxu0 %v10594_v5  ;;  %6842 = vmatpush1.bf16.msra.mxu1 %v10599_v44  ;;  %14123 = vst [vmem:[#allocation156_spill] sm:$0xff] %v10638_v55  ;;  %v1730_v36 = vld [vmem:[%s13638_s2 + $0x5c8] sm:$0xff]  ;;  %v1732_v54 = vld [vmem:[%s13638_s2 + $0x5d8] sm:$0xff]  ;;  %v10668_v59 = vpack.c.bf16 %v1727_v0, %v1725_v18  ;;  %v1729_v44 = vld [vmem:[%s13638_s2 + $0x5c0] sm:$0xff] }
 0x36d   :  { %6484 = vmatprep.subr.bf16.mxu0 %v10601_v14  ;;  %6844 = vmatprep.subr.bf16.mxu1 %v10613_v9  ;;  %14124 = vst [vmem:[#allocation157_spill] sm:$0xff] %v10650_v21  ;;  %v5577_v43 = vld [vmem:[%s13638_s2 + $0x1108] sm:$0xff]  ;;  %v5579_v20 = vld [vmem:[%s13638_s2 + $0x1118] sm:$0xff]  ;;  %v10672_v9 = vpack.c.bf16 %v5574_v60, %v5572_v38  ;;  %v10674_v14 = vpack.c.bf16 %v1732_v54, %v1730_v36  ;;  %v1731_v5 = vld [vmem:[%s13638_s2 + $0x5d0] sm:$0xff] }
 0x36e   :  { %14125 = vst [vmem:[#allocation158_spill] sm:$0xff] %v10668_v59  ;;  %v5576_v0 = vld [vmem:[%s13638_s2 + $0x1100] sm:$0xff]  ;;  %v10686_v18 = vpack.c.bf16 %v5579_v20, %v5577_v43  ;;  %v5578_v38 = vld [vmem:[%s13638_s2 + $0x1110] sm:$0xff]  ;;  %v1734_v60 = vld [vmem:[%s13638_s2 + $0x5e8] sm:$0xff]  ;;  %v10704_v20 = vpack.c.bf16 %v1731_v5, %v1729_v44 }
 0x36f   :  { %14126 = vst [vmem:[#allocation159_spill] sm:$0xff] %v10672_v9  ;;  %14127 = vst [vmem:[#allocation160_spill] sm:$0xff] %v10674_v14  ;;  %v1736_v36 = vld [vmem:[%s13638_s2 + $0x5f8] sm:$0xff]  ;;  %v5581_v54 = vld [vmem:[%s13638_s2 + $0x1128] sm:$0xff] }
 0x370   :  { %6486 = vmatpush1.bf16.msra.mxu0 %v10632_v35  ;;  %6846 = vmatpush1.bf16.msra.mxu1 %v10636_v53  ;;  %14128 = vst [vmem:[#allocation161_spill] sm:$0xff] %v10686_v18  ;;  %v5583_v43 = vld [vmem:[%s13638_s2 + $0x1138] sm:$0xff]  ;;  %14129 = vst [vmem:[#allocation162_spill] sm:$0xff] %v10704_v20  ;;  %v1733_v53 = vld [vmem:[%s13638_s2 + $0x5e0] sm:$0xff] }
 0x371   :  { %6488 = vmatprep.subr.bf16.mxu0 %v10638_v55  ;;  %6848 = vmatprep.subr.bf16.mxu1 %v10650_v21  ;;  %v10708_v21 = vpack.c.bf16 %v5578_v38, %v5576_v0  ;;  %v10710_v55 = vpack.c.bf16 %v1736_v36, %v1734_v60  ;;  %v1735_v35 = vld [vmem:[%s13638_s2 + $0x5f0] sm:$0xff]  ;;  %v5580_v5 = vld [vmem:[%s13638_s2 + $0x1120] sm:$0xff]  ;;  %v10722_v44 = vpack.c.bf16 %v5583_v43, %v5581_v54  ;;  %v1738_v38 = vld [vmem:[%s13638_s2 + $0x608] sm:$0xff] }
 0x372   :  { %v5582_v0 = vld [vmem:[%s13638_s2 + $0x1130] sm:$0xff]  ;;  %v1740_v60 = vld [vmem:[%s13638_s2 + $0x618] sm:$0xff]  ;;  %v5585_v36 = vld [vmem:[%s13638_s2 + $0x1148] sm:$0xff]  ;;  %v10740_v43 = vpack.c.bf16 %v1735_v35, %v1733_v53 }
 0x373   :  { %14130 = vst [vmem:[#allocation163_spill] sm:$0xff] %v10708_v21  ;;  %14131 = vst [vmem:[#allocation164_spill] sm:$0xff] %v10710_v55  ;;  %v5587_v54 = vld [vmem:[%s13638_s2 + $0x1158] sm:$0xff]  ;;  %v5584_v35 = vld [vmem:[%s13638_s2 + $0x1140] sm:$0xff] }
 0x374   :  { %6490 = vmatpush1.bf16.msra.mxu0 %v10668_v59  ;;  %6850 = vmatpush1.bf16.msra.mxu1 %v10672_v9  ;;  %14132 = vst [vmem:[#allocation165_spill] sm:$0xff] %v10722_v44  ;;  %14133 = vst [vmem:[#allocation166_spill] sm:$0xff] %v10740_v43  ;;  %v1737_v9 = vld [vmem:[%s13638_s2 + $0x600] sm:$0xff]  ;;  %v1739_v59 = vld [vmem:[%s13638_s2 + $0x610] sm:$0xff]  ;;  %v10758_v53 = vpack.c.bf16 %v5587_v54, %v5585_v36 }
 0x375   :  { %6492 = vmatprep.subr.bf16.mxu0 %v10674_v14  ;;  %6852 = vmatprep.subr.bf16.mxu1 %v10686_v18  ;;  %v10744_v18 = vpack.c.bf16 %v5582_v0, %v5580_v5  ;;  %v10746_v14 = vpack.c.bf16 %v1740_v60, %v1738_v38  ;;  %v5586_v5 = vld [vmem:[%s13638_s2 + $0x1150] sm:$0xff]  ;;  %v1742_v0 = vld [vmem:[%s13638_s2 + $0x628] sm:$0xff]  ;;  %v1744_v38 = vld [vmem:[%s13638_s2 + $0x638] sm:$0xff]  ;;  %v10776_v54 = vpack.c.bf16 %v1739_v59, %v1737_v9 }
 0x376   :  { %14136 = vst [vmem:[#allocation169_spill] sm:$0xff] %v10758_v53  ;;  %v5589_v60 = vld [vmem:[%s13638_s2 + $0x1168] sm:$0xff]  ;;  %v5591_v36 = vld [vmem:[%s13638_s2 + $0x1178] sm:$0xff]  ;;  %v5588_v9 = vld [vmem:[%s13638_s2 + $0x1160] sm:$0xff] }
 0x377   :  { %14134 = vst [vmem:[#allocation167_spill] sm:$0xff] %v10744_v18  ;;  %14135 = vst [vmem:[#allocation168_spill] sm:$0xff] %v10746_v14  ;;  %v10794_v59 = vpack.c.bf16 %v5591_v36, %v5589_v60  ;;  %v5595_v60 = vld [vmem:[%s13638_s2 + $0x1198] sm:$0xff]  ;;  %v1472_v37 = vld [vmem:[#allocation4 + $0x20] sm:$0xf8] }
 0x378   :  { %6494 = vmatpush1.bf16.msra.mxu0 %v10704_v20  ;;  %6854 = vmatpush1.bf16.msra.mxu1 %v10708_v21  ;;  %14137 = vst [vmem:[#allocation170_spill] sm:$0xff] %v10776_v54  ;;  %v1741_v21 = vld [vmem:[%s13638_s2 + $0x620] sm:$0xff]  ;;  %v1743_v20 = vld [vmem:[%s13638_s2 + $0x630] sm:$0xff] }
 0x379   :  { %6496 = vmatprep.subr.bf16.mxu0 %v10710_v55  ;;  %6856 = vmatprep.subr.bf16.mxu1 %v10722_v44  ;;  %v10780_v44 = vpack.c.bf16 %v5586_v5, %v5584_v35  ;;  %v10782_v55 = vpack.c.bf16 %v1744_v38, %v1742_v0  ;;  %14140 = vst [vmem:[#allocation173_spill] sm:$0xff] %v10794_v59  ;;  %v5590_v35 = vld [vmem:[%s13638_s2 + $0x1170] sm:$0xff]  ;;  %v1746_v5 = vld [vmem:[%s13638_s2 + $0x648] sm:$0xff]  ;;  %v1748_v0 = vld [vmem:[%s13638_s2 + $0x658] sm:$0xff] }
 0x37a   :  { %v5593_v38 = vld [vmem:[%s13638_s2 + $0x1188] sm:$0xff]  ;;  %v10814_v36 = vpack.c.bf16 %v1743_v20, %v1741_v21  ;;  %v5592_v21 = vld [vmem:[%s13638_s2 + $0x1180] sm:$0xff] }
 0x37b   :  { %14138 = vst [vmem:[#allocation171_spill] sm:$0xff] %v10780_v44  ;;  %14139 = vst [vmem:[#allocation172_spill] sm:$0xff] %v10782_v55  ;;  %v10832_v20 = vpack.c.bf16 %v5595_v60, %v5593_v38  ;;  %v5599_v38 = vld [vmem:[%s13638_s2 + $0x11b8] sm:$0xff]  ;;  %v1475_v42 = vld [vmem:[#allocation4 + $0x38] sm:$0x3] }
 0x37c   :  { %6498 = vmatpush1.bf16.msra.mxu0 %v10740_v43  ;;  %6858 = vmatpush1.bf16.msra.mxu1 %v10744_v18  ;;  %14141 = vst [vmem:[#allocation174_spill] sm:$0xff] %v10814_v36  ;;  %v1745_v18 = vld [vmem:[%s13638_s2 + $0x640] sm:$0xff]  ;;  %v1799_v43 = vld [vmem:[%s13638_s2 + $0x7f0] sm:$0xff] }
 0x37d   :  { %6500 = vmatprep.subr.bf16.mxu0 %v10746_v14  ;;  %6860 = vmatprep.subr.bf16.mxu1 %v10758_v53  ;;  %v10818_v53 = vpack.c.bf16 %v5590_v35, %v5588_v9  ;;  %v10820_v14 = vpack.c.bf16 %v1748_v0, %v1746_v5  ;;  %14144 = vst [vmem:[#allocation177_spill] sm:$0xff] %v10832_v20  ;;  %v5594_v9 = vld [vmem:[%s13638_s2 + $0x1190] sm:$0xff]  ;;  %v1750_v35 = vld [vmem:[%s13638_s2 + $0x668] sm:$0xff]  ;;  %v1752_v5 = vld [vmem:[%s13638_s2 + $0x678] sm:$0xff] }
 0x37e   :  { %v5597_v0 = vld [vmem:[%s13638_s2 + $0x11a8] sm:$0xff] }
 0x37f   :  { %2130 = vmatmul.mubr.f32.vlgmr.msra.gmra.mrb[16].mxu0 %v10514_v39  ;;  %2953 = vmatmul.mubr.f32.vlgmr.msra.gmra.mrb[16].mxu1 %v10514_v39  ;;  %14142 = vst [vmem:[#allocation175_spill] sm:$0xff] %v10818_v53  ;;  %14143 = vst [vmem:[#allocation176_spill] sm:$0xff] %v10820_v14  ;;  %v1747_v39 = vld [vmem:[%s13638_s2 + $0x650] sm:$0xff] }
 0x380   :  { %6502 = vmatpush1.bf16.msra.mxu0 %v10776_v54  ;;  %6862 = vmatpush1.bf16.msra.mxu1 %v10780_v44  ;;  %v10850_v60 = vpack.c.bf16 %v1747_v39, %v1745_v18  ;;  %v1749_v44 = vld [vmem:[%s13638_s2 + $0x660] sm:$0xff]  ;;  %v1751_v54 = vld [vmem:[%s13638_s2 + $0x670] sm:$0xff]  ;;  %v10868_v39 = vpack.c.bf16 %v5599_v38, %v5597_v0  ;;  %v5603_v0 = vld [vmem:[%s13638_s2 + $0x11d8] sm:$0xff] }
 0x381   :  { %6504 = vmatprep.subr.bf16.mxu0 %v10782_v55  ;;  %6864 = vmatprep.subr.bf16.mxu1 %v10794_v59  ;;  %v10854_v59 = vpack.c.bf16 %v5594_v9, %v5592_v21  ;;  %v10856_v55 = vpack.c.bf16 %v1752_v5, %v1750_v35  ;;  %v5596_v18 = vld [vmem:[%s13638_s2 + $0x11a0] sm:$0xff]  ;;  %v5598_v21 = vld [vmem:[%s13638_s2 + $0x11b0] sm:$0xff]  ;;  %v1754_v9 = vld [vmem:[%s13638_s2 + $0x688] sm:$0xff]  ;;  %v10886_v38 = vpack.c.bf16 %v1751_v54, %v1749_v44 }
 0x382   :  { %14145 = vst [vmem:[#allocation178_spill] sm:$0xff] %v10850_v60  ;;  %14148 = vst [vmem:[#allocation181_spill] sm:$0xff] %v10868_v39  ;;  %v1756_v35 = vld [vmem:[%s13638_s2 + $0x698] sm:$0xff]  ;;  %v5601_v5 = vld [vmem:[%s13638_s2 + $0x11c8] sm:$0xff] }
 0x383   :  { %14146 = vst [vmem:[#allocation179_spill] sm:$0xff] %v10854_v59  ;;  %14147 = vst [vmem:[#allocation180_spill] sm:$0xff] %v10856_v55  ;;  %v5600_v44 = vld [vmem:[%s13638_s2 + $0x11c0] sm:$0xff]  ;;  %v10904_v54 = vpack.c.bf16 %v5603_v0, %v5601_v5  ;;  %v5607_v5 = vld [vmem:[%s13638_s2 + $0x11f8] sm:$0xff] }
 0x384   :  { %6506 = vmatpush1.bf16.msra.mxu0 %v10814_v36  ;;  %6866 = vmatpush1.bf16.msra.mxu1 %v10818_v53  ;;  %14149 = vst [vmem:[#allocation182_spill] sm:$0xff] %v10886_v38  ;;  %v1753_v53 = vld [vmem:[%s13638_s2 + $0x680] sm:$0xff]  ;;  %v1755_v36 = vld [vmem:[%s13638_s2 + $0x690] sm:$0xff] }
 0x385   :  { %6508 = vmatprep.subr.bf16.mxu0 %v10820_v14  ;;  %6868 = vmatprep.subr.bf16.mxu1 %v10832_v20  ;;  %v10890_v20 = vpack.c.bf16 %v5598_v21, %v5596_v18  ;;  %v10892_v14 = vpack.c.bf16 %v1756_v35, %v1754_v9  ;;  %14152 = vst [vmem:[#allocation185_spill] sm:$0xff] %v10904_v54  ;;  %v5602_v18 = vld [vmem:[%s13638_s2 + $0x11d0] sm:$0xff]  ;;  %v1758_v21 = vld [vmem:[%s13638_s2 + $0x6a8] sm:$0xff]  ;;  %v1760_v9 = vld [vmem:[%s13638_s2 + $0x6b8] sm:$0xff] }
 0x386   :  { %v5605_v35 = vld [vmem:[%s13638_s2 + $0x11e8] sm:$0xff]  ;;  %v10922_v0 = vpack.c.bf16 %v1755_v36, %v1753_v53  ;;  %v5604_v53 = vld [vmem:[%s13638_s2 + $0x11e0] sm:$0xff] }
 0x387   :  { %14150 = vst [vmem:[#allocation183_spill] sm:$0xff] %v10890_v20  ;;  %14151 = vst [vmem:[#allocation184_spill] sm:$0xff] %v10892_v14  ;;  %v10940_v36 = vpack.c.bf16 %v5607_v5, %v5605_v35  ;;  %v5611_v35 = vld [vmem:[%s13638_s2 + $0x1218] sm:$0xff] }
 0x388   :  { %6510 = vmatpush1.bf16.msra.mxu0 %v10850_v60  ;;  %6870 = vmatpush1.bf16.msra.mxu1 %v10854_v59  ;;  %14153 = vst [vmem:[#allocation186_spill] sm:$0xff] %v10922_v0  ;;  %v1757_v59 = vld [vmem:[%s13638_s2 + $0x6a0] sm:$0xff]  ;;  %v1759_v60 = vld [vmem:[%s13638_s2 + $0x6b0] sm:$0xff] }
 0x389   :  { %6512 = vmatprep.subr.bf16.mxu0 %v10856_v55  ;;  %6872 = vmatprep.subr.bf16.mxu1 %v10868_v39  ;;  %v10926_v39 = vpack.c.bf16 %v5602_v18, %v5600_v44  ;;  %v10928_v55 = vpack.c.bf16 %v1760_v9, %v1758_v21  ;;  %14156 = vst [vmem:[#allocation189_spill] sm:$0xff] %v10940_v36  ;;  %v5606_v44 = vld [vmem:[%s13638_s2 + $0x11f0] sm:$0xff]  ;;  %v1762_v18 = vld [vmem:[%s13638_s2 + $0x6c8] sm:$0xff]  ;;  %v1764_v21 = vld [vmem:[%s13638_s2 + $0x6d8] sm:$0xff] }
 0x38a   :  { %v5609_v9 = vld [vmem:[%s13638_s2 + $0x1208] sm:$0xff]  ;;  %v10958_v5 = vpack.c.bf16 %v1759_v60, %v1757_v59  ;;  %v5608_v59 = vld [vmem:[%s13638_s2 + $0x1200] sm:$0xff] }
 0x38b   :  { %14154 = vst [vmem:[#allocation187_spill] sm:$0xff] %v10926_v39  ;;  %14155 = vst [vmem:[#allocation188_spill] sm:$0xff] %v10928_v55  ;;  %v10976_v60 = vpack.c.bf16 %v5611_v35, %v5609_v9  ;;  %v5615_v9 = vld [vmem:[%s13638_s2 + $0x1238] sm:$0xff] }
 0x38c   :  { %6514 = vmatpush1.bf16.msra.mxu0 %v10886_v38  ;;  %6874 = vmatpush1.bf16.msra.mxu1 %v10890_v20  ;;  %14157 = vst [vmem:[#allocation190_spill] sm:$0xff] %v10958_v5  ;;  %v1761_v20 = vld [vmem:[%s13638_s2 + $0x6c0] sm:$0xff]  ;;  %v1763_v38 = vld [vmem:[%s13638_s2 + $0x6d0] sm:$0xff] }
 0x38d   :  { %6516 = vmatprep.subr.bf16.mxu0 %v10892_v14  ;;  %6876 = vmatprep.subr.bf16.mxu1 %v10904_v54  ;;  %v10962_v54 = vpack.c.bf16 %v5606_v44, %v5604_v53  ;;  %v10964_v14 = vpack.c.bf16 %v1764_v21, %v1762_v18  ;;  %14160 = vst [vmem:[#allocation193_spill] sm:$0xff] %v10976_v60  ;;  %v5610_v53 = vld [vmem:[%s13638_s2 + $0x1210] sm:$0xff]  ;;  %v1766_v44 = vld [vmem:[%s13638_s2 + $0x6e8] sm:$0xff]  ;;  %v1768_v18 = vld [vmem:[%s13638_s2 + $0x6f8] sm:$0xff] }
 0x38e   :  { %v5613_v21 = vld [vmem:[%s13638_s2 + $0x1228] sm:$0xff]  ;;  %v10994_v35 = vpack.c.bf16 %v1763_v38, %v1761_v20  ;;  %v5612_v20 = vld [vmem:[%s13638_s2 + $0x1220] sm:$0xff] }
 0x38f   :  { %14158 = vst [vmem:[#allocation191_spill] sm:$0xff] %v10962_v54  ;;  %14159 = vst [vmem:[#allocation192_spill] sm:$0xff] %v10964_v14  ;;  %v11012_v38 = vpack.c.bf16 %v5615_v9, %v5613_v21  ;;  %v5619_v21 = vld [vmem:[%s13638_s2 + $0x1258] sm:$0xff] }
 0x390   :  { %6518 = vmatpush1.bf16.msra.mxu0 %v10922_v0  ;;  %6878 = vmatpush1.bf16.msra.mxu1 %v10926_v39  ;;  %14161 = vst [vmem:[#allocation194_spill] sm:$0xff] %v10994_v35  ;;  %v1765_v39 = vld [vmem:[%s13638_s2 + $0x6e0] sm:$0xff]  ;;  %v1767_v0 = vld [vmem:[%s13638_s2 + $0x6f0] sm:$0xff] }
 0x391   :  { %6520 = vmatprep.subr.bf16.mxu0 %v10928_v55  ;;  %6880 = vmatprep.subr.bf16.mxu1 %v10940_v36  ;;  %v10998_v36 = vpack.c.bf16 %v5610_v53, %v5608_v59  ;;  %v11000_v55 = vpack.c.bf16 %v1768_v18, %v1766_v44  ;;  %14164 = vst [vmem:[#allocation197_spill] sm:$0xff] %v11012_v38  ;;  %v5614_v59 = vld [vmem:[%s13638_s2 + $0x1230] sm:$0xff]  ;;  %v1770_v53 = vld [vmem:[%s13638_s2 + $0x708] sm:$0xff]  ;;  %v1772_v44 = vld [vmem:[%s13638_s2 + $0x718] sm:$0xff] }
 0x392   :  { %v5617_v18 = vld [vmem:[%s13638_s2 + $0x1248] sm:$0xff]  ;;  %v11030_v9 = vpack.c.bf16 %v1767_v0, %v1765_v39  ;;  %v5616_v39 = vld [vmem:[%s13638_s2 + $0x1240] sm:$0xff] }
 0x393   :  { %14162 = vst [vmem:[#allocation195_spill] sm:$0xff] %v10998_v36  ;;  %14163 = vst [vmem:[#allocation196_spill] sm:$0xff] %v11000_v55  ;;  %v11048_v0 = vpack.c.bf16 %v5619_v21, %v5617_v18  ;;  %v5623_v18 = vld [vmem:[%s13638_s2 + $0x1278] sm:$0xff] }
 0x394   :  { %6522 = vmatpush1.bf16.msra.mxu0 %v10958_v5  ;;  %6882 = vmatpush1.bf16.msra.mxu1 %v10962_v54  ;;  %14165 = vst [vmem:[#allocation198_spill] sm:$0xff] %v11030_v9  ;;  %v1769_v54 = vld [vmem:[%s13638_s2 + $0x700] sm:$0xff]  ;;  %v1771_v5 = vld [vmem:[%s13638_s2 + $0x710] sm:$0xff] }
 0x395   :  { %6524 = vmatprep.subr.bf16.mxu0 %v10964_v14  ;;  %6884 = vmatprep.subr.bf16.mxu1 %v10976_v60  ;;  %v11034_v60 = vpack.c.bf16 %v5614_v59, %v5612_v20  ;;  %v11036_v14 = vpack.c.bf16 %v1772_v44, %v1770_v53  ;;  %14168 = vst [vmem:[#allocation201_spill] sm:$0xff] %v11048_v0  ;;  %v5618_v20 = vld [vmem:[%s13638_s2 + $0x1250] sm:$0xff]  ;;  %v1774_v59 = vld [vmem:[%s13638_s2 + $0x728] sm:$0xff]  ;;  %v1776_v53 = vld [vmem:[%s13638_s2 + $0x738] sm:$0xff] }
 0x396   :  { %v5621_v44 = vld [vmem:[%s13638_s2 + $0x1268] sm:$0xff]  ;;  %v11066_v21 = vpack.c.bf16 %v1771_v5, %v1769_v54  ;;  %v5620_v54 = vld [vmem:[%s13638_s2 + $0x1260] sm:$0xff] }
 0x397   :  { %14166 = vst [vmem:[#allocation199_spill] sm:$0xff] %v11034_v60  ;;  %14167 = vst [vmem:[#allocation200_spill] sm:$0xff] %v11036_v14  ;;  %v11084_v5 = vpack.c.bf16 %v5623_v18, %v5621_v44  ;;  %v5627_v44 = vld [vmem:[%s13638_s2 + $0x1298] sm:$0xff] }
 0x398   :  { %6526 = vmatpush1.bf16.msra.mxu0 %v10994_v35  ;;  %6886 = vmatpush1.bf16.msra.mxu1 %v10998_v36  ;;  %14169 = vst [vmem:[#allocation202_spill] sm:$0xff] %v11066_v21  ;;  %v1773_v36 = vld [vmem:[%s13638_s2 + $0x720] sm:$0xff]  ;;  %v1775_v35 = vld [vmem:[%s13638_s2 + $0x730] sm:$0xff] }
 0x399   :  { %6528 = vmatprep.subr.bf16.mxu0 %v11000_v55  ;;  %6888 = vmatprep.subr.bf16.mxu1 %v11012_v38  ;;  %v11070_v38 = vpack.c.bf16 %v5618_v20, %v5616_v39  ;;  %v11072_v55 = vpack.c.bf16 %v1776_v53, %v1774_v59  ;;  %14172 = vst [vmem:[#allocation205_spill] sm:$0xff] %v11084_v5  ;;  %v5622_v39 = vld [vmem:[%s13638_s2 + $0x1270] sm:$0xff]  ;;  %v1778_v20 = vld [vmem:[%s13638_s2 + $0x748] sm:$0xff]  ;;  %v1780_v59 = vld [vmem:[%s13638_s2 + $0x758] sm:$0xff] }
 0x39a   :  { %v5625_v53 = vld [vmem:[%s13638_s2 + $0x1288] sm:$0xff]  ;;  %v11102_v18 = vpack.c.bf16 %v1775_v35, %v1773_v36  ;;  %v5624_v36 = vld [vmem:[%s13638_s2 + $0x1280] sm:$0xff] }
 0x39b   :  { %14170 = vst [vmem:[#allocation203_spill] sm:$0xff] %v11070_v38  ;;  %14171 = vst [vmem:[#allocation204_spill] sm:$0xff] %v11072_v55  ;;  %v11120_v35 = vpack.c.bf16 %v5627_v44, %v5625_v53  ;;  %v5631_v53 = vld [vmem:[%s13638_s2 + $0x12b8] sm:$0xff] }
 0x39c   :  { %6530 = vmatpush1.bf16.msra.mxu0 %v11030_v9  ;;  %6890 = vmatpush1.bf16.msra.mxu1 %v11034_v60  ;;  %14173 = vst [vmem:[#allocation206_spill] sm:$0xff] %v11102_v18  ;;  %v1777_v60 = vld [vmem:[%s13638_s2 + $0x740] sm:$0xff]  ;;  %v1779_v9 = vld [vmem:[%s13638_s2 + $0x750] sm:$0xff] }
 0x39d   :  { %6532 = vmatprep.subr.bf16.mxu0 %v11036_v14  ;;  %6892 = vmatprep.subr.bf16.mxu1 %v11048_v0  ;;  %v11106_v0 = vpack.c.bf16 %v5622_v39, %v5620_v54  ;;  %v11108_v14 = vpack.c.bf16 %v1780_v59, %v1778_v20  ;;  %14176 = vst [vmem:[#allocation209_spill] sm:$0xff] %v11120_v35  ;;  %v5626_v54 = vld [vmem:[%s13638_s2 + $0x1290] sm:$0xff]  ;;  %v1782_v39 = vld [vmem:[%s13638_s2 + $0x768] sm:$0xff]  ;;  %v1784_v20 = vld [vmem:[%s13638_s2 + $0x778] sm:$0xff] }
 0x39e   :  { %v5629_v59 = vld [vmem:[%s13638_s2 + $0x12a8] sm:$0xff]  ;;  %v11138_v44 = vpack.c.bf16 %v1779_v9, %v1777_v60  ;;  %v5628_v60 = vld [vmem:[%s13638_s2 + $0x12a0] sm:$0xff] }
 0x39f   :  { %14174 = vst [vmem:[#allocation207_spill] sm:$0xff] %v11106_v0  ;;  %14175 = vst [vmem:[#allocation208_spill] sm:$0xff] %v11108_v14  ;;  %v11156_v9 = vpack.c.bf16 %v5631_v53, %v5629_v59  ;;  %v5635_v59 = vld [vmem:[%s13638_s2 + $0x12d8] sm:$0xff] }
 0x3a0   :  { %6534 = vmatpush1.bf16.msra.mxu0 %v11066_v21  ;;  %6894 = vmatpush1.bf16.msra.mxu1 %v11070_v38  ;;  %14177 = vst [vmem:[#allocation210_spill] sm:$0xff] %v11138_v44  ;;  %v1781_v38 = vld [vmem:[%s13638_s2 + $0x760] sm:$0xff]  ;;  %v1783_v21 = vld [vmem:[%s13638_s2 + $0x770] sm:$0xff] }
 0x3a1   :  { %6536 = vmatprep.subr.bf16.mxu0 %v11072_v55  ;;  %6896 = vmatprep.subr.bf16.mxu1 %v11084_v5  ;;  %v11142_v5 = vpack.c.bf16 %v5626_v54, %v5624_v36  ;;  %v11144_v55 = vpack.c.bf16 %v1784_v20, %v1782_v39  ;;  %14180 = vst [vmem:[#allocation213_spill] sm:$0xff] %v11156_v9  ;;  %v5630_v36 = vld [vmem:[%s13638_s2 + $0x12b0] sm:$0xff]  ;;  %v1786_v54 = vld [vmem:[%s13638_s2 + $0x788] sm:$0xff]  ;;  %v1788_v39 = vld [vmem:[%s13638_s2 + $0x798] sm:$0xff] }
 0x3a2   :  { %v5633_v20 = vld [vmem:[%s13638_s2 + $0x12c8] sm:$0xff]  ;;  %v11174_v53 = vpack.c.bf16 %v1783_v21, %v1781_v38  ;;  %v5632_v38 = vld [vmem:[%s13638_s2 + $0x12c0] sm:$0xff] }
 0x3a3   :  { %14178 = vst [vmem:[#allocation211_spill] sm:$0xff] %v11142_v5  ;;  %14179 = vst [vmem:[#allocation212_spill] sm:$0xff] %v11144_v55  ;;  %v11192_v21 = vpack.c.bf16 %v5635_v59, %v5633_v20  ;;  %v5639_v20 = vld [vmem:[%s13638_s2 + $0x12f8] sm:$0xff] }
 0x3a4   :  { %6538 = vmatpush1.bf16.msra.mxu0 %v11102_v18  ;;  %6898 = vmatpush1.bf16.msra.mxu1 %v11106_v0  ;;  %14181 = vst [vmem:[#allocation214_spill] sm:$0xff] %v11174_v53  ;;  %v1785_v0 = vld [vmem:[%s13638_s2 + $0x780] sm:$0xff]  ;;  %v1787_v18 = vld [vmem:[%s13638_s2 + $0x790] sm:$0xff] }
 0x3a5   :  { %6540 = vmatprep.subr.bf16.mxu0 %v11108_v14  ;;  %6900 = vmatprep.subr.bf16.mxu1 %v11120_v35  ;;  %v11178_v35 = vpack.c.bf16 %v5630_v36, %v5628_v60  ;;  %v11180_v14 = vpack.c.bf16 %v1788_v39, %v1786_v54  ;;  %14184 = vst [vmem:[#allocation217_spill] sm:$0xff] %v11192_v21  ;;  %v5634_v60 = vld [vmem:[%s13638_s2 + $0x12d0] sm:$0xff]  ;;  %v1790_v36 = vld [vmem:[%s13638_s2 + $0x7a8] sm:$0xff]  ;;  %v1792_v54 = vld [vmem:[%s13638_s2 + $0x7b8] sm:$0xff] }
 0x3a6   :  { %v5637_v39 = vld [vmem:[%s13638_s2 + $0x12e8] sm:$0xff]  ;;  %v11210_v59 = vpack.c.bf16 %v1787_v18, %v1785_v0  ;;  %v5636_v0 = vld [vmem:[%s13638_s2 + $0x12e0] sm:$0xff] }
 0x3a7   :  { %14182 = vst [vmem:[#allocation215_spill] sm:$0xff] %v11178_v35  ;;  %14183 = vst [vmem:[#allocation216_spill] sm:$0xff] %v11180_v14  ;;  %v11228_v18 = vpack.c.bf16 %v5639_v20, %v5637_v39  ;;  %v5643_v39 = vld [vmem:[%s13638_s2 + $0x1318] sm:$0xff] }
 0x3a8   :  { %6542 = vmatpush1.bf16.msra.mxu0 %v11138_v44  ;;  %6902 = vmatpush1.bf16.msra.mxu1 %v11142_v5  ;;  %14185 = vst [vmem:[#allocation218_spill] sm:$0xff] %v11210_v59  ;;  %v1789_v5 = vld [vmem:[%s13638_s2 + $0x7a0] sm:$0xff]  ;;  %v1791_v44 = vld [vmem:[%s13638_s2 + $0x7b0] sm:$0xff] }
 0x3a9   :  { %6544 = vmatprep.subr.bf16.mxu0 %v11144_v55  ;;  %6904 = vmatprep.subr.bf16.mxu1 %v11156_v9  ;;  %v11214_v9 = vpack.c.bf16 %v5634_v60, %v5632_v38  ;;  %v11216_v55 = vpack.c.bf16 %v1792_v54, %v1790_v36  ;;  %14188 = vst [vmem:[#allocation221_spill] sm:$0xff] %v11228_v18  ;;  %v5638_v38 = vld [vmem:[%s13638_s2 + $0x12f0] sm:$0xff]  ;;  %v1794_v60 = vld [vmem:[%s13638_s2 + $0x7c8] sm:$0xff]  ;;  %v1796_v36 = vld [vmem:[%s13638_s2 + $0x7d8] sm:$0xff] }
 0x3aa   :  { %v5641_v54 = vld [vmem:[%s13638_s2 + $0x1308] sm:$0xff]  ;;  %v11246_v20 = vpack.c.bf16 %v1791_v44, %v1789_v5  ;;  %v5640_v5 = vld [vmem:[%s13638_s2 + $0x1300] sm:$0xff] }
 0x3ab   :  { %14186 = vst [vmem:[#allocation219_spill] sm:$0xff] %v11214_v9  ;;  %14187 = vst [vmem:[#allocation220_spill] sm:$0xff] %v11216_v55  ;;  %v11264_v44 = vpack.c.bf16 %v5643_v39, %v5641_v54  ;;  %v5647_v54 = vld [vmem:[%s13638_s2 + $0x1338] sm:$0xff] }
 0x3ac   :  { %6546 = vmatpush1.bf16.msra.mxu0 %v11174_v53  ;;  %6906 = vmatpush1.bf16.msra.mxu1 %v11178_v35  ;;  %14189 = vst [vmem:[#allocation222_spill] sm:$0xff] %v11246_v20  ;;  %v1793_v35 = vld [vmem:[%s13638_s2 + $0x7c0] sm:$0xff]  ;;  %v1795_v53 = vld [vmem:[%s13638_s2 + $0x7d0] sm:$0xff] }
 0x3ad   :  { %6548 = vmatprep.subr.bf16.mxu0 %v11180_v14  ;;  %6908 = vmatprep.subr.bf16.mxu1 %v11192_v21  ;;  %v11250_v21 = vpack.c.bf16 %v5638_v38, %v5636_v0  ;;  %v11252_v14 = vpack.c.bf16 %v1796_v36, %v1794_v60  ;;  %14192 = vst [vmem:[#allocation225_spill] sm:$0xff] %v11264_v44  ;;  %v5642_v0 = vld [vmem:[%s13638_s2 + $0x1310] sm:$0xff]  ;;  %v1798_v38 = vld [vmem:[%s13638_s2 + $0x7e8] sm:$0xff]  ;;  %v1800_v60 = vld [vmem:[%s13638_s2 + $0x7f8] sm:$0xff] }
 0x3ae   :  { %v5645_v36 = vld [vmem:[%s13638_s2 + $0x1328] sm:$0xff] }
 0x3af   :  { %14190 = vst [vmem:[#allocation223_spill] sm:$0xff] %v11250_v21  ;;  %14191 = vst [vmem:[#allocation224_spill] sm:$0xff] %v11252_v14 }
 0x3b0   :  { %6550 = vmatpush1.bf16.msra.mxu0 %v11210_v59  ;;  %6910 = vmatpush1.bf16.msra.mxu1 %v11214_v9  ;;  %v11288_v9 = vpack.c.bf16 %v1800_v60, %v1798_v38  ;;  %v1797_v59 = vld [vmem:[%s13638_s2 + $0x7e0] sm:$0xff]  ;;  %v1804_v38 = vld [vmem:[%s13638_s2 + $0x818] sm:$0xff] }
 0x3b1   :  { %6552 = vmatprep.subr.bf16.mxu0 %v11216_v55  ;;  %6912 = vmatprep.subr.bf16.mxu1 %v11228_v18  ;;  %v11282_v18 = vpack.c.bf16 %v1795_v53, %v1793_v35  ;;  %v11286_v55 = vpack.c.bf16 %v5642_v0, %v5640_v5  ;;  %v5644_v35 = vld [vmem:[%s13638_s2 + $0x1320] sm:$0xff]  ;;  %v11300_v53 = vpack.c.bf16 %v5647_v54, %v5645_v36  ;;  %v5646_v5 = vld [vmem:[%s13638_s2 + $0x1330] sm:$0xff]  ;;  %v1802_v0 = vld [vmem:[%s13638_s2 + $0x808] sm:$0xff] }
 0x3b2   :  { %14195 = vst [vmem:[#allocation228_spill] sm:$0xff] %v11288_v9  ;;  %v5651_v36 = vld [vmem:[%s13638_s2 + $0x1358] sm:$0xff]  ;;  %v11325_v22 = vpack.c.bf16 %v5646_v5, %v5644_v35  ;;  %v11327_v62 = vpack.c.bf16 %v1804_v38, %v1802_v0 }
 0x3b3   :  { %14193 = vst [vmem:[#allocation226_spill] sm:$0xff] %v11282_v18  ;;  %14194 = vst [vmem:[#allocation227_spill] sm:$0xff] %v11286_v55 }
 0x3b4   :  { %v1363_v39 = vpop.permute.xlu0 %1362  ;;  %6554 = vmatpush1.bf16.msra.mxu0 %v11246_v20  ;;  %6914 = vmatpush1.bf16.msra.mxu1 %v11250_v21  ;;  %14196 = vst [vmem:[#allocation229_spill] sm:$0xff] %v11300_v53  ;;  %v11319_v21 = vpack.c.bf16 %v1799_v43, %v1797_v59  ;;  %14198 = vst [vmem:[#allocation231_spill] sm:$0xff] %v11325_v22  ;;  %v3213_v59 = vld [vmem:[#allocation5 + $0x88] sm:$0x3f] }
 0x3b5   :  { %1384 = vst.msk [vmem:[#allocation5 + $0x90] sm:$0x3f] %vm1383_vm0, %v1363_v39  ;;  %6556 = vmatprep.subr.bf16.mxu0 %v11252_v14  ;;  %6916 = vmatprep.subr.bf16.mxu1 %v11264_v44  ;;  %v5649_v44 = vld [vmem:[%s13638_s2 + $0x1348] sm:$0xff]  ;;  %14199 = vst [vmem:[#allocation232_spill] sm:$0xff] %v11327_v62 }
 0x3b6   :  { %14197 = vst [vmem:[#allocation230_spill] sm:$0xff] %v11319_v21 }
 0x3b8   :  { %v1365_v60 = vpop.permute.xlu1 %1364  ;;  %v1189_v14 = vpop.permute.xlu0 %1188  ;;  %6558 = vmatpush1.bf16.msra.mxu0 %v11282_v18  ;;  %6918 = vmatpush1.bf16.msra.mxu1 %v11286_v55  ;;  %v5663_v55 = vld [vmem:[%s13638_s2 + $0x13b8] sm:$0xff] }
 0x3b9   :  { %v1370_v54 = vsel %vm715_vm14, %v1363_v39, %v1365_v60  ;;  %v1191_v20 = vsel %vm715_vm14, %v10135_v4, %v1189_v14  ;;  %6560 = vmatprep.subr.bf16.mxu0 %v11288_v9  ;;  %6920 = vmatprep.subr.bf16.mxu1 %v11300_v53  ;;  %v11330_v39 = vpack.c.bf16 %v5651_v36, %v5649_v44 }
 0x3ba   :  { %1385 = vst [vmem:[#allocation5 + $0x98] sm:$0x3f] %v1370_v54  ;;  %1199 = vst.msk [vmem:[#allocation5 + $0x30] sm:$0x7f] %vm1198_vm1, %v1191_v20 }
 0x3bb   :  { %14200 = vst [vmem:[#allocation233_spill] sm:$0xff] %v11330_v39 }
 0x3bc   :  { %v1210_v18 = vpop.permute.xlu1 %1209  ;;  %v1212_v43 = vpop.permute.xlu0 %1211  ;;  %v3214_v54 = vld [vmem:[#allocation5 + $0x90] sm:$0x3f]  ;;  %6562 = vmatpush1.bf16.msra.mxu0 %v11319_v21  ;;  %6922 = vmatpush1.bf16.msra.mxu1 %v11325_v22  ;;  %v1807_v21 = vld [vmem:[%s13638_s2 + $0x830] sm:$0xff] }
 0x3bd   :  { %1220 = vst.msk [vmem:[#allocation5 + $0x30] sm:$0x7f] %vm52_vm9, %v1210_v18  ;;  %v1215_v4 = vsel %vm426_vm13, %v1210_v18, %v1212_v43  ;;  %v8044_v14 = vpack.i.bf16 %v3214_v54, %v3213_v59  ;;  %6564 = vmatprep.subr.bf16.mxu0 %v11327_v62  ;;  %6924 = vmatprep.subr.bf16.mxu1 %v11330_v39  ;;  %v1537_v18 = vld [vmem:[#allocation5 + $0x90] sm:$0x3f]  ;;  %vm1386_vm9 = vcmask 783360  }
 0x3be   :  { %1221 = vst [vmem:[#allocation5 + $0x38] sm:$0x7f] %v1215_v4  ;;  %v1801_v54 = vld [vmem:[%s13638_s2 + $0x800] sm:$0xff]  ;;  %v1803_v4 = vld [vmem:[%s13638_s2 + $0x810] sm:$0xff] }
 0x3bf   :  { %8045 = vrot.lane.b32.xlu1 %v8044_v14, %s8113_s13  ;;  %v5648_v14 = vld [vmem:[%s13638_s2 + $0x1340] sm:$0xff]  ;;  %v11371_v39 = vpack.c.bf16 %v1803_v4, %v1801_v54  ;;  %v5654_v4 = vld [vmem:[%s13638_s2 + $0x1370] sm:$0xff] }
 0x3c0   :  { %v1361_v20 = vpop.permute.xlu1 %1360  ;;  %v1410_v35 = vpop.permute.xlu0 %1409  ;;  %v1805_v22 = vld [vmem:[%s13638_s2 + $0x820] sm:$0xff] }
 0x3c1   :  { %v1369_v44 = vsel %vm715_vm14, %v10205_v2, %v1361_v20  ;;  %v1538_v5 = vld [vmem:[#allocation5 + $0x98] sm:$0x3f]  ;;  %14201 = vst [vmem:[#allocation234_spill] sm:$0xff] %v11371_v39  ;;  %v5652_v54 = vld [vmem:[%s13638_s2 + $0x1360] sm:$0xff] }
 0x3c2   :  { %1382 = vst.msk [vmem:[#allocation5 + $0x30] sm:$0x80] %vm1381_vm2, %v1369_v44  ;;  %2135 = vmatprep.mubr.f32.mxu0 %v1538_v5  ;;  %2958 = vmatprep.mubr.f32.mxu1 %v1538_v5  ;;  %v1806_v20 = vld [vmem:[%s13638_s2 + $0x828] sm:$0xff]  ;;  %v1808_v44 = vld [vmem:[%s13638_s2 + $0x838] sm:$0xff] }
 0x3c3   :  { %1431 = vst.msk [vmem:[#allocation5 + $0x30] sm:$0x80] %vm112_vm10, %v1410_v35  ;;  %2136 = vmatmul.mubr.f32.gmra.mrb[18].mxu0 %v1537_v18  ;;  %2959 = vmatmul.mubr.f32.gmra.mrb[18].mxu1 %v1537_v18  ;;  %v5653_v18 = vld [vmem:[%s13638_s2 + $0x1368] sm:$0xff]  ;;  %vm14207_vm10 = vcmask 1046784  }
 0x3c4   :  { %v1412_v0 = vpop.permute.xlu1 %1411  ;;  %v1367_v36 = vpop.permute.xlu0 %1366 }
 0x3c5   :  { %v1421_v38 = vsel %vm426_vm13, %v1410_v35, %v1412_v0  ;;  %v1371_v59 = vsel %vm715_vm14, %v1365_v60, %v1367_v36  ;;  %v5650_v60 = vld [vmem:[%s13638_s2 + $0x1350] sm:$0xff] }
 0x3c6   :  { %1432 = vst [vmem:[#allocation5 + $0x38] sm:$0x80] %v1421_v38  ;;  %1387 = vst.msk [vmem:[#allocation5 + $0xa0] sm:$0x3f] %vm1386_vm9, %v1371_v59  ;;  %v5655_v38 = vld [vmem:[%s13638_s2 + $0x1378] sm:$0xff]  ;;  %v11373_v62 = vpack.c.bf16 %v5650_v60, %v5648_v14  ;;  %v1810_v60 = vld [vmem:[%s13638_s2 + $0x848] sm:$0xff] }
 0x3c8   :  { %v1416_v2 = vpop.permute.xlu1 %1415  ;;  %v1418_v35 = vpop.permute.xlu0 %1417  ;;  %14202 = vst [vmem:[#allocation235_spill] sm:$0xff] %v11373_v62 }
 0x3c9   :  { %1434 = vst.msk [vmem:[#allocation5 + $0xa0] sm:$0x3f] %vm114_vm11, %v1416_v2  ;;  %v1423_v36 = vsel %vm426_vm13, %v1416_v2, %v1418_v35  ;;  %v11384_v2 = vpack.c.bf16 %v1808_v44, %v1806_v20  ;;  %v11404_v44 = vpack.c.bf16 %v5654_v4, %v5652_v54  ;;  %v1809_v54 = vld [vmem:[%s13638_s2 + $0x840] sm:$0xff]  ;;  %vm14210_vm11 = vcmask 1047815  }
 0x3ca   :  { %v3204_v5 = vld [vmem:[#allocation5 + $0x30] sm:$0xff]  ;;  %1435 = vst [vmem:[#allocation5 + $0xa8] sm:$0x3f] %v1423_v36  ;;  %v11386_v36 = vpack.c.bf16 %v5655_v38, %v5653_v18  ;;  %v3215_v18 = vld [vmem:[#allocation5 + $0x98] sm:$0x3f] }
 0x3cb   :  { %3256 = vrot.lane.b32.xlu1 %v3204_v5, %s8113_s13  ;;  %14203 = vst [vmem:[#allocation236_spill] sm:$0xff] %v11384_v2  ;;  %14206 = vst [vmem:[#allocation239_spill] sm:$0xff] %v11404_v44 }
 0x3cc   :  { %v1214_v59 = vpop.permute.xlu1 %1213  ;;  %14204 = vst [vmem:[#allocation237_spill] sm:$0xff] %v11386_v36 }
 0x3cd   :  { %v1216_v53 = vsel %vm426_vm13, %v1212_v43, %v1214_v59  ;;  %v11382_v9 = vld [vmem:[#allocation5 + $0x38] sm:$0xff]  ;;  %v1414_v14 = vpop.permute.xlu0 %1413 }
 0x3ce   :  { %1222 = vst [vmem:[#allocation5 + $0x40] sm:$0x7f] %v1216_v53  ;;  %2206 = vmatprep.mubr.f32.mxu0 %v11382_v9  ;;  %3029 = vmatprep.mubr.f32.mxu1 %v11382_v9  ;;  %v1422_v43 = vsel %vm426_vm13, %v1412_v0, %v1414_v14  ;;  %v11402_v53 = vpack.c.bf16 %v1807_v21, %v1805_v22  ;;  %v1812_v0 = vld [vmem:[%s13638_s2 + $0x858] sm:$0xff]  ;;  %v5657_v22 = vld [vmem:[%s13638_s2 + $0x1388] sm:$0xff]  ;;  %v5656_v14 = vld [vmem:[%s13638_s2 + $0x1380] sm:$0xff] }
 0x3cf   :  { %2207 = vmatmul.mubr.f32.vlgmr.msra.gmra.mrb[16].mxu0 %v3204_v5  ;;  %3030 = vmatmul.mubr.f32.vlgmr.msra.gmra.mrb[16].mxu1 %v3204_v5  ;;  %1433 = vst [vmem:[#allocation5 + $0x40] sm:$0x80] %v1422_v43  ;;  %v5659_v21 = vld [vmem:[%s13638_s2 + $0x1398] sm:$0xff]  ;;  %v5658_v43 = vld [vmem:[%s13638_s2 + $0x1390] sm:$0xff] }
 0x3d0   :  { %6566 = vmatpush1.bf16.msra.mxu0 %v11371_v39  ;;  %6926 = vmatpush1.bf16.msra.mxu1 %v11373_v62  ;;  %v1420_v20 = vpop.permute.xlu1 %1419  ;;  %14205 = vst [vmem:[#allocation238_spill] sm:$0xff] %v11402_v53  ;;  %v3216_v38 = vld [vmem:[#allocation5 + $0xa0] sm:$0x3f]  ;;  %v11451_v62 = vpack.c.bf16 %v5659_v21, %v5657_v22  ;;  %v5661_v39 = vld [vmem:[%s13638_s2 + $0x13a8] sm:$0xff] }
 0x3d1   :  { %v1424_v5 = vsel %vm426_vm13, %v1418_v35, %v1420_v20  ;;  %6568 = vmatprep.subr.bf16.mxu0 %v11384_v2  ;;  %6928 = vmatprep.subr.bf16.mxu1 %v11386_v36  ;;  %v8049_v59 = vpack.i.bf16 %v3216_v38, %v3215_v18  ;;  %v11421_v4 = vpop.permute.xlu0 %1272  ;;  %v1811_v35 = vld [vmem:[%s13638_s2 + $0x850] sm:$0xff]  ;;  %v1540_v20 = vld [vmem:[#allocation5 + $0xa8] sm:$0x3f]  ;;  %v1814_v18 = vld [vmem:[%s13638_s2 + $0x868] sm:$0xff] }
 0x3d2   :  { %1436 = vst [vmem:[#allocation5 + $0xb0] sm:$0x3f] %v1424_v5  ;;  %1283 = vst.msk [vmem:[#allocation5 + $0x58] sm:$0x7f] %vm14207_vm10, %v11421_v4  ;;  %v1816_v38 = vld [vmem:[%s13638_s2 + $0x878] sm:$0xff]  ;;  %2212 = vmatprep.mubr.f32.mxu0 %v1540_v20  ;;  %3035 = vmatprep.mubr.f32.mxu1 %v1540_v20  ;;  %v1815_v20 = vld [vmem:[%s13638_s2 + $0x870] sm:$0xff] }
 0x3d3   :  { %8050 = vrot.lane.b32.xlu0 %v8049_v59, %s8113_s13  ;;  %v11441_v5 = vld [vmem:[#allocation4 + $0x20] sm:$0x1]  ;;  %v11447_v2 = vld [vmem:[#allocation5 + $0x48] sm:$0xff]  ;;  %v11449_v59 = vpack.c.bf16 %v1812_v0, %v1810_v60  ;;  %14209 = vst [vmem:[#allocation241_spill] sm:$0xff] %v11451_v62  ;;  %v11463_v60 = vpack.c.bf16 %v5658_v43, %v5656_v14  ;;  %v1813_v0 = vld [vmem:[%s13638_s2 + $0x860] sm:$0xff]  ;;  %v11470_v26 = vpack.c.bf16 %v1816_v38, %v1814_v18 }
 0x3d4   :  { %6570 = vmatpush1.bf16.msra.mxu0 %v11402_v53  ;;  %6930 = vmatpush1.bf16.msra.mxu1 %v11404_v44  ;;  %v11445_v36 = vpop.permute.xlu1 %1492  ;;  %v1539_v53 = vld [vmem:[#allocation5 + $0xa0] sm:$0x3f]  ;;  %v11461_v44 = vpack.c.bf16 %v1811_v35, %v1809_v54  ;;  %v5660_v54 = vld [vmem:[%s13638_s2 + $0x13a0] sm:$0xff]  ;;  %v11487_v14 = vpack.c.bf16 %v5663_v55, %v5661_v39  ;;  %v1818_v43 = vld [vmem:[%s13638_s2 + $0x888] sm:$0xff]  ;;  %v1267_v46 = vrot.slane %v11441_v5, 2 }
 0x3d5   :  { %14208 = vst [vmem:[#allocation240_spill] sm:$0xff] %v11449_v59  ;;  %1514 = vst.msk [vmem:[#allocation5 + $0x58] sm:$0x80] %vm14210_vm11, %v11445_v36  ;;  %v1252_v22 = vld [vmem:[#allocation4 + $0x8] sm:$0xfc]  ;;  %2213 = vmatmul.mubr.f32.gmra.mrb[18].mxu0 %v1539_v53  ;;  %3036 = vmatmul.mubr.f32.gmra.mrb[18].mxu1 %v1539_v53  ;;  %v11468_v21 = vpop.permute.xlu0 %1498  ;;  %v1820_v18 = vld [vmem:[%s13638_s2 + $0x898] sm:$0xff] }
 0x3d6   :  { %14211 = vst [vmem:[#allocation242_spill] sm:$0xff] %v11461_v44  ;;  %14212 = vst [vmem:[#allocation243_spill] sm:$0xff] %v11463_v60  ;;  %v5662_v35 = vld [vmem:[%s13638_s2 + $0x13b0] sm:$0xff]  ;;  %2283 = vmatprep.mubr.f32.mxu0 %v11447_v2  ;;  %3106 = vmatprep.mubr.f32.mxu1 %v11447_v2  ;;  %v5665_v55 = vld [vmem:[%s13638_s2 + $0x13c8] sm:$0xff]  ;;  %v1266_v15 = vrot.slane %v1252_v22, 2  ;;  %v11517_v8 = vpack.c.bf16 %v1820_v18, %v1818_v43 }
 0x3d7   :  { %14213 = vst [vmem:[#allocation244_spill] sm:$0xff] %v11470_v26  ;;  %1517 = vst.msk [vmem:[#allocation5 + $0xc8] sm:$0x3f] %vm14214_vm7, %v11468_v21  ;;  %v11485_v53 = vld [vmem:[#allocation5 + $0x40] sm:$0xff]  ;;  %6572 = vmatprep.subr.bf16.mxu0 %v11449_v59  ;;  %6932 = vmatprep.subr.bf16.mxu1 %v11451_v62  ;;  %v5667_v39 = vld [vmem:[%s13638_s2 + $0x13d8] sm:$0xff]  ;;  %v11508_v59 = vpack.c.bf16 %v1815_v20, %v1813_v0  ;;  %v11510_v62 = vpack.c.bf16 %v5662_v35, %v5660_v54 }
 0x3d8   :  { %14215 = vst [vmem:[#allocation245_spill] sm:$0xff] %v11487_v14  ;;  %v8054_v38 = vpack.i.bf16 %v11485_v53, %v11382_v9  ;;  %6574 = vmatpush1.bf16.msra.mxu0 %v11461_v44  ;;  %6934 = vmatpush1.bf16.msra.mxu1 %v11463_v60  ;;  %v3217_v13 = vld [vmem:[#allocation5 + $0xa8] sm:$0x3f]  ;;  %v1817_v5 = vld [vmem:[%s13638_s2 + $0x880] sm:$0xff]  ;;  %14218 = vst [vmem:[#allocation248_spill] sm:$0xff] %v11517_v8  ;;  %v11529_v54 = vpack.c.bf16 %v5667_v39, %v5665_v55  ;;  %v1484_v60 = vrot.slane %v1472_v37, 4 }
 0x3d9   :  { %14216 = vst [vmem:[#allocation246_spill] sm:$0xff] %v11508_v59  ;;  %14217 = vst [vmem:[#allocation247_spill] sm:$0xff] %v11510_v62  ;;  %v3218_v9 = vld [vmem:[#allocation5 + $0xb0] sm:$0x3f]  ;;  %6576 = vmatprep.subr.bf16.mxu0 %v11470_v26  ;;  %v1819_v0 = vld [vmem:[%s13638_s2 + $0x890] sm:$0xff]  ;;  %6936 = vmatprep.subr.bf16.mxu1 %v11487_v14  ;;  %v1268_v39 = vsel %vm1235_vm5, %v1266_v15, %v1267_v46 }
 0x3da   :  { %8055 = vrot.lane.b32.xlu1 %v8054_v38, %s8113_s13  ;;  %v8059_v44 = vpack.i.bf16 %v3218_v9, %v3217_v13  ;;  %v5664_v22 = vld [vmem:[%s13638_s2 + $0x13c0] sm:$0xff]  ;;  %v5666_v20 = vld [vmem:[%s13638_s2 + $0x13d0] sm:$0xff]  ;;  %14219 = vst [vmem:[#allocation249_spill] sm:$0xff] %v11529_v54  ;;  %v1822_v13 = vld [vmem:[%s13638_s2 + $0x8a8] sm:$0xff]  ;;  %v11547_v9 = vpack.c.bf16 %v1819_v0, %v1817_v5  ;;  %v1488_v0 = vrot.slane %v1475_v42, 4 }
 0x3db   :  { %v1824_v35 = vld [vmem:[%s13638_s2 + $0x8b8] sm:$0xff]  ;;  %v5669_v43 = vld [vmem:[%s13638_s2 + $0x13e8] sm:$0xff]  ;;  %v1256_v55 = vld [vmem:[#allocation4 + $0x28] sm:$0x1]  ;;  %v11549_v14 = vpack.c.bf16 %v5666_v20, %v5664_v22 }
 0x3dc   :  { %8060 = vrot.lane.b32.xlu0 %v8059_v44, %s8113_s13  ;;  %v5671_v18 = vld [vmem:[%s13638_s2 + $0x13f8] sm:$0xff]  ;;  %6578 = vmatpush1.bf16.msra.mxu0 %v11508_v59  ;;  %v11551_v26 = vld [vmem:[#allocation5 + $0x50] sm:$0xff]  ;;  %v11558_v59 = vpack.c.bf16 %v1824_v35, %v1822_v13  ;;  %v1823_v15 = vld [vmem:[%s13638_s2 + $0x8b0] sm:$0xff]  ;;  %v1270_v20 = vrot.slane %v1256_v55, 2 }
 0x3dd   :  { %v1253_v38 = vld [vmem:[#allocation4 + $0x10] sm:$0xfc]  ;;  %6938 = vmatpush1.bf16.msra.mxu1 %v11510_v62  ;;  %14220 = vst [vmem:[#allocation250_spill] sm:$0xff] %v11549_v14  ;;  %v1821_v44 = vld [vmem:[%s13638_s2 + $0x8a0] sm:$0xff]  ;;  %6580 = vmatprep.subr.bf16.mxu0 %v11517_v8  ;;  %v5670_v5 = vld [vmem:[%s13638_s2 + $0x13f0] sm:$0xff]  ;;  %v11570_v22 = vpack.c.bf16 %v5671_v18, %v5669_v43  ;;  %v8064_v42 = vpack.i.bf16 %v11551_v26, %v11447_v2 }
 0x3de   :  { %1274 = vrot.lane.b32.xlu1 %v1268_v39, %s8111_s28  ;;  %v5668_v46 = vld [vmem:[%s13638_s2 + $0x13e0] sm:$0xff]  ;;  %6940 = vmatprep.subr.bf16.mxu1 %v11529_v54  ;;  %v1269_v37 = vrot.slane %v1253_v38, 2  ;;  %v1826_v13 = vld [vmem:[%s13638_s2 + $0x8c8] sm:$0xff]  ;;  %v1828_v35 = vld [vmem:[%s13638_s2 + $0x8d8] sm:$0xff]  ;;  %v11589_v55 = vpack.c.bf16 %v1823_v15, %v1821_v44  ;;  %v1489_v2 = vsel %vm1449_vm6, %v1484_v60, %v1488_v0 }
 0x3df   :  { %v5673_v39 = vld [vmem:[%s13638_s2 + $0x1408] sm:$0xff]  ;;  %v5675_v43 = vld [vmem:[%s13638_s2 + $0x1418] sm:$0xff]  ;;  %v1473_v18 = vld [vmem:[#allocation4 + $0x28] sm:$0xf8]  ;;  %v11591_v54 = vpack.c.bf16 %v5670_v5, %v5668_v46  ;;  %v11599_v62 = vpack.c.bf16 %v1828_v35, %v1826_v13 }
 0x3e0   :  { %1494 = vrot.lane.b32.xlu0 %v1484_v60, %s8111_s28  ;;  %v1476_v38 = vld [vmem:[#allocation4 + $0x40] sm:$0x3]  ;;  %6582 = vmatpush1.bf16.msra.mxu0 %v11547_v9  ;;  %v1825_v8 = vld [vmem:[%s13638_s2 + $0x8c0] sm:$0xff]  ;;  %v5674_v15 = vld [vmem:[%s13638_s2 + $0x1410] sm:$0xff]  ;;  %v1271_v46 = vsel %vm1235_vm5, %v1269_v37, %v1270_v20  ;;  %v11612_v5 = vpack.c.bf16 %v5675_v43, %v5673_v39  ;;  %v1485_v60 = vrot.slane %v1473_v18, 4  ;;  %vm14293_vm5 = vcmask 522240  }
 0x3e1   :  { %6942 = vmatpush1.bf16.msra.mxu1 %v11549_v14  ;;  %14221 = vst [vmem:[#allocation251_spill] sm:$0xff] %v11591_v54  ;;  %6584 = vmatprep.subr.bf16.mxu0 %v11558_v59  ;;  %14222 = vst [vmem:[#allocation252_spill] sm:$0xff] %v11599_v62  ;;  %v1827_v14 = vld [vmem:[%s13638_s2 + $0x8d0] sm:$0xff]  ;;  %v5672_v44 = vld [vmem:[%s13638_s2 + $0x1400] sm:$0xff]  ;;  %v1490_v0 = vrot.slane %v1476_v38, 4 }
 0x3e2   :  { %8065 = vrot.lane.b32.xlu1 %v8064_v42, %s8113_s13  ;;  %6944 = vmatprep.subr.bf16.mxu1 %v11570_v22  ;;  %14223 = vst [vmem:[#allocation253_spill] sm:$0xff] %v11612_v5  ;;  %v1830_v13 = vld [vmem:[%s13638_s2 + $0x8e8] sm:$0xff]  ;;  %v1832_v35 = vld [vmem:[%s13638_s2 + $0x8f8] sm:$0xff]  ;;  %v11629_v20 = vpack.c.bf16 %v1827_v14, %v1825_v8  ;;  %v11631_v39 = vpack.c.bf16 %v5674_v15, %v5672_v44  ;;  %v1829_v43 = vld [vmem:[%s13638_s2 + $0x8e0] sm:$0xff] }
 0x3e3   :  { %v5677_v42 = vld [vmem:[%s13638_s2 + $0x1428] sm:$0xff]  ;;  %v5679_v37 = vld [vmem:[%s13638_s2 + $0x1438] sm:$0xff]  ;;  %v1831_v18 = vld [vmem:[%s13638_s2 + $0x8f0] sm:$0xff]  ;;  %v1491_v15 = vsel %vm1449_vm6, %v1485_v60, %v1490_v0 }
 0x3e4   :  { %1500 = vrot.lane.b32.xlu0 %v1489_v2, %s8111_s28  ;;  %6586 = vmatpush1.bf16.msra.mxu0 %v11589_v55  ;;  %14224 = vst [vmem:[#allocation254_spill] sm:$0xff] %v11629_v20  ;;  %v3220_v38 = vld [vmem:[#allocation5 + $0xc0] sm:$0x3f]  ;;  %v11641_v2 = vpack.c.bf16 %v1832_v35, %v1830_v13  ;;  %v5676_v8 = vld [vmem:[%s13638_s2 + $0x1420] sm:$0xff]  ;;  %v1834_v44 = vld [vmem:[%s13638_s2 + $0x908] sm:$0xff]  ;;  %v11668_v0 = vpack.c.bf16 %v1831_v18, %v1829_v43 }
 0x3e5   :  { %6946 = vmatpush1.bf16.msra.mxu1 %v11591_v54  ;;  %6588 = vmatprep.subr.bf16.mxu0 %v11599_v62  ;;  %v5678_v14 = vld [vmem:[%s13638_s2 + $0x1430] sm:$0xff]  ;;  %v1836_v13 = vld [vmem:[%s13638_s2 + $0x918] sm:$0xff]  ;;  %v5681_v35 = vld [vmem:[%s13638_s2 + $0x1448] sm:$0xff] }
 0x3e6   :  { %1276 = vrot.lane.b32.xlu1 %v1271_v46, %s8111_s28  ;;  %6948 = vmatprep.subr.bf16.mxu1 %v11612_v5  ;;  %v11654_v46 = vpack.c.bf16 %v5679_v37, %v5677_v42  ;;  %v5683_v62 = vld [vmem:[%s13638_s2 + $0x1458] sm:$0xff]  ;;  %14225 = vst [vmem:[#allocation255_spill] sm:$0xff] %v11668_v0  ;;  %v11670_v42 = vpack.c.bf16 %v5678_v14, %v5676_v8  ;;  %v3219_v37 = vld [vmem:[#allocation5 + $0xb8] sm:$0x3f]  ;;  %v1833_v5 = vld [vmem:[%s13638_s2 + $0x900] sm:$0xff] }
 0x3e7   :  { %v1835_v54 = vld [vmem:[%s13638_s2 + $0x910] sm:$0xff]  ;;  %v11682_v43 = vpack.c.bf16 %v5683_v62, %v5681_v35  ;;  %v5680_v18 = vld [vmem:[%s13638_s2 + $0x1440] sm:$0xff]  ;;  %v1838_v14 = vld [vmem:[%s13638_s2 + $0x928] sm:$0xff] }
 0x3e8   :  { %1496 = vrot.lane.b32.xlu0 %v1485_v60, %s8111_s28  ;;  %6590 = vmatpush1.bf16.msra.mxu0 %v11629_v20  ;;  %14226 = vst [vmem:[#allocation256_spill] sm:$0xff] %v11670_v42  ;;  %v8069_v60 = vpack.i.bf16 %v3220_v38, %v3219_v37  ;;  %v11680_v20 = vpack.c.bf16 %v1836_v13, %v1834_v44  ;;  %v5682_v8 = vld [vmem:[%s13638_s2 + $0x1450] sm:$0xff]  ;;  %v1840_v38 = vld [vmem:[%s13638_s2 + $0x938] sm:$0xff]  ;;  %v5685_v62 = vld [vmem:[%s13638_s2 + $0x1468] sm:$0xff] }
 0x3e9   :  { %6950 = vmatpush1.bf16.msra.mxu1 %v11631_v39  ;;  %6592 = vmatprep.subr.bf16.mxu0 %v11641_v2  ;;  %14228 = vst [vmem:[#allocation258_spill] sm:$0xff] %v11682_v43  ;;  %v5687_v44 = vld [vmem:[%s13638_s2 + $0x1478] sm:$0xff]  ;;  %v11708_v13 = vpack.c.bf16 %v5682_v8, %v5680_v18  ;;  %v1837_v35 = vld [vmem:[%s13638_s2 + $0x920] sm:$0xff]  ;;  %v1839_v37 = vld [vmem:[%s13638_s2 + $0x930] sm:$0xff] }
 0x3ea   :  { %1502 = vrot.lane.b32.xlu1 %v1491_v15, %s8111_s28  ;;  %14227 = vst [vmem:[#allocation257_spill] sm:$0xff] %v11680_v20  ;;  %6952 = vmatprep.subr.bf16.mxu1 %v11654_v46  ;;  %v11706_v15 = vpack.c.bf16 %v1835_v54, %v1833_v5  ;;  %v5684_v54 = vld [vmem:[%s13638_s2 + $0x1460] sm:$0xff]  ;;  %v5686_v5 = vld [vmem:[%s13638_s2 + $0x1470] sm:$0xff]  ;;  %v1842_v18 = vld [vmem:[%s13638_s2 + $0x948] sm:$0xff] }
 0x3eb   :  { %14230 = vst [vmem:[#allocation260_spill] sm:$0xff] %v11708_v13  ;;  %v1844_v8 = vld [vmem:[%s13638_s2 + $0x958] sm:$0xff] }
 0x3ec   :  { %8070 = vrot.lane.b32.xlu0 %v8069_v60, %s8113_s13  ;;  %6594 = vmatpush1.bf16.msra.mxu0 %v11668_v0  ;;  %14229 = vst [vmem:[#allocation259_spill] sm:$0xff] %v11706_v15  ;;  %v11718_v60 = vpack.c.bf16 %v1840_v38, %v1838_v14  ;;  %v11720_v0 = vpack.c.bf16 %v5687_v44, %v5685_v62  ;;  %v5689_v14 = vld [vmem:[%s13638_s2 + $0x1488] sm:$0xff]  ;;  %v5691_v38 = vld [vmem:[%s13638_s2 + $0x1498] sm:$0xff] }
 0x3ed   :  { %6954 = vmatpush1.bf16.msra.mxu1 %v11670_v42  ;;  %6596 = vmatprep.subr.bf16.mxu0 %v11680_v20  ;;  %v11742_v62 = vpack.c.bf16 %v1839_v37, %v1837_v35  ;;  %v11744_v44 = vpack.c.bf16 %v5686_v5, %v5684_v54  ;;  %v1843_v20 = vld [vmem:[%s13638_s2 + $0x950] sm:$0xff]  ;;  %v11754_v42 = vpack.c.bf16 %v1844_v8, %v1842_v18  ;;  %v5688_v35 = vld [vmem:[%s13638_s2 + $0x1480] sm:$0xff]  ;;  %v1846_v54 = vld [vmem:[%s13638_s2 + $0x968] sm:$0xff] }
 0x3ee   :  { %6956 = vmatprep.subr.bf16.mxu1 %v11682_v43  ;;  %14231 = vst [vmem:[#allocation261_spill] sm:$0xff] %v11718_v60  ;;  %14232 = vst [vmem:[#allocation262_spill] sm:$0xff] %v11720_v0  ;;  %v1841_v43 = vld [vmem:[%s13638_s2 + $0x940] sm:$0xff]  ;;  %v5690_v37 = vld [vmem:[%s13638_s2 + $0x1490] sm:$0xff] }
 0x3ef   :  { %14233 = vst [vmem:[#allocation263_spill] sm:$0xff] %v11742_v62  ;;  %14234 = vst [vmem:[#allocation264_spill] sm:$0xff] %v11744_v44  ;;  %v1848_v5 = vld [vmem:[%s13638_s2 + $0x978] sm:$0xff]  ;;  %v5693_v18 = vld [vmem:[%s13638_s2 + $0x14a8] sm:$0xff] }
 0x3f0   :  { %6598 = vmatpush1.bf16.msra.mxu0 %v11706_v15  ;;  %14235 = vst [vmem:[#allocation265_spill] sm:$0xff] %v11754_v42  ;;  %v11756_v15 = vpack.c.bf16 %v5691_v38, %v5689_v14  ;;  %v5695_v8 = vld [vmem:[%s13638_s2 + $0x14b8] sm:$0xff]  ;;  %v11778_v14 = vpack.c.bf16 %v1843_v20, %v1841_v43  ;;  %v11780_v38 = vpack.c.bf16 %v5690_v37, %v5688_v35  ;;  %v5692_v20 = vld [vmem:[%s13638_s2 + $0x14a0] sm:$0xff]  ;;  %v5694_v43 = vld [vmem:[%s13638_s2 + $0x14b0] sm:$0xff] }
 0x3f1   :  { %6958 = vmatpush1.bf16.msra.mxu1 %v11708_v13  ;;  %6600 = vmatprep.subr.bf16.mxu0 %v11718_v60  ;;  %v1847_v60 = vld [vmem:[%s13638_s2 + $0x970] sm:$0xff]  ;;  %v11790_v13 = vpack.c.bf16 %v1848_v5, %v1846_v54  ;;  %v1850_v35 = vld [vmem:[%s13638_s2 + $0x988] sm:$0xff]  ;;  %v1852_v37 = vld [vmem:[%s13638_s2 + $0x998] sm:$0xff] }
 0x3f2   :  { %6960 = vmatprep.subr.bf16.mxu1 %v11720_v0  ;;  %14236 = vst [vmem:[#allocation266_spill] sm:$0xff] %v11756_v15  ;;  %14237 = vst [vmem:[#allocation267_spill] sm:$0xff] %v11778_v14  ;;  %v1845_v0 = vld [vmem:[%s13638_s2 + $0x960] sm:$0xff]  ;;  %v5697_v54 = vld [vmem:[%s13638_s2 + $0x14c8] sm:$0xff] }
 0x3f3   :  { %14238 = vst [vmem:[#allocation268_spill] sm:$0xff] %v11780_v38  ;;  %14239 = vst [vmem:[#allocation269_spill] sm:$0xff] %v11790_v13  ;;  %v5699_v5 = vld [vmem:[%s13638_s2 + $0x14d8] sm:$0xff] }
 0x3f4   :  { %6602 = vmatpush1.bf16.msra.mxu0 %v11742_v62  ;;  %v11792_v62 = vpack.c.bf16 %v5695_v8, %v5693_v18  ;;  %v11814_v18 = vpack.c.bf16 %v1847_v60, %v1845_v0  ;;  %v11816_v8 = vpack.c.bf16 %v5694_v43, %v5692_v20  ;;  %v5696_v0 = vld [vmem:[%s13638_s2 + $0x14c0] sm:$0xff]  ;;  %v5698_v60 = vld [vmem:[%s13638_s2 + $0x14d0] sm:$0xff]  ;;  %v1854_v20 = vld [vmem:[%s13638_s2 + $0x9a8] sm:$0xff] }
 0x3f5   :  { %6962 = vmatpush1.bf16.msra.mxu1 %v11744_v44  ;;  %6604 = vmatprep.subr.bf16.mxu0 %v11754_v42  ;;  %v1851_v42 = vld [vmem:[%s13638_s2 + $0x990] sm:$0xff]  ;;  %v11826_v44 = vpack.c.bf16 %v1852_v37, %v1850_v35  ;;  %v1856_v43 = vld [vmem:[%s13638_s2 + $0x9b8] sm:$0xff]  ;;  %v5701_v35 = vld [vmem:[%s13638_s2 + $0x14e8] sm:$0xff] }
 0x3f6   :  { %6964 = vmatprep.subr.bf16.mxu1 %v11756_v15  ;;  %14240 = vst [vmem:[#allocation270_spill] sm:$0xff] %v11792_v62  ;;  %14241 = vst [vmem:[#allocation271_spill] sm:$0xff] %v11814_v18  ;;  %v1849_v15 = vld [vmem:[%s13638_s2 + $0x980] sm:$0xff]  ;;  %v5703_v37 = vld [vmem:[%s13638_s2 + $0x14f8] sm:$0xff] }
 0x3f7   :  { %14242 = vst [vmem:[#allocation272_spill] sm:$0xff] %v11816_v8  ;;  %14243 = vst [vmem:[#allocation273_spill] sm:$0xff] %v11826_v44 }
 0x3f8   :  { %6606 = vmatpush1.bf16.msra.mxu0 %v11778_v14  ;;  %v11828_v14 = vpack.c.bf16 %v5699_v5, %v5697_v54  ;;  %v11850_v54 = vpack.c.bf16 %v1851_v42, %v1849_v15  ;;  %v11852_v5 = vpack.c.bf16 %v5698_v60, %v5696_v0  ;;  %v5700_v42 = vld [vmem:[%s13638_s2 + $0x14e0] sm:$0xff]  ;;  %v5702_v15 = vld [vmem:[%s13638_s2 + $0x14f0] sm:$0xff]  ;;  %v1858_v0 = vld [vmem:[%s13638_s2 + $0x9c8] sm:$0xff] }
 0x3f9   :  { %6966 = vmatpush1.bf16.msra.mxu1 %v11780_v38  ;;  %6608 = vmatprep.subr.bf16.mxu0 %v11790_v13  ;;  %v1855_v13 = vld [vmem:[%s13638_s2 + $0x9b0] sm:$0xff]  ;;  %v11862_v38 = vpack.c.bf16 %v1856_v43, %v1854_v20  ;;  %v1860_v60 = vld [vmem:[%s13638_s2 + $0x9d8] sm:$0xff]  ;;  %v5705_v20 = vld [vmem:[%s13638_s2 + $0x1508] sm:$0xff] }
 0x3fa   :  { %6968 = vmatprep.subr.bf16.mxu1 %v11792_v62  ;;  %14244 = vst [vmem:[#allocation274_spill] sm:$0xff] %v11828_v14  ;;  %14245 = vst [vmem:[#allocation275_spill] sm:$0xff] %v11850_v54  ;;  %v1853_v62 = vld [vmem:[%s13638_s2 + $0x9a0] sm:$0xff]  ;;  %v5707_v43 = vld [vmem:[%s13638_s2 + $0x1518] sm:$0xff] }
 0x3fb   :  { %14246 = vst [vmem:[#allocation276_spill] sm:$0xff] %v11852_v5  ;;  %14247 = vst [vmem:[#allocation277_spill] sm:$0xff] %v11862_v38 }
 0x3fc   :  { %6610 = vmatpush1.bf16.msra.mxu0 %v11814_v18  ;;  %v11864_v18 = vpack.c.bf16 %v5703_v37, %v5701_v35  ;;  %v11886_v35 = vpack.c.bf16 %v1855_v13, %v1853_v62  ;;  %v11888_v37 = vpack.c.bf16 %v5702_v15, %v5700_v42  ;;  %v5704_v13 = vld [vmem:[%s13638_s2 + $0x1500] sm:$0xff]  ;;  %v5706_v62 = vld [vmem:[%s13638_s2 + $0x1510] sm:$0xff]  ;;  %v1862_v42 = vld [vmem:[%s13638_s2 + $0x9e8] sm:$0xff] }
 0x3fd   :  { %6970 = vmatpush1.bf16.msra.mxu1 %v11816_v8  ;;  %6612 = vmatprep.subr.bf16.mxu0 %v11826_v44  ;;  %v1859_v44 = vld [vmem:[%s13638_s2 + $0x9d0] sm:$0xff]  ;;  %v11898_v8 = vpack.c.bf16 %v1860_v60, %v1858_v0  ;;  %v1864_v15 = vld [vmem:[%s13638_s2 + $0x9f8] sm:$0xff]  ;;  %v5709_v0 = vld [vmem:[%s13638_s2 + $0x1528] sm:$0xff] }
 0x3fe   :  { %6972 = vmatprep.subr.bf16.mxu1 %v11828_v14  ;;  %14248 = vst [vmem:[#allocation278_spill] sm:$0xff] %v11864_v18  ;;  %14249 = vst [vmem:[#allocation279_spill] sm:$0xff] %v11886_v35  ;;  %v1857_v14 = vld [vmem:[%s13638_s2 + $0x9c0] sm:$0xff]  ;;  %v5711_v60 = vld [vmem:[%s13638_s2 + $0x1538] sm:$0xff] }
 0x3ff   :  { %14250 = vst [vmem:[#allocation280_spill] sm:$0xff] %v11888_v37  ;;  %14251 = vst [vmem:[#allocation281_spill] sm:$0xff] %v11898_v8 }
 0x400   :  { %6614 = vmatpush1.bf16.msra.mxu0 %v11850_v54  ;;  %v11900_v54 = vpack.c.bf16 %v5707_v43, %v5705_v20  ;;  %v11922_v20 = vpack.c.bf16 %v1859_v44, %v1857_v14  ;;  %v11924_v43 = vpack.c.bf16 %v5706_v62, %v5704_v13  ;;  %v5708_v44 = vld [vmem:[%s13638_s2 + $0x1520] sm:$0xff]  ;;  %v5710_v14 = vld [vmem:[%s13638_s2 + $0x1530] sm:$0xff]  ;;  %v1866_v13 = vld [vmem:[%s13638_s2 + $0xa08] sm:$0xff] }
 0x401   :  { %6974 = vmatpush1.bf16.msra.mxu1 %v11852_v5  ;;  %6616 = vmatprep.subr.bf16.mxu0 %v11862_v38  ;;  %v1863_v38 = vld [vmem:[%s13638_s2 + $0x9f0] sm:$0xff]  ;;  %v11934_v5 = vpack.c.bf16 %v1864_v15, %v1862_v42  ;;  %v1868_v62 = vld [vmem:[%s13638_s2 + $0xa18] sm:$0xff]  ;;  %v5713_v42 = vld [vmem:[%s13638_s2 + $0x1548] sm:$0xff] }
 0x402   :  { %6976 = vmatprep.subr.bf16.mxu1 %v11864_v18  ;;  %14252 = vst [vmem:[#allocation282_spill] sm:$0xff] %v11900_v54  ;;  %14253 = vst [vmem:[#allocation283_spill] sm:$0xff] %v11922_v20  ;;  %v1861_v18 = vld [vmem:[%s13638_s2 + $0x9e0] sm:$0xff]  ;;  %v5715_v15 = vld [vmem:[%s13638_s2 + $0x1558] sm:$0xff] }
 0x403   :  { %14254 = vst [vmem:[#allocation284_spill] sm:$0xff] %v11924_v43  ;;  %14255 = vst [vmem:[#allocation285_spill] sm:$0xff] %v11934_v5 }
 0x404   :  { %6618 = vmatpush1.bf16.msra.mxu0 %v11886_v35  ;;  %v11936_v35 = vpack.c.bf16 %v5711_v60, %v5709_v0  ;;  %v11958_v0 = vpack.c.bf16 %v1863_v38, %v1861_v18  ;;  %v11960_v60 = vpack.c.bf16 %v5710_v14, %v5708_v44  ;;  %v5712_v38 = vld [vmem:[%s13638_s2 + $0x1540] sm:$0xff]  ;;  %v5714_v18 = vld [vmem:[%s13638_s2 + $0x1550] sm:$0xff]  ;;  %v1870_v44 = vld [vmem:[%s13638_s2 + $0xa28] sm:$0xff] }
 0x405   :  { %6978 = vmatpush1.bf16.msra.mxu1 %v11888_v37  ;;  %6620 = vmatprep.subr.bf16.mxu0 %v11898_v8  ;;  %v11966_v8 = vpack.c.bf16 %v5715_v15, %v5713_v42  ;;  %v1865_v37 = vld [vmem:[%s13638_s2 + $0xa00] sm:$0xff]  ;;  %v1872_v14 = vld [vmem:[%s13638_s2 + $0xa38] sm:$0xff]  ;;  %v1542_v15 = vld [vmem:[#allocation5 + $0xb8] sm:$0x3f] }
 0x406   :  { %6980 = vmatprep.subr.bf16.mxu1 %v11900_v54  ;;  %14256 = vst [vmem:[#allocation286_spill] sm:$0xff] %v11936_v35  ;;  %14257 = vst [vmem:[#allocation287_spill] sm:$0xff] %v11958_v0  ;;  %v11964_v54 = vpack.c.bf16 %v1868_v62, %v1866_v13  ;;  %v5717_v13 = vld [vmem:[%s13638_s2 + $0x1568] sm:$0xff]  ;;  %v5719_v62 = vld [vmem:[%s13638_s2 + $0x1578] sm:$0xff] }
 0x407   :  { %14258 = vst [vmem:[#allocation288_spill] sm:$0xff] %v11960_v60  ;;  %14260 = vst [vmem:[#allocation290_spill] sm:$0xff] %v11966_v8 }
 0x408   :  { %6622 = vmatpush1.bf16.msra.mxu0 %v11922_v20  ;;  %14259 = vst [vmem:[#allocation289_spill] sm:$0xff] %v11964_v54  ;;  %v1871_v20 = vld [vmem:[%s13638_s2 + $0xa30] sm:$0xff] }
 0x409   :  { %6982 = vmatpush1.bf16.msra.mxu1 %v11924_v43  ;;  %6624 = vmatprep.subr.bf16.mxu0 %v11934_v5  ;;  %v1867_v43 = vld [vmem:[%s13638_s2 + $0xa10] sm:$0xff]  ;;  %v1869_v5 = vld [vmem:[%s13638_s2 + $0xa20] sm:$0xff] }
 0x40a   :  { %6984 = vmatprep.subr.bf16.mxu1 %v11936_v35  ;;  %v11994_v42 = vpack.c.bf16 %v1867_v43, %v1865_v37  ;;  %v11998_v35 = vpack.c.bf16 %v5714_v18, %v5712_v38  ;;  %v5716_v37 = vld [vmem:[%s13638_s2 + $0x1560] sm:$0xff]  ;;  %v5718_v43 = vld [vmem:[%s13638_s2 + $0x1570] sm:$0xff]  ;;  %v1874_v38 = vld [vmem:[%s13638_s2 + $0xa48] sm:$0xff] }
 0x40b   :  { %v1876_v18 = vld [vmem:[%s13638_s2 + $0xa58] sm:$0xff] }
 0x40c   :  { %6626 = vmatpush1.bf16.msra.mxu0 %v11958_v0  ;;  %14261 = vst [vmem:[#allocation291_spill] sm:$0xff] %v11994_v42  ;;  %14262 = vst [vmem:[#allocation292_spill] sm:$0xff] %v11998_v35  ;;  %v12006_v0 = vpack.c.bf16 %v1872_v14, %v1870_v44  ;;  %v5721_v44 = vld [vmem:[%s13638_s2 + $0x1588] sm:$0xff]  ;;  %v5723_v14 = vld [vmem:[%s13638_s2 + $0x1598] sm:$0xff] }
 0x40d   :  { %6986 = vmatpush1.bf16.msra.mxu1 %v11960_v60  ;;  %6628 = vmatprep.subr.bf16.mxu0 %v11964_v54  ;;  %v12008_v60 = vpack.c.bf16 %v5719_v62, %v5717_v13  ;;  %v12031_v13 = vpack.c.bf16 %v1871_v20, %v1869_v5  ;;  %v12037_v62 = vpack.c.bf16 %v5718_v43, %v5716_v37  ;;  %v5720_v54 = vld [vmem:[%s13638_s2 + $0x1580] sm:$0xff]  ;;  %v5722_v5 = vld [vmem:[%s13638_s2 + $0x1590] sm:$0xff]  ;;  %v1878_v43 = vld [vmem:[%s13638_s2 + $0xa68] sm:$0xff] }
 0x40e   :  { %6988 = vmatprep.subr.bf16.mxu1 %v11966_v8  ;;  %14263 = vst [vmem:[#allocation293_spill] sm:$0xff] %v12006_v0  ;;  %v1875_v8 = vld [vmem:[%s13638_s2 + $0xa50] sm:$0xff]  ;;  %v1541_v20 = vld [vmem:[#allocation5 + $0xb0] sm:$0x3f]  ;;  %v12052_v37 = vpack.c.bf16 %v5723_v14, %v5721_v44  ;;  %v12076_v44 = vpack.c.bf16 %v5722_v5, %v5720_v54  ;;  %v1884_v5 = vld [vmem:[%s13638_s2 + $0xa98] sm:$0xff] }
 0x40f   :  { %14264 = vst [vmem:[#allocation294_spill] sm:$0xff] %v12008_v60  ;;  %2284 = vmatmul.mubr.f32.vlgmr.msra.gmra.mrb[16].mxu0 %v11485_v53  ;;  %14265 = vst [vmem:[#allocation295_spill] sm:$0xff] %v12031_v13 }
 0x410   :  { %3107 = vmatmul.mubr.f32.vlgmr.msra.gmra.mrb[16].mxu1 %v11485_v53  ;;  %2289 = vmatprep.mubr.f32.mxu0 %v1542_v15  ;;  %v1873_v53 = vld [vmem:[%s13638_s2 + $0xa40] sm:$0xff]  ;;  %14266 = vst [vmem:[#allocation296_spill] sm:$0xff] %v12037_v62  ;;  %14268 = vst [vmem:[#allocation298_spill] sm:$0xff] %v12052_v37 }
 0x411   :  { %6630 = vmatpush1.bf16.msra.mxu0 %v11994_v42  ;;  %3112 = vmatprep.mubr.f32.mxu1 %v1542_v15  ;;  %v12050_v15 = vpack.c.bf16 %v1876_v18, %v1874_v38  ;;  %v12060_v42 = vld [vmem:[#allocation5 + $0x58] sm:$0xff]  ;;  %v5727_v38 = vld [vmem:[%s13638_s2 + $0x15b8] sm:$0xff]  ;;  %v12071_v18 = vpack.c.bf16 %v1875_v8, %v1873_v53  ;;  %14270 = vst [vmem:[#allocation300_spill] sm:$0xff] %v12076_v44  ;;  %v5724_v8 = vld [vmem:[%s13638_s2 + $0x15a0] sm:$0xff] }
 0x412   :  { %6990 = vmatpush1.bf16.msra.mxu1 %v11998_v35  ;;  %6632 = vmatprep.subr.bf16.mxu0 %v12006_v0  ;;  %v1880_v35 = vld [vmem:[%s13638_s2 + $0xa78] sm:$0xff]  ;;  %v1882_v53 = vld [vmem:[%s13638_s2 + $0xa88] sm:$0xff]  ;;  %v1883_v0 = vld [vmem:[%s13638_s2 + $0xa90] sm:$0xff] }
 0x413   :  { %6992 = vmatprep.subr.bf16.mxu1 %v12008_v60  ;;  %14267 = vst [vmem:[#allocation297_spill] sm:$0xff] %v12050_v15  ;;  %2290 = vmatmul.mubr.f32.gmra.mrb[18].mxu0 %v1541_v20  ;;  %v5725_v60 = vld [vmem:[%s13638_s2 + $0x15a8] sm:$0xff]  ;;  %14269 = vst [vmem:[#allocation299_spill] sm:$0xff] %v12071_v18  ;;  %v12078_v14 = vpack.c.bf16 %v1880_v35, %v1878_v43  ;;  %v5726_v35 = vld [vmem:[%s13638_s2 + $0x15b0] sm:$0xff] }
 0x414   :  { %3113 = vmatmul.mubr.f32.gmra.mrb[18].mxu1 %v1541_v20  ;;  %5390 = vmatprep.mubr.msk.f32.mxu0 %vm148_vm12, %v12060_v42  ;;  %v1877_v20 = vld [vmem:[%s13638_s2 + $0xa60] sm:$0xff]  ;;  %v12091_v54 = vpack.c.bf16 %v5727_v38, %v5725_v60  ;;  %v5729_v43 = vld [vmem:[%s13638_s2 + $0x15c8] sm:$0xff]  ;;  %v5731_v60 = vld [vmem:[%s13638_s2 + $0x15d8] sm:$0xff] }
 0x415   :  { %6634 = vmatpush1.bf16.msra.mxu0 %v12031_v13  ;;  %5752 = vmatprep.mubr.msk.f32.mxu1 %vm148_vm12, %v12060_v42  ;;  %14271 = vst [vmem:[#allocation301_spill] sm:$0xff] %v12078_v14  ;;  %v1879_v13 = vld [vmem:[%s13638_s2 + $0xa70] sm:$0xff] }
 0x416   :  { %6994 = vmatpush1.bf16.msra.mxu1 %v12037_v62  ;;  %6636 = vmatprep.subr.bf16.mxu0 %v12050_v15  ;;  %14272 = vst [vmem:[#allocation302_spill] sm:$0xff] %v12091_v54  ;;  %v12109_v38 = vpack.c.bf16 %v1879_v13, %v1877_v20  ;;  %v12115_v15 = vpack.c.bf16 %v1884_v5, %v1882_v53  ;;  %v1881_v62 = vld [vmem:[%s13638_s2 + $0xa80] sm:$0xff]  ;;  %v1888_v53 = vld [vmem:[%s13638_s2 + $0xab8] sm:$0xff]  ;;  %v5733_v5 = vld [vmem:[%s13638_s2 + $0x15e8] sm:$0xff] }
 0x417   :  { %6996 = vmatprep.subr.bf16.mxu1 %v12052_v37  ;;  %v12113_v37 = vpack.c.bf16 %v5726_v35, %v5724_v8  ;;  %v5728_v13 = vld [vmem:[%s13638_s2 + $0x15c0] sm:$0xff]  ;;  %v12127_v20 = vpack.c.bf16 %v5731_v60, %v5729_v43  ;;  %v5730_v8 = vld [vmem:[%s13638_s2 + $0x15d0] sm:$0xff]  ;;  %v1886_v35 = vld [vmem:[%s13638_s2 + $0xaa8] sm:$0xff]  ;;  %v12145_v60 = vpack.c.bf16 %v1883_v0, %v1881_v62 }
 0x418   :  { %14273 = vst [vmem:[#allocation303_spill] sm:$0xff] %v12109_v38  ;;  %14275 = vst [vmem:[#allocation305_spill] sm:$0xff] %v12115_v15  ;;  %v5735_v43 = vld [vmem:[%s13638_s2 + $0x15f8] sm:$0xff]  ;;  %v5732_v0 = vld [vmem:[%s13638_s2 + $0x15e0] sm:$0xff] }
 0x419   :  { %6638 = vmatpush1.bf16.msra.mxu0 %v12071_v18  ;;  %14274 = vst [vmem:[#allocation304_spill] sm:$0xff] %v12113_v37  ;;  %14276 = vst [vmem:[#allocation306_spill] sm:$0xff] %v12127_v20  ;;  %v1887_v18 = vld [vmem:[%s13638_s2 + $0xab0] sm:$0xff]  ;;  %v12163_v62 = vpack.c.bf16 %v5735_v43, %v5733_v5  ;;  %v5739_v5 = vld [vmem:[%s13638_s2 + $0x1618] sm:$0xff] }
 0x41a   :  { %6998 = vmatpush1.bf16.msra.mxu1 %v12076_v44  ;;  %6640 = vmatprep.subr.bf16.mxu0 %v12078_v14  ;;  %14277 = vst [vmem:[#allocation307_spill] sm:$0xff] %v12145_v60  ;;  %v12151_v14 = vpack.c.bf16 %v1888_v53, %v1886_v35  ;;  %v1885_v44 = vld [vmem:[%s13638_s2 + $0xaa0] sm:$0xff]  ;;  %v1892_v35 = vld [vmem:[%s13638_s2 + $0xad8] sm:$0xff]  ;;  %v5737_v53 = vld [vmem:[%s13638_s2 + $0x1608] sm:$0xff] }
 0x41b   :  { %7000 = vmatprep.subr.bf16.mxu1 %v12091_v54  ;;  %v12149_v54 = vpack.c.bf16 %v5730_v8, %v5728_v13  ;;  %14280 = vst [vmem:[#allocation310_spill] sm:$0xff] %v12163_v62  ;;  %v5734_v13 = vld [vmem:[%s13638_s2 + $0x15f0] sm:$0xff]  ;;  %v1890_v8 = vld [vmem:[%s13638_s2 + $0xac8] sm:$0xff]  ;;  %v12181_v43 = vpack.c.bf16 %v1887_v18, %v1885_v44  ;;  %v5736_v18 = vld [vmem:[%s13638_s2 + $0x1600] sm:$0xff]  ;;  %v12199_v44 = vpack.c.bf16 %v5739_v5, %v5737_v53 }
 0x41c   :  { %14279 = vst [vmem:[#allocation309_spill] sm:$0xff] %v12151_v14  ;;  %v5743_v53 = vld [vmem:[%s13638_s2 + $0x1638] sm:$0xff] }
 0x41d   :  { %6642 = vmatpush1.bf16.msra.mxu0 %v12109_v38  ;;  %14278 = vst [vmem:[#allocation308_spill] sm:$0xff] %v12149_v54  ;;  %14281 = vst [vmem:[#allocation311_spill] sm:$0xff] %v12181_v43  ;;  %v1891_v38 = vld [vmem:[%s13638_s2 + $0xad0] sm:$0xff] }
 0x41e   :  { %7002 = vmatpush1.bf16.msra.mxu1 %v12113_v37  ;;  %6644 = vmatprep.subr.bf16.mxu0 %v12115_v15  ;;  %v12187_v15 = vpack.c.bf16 %v1892_v35, %v1890_v8  ;;  %v1889_v37 = vld [vmem:[%s13638_s2 + $0xac0] sm:$0xff]  ;;  %14284 = vst [vmem:[#allocation314_spill] sm:$0xff] %v12199_v44  ;;  %v1896_v8 = vld [vmem:[%s13638_s2 + $0xaf8] sm:$0xff]  ;;  %v5741_v35 = vld [vmem:[%s13638_s2 + $0x1628] sm:$0xff] }
 0x41f   :  { %7004 = vmatprep.subr.bf16.mxu1 %v12127_v20  ;;  %v12185_v20 = vpack.c.bf16 %v5734_v13, %v5732_v0  ;;  %v5738_v0 = vld [vmem:[%s13638_s2 + $0x1610] sm:$0xff]  ;;  %v1894_v13 = vld [vmem:[%s13638_s2 + $0xae8] sm:$0xff]  ;;  %v12217_v5 = vpack.c.bf16 %v1891_v38, %v1889_v37  ;;  %v5740_v37 = vld [vmem:[%s13638_s2 + $0x1620] sm:$0xff]  ;;  %v12235_v38 = vpack.c.bf16 %v5743_v53, %v5741_v35 }
 0x420   :  { %14283 = vst [vmem:[#allocation313_spill] sm:$0xff] %v12187_v15  ;;  %v5747_v35 = vld [vmem:[%s13638_s2 + $0x1658] sm:$0xff] }
 0x421   :  { %6646 = vmatpush1.bf16.msra.mxu0 %v12145_v60  ;;  %14282 = vst [vmem:[#allocation312_spill] sm:$0xff] %v12185_v20  ;;  %14285 = vst [vmem:[#allocation315_spill] sm:$0xff] %v12217_v5  ;;  %v1895_v60 = vld [vmem:[%s13638_s2 + $0xaf0] sm:$0xff] }
 0x422   :  { %7006 = vmatpush1.bf16.msra.mxu1 %v12149_v54  ;;  %6648 = vmatprep.subr.bf16.mxu0 %v12151_v14  ;;  %v12223_v14 = vpack.c.bf16 %v1896_v8, %v1894_v13  ;;  %v1893_v54 = vld [vmem:[%s13638_s2 + $0xae0] sm:$0xff]  ;;  %14288 = vst [vmem:[#allocation318_spill] sm:$0xff] %v12235_v38  ;;  %v1900_v13 = vld [vmem:[%s13638_s2 + $0xb18] sm:$0xff]  ;;  %v5745_v8 = vld [vmem:[%s13638_s2 + $0x1648] sm:$0xff] }
 0x423   :  { %7008 = vmatprep.subr.bf16.mxu1 %v12163_v62  ;;  %v12221_v62 = vpack.c.bf16 %v5738_v0, %v5736_v18  ;;  %v5742_v18 = vld [vmem:[%s13638_s2 + $0x1630] sm:$0xff]  ;;  %v1898_v0 = vld [vmem:[%s13638_s2 + $0xb08] sm:$0xff]  ;;  %v12253_v53 = vpack.c.bf16 %v1895_v60, %v1893_v54  ;;  %v5744_v54 = vld [vmem:[%s13638_s2 + $0x1640] sm:$0xff]  ;;  %v12271_v60 = vpack.c.bf16 %v5747_v35, %v5745_v8 }
 0x424   :  { %14287 = vst [vmem:[#allocation317_spill] sm:$0xff] %v12223_v14  ;;  %v5751_v8 = vld [vmem:[%s13638_s2 + $0x1678] sm:$0xff] }
 0x425   :  { %6650 = vmatpush1.bf16.msra.mxu0 %v12181_v43  ;;  %14286 = vst [vmem:[#allocation316_spill] sm:$0xff] %v12221_v62  ;;  %v1899_v43 = vld [vmem:[%s13638_s2 + $0xb10] sm:$0xff] }
 0x426   :  { %7010 = vmatpush1.bf16.msra.mxu1 %v12185_v20  ;;  %6652 = vmatprep.subr.bf16.mxu0 %v12187_v15  ;;  %v12259_v15 = vpack.c.bf16 %v1900_v13, %v1898_v0  ;;  %v1897_v20 = vld [vmem:[%s13638_s2 + $0xb00] sm:$0xff]  ;;  %v1904_v0 = vld [vmem:[%s13638_s2 + $0xb38] sm:$0xff]  ;;  %v5749_v13 = vld [vmem:[%s13638_s2 + $0x1668] sm:$0xff] }
 0x427   :  { %7012 = vmatprep.subr.bf16.mxu1 %v12199_v44  ;;  %v12257_v44 = vpack.c.bf16 %v5742_v18, %v5740_v37  ;;  %v5746_v37 = vld [vmem:[%s13638_s2 + $0x1650] sm:$0xff]  ;;  %v1902_v18 = vld [vmem:[%s13638_s2 + $0xb28] sm:$0xff]  ;;  %v12289_v35 = vpack.c.bf16 %v1899_v43, %v1897_v20  ;;  %v12304_v20 = vpack.c.bf16 %v5751_v8, %v5749_v13  ;;  %v5748_v43 = vld [vmem:[%s13638_s2 + $0x1660] sm:$0xff]  ;;  %v12333_v8 = vpop.permute.xlu0 %3248 }
 0x428   :  { %v1544_v13 = vld [vmem:[#allocation5 + $0xc8] sm:$0x3f] }
 0x429   :  { %6654 = vmatpush1.bf16.msra.mxu0 %v12217_v5  ;;  %v1903_v5 = vld [vmem:[%s13638_s2 + $0xb30] sm:$0xff] }
 0x42a   :  { %7014 = vmatpush1.bf16.msra.mxu1 %v12221_v62  ;;  %6656 = vmatprep.subr.bf16.mxu0 %v12223_v14  ;;  %v12295_v14 = vpack.c.bf16 %v1904_v0, %v1902_v18  ;;  %v1901_v62 = vld [vmem:[%s13638_s2 + $0xb20] sm:$0xff]  ;;  %v12320_v0 = vpop.permute.xlu1 %8035 }
 0x42b   :  { %7016 = vmatprep.subr.bf16.mxu1 %v12235_v38  ;;  %v12293_v38 = vpack.c.bf16 %v5746_v37, %v5744_v54  ;;  %v5750_v54 = vld [vmem:[%s13638_s2 + $0x1670] sm:$0xff]  ;;  %v12313_v37 = vpack.c.bf16 %v1903_v5, %v1901_v62  ;;  %v8038_v62 = vunpack.i.h.bf16 %v12320_v0  ;;  %v8037_v5 = vunpack.i.l.bf16 %v12320_v0  ;;  %v14392_v0 = vld [vmem:[#allocation113_spill] sm:$0xff] }
 0x42c   :  { %v12317_v18 = vpack.c.bf16 %v5750_v54, %v5748_v43  ;;  %v14295_v43 = vld [vmem:[#allocation15_spill] sm:$0xff] }
 0x42d   :  { %6658 = vmatpush1.bf16.msra.mxu0 %v12253_v53 }
 0x42e   :  { %7018 = vmatpush1.bf16.msra.mxu1 %v12257_v44  ;;  %6660 = vmatprep.subr.bf16.mxu0 %v12259_v15 }
 0x42f   :  { %7020 = vmatprep.subr.bf16.mxu1 %v12271_v60 }
 0x431   :  { %6662 = vmatpush1.bf16.msra.mxu0 %v12289_v35 }
 0x432   :  { %7022 = vmatpush1.bf16.msra.mxu1 %v12293_v38  ;;  %6664 = vmatprep.subr.bf16.mxu0 %v12295_v14 }
 0x433   :  { %7024 = vmatprep.subr.bf16.mxu1 %v12304_v20 }
 0x435   :  { %6666 = vmatpush1.bf16.msra.mxu0 %v12313_v37 }
 0x436   :  { %7026 = vmatpush1.bf16.msra.mxu1 %v12317_v18  ;;  %7028 = vmatprep.subr.bf16.mxu0 %v8785_v34  ;;  %v1543_v34 = vld [vmem:[#allocation5 + $0xc0] sm:$0x3f] }
 0x437   :  { %7388 = vmatprep.subr.bf16.mxu1 %v8796_v49  ;;  %v3297_v49 = vsel %vm426_vm13, %v8037_v5, %v8038_v62 }
 0x438   :  { %2361 = vmatmul.mubr.f32.vlgmr.msra.gmra.mrb[16].mxu0 %v11551_v26 }
 0x439   :  { %3184 = vmatmul.mubr.f32.vlgmr.msra.gmra.mrb[16].mxu1 %v11551_v26  ;;  %5391 = vmatprep.mubr.msk.f32.mxu0 %vm148_vm12, %v1544_v13  ;;  %v14292_v26 = vld [vmem:[#allocation13_spill] sm:$0xff] }
 0x43a   :  { %5753 = vmatprep.mubr.msk.f32.mxu1 %vm148_vm12, %v1544_v13  ;;  %7030 = vmatpush1.bf16.msra.mxu0 %v8798_v58  ;;  %v12347_v58 = vpop.permute.xlu0 %8040  ;;  %v14296_v13 = vld [vmem:[#allocation17_spill] sm:$0xff] }
 0x43b   :  { %7390 = vmatpush1.bf16.msra.mxu1 %v8807_v1  ;;  %7032 = vmatprep.subr.bf16.mxu0 %v8821_v19  ;;  %v12350_v1 = vpop.permute.xlu1 %8045 }
 0x43c   :  { %2367 = vmatmul.mubr.f32.gmra.mrb[18].mxu0 %v1543_v34  ;;  %7392 = vmatprep.subr.bf16.mxu1 %v8832_v41  ;;  %v8048_v41 = vunpack.i.h.bf16 %v12350_v1 }
 0x43d   :  { %3190 = vmatmul.mubr.f32.gmra.mrb[18].mxu1 %v1543_v34  ;;  %3408 = vmatprep.mubr.f32.mxu0 %v3297_v49 }
 0x43e   :  { %7034 = vmatpush1.bf16.msra.mxu0 %v8834_v50  ;;  %3874 = vmatprep.mubr.f32.mxu1 %v3297_v49 }
 0x43f   :  { %7394 = vmatpush1.bf16.msra.mxu1 %v8843_v3  ;;  %7036 = vmatprep.subr.bf16.mxu0 %v8857_v7  ;;  %v12362_v3 = vpop.permute.xlu1 %3256 }
 0x440   :  { %7396 = vmatprep.subr.bf16.mxu1 %v8868_v23 }
 0x442   :  { %7038 = vmatpush1.bf16.msra.mxu0 %v8870_v24 }
 0x443   :  { %7398 = vmatpush1.bf16.msra.mxu1 %v8879_v31  ;;  %7040 = vmatprep.subr.bf16.mxu0 %v8893_v47 }
 0x444   :  { %7400 = vmatprep.subr.bf16.mxu1 %v8904_v57 }
 0x445   :  { %v12355_v19 = vpop.permute.xlu0 %8050 }
 0x446   :  { %7042 = vmatpush1.bf16.msra.mxu0 %v8906_v61  ;;  %v8052_v50 = vunpack.i.l.bf16 %v12355_v19  ;;  %v8053_v47 = vunpack.i.h.bf16 %v12355_v19  ;;  %v14393_v19 = vld [vmem:[#allocation114_spill] sm:$0xff] }
 0x447   :  { %7402 = vmatpush1.bf16.msra.mxu1 %v8915_v17  ;;  %7044 = vmatprep.subr.bf16.mxu0 %v8928_v28 }
 0x448   :  { %7404 = vmatprep.subr.bf16.mxu1 %v8960_v45  ;;  %v12370_v7 = vsel %vm426_vm13, %v8048_v41, %v8052_v50 }
 0x44a   :  { %7046 = vmatpush1.bf16.msra.mxu0 %v8962_v48 }
 0x44b   :  { %7406 = vmatpush1.bf16.msra.mxu1 %v8974_v11  ;;  %7048 = vmatprep.subr.bf16.mxu0 %v8986_v40 }
 0x44c   :  { %7408 = vmatprep.subr.bf16.mxu1 %v8988_v51  ;;  %v12376_v23 = vpop.permute.xlu1 %8055 }
 0x44d   :  { %v8057_v24 = vunpack.i.l.bf16 %v12376_v23  ;;  %v8058_v51 = vunpack.i.h.bf16 %v12376_v23  ;;  %v14400_v23 = vld [vmem:[#allocation121_spill] sm:$0xff] }
 0x44e   :  { %7050 = vmatpush1.bf16.msra.mxu0 %v9000_v6  ;;  %v12380_v31 = vpop.permute.xlu0 %8060 }
 0x44f   :  { %7410 = vmatpush1.bf16.msra.mxu1 %v9013_v25  ;;  %v8062_v57 = vunpack.i.l.bf16 %v12380_v31  ;;  %7052 = vmatprep.subr.bf16.mxu0 %v9015_v30  ;;  %v12390_v61 = vsel %vm426_vm13, %v12362_v3, %v8057_v24  ;;  %v14289_v30 = vld [vmem:[#allocation10_spill] sm:$0xff] }
 0x450   :  { %7412 = vmatprep.subr.bf16.mxu1 %v9027_v52  ;;  %v1275_v17 = vpop.permute.xlu1 %1274 }
 0x451   :  { %v1278_v28 = vsel %vm148_vm12, %v11421_v4, %v1275_v17  ;;  %v12400_v45 = vsel %vm426_vm13, %v8053_v47, %v8062_v57  ;;  %v14294_v4 = vld [vmem:[#allocation14_spill] sm:$0xff] }
 0x452   :  { %7054 = vmatpush1.bf16.msra.mxu0 %v9048_v27  ;;  %1284 = vst [vmem:[#allocation5 + $0x60] sm:$0x7f] %v1278_v28  ;;  %v1495_v48 = vpop.permute.xlu0 %1494  ;;  %v14290_v27 = vld [vmem:[#allocation11_spill] sm:$0xff]  ;;  %v14297_v28 = vld [vmem:[#allocation18_spill] sm:$0xff] }
 0x453   :  { %7414 = vmatpush1.bf16.msra.mxu1 %v9055_v29  ;;  %v1504_v11 = vsel %vm148_vm12, %v11445_v36, %v1495_v48  ;;  %7056 = vmatprep.subr.bf16.mxu0 %v9057_v33  ;;  %v14291_v33 = vld [vmem:[#allocation12_spill] sm:$0xff] }
 0x454   :  { %1515 = vst [vmem:[#allocation5 + $0x60] sm:$0x80] %v1504_v11  ;;  %7416 = vmatprep.subr.bf16.mxu1 %v9069_v16  ;;  %v12408_v40 = vpop.permute.xlu1 %8065  ;;  %v14298_v11 = vld [vmem:[#allocation19_spill] sm:$0xff] }
 0x455   :  { %v8067_v6 = vunpack.i.l.bf16 %v12408_v40 }
 0x456   :  { %7058 = vmatpush1.bf16.msra.mxu0 %v9087_v12  ;;  %v1501_v25 = vpop.permute.xlu0 %1500 }
 0x457   :  { %7418 = vmatpush1.bf16.msra.mxu1 %v14289_v30  ;;  %v1506_v52 = vsel %vm148_vm12, %v11468_v21, %v1501_v25  ;;  %7060 = vmatprep.subr.bf16.mxu0 %v14290_v27  ;;  %v12422_v29 = vsel %vm426_vm13, %v8058_v51, %v8067_v6  ;;  %v3221_v30 = vld [vmem:[#allocation5 + $0xc8] sm:$0x3f]  ;;  %v14300_v27 = vld [vmem:[#allocation21_spill] sm:$0xff] }
 0x458   :  { %1518 = vst [vmem:[#allocation5 + $0xd0] sm:$0x3f] %v1506_v52  ;;  %7420 = vmatprep.subr.bf16.mxu1 %v14291_v33  ;;  %v1277_v16 = vpop.permute.xlu1 %1276 }
 0x459   :  { %v1279_v12 = vsel %vm148_vm12, %v1275_v17, %v1277_v16  ;;  %v14301_v16 = vld [vmem:[#allocation22_spill] sm:$0xff] }
 0x45a   :  { %7062 = vmatpush1.bf16.msra.mxu0 %v14292_v26  ;;  %1285 = vst.msk [vmem:[#allocation5 + $0x68] sm:$0x7f] %vm14293_vm5, %v1279_v12  ;;  %v1497_v36 = vpop.permute.xlu0 %1496  ;;  %v14304_v26 = vld [vmem:[#allocation25_spill] sm:$0xff] }
 0x45b   :  { %7422 = vmatpush1.bf16.msra.mxu1 %v14294_v4  ;;  %v1505_v21 = vsel %vm148_vm12, %v1495_v48, %v1497_v36  ;;  %7064 = vmatprep.subr.bf16.mxu0 %v14295_v43  ;;  %v3210_v54 = vld [vmem:[#allocation5 + $0x60] sm:$0xff]  ;;  %v14299_v48 = vld [vmem:[#allocation20_spill] sm:$0xff] }
 0x45c   :  { %1516 = vst.msk [vmem:[#allocation5 + $0x68] sm:$0x80] %vm1327_vm15, %v1505_v21  ;;  %7424 = vmatprep.subr.bf16.mxu1 %v14296_v13  ;;  %v1503_v34 = vpop.permute.xlu1 %1502  ;;  %v8074_v49 = vpack.i.bf16 %v3210_v54, %v12060_v42  ;;  %v14302_v42 = vld [vmem:[#allocation23_spill] sm:$0xff]  ;;  %v14305_v4 = vld [vmem:[#allocation26_spill] sm:$0xff]  ;;  %v14307_v43 = vld [vmem:[#allocation28_spill] sm:$0xff] }
 0x45d   :  { %v1507_v17 = vsel %vm148_vm12, %v1501_v25, %v1503_v34  ;;  %v14303_v25 = vld [vmem:[#allocation24_spill] sm:$0xff]  ;;  %v14306_v21 = vld [vmem:[#allocation27_spill] sm:$0xff]  ;;  %v14308_v54 = vld [vmem:[#allocation29_spill] sm:$0xff] }
 0x45e   :  { %7066 = vmatpush1.bf16.msra.mxu0 %v14297_v28  ;;  %1519 = vst.msk [vmem:[#allocation5 + $0xd8] sm:$0x3f] %vm1332_vm4, %v1507_v17  ;;  %8075 = vrot.lane.b32.xlu1 %v8074_v49, %s8113_s13  ;;  %v14309_v13 = vld [vmem:[#allocation30_spill] sm:$0xff]  ;;  %v14310_v34 = vld [vmem:[#allocation31_spill] sm:$0xff]  ;;  %v14311_v49 = vld [vmem:[#allocation32_spill] sm:$0xff] }
 0x45f   :  { %7426 = vmatpush1.bf16.msra.mxu1 %v14298_v11  ;;  %7068 = vmatprep.subr.bf16.mxu0 %v14299_v48  ;;  %v3222_v52 = vld [vmem:[#allocation5 + $0xd0] sm:$0x3f]  ;;  %v14313_v28 = vld [vmem:[#allocation34_spill] sm:$0xff]  ;;  %v14314_v11 = vld [vmem:[#allocation35_spill] sm:$0xff] }
 0x460   :  { %7428 = vmatprep.subr.bf16.mxu1 %v14300_v27  ;;  %v8079_v33 = vpack.i.bf16 %v3222_v52, %v3221_v30  ;;  %v14312_v17 = vld [vmem:[#allocation33_spill] sm:$0xff]  ;;  %v14315_v48 = vld [vmem:[#allocation36_spill] sm:$0xff]  ;;  %v14317_v52 = vld [vmem:[#allocation38_spill] sm:$0xff] }
 0x461   :  { %v14316_v30 = vld [vmem:[#allocation37_spill] sm:$0xff]  ;;  %v14318_v27 = vld [vmem:[#allocation39_spill] sm:$0xff] }
 0x462   :  { %7070 = vmatpush1.bf16.msra.mxu0 %v14301_v16  ;;  %8080 = vrot.lane.b32.xlu0 %v8079_v33, %s8113_s13  ;;  %v14319_v33 = vld [vmem:[#allocation40_spill] sm:$0xff]  ;;  %v14320_v16 = vld [vmem:[#allocation41_spill] sm:$0xff] }
 0x463   :  { %7430 = vmatpush1.bf16.msra.mxu1 %v14302_v42  ;;  %7072 = vmatprep.subr.bf16.mxu0 %v14303_v25  ;;  %v3211_v12 = vld [vmem:[#allocation5 + $0x68] sm:$0xff]  ;;  %v8047_v42 = vunpack.i.l.bf16 %v12350_v1  ;;  %v14321_v25 = vld [vmem:[#allocation42_spill] sm:$0xff] }
 0x464   :  { %7432 = vmatprep.subr.bf16.mxu1 %v14304_v26  ;;  %3270 = vrot.lane.b32.xlu1 %v3211_v12, %s8113_s13  ;;  %v14322_v12 = vld [vmem:[#allocation43_spill] sm:$0xff]  ;;  %v14323_v26 = vld [vmem:[#allocation44_spill] sm:$0xff] }
 0x465   :  { %v3223_v36 = vld [vmem:[#allocation5 + $0xd8] sm:$0x3f] }
 0x466   :  { %7074 = vmatpush1.bf16.msra.mxu0 %v14305_v4  ;;  %3294 = vrot.lane.b32.xlu0 %v3223_v36, %s8113_s13  ;;  %v3296_v36 = vsel %vm426_vm13, %v12333_v8, %v8037_v5  ;;  %v14324_v4 = vld [vmem:[#allocation45_spill] sm:$0xff]  ;;  %v14327_v8 = vld [vmem:[#allocation48_spill] sm:$0xff] }
 0x467   :  { %7434 = vmatpush1.bf16.msra.mxu1 %v14306_v21  ;;  %7076 = vmatprep.subr.bf16.mxu0 %v14307_v43  ;;  %v3308_v21 = vsel %vm426_vm13, %v8047_v42, %v8048_v41  ;;  %v8042_v43 = vunpack.i.l.bf16 %v12347_v58  ;;  %v14329_v41 = vld [vmem:[#allocation50_spill] sm:$0xff] }
 0x468   :  { %7436 = vmatprep.subr.bf16.mxu1 %v14308_v54  ;;  %v8043_v54 = vunpack.i.h.bf16 %v12347_v58  ;;  %v14391_v58 = vld [vmem:[#allocation112_spill] sm:$0xff] }
 0x469   :  { %v3307_v5 = vsel %vm426_vm13, %v8042_v43, %v8047_v42  ;;  %v14340_v42 = vld [vmem:[#allocation61_spill] sm:$0xff]  ;;  %v14347_v43 = vld [vmem:[#allocation68_spill] sm:$0xff] }
 0x46a   :  { %7078 = vmatpush1.bf16.msra.mxu0 %v14309_v13  ;;  %v14325_v13 = vld [vmem:[#allocation46_spill] sm:$0xff]  ;;  %v3299_v1 = vsel %vm426_vm13, %v8043_v54, %v12362_v3 }
 0x46b   :  { %7438 = vmatpush1.bf16.msra.mxu1 %v14310_v34  ;;  %7080 = vmatprep.subr.bf16.mxu0 %v14311_v49  ;;  %v14326_v34 = vld [vmem:[#allocation47_spill] sm:$0xff]  ;;  %v14328_v49 = vld [vmem:[#allocation49_spill] sm:$0xff]  ;;  %v14337_v3 = vld [vmem:[#allocation58_spill] sm:$0xff] }
 0x46c   :  { %7440 = vmatprep.subr.bf16.mxu1 %v14312_v17  ;;  %v14330_v17 = vld [vmem:[#allocation51_spill] sm:$0xff] }
 0x46e   :  { %7082 = vmatpush1.bf16.msra.mxu0 %v14313_v28  ;;  %v14331_v28 = vld [vmem:[#allocation52_spill] sm:$0xff] }
 0x46f   :  { %7442 = vmatpush1.bf16.msra.mxu1 %v14314_v11  ;;  %7084 = vmatprep.subr.bf16.mxu0 %v14315_v48  ;;  %v14332_v11 = vld [vmem:[#allocation53_spill] sm:$0xff]  ;;  %v14333_v48 = vld [vmem:[#allocation54_spill] sm:$0xff] }
 0x470   :  { %7444 = vmatprep.subr.bf16.mxu1 %v14316_v30  ;;  %v14334_v30 = vld [vmem:[#allocation55_spill] sm:$0xff] }
 0x472   :  { %7086 = vmatpush1.bf16.msra.mxu0 %v14317_v52  ;;  %v14335_v52 = vld [vmem:[#allocation56_spill] sm:$0xff] }
 0x473   :  { %7446 = vmatpush1.bf16.msra.mxu1 %v14318_v27  ;;  %7088 = vmatprep.subr.bf16.mxu0 %v14319_v33  ;;  %v14336_v27 = vld [vmem:[#allocation57_spill] sm:$0xff]  ;;  %v14338_v33 = vld [vmem:[#allocation59_spill] sm:$0xff] }
 0x474   :  { %7448 = vmatprep.subr.bf16.mxu1 %v14320_v16  ;;  %v14339_v16 = vld [vmem:[#allocation60_spill] sm:$0xff] }
 0x476   :  { %7090 = vmatpush1.bf16.msra.mxu0 %v14321_v25  ;;  %v14341_v25 = vld [vmem:[#allocation62_spill] sm:$0xff] }
 0x477   :  { %7450 = vmatpush1.bf16.msra.mxu1 %v14322_v12  ;;  %7092 = vmatprep.subr.bf16.mxu0 %v14323_v26  ;;  %v14342_v12 = vld [vmem:[#allocation63_spill] sm:$0xff]  ;;  %v14343_v26 = vld [vmem:[#allocation64_spill] sm:$0xff] }
 0x478   :  { %7452 = vmatprep.subr.bf16.mxu1 %v14324_v4  ;;  %v14345_v4 = vld [vmem:[#allocation66_spill] sm:$0xff] }
 0x479   :  { %3409 = vmatmul.mubr.f32.vlgmr.msra.gmra.mrb[20].mxu0 %v3296_v36 }
 0x47a   :  { %3875 = vmatmul.mubr.f32.vlgmr.msra.gmra.mrb[20].mxu1 %v3296_v36  ;;  %3414 = vmatprep.mubr.f32.mxu0 %v3308_v21  ;;  %v14344_v36 = vld [vmem:[#allocation65_spill] sm:$0xff] }
 0x47b   :  { %7094 = vmatpush1.bf16.msra.mxu0 %v14325_v13  ;;  %3880 = vmatprep.mubr.f32.mxu1 %v3308_v21  ;;  %v14346_v21 = vld [vmem:[#allocation67_spill] sm:$0xff]  ;;  %v14348_v13 = vld [vmem:[#allocation69_spill] sm:$0xff] }
 0x47c   :  { %7454 = vmatpush1.bf16.msra.mxu1 %v14326_v34  ;;  %7096 = vmatprep.subr.bf16.mxu0 %v14327_v8  ;;  %v14349_v34 = vld [vmem:[#allocation70_spill] sm:$0xff]  ;;  %v14351_v8 = vld [vmem:[#allocation72_spill] sm:$0xff] }
 0x47d   :  { %3415 = vmatmul.mubr.f32.gmra.mrb[22].mxu0 %v3307_v5  ;;  %7456 = vmatprep.subr.bf16.mxu1 %v14328_v49  ;;  %v14352_v49 = vld [vmem:[#allocation73_spill] sm:$0xff] }
 0x47e   :  { %3881 = vmatmul.mubr.f32.gmra.mrb[22].mxu1 %v3307_v5  ;;  %3485 = vmatprep.mubr.f32.mxu0 %v3299_v1  ;;  %v14350_v5 = vld [vmem:[#allocation71_spill] sm:$0xff] }
 0x47f   :  { %7098 = vmatpush1.bf16.msra.mxu0 %v14329_v41  ;;  %3951 = vmatprep.mubr.f32.mxu1 %v3299_v1  ;;  %v14353_v1 = vld [vmem:[#allocation74_spill] sm:$0xff]  ;;  %v14354_v41 = vld [vmem:[#allocation75_spill] sm:$0xff] }
 0x480   :  { %7458 = vmatpush1.bf16.msra.mxu1 %v14330_v17  ;;  %7100 = vmatprep.subr.bf16.mxu0 %v14331_v28  ;;  %v14355_v17 = vld [vmem:[#allocation76_spill] sm:$0xff]  ;;  %v14356_v28 = vld [vmem:[#allocation77_spill] sm:$0xff] }
 0x481   :  { %7460 = vmatprep.subr.bf16.mxu1 %v14332_v11  ;;  %v14357_v11 = vld [vmem:[#allocation78_spill] sm:$0xff] }
 0x483   :  { %7102 = vmatpush1.bf16.msra.mxu0 %v14333_v48  ;;  %v14358_v48 = vld [vmem:[#allocation79_spill] sm:$0xff] }
 0x484   :  { %7462 = vmatpush1.bf16.msra.mxu1 %v14334_v30  ;;  %7104 = vmatprep.subr.bf16.mxu0 %v14335_v52  ;;  %v14359_v30 = vld [vmem:[#allocation80_spill] sm:$0xff]  ;;  %v14360_v52 = vld [vmem:[#allocation81_spill] sm:$0xff] }
 0x485   :  { %7464 = vmatprep.subr.bf16.mxu1 %v14336_v27  ;;  %v14361_v27 = vld [vmem:[#allocation82_spill] sm:$0xff] }
 0x487   :  { %7106 = vmatpush1.bf16.msra.mxu0 %v14337_v3  ;;  %v14362_v3 = vld [vmem:[#allocation83_spill] sm:$0xff] }
 0x488   :  { %7466 = vmatpush1.bf16.msra.mxu1 %v14338_v33  ;;  %7108 = vmatprep.subr.bf16.mxu0 %v14339_v16  ;;  %v14363_v33 = vld [vmem:[#allocation84_spill] sm:$0xff]  ;;  %v14364_v16 = vld [vmem:[#allocation85_spill] sm:$0xff] }
 0x489   :  { %7468 = vmatprep.subr.bf16.mxu1 %v14340_v42  ;;  %v14365_v42 = vld [vmem:[#allocation86_spill] sm:$0xff] }
 0x48b   :  { %7110 = vmatpush1.bf16.msra.mxu0 %v14341_v25  ;;  %v14366_v25 = vld [vmem:[#allocation87_spill] sm:$0xff] }
 0x48c   :  { %7470 = vmatpush1.bf16.msra.mxu1 %v14342_v12  ;;  %7112 = vmatprep.subr.bf16.mxu0 %v14343_v26  ;;  %v14367_v12 = vld [vmem:[#allocation88_spill] sm:$0xff]  ;;  %v14368_v26 = vld [vmem:[#allocation89_spill] sm:$0xff] }
 0x48d   :  { %7472 = vmatprep.subr.bf16.mxu1 %v14344_v36  ;;  %v14369_v36 = vld [vmem:[#allocation90_spill] sm:$0xff] }
 0x48f   :  { %7114 = vmatpush1.bf16.msra.mxu0 %v14345_v4  ;;  %v14370_v4 = vld [vmem:[#allocation91_spill] sm:$0xff] }
 0x490   :  { %7474 = vmatpush1.bf16.msra.mxu1 %v14346_v21  ;;  %7116 = vmatprep.subr.bf16.mxu0 %v14347_v43  ;;  %v14371_v21 = vld [vmem:[#allocation92_spill] sm:$0xff]  ;;  %v14372_v43 = vld [vmem:[#allocation93_spill] sm:$0xff] }
 0x491   :  { %7476 = vmatprep.subr.bf16.mxu1 %v14348_v13  ;;  %v14373_v13 = vld [vmem:[#allocation94_spill] sm:$0xff] }
 0x493   :  { %7118 = vmatpush1.bf16.msra.mxu0 %v14349_v34  ;;  %v14374_v34 = vld [vmem:[#allocation95_spill] sm:$0xff] }
 0x494   :  { %7478 = vmatpush1.bf16.msra.mxu1 %v14350_v5  ;;  %7120 = vmatprep.subr.bf16.mxu0 %v14351_v8  ;;  %v14375_v5 = vld [vmem:[#allocation96_spill] sm:$0xff]  ;;  %v14376_v8 = vld [vmem:[#allocation97_spill] sm:$0xff] }
 0x495   :  { %7480 = vmatprep.subr.bf16.mxu1 %v14352_v49  ;;  %v14377_v49 = vld [vmem:[#allocation98_spill] sm:$0xff] }
 0x497   :  { %7122 = vmatpush1.bf16.msra.mxu0 %v14353_v1  ;;  %v14378_v1 = vld [vmem:[#allocation99_spill] sm:$0xff] }
 0x498   :  { %7482 = vmatpush1.bf16.msra.mxu1 %v14354_v41  ;;  %7124 = vmatprep.subr.bf16.mxu0 %v14355_v17  ;;  %v14379_v41 = vld [vmem:[#allocation100_spill] sm:$0xff]  ;;  %v14380_v17 = vld [vmem:[#allocation101_spill] sm:$0xff] }
 0x499   :  { %7484 = vmatprep.subr.bf16.mxu1 %v14356_v28  ;;  %v14381_v28 = vld [vmem:[#allocation102_spill] sm:$0xff] }
 0x49b   :  { %7126 = vmatpush1.bf16.msra.mxu0 %v14357_v11  ;;  %v14382_v11 = vld [vmem:[#allocation103_spill] sm:$0xff] }
 0x49c   :  { %7486 = vmatpush1.bf16.msra.mxu1 %v14358_v48  ;;  %7128 = vmatprep.subr.bf16.mxu0 %v14359_v30  ;;  %v14383_v48 = vld [vmem:[#allocation104_spill] sm:$0xff]  ;;  %v14384_v30 = vld [vmem:[#allocation105_spill] sm:$0xff] }
 0x49d   :  { %7488 = vmatprep.subr.bf16.mxu1 %v14360_v52  ;;  %v14385_v52 = vld [vmem:[#allocation106_spill] sm:$0xff] }
 0x49f   :  { %7130 = vmatpush1.bf16.msra.mxu0 %v14361_v27  ;;  %v14386_v27 = vld [vmem:[#allocation107_spill] sm:$0xff] }
 0x4a0   :  { %7490 = vmatpush1.bf16.msra.mxu1 %v14362_v3  ;;  %7132 = vmatprep.subr.bf16.mxu0 %v14363_v33  ;;  %v14387_v3 = vld [vmem:[#allocation108_spill] sm:$0xff]  ;;  %v3298_v33 = vsel %vm426_vm13, %v8038_v62, %v8043_v54  ;;  %v3301_v62 = vsel %vm426_vm13, %v8057_v24, %v8058_v51  ;;  %v14396_v54 = vld [vmem:[#allocation117_spill] sm:$0xff]  ;;  %v14401_v24 = vld [vmem:[#allocation122_spill] sm:$0xff] }
 0x4a1   :  { %7492 = vmatprep.subr.bf16.mxu1 %v14364_v16  ;;  %v14388_v16 = vld [vmem:[#allocation109_spill] sm:$0xff]  ;;  %v14403_v51 = vld [vmem:[#allocation124_spill] sm:$0xff] }
 0x4a3   :  { %7134 = vmatpush1.bf16.msra.mxu0 %v14365_v42  ;;  %v3310_v42 = vsel %vm426_vm13, %v8052_v50, %v8053_v47  ;;  %v14394_v50 = vld [vmem:[#allocation115_spill] sm:$0xff]  ;;  %v14395_v47 = vld [vmem:[#allocation116_spill] sm:$0xff] }
 0x4a4   :  { %7494 = vmatpush1.bf16.msra.mxu1 %v14366_v25  ;;  %7136 = vmatprep.subr.bf16.mxu0 %v14367_v12  ;;  %v14389_v25 = vld [vmem:[#allocation110_spill] sm:$0xff]  ;;  %v14390_v12 = vld [vmem:[#allocation111_spill] sm:$0xff] }
 0x4a5   :  { %7496 = vmatprep.subr.bf16.mxu1 %v14368_v26  ;;  %v14397_v26 = vld [vmem:[#allocation118_spill] sm:$0xff] }
 0x4a7   :  { %7138 = vmatpush1.bf16.msra.mxu0 %v14369_v36  ;;  %v14398_v36 = vld [vmem:[#allocation119_spill] sm:$0xff] }
 0x4a8   :  { %7498 = vmatpush1.bf16.msra.mxu1 %v14370_v4  ;;  %7140 = vmatprep.subr.bf16.mxu0 %v14371_v21  ;;  %v14399_v4 = vld [vmem:[#allocation120_spill] sm:$0xff]  ;;  %v14404_v21 = vld [vmem:[#allocation125_spill] sm:$0xff] }
 0x4a9   :  { %7500 = vmatprep.subr.bf16.mxu1 %v14372_v43  ;;  %v14405_v43 = vld [vmem:[#allocation126_spill] sm:$0xff] }
 0x4ab   :  { %7142 = vmatpush1.bf16.msra.mxu0 %v14373_v13  ;;  %v14406_v13 = vld [vmem:[#allocation127_spill] sm:$0xff] }
 0x4ac   :  { %7502 = vmatpush1.bf16.msra.mxu1 %v14374_v34  ;;  %7144 = vmatprep.subr.bf16.mxu0 %v14375_v5  ;;  %v14407_v34 = vld [vmem:[#allocation128_spill] sm:$0xff]  ;;  %v14408_v5 = vld [vmem:[#allocation129_spill] sm:$0xff] }
 0x4ad   :  { %7504 = vmatprep.subr.bf16.mxu1 %v14376_v8  ;;  %v14409_v8 = vld [vmem:[#allocation130_spill] sm:$0xff] }
 0x4af   :  { %7146 = vmatpush1.bf16.msra.mxu0 %v14377_v49  ;;  %v14410_v49 = vld [vmem:[#allocation131_spill] sm:$0xff] }
 0x4b0   :  { %7506 = vmatpush1.bf16.msra.mxu1 %v14378_v1  ;;  %7148 = vmatprep.subr.bf16.mxu0 %v14379_v41  ;;  %v14411_v1 = vld [vmem:[#allocation132_spill] sm:$0xff]  ;;  %v14412_v41 = vld [vmem:[#allocation133_spill] sm:$0xff] }
 0x4b1   :  { %7508 = vmatprep.subr.bf16.mxu1 %v14380_v17  ;;  %v14413_v17 = vld [vmem:[#allocation134_spill] sm:$0xff] }
 0x4b3   :  { %7150 = vmatpush1.bf16.msra.mxu0 %v14381_v28  ;;  %v14414_v28 = vld [vmem:[#allocation135_spill] sm:$0xff] }
 0x4b4   :  { %7510 = vmatpush1.bf16.msra.mxu1 %v14382_v11  ;;  %7152 = vmatprep.subr.bf16.mxu0 %v14383_v48  ;;  %v14415_v11 = vld [vmem:[#allocation136_spill] sm:$0xff]  ;;  %v14416_v48 = vld [vmem:[#allocation137_spill] sm:$0xff] }
 0x4b5   :  { %7512 = vmatprep.subr.bf16.mxu1 %v14384_v30  ;;  %v14421_v30 = vld [vmem:[#allocation142_spill] sm:$0xff] }
 0x4b7   :  { %7154 = vmatpush1.bf16.msra.mxu0 %v14385_v52  ;;  %v14422_v52 = vld [vmem:[#allocation143_spill] sm:$0xff] }
 0x4b8   :  { %7514 = vmatpush1.bf16.msra.mxu1 %v14386_v27  ;;  %7156 = vmatprep.subr.bf16.mxu0 %v14387_v3  ;;  %v14423_v27 = vld [vmem:[#allocation144_spill] sm:$0xff]  ;;  %v14424_v3 = vld [vmem:[#allocation145_spill] sm:$0xff] }
 0x4b9   :  { %7516 = vmatprep.subr.bf16.mxu1 %v14388_v16  ;;  %v14426_v16 = vld [vmem:[#allocation147_spill] sm:$0xff] }
 0x4ba   :  { %3486 = vmatmul.mubr.f32.vlgmr.msra.gmra.mrb[20].mxu0 %v3298_v33 }
 0x4bb   :  { %3952 = vmatmul.mubr.f32.vlgmr.msra.gmra.mrb[20].mxu1 %v3298_v33  ;;  %3491 = vmatprep.mubr.f32.mxu0 %v3310_v42  ;;  %v14425_v33 = vld [vmem:[#allocation146_spill] sm:$0xff] }
 0x4bc   :  { %7158 = vmatpush1.bf16.msra.mxu0 %v14389_v25  ;;  %3957 = vmatprep.mubr.f32.mxu1 %v3310_v42  ;;  %v14427_v42 = vld [vmem:[#allocation148_spill] sm:$0xff]  ;;  %v14428_v25 = vld [vmem:[#allocation149_spill] sm:$0xff] }
 0x4bd   :  { %7518 = vmatpush1.bf16.msra.mxu1 %v14390_v12  ;;  %7160 = vmatprep.subr.bf16.mxu0 %v14391_v58  ;;  %v14429_v12 = vld [vmem:[#allocation150_spill] sm:$0xff]  ;;  %v14430_v58 = vld [vmem:[#allocation151_spill] sm:$0xff] }
 0x4be   :  { %3492 = vmatmul.mubr.f32.gmra.mrb[22].mxu0 %v12370_v7  ;;  %7520 = vmatprep.subr.bf16.mxu1 %v14392_v0  ;;  %v14431_v0 = vld [vmem:[#allocation152_spill] sm:$0xff] }
 0x4bf   :  { %3958 = vmatmul.mubr.f32.gmra.mrb[22].mxu1 %v12370_v7  ;;  %3562 = vmatprep.mubr.f32.mxu0 %v3301_v62  ;;  %v14402_v7 = vld [vmem:[#allocation123_spill] sm:$0xff] }
 0x4c0   :  { %7162 = vmatpush1.bf16.msra.mxu0 %v14393_v19  ;;  %4028 = vmatprep.mubr.f32.mxu1 %v3301_v62  ;;  %v14432_v62 = vld [vmem:[#allocation153_spill] sm:$0xff]  ;;  %v14433_v19 = vld [vmem:[#allocation154_spill] sm:$0xff] }
 0x4c1   :  { %7522 = vmatpush1.bf16.msra.mxu1 %v14394_v50  ;;  %7164 = vmatprep.subr.bf16.mxu0 %v14395_v47  ;;  %v14434_v50 = vld [vmem:[#allocation155_spill] sm:$0xff]  ;;  %v14435_v47 = vld [vmem:[#allocation156_spill] sm:$0xff] }
 0x4c2   :  { %7524 = vmatprep.subr.bf16.mxu1 %v14396_v54  ;;  %v14436_v54 = vld [vmem:[#allocation157_spill] sm:$0xff] }
 0x4c4   :  { %7166 = vmatpush1.bf16.msra.mxu0 %v14397_v26  ;;  %v14437_v26 = vld [vmem:[#allocation158_spill] sm:$0xff] }
 0x4c5   :  { %7526 = vmatpush1.bf16.msra.mxu1 %v14398_v36  ;;  %7168 = vmatprep.subr.bf16.mxu0 %v14399_v4  ;;  %v14438_v36 = vld [vmem:[#allocation159_spill] sm:$0xff]  ;;  %v14439_v4 = vld [vmem:[#allocation160_spill] sm:$0xff] }
 0x4c6   :  { %7528 = vmatprep.subr.bf16.mxu1 %v14400_v23  ;;  %v14440_v23 = vld [vmem:[#allocation161_spill] sm:$0xff] }
 0x4c8   :  { %7170 = vmatpush1.bf16.msra.mxu0 %v14401_v24  ;;  %v14441_v24 = vld [vmem:[#allocation162_spill] sm:$0xff] }
 0x4c9   :  { %7530 = vmatpush1.bf16.msra.mxu1 %v14402_v7  ;;  %7172 = vmatprep.subr.bf16.mxu0 %v14403_v51  ;;  %v14442_v7 = vld [vmem:[#allocation163_spill] sm:$0xff]  ;;  %v14443_v51 = vld [vmem:[#allocation164_spill] sm:$0xff] }
 0x4ca   :  { %7532 = vmatprep.subr.bf16.mxu1 %v14404_v21  ;;  %v14444_v21 = vld [vmem:[#allocation165_spill] sm:$0xff] }
 0x4cc   :  { %7174 = vmatpush1.bf16.msra.mxu0 %v14405_v43  ;;  %v8063_v43 = vunpack.i.h.bf16 %v12380_v31  ;;  %v14519_v31 = vld [vmem:[#allocation240_spill] sm:$0xff] }
 0x4cd   :  { %7534 = vmatpush1.bf16.msra.mxu1 %v14406_v13  ;;  %7176 = vmatprep.subr.bf16.mxu0 %v14407_v34  ;;  %v14445_v13 = vld [vmem:[#allocation166_spill] sm:$0xff]  ;;  %v14446_v34 = vld [vmem:[#allocation167_spill] sm:$0xff] }
 0x4ce   :  { %7536 = vmatprep.subr.bf16.mxu1 %v14408_v5  ;;  %v14447_v5 = vld [vmem:[#allocation168_spill] sm:$0xff] }
 0x4d0   :  { %7178 = vmatpush1.bf16.msra.mxu0 %v14409_v8  ;;  %v14448_v8 = vld [vmem:[#allocation169_spill] sm:$0xff] }
 0x4d1   :  { %7538 = vmatpush1.bf16.msra.mxu1 %v10364_v10  ;;  %7180 = vmatprep.subr.bf16.mxu0 %v10371_v56  ;;  %v14417_v10 = vld [vmem:[#allocation138_spill] sm:$0xff]  ;;  %v14418_v56 = vld [vmem:[#allocation139_spill] sm:$0xff] }
 0x4d2   :  { %7540 = vmatprep.subr.bf16.mxu1 %v10373_v32  ;;  %v14419_v32 = vld [vmem:[#allocation140_spill] sm:$0xff] }
 0x4d4   :  { %7182 = vmatpush1.bf16.msra.mxu0 %v10388_v63  ;;  %v14420_v63 = vld [vmem:[#allocation141_spill] sm:$0xff] }
 0x4d5   :  { %7542 = vmatpush1.bf16.msra.mxu1 %v14410_v49  ;;  %7184 = vmatprep.subr.bf16.mxu0 %v14411_v1  ;;  %v8068_v49 = vunpack.i.h.bf16 %v12408_v40  ;;  %v3312_v1 = vsel %vm426_vm13, %v8062_v57, %v8063_v43 }
 0x4d6   :  { %7544 = vmatprep.subr.bf16.mxu1 %v14412_v41  ;;  %v14449_v41 = vld [vmem:[#allocation170_spill] sm:$0xff] }
 0x4d7   :  { %v3303_v57 = vsel %vm426_vm13, %v8067_v6, %v8068_v49  ;;  %v14461_v6 = vld [vmem:[#allocation182_spill] sm:$0xff] }
 0x4d8   :  { %7186 = vmatpush1.bf16.msra.mxu0 %v14413_v17  ;;  %v14450_v17 = vld [vmem:[#allocation171_spill] sm:$0xff] }
 0x4d9   :  { %7546 = vmatpush1.bf16.msra.mxu1 %v14414_v28  ;;  %7188 = vmatprep.subr.bf16.mxu0 %v14415_v11  ;;  %v14451_v28 = vld [vmem:[#allocation172_spill] sm:$0xff]  ;;  %v14452_v11 = vld [vmem:[#allocation173_spill] sm:$0xff] }
 0x4da   :  { %7548 = vmatprep.subr.bf16.mxu1 %v14416_v48  ;;  %v14454_v48 = vld [vmem:[#allocation175_spill] sm:$0xff] }
 0x4dc   :  { %7190 = vmatpush1.bf16.msra.mxu0 %v14417_v10  ;;  %v14455_v10 = vld [vmem:[#allocation176_spill] sm:$0xff] }
 0x4dd   :  { %7550 = vmatpush1.bf16.msra.mxu1 %v14418_v56  ;;  %7192 = vmatprep.subr.bf16.mxu0 %v14419_v32  ;;  %v14456_v56 = vld [vmem:[#allocation177_spill] sm:$0xff]  ;;  %v14457_v32 = vld [vmem:[#allocation178_spill] sm:$0xff] }
 0x4de   :  { %7552 = vmatprep.subr.bf16.mxu1 %v14420_v63  ;;  %v14458_v63 = vld [vmem:[#allocation179_spill] sm:$0xff] }
 0x4e0   :  { %7194 = vmatpush1.bf16.msra.mxu0 %v14421_v30  ;;  %v14459_v30 = vld [vmem:[#allocation180_spill] sm:$0xff] }
 0x4e1   :  { %7554 = vmatpush1.bf16.msra.mxu1 %v14422_v52  ;;  %7196 = vmatprep.subr.bf16.mxu0 %v14423_v27  ;;  %v14460_v52 = vld [vmem:[#allocation181_spill] sm:$0xff]  ;;  %v14463_v27 = vld [vmem:[#allocation184_spill] sm:$0xff] }
 0x4e2   :  { %7556 = vmatprep.subr.bf16.mxu1 %v14424_v3  ;;  %v14464_v3 = vld [vmem:[#allocation185_spill] sm:$0xff] }
 0x4e4   :  { %7198 = vmatpush1.bf16.msra.mxu0 %v14425_v33 }
 0x4e5   :  { %7558 = vmatpush1.bf16.msra.mxu1 %v14426_v16  ;;  %7200 = vmatprep.subr.bf16.mxu0 %v14427_v42 }
 0x4e6   :  { %7560 = vmatprep.subr.bf16.mxu1 %v14428_v25  ;;  %v14465_v25 = vld [vmem:[#allocation186_spill] sm:$0xff] }
 0x4e8   :  { %7202 = vmatpush1.bf16.msra.mxu0 %v14429_v12 }
 0x4e9   :  { %7562 = vmatpush1.bf16.msra.mxu1 %v14430_v58  ;;  %7204 = vmatprep.subr.bf16.mxu0 %v14431_v0  ;;  %v14466_v0 = vld [vmem:[#allocation187_spill] sm:$0xff] }
 0x4ea   :  { %7564 = vmatprep.subr.bf16.mxu1 %v14432_v62 }
 0x4ec   :  { %7206 = vmatpush1.bf16.msra.mxu0 %v14433_v19  ;;  %v14467_v19 = vld [vmem:[#allocation188_spill] sm:$0xff] }
 0x4ed   :  { %7566 = vmatpush1.bf16.msra.mxu1 %v14434_v50  ;;  %7208 = vmatprep.subr.bf16.mxu0 %v14435_v47  ;;  %v14468_v50 = vld [vmem:[#allocation189_spill] sm:$0xff] }
 0x4ee   :  { %7568 = vmatprep.subr.bf16.mxu1 %v14436_v54 }
 0x4f0   :  { %7210 = vmatpush1.bf16.msra.mxu0 %v14437_v26 }
 0x4f1   :  { %7570 = vmatpush1.bf16.msra.mxu1 %v14438_v36  ;;  %7212 = vmatprep.subr.bf16.mxu0 %v14439_v4  ;;  %v14469_v36 = vld [vmem:[#allocation190_spill] sm:$0xff] }
 0x4f2   :  { %7572 = vmatprep.subr.bf16.mxu1 %v14440_v23 }
 0x4f4   :  { %7214 = vmatpush1.bf16.msra.mxu0 %v14441_v24  ;;  %v14470_v24 = vld [vmem:[#allocation191_spill] sm:$0xff] }
 0x4f5   :  { %7574 = vmatpush1.bf16.msra.mxu1 %v14442_v7  ;;  %7216 = vmatprep.subr.bf16.mxu0 %v14443_v51  ;;  %v14471_v51 = vld [vmem:[#allocation192_spill] sm:$0xff] }
 0x4f6   :  { %7576 = vmatprep.subr.bf16.mxu1 %v14444_v21  ;;  %v14472_v21 = vld [vmem:[#allocation193_spill] sm:$0xff] }
 0x4f8   :  { %7218 = vmatpush1.bf16.msra.mxu0 %v14445_v13  ;;  %v14473_v13 = vld [vmem:[#allocation194_spill] sm:$0xff] }
 0x4f9   :  { %7578 = vmatpush1.bf16.msra.mxu1 %v14446_v34  ;;  %7220 = vmatprep.subr.bf16.mxu0 %v14447_v5  ;;  %v14474_v34 = vld [vmem:[#allocation195_spill] sm:$0xff]  ;;  %v14475_v5 = vld [vmem:[#allocation196_spill] sm:$0xff] }
 0x4fa   :  { %7580 = vmatprep.subr.bf16.mxu1 %v14448_v8  ;;  %v14476_v8 = vld [vmem:[#allocation197_spill] sm:$0xff] }
 0x4fb   :  { %3563 = vmatmul.mubr.f32.vlgmr.msra.gmra.mrb[20].mxu0 %v12390_v61 }
 0x4fc   :  { %4029 = vmatmul.mubr.f32.vlgmr.msra.gmra.mrb[20].mxu1 %v12390_v61  ;;  %3568 = vmatprep.mubr.f32.mxu0 %v3312_v1  ;;  %v14453_v61 = vld [vmem:[#allocation174_spill] sm:$0xff] }
 0x4fd   :  { %7222 = vmatpush1.bf16.msra.mxu0 %v14449_v41  ;;  %4034 = vmatprep.mubr.f32.mxu1 %v3312_v1  ;;  %v14477_v1 = vld [vmem:[#allocation198_spill] sm:$0xff]  ;;  %v14478_v41 = vld [vmem:[#allocation199_spill] sm:$0xff] }
 0x4fe   :  { %7582 = vmatpush1.bf16.msra.mxu1 %v14450_v17  ;;  %7224 = vmatprep.subr.bf16.mxu0 %v14451_v28  ;;  %v14479_v17 = vld [vmem:[#allocation200_spill] sm:$0xff]  ;;  %v14480_v28 = vld [vmem:[#allocation201_spill] sm:$0xff] }
 0x4ff   :  { %3569 = vmatmul.mubr.f32.gmra.mrb[22].mxu0 %v12400_v45  ;;  %7584 = vmatprep.subr.bf16.mxu1 %v14452_v11  ;;  %v14481_v11 = vld [vmem:[#allocation202_spill] sm:$0xff] }
 0x500   :  { %4035 = vmatmul.mubr.f32.gmra.mrb[22].mxu1 %v12400_v45  ;;  %3639 = vmatprep.mubr.f32.mxu0 %v3303_v57  ;;  %v14462_v45 = vld [vmem:[#allocation183_spill] sm:$0xff] }
 0x501   :  { %7226 = vmatpush1.bf16.msra.mxu0 %v14453_v61  ;;  %4105 = vmatprep.mubr.f32.mxu1 %v3303_v57  ;;  %v14482_v57 = vld [vmem:[#allocation203_spill] sm:$0xff]  ;;  %v14483_v61 = vld [vmem:[#allocation204_spill] sm:$0xff] }
 0x502   :  { %7586 = vmatpush1.bf16.msra.mxu1 %v14454_v48  ;;  %7228 = vmatprep.subr.bf16.mxu0 %v14455_v10  ;;  %v14484_v48 = vld [vmem:[#allocation205_spill] sm:$0xff]  ;;  %v14485_v10 = vld [vmem:[#allocation206_spill] sm:$0xff] }
 0x503   :  { %7588 = vmatprep.subr.bf16.mxu1 %v14456_v56  ;;  %v14486_v56 = vld [vmem:[#allocation207_spill] sm:$0xff] }
 0x505   :  { %7230 = vmatpush1.bf16.msra.mxu0 %v14457_v32  ;;  %v14487_v32 = vld [vmem:[#allocation208_spill] sm:$0xff] }
 0x506   :  { %7590 = vmatpush1.bf16.msra.mxu1 %v14458_v63  ;;  %7232 = vmatprep.subr.bf16.mxu0 %v14459_v30  ;;  %v14488_v63 = vld [vmem:[#allocation209_spill] sm:$0xff]  ;;  %v14489_v30 = vld [vmem:[#allocation210_spill] sm:$0xff] }
 0x507   :  { %7592 = vmatprep.subr.bf16.mxu1 %v14460_v52  ;;  %v14490_v52 = vld [vmem:[#allocation211_spill] sm:$0xff] }
 0x509   :  { %7234 = vmatpush1.bf16.msra.mxu0 %v14461_v6  ;;  %v14491_v6 = vld [vmem:[#allocation212_spill] sm:$0xff] }
 0x50a   :  { %7594 = vmatpush1.bf16.msra.mxu1 %v14462_v45  ;;  %7236 = vmatprep.subr.bf16.mxu0 %v14463_v27  ;;  %v14492_v45 = vld [vmem:[#allocation213_spill] sm:$0xff]  ;;  %v14493_v27 = vld [vmem:[#allocation214_spill] sm:$0xff] }
 0x50b   :  { %7596 = vmatprep.subr.bf16.mxu1 %v14464_v3  ;;  %v12660_v33 = vpop.f32.mrb[16].mxu0  ;;  %v14494_v3 = vld [vmem:[#allocation215_spill] sm:$0xff] }
 0x50c   :  { %v12662_v16 = vpop.f32.mrb[16].mxu1  ;;  %v12664_v42 = vpop.f32.mrb[17].mxu0 }
 0x50d   :  { %7238 = vmatpush1.bf16.msra.mxu0 %v14465_v25  ;;  %v3196_v12 = vmax.f32 %v12660_v33, %v12662_v16  ;;  %v12669_v58 = vpop.f32.mrb[17].mxu1  ;;  %v14495_v25 = vld [vmem:[#allocation216_spill] sm:$0xff] }
 0x50e   :  { %7598 = vmatpush1.bf16.msra.mxu1 %v14466_v0  ;;  %v3197_v62 = vmax.f32 %v12664_v42, %v12669_v58  ;;  %7240 = vmatprep.subr.bf16.mxu0 %v14467_v19  ;;  %v14496_v0 = vld [vmem:[#allocation217_spill] sm:$0xff]  ;;  %v14497_v19 = vld [vmem:[#allocation218_spill] sm:$0xff] }
 0x50f   :  { %7600 = vmatprep.subr.bf16.mxu1 %v14468_v50  ;;  %v12676_v47 = vpop.f32.mrb[18].mxu0  ;;  %v14498_v50 = vld [vmem:[#allocation219_spill] sm:$0xff] }
 0x510   :  { %v12678_v54 = vpop.f32.mrb[18].mxu1  ;;  %v12680_v26 = vpop.f32.mrb[19].mxu0 }
 0x511   :  { %7242 = vmatpush1.bf16.msra.mxu0 %v14469_v36  ;;  %v3198_v4 = vmax.f32 %v12676_v47, %v12678_v54  ;;  %v12685_v23 = vpop.f32.mrb[19].mxu1  ;;  %v14499_v36 = vld [vmem:[#allocation220_spill] sm:$0xff]  ;;  %v4532_v54 = vld [vmem:[%s13639_s3 + $0x128] sm:$0xff] }
 0x512   :  { %7602 = vmatpush1.bf16.msra.mxu1 %v14470_v24  ;;  %v3199_v7 = vmax.f32 %v12680_v26, %v12685_v23  ;;  %7244 = vmatprep.subr.bf16.mxu0 %v14471_v51  ;;  %v14500_v24 = vld [vmem:[#allocation221_spill] sm:$0xff]  ;;  %v14501_v51 = vld [vmem:[#allocation222_spill] sm:$0xff] }
 0x513   :  { %7604 = vmatprep.subr.bf16.mxu1 %v14472_v21  ;;  %v14502_v21 = vld [vmem:[#allocation223_spill] sm:$0xff]  ;;  %v4531_v47 = vld [vmem:[%s13639_s3 + $0x120] sm:$0xff] }
 0x514   :  { %v4517_v26 = vld [vmem:[%s13639_s3 + $0xb0] sm:$0xff]  ;;  %v7789_v23 = vpack.c.bf16 %v4532_v54, %v4531_v47  ;;  %v4523_v54 = vld [vmem:[%s13639_s3 + $0xe0] sm:$0xff] }
 0x515   :  { %7246 = vmatpush1.bf16.msra.mxu0 %v14473_v13  ;;  %v14503_v13 = vld [vmem:[#allocation224_spill] sm:$0xff] }
 0x516   :  { %7606 = vmatpush1.bf16.msra.mxu1 %v14474_v34  ;;  %7248 = vmatprep.subr.bf16.mxu0 %v14475_v5  ;;  %v14504_v34 = vld [vmem:[#allocation225_spill] sm:$0xff]  ;;  %v12724_v5 = vpop.permute.xlu0 %8070 }
 0x517   :  { %7608 = vmatprep.subr.bf16.mxu1 %v14476_v8  ;;  %v14505_v8 = vld [vmem:[#allocation226_spill] sm:$0xff] }
 0x519   :  { %7250 = vmatpush1.bf16.msra.mxu0 %v14477_v1  ;;  %v14506_v1 = vld [vmem:[#allocation227_spill] sm:$0xff] }
 0x51a   :  { %7610 = vmatpush1.bf16.msra.mxu1 %v14478_v41  ;;  %7252 = vmatprep.subr.bf16.mxu0 %v14479_v17  ;;  %v14507_v41 = vld [vmem:[#allocation228_spill] sm:$0xff]  ;;  %v14508_v17 = vld [vmem:[#allocation229_spill] sm:$0xff] }
 0x51b   :  { %7612 = vmatprep.subr.bf16.mxu1 %v14480_v28  ;;  %v8073_v28 = vunpack.i.h.bf16 %v12724_v5 }
 0x51d   :  { %7254 = vmatpush1.bf16.msra.mxu0 %v14481_v11  ;;  %v8072_v11 = vunpack.i.l.bf16 %v12724_v5  ;;  %v14577_v5 = vld [vmem:[#allocation298_spill] sm:$0xff] }
 0x51e   :  { %7614 = vmatpush1.bf16.msra.mxu1 %v14482_v57  ;;  %7256 = vmatprep.subr.bf16.mxu0 %v14483_v61  ;;  %v12732_v57 = vpop.permute.xlu1 %8075  ;;  %v14509_v61 = vld [vmem:[#allocation230_spill] sm:$0xff] }
 0x51f   :  { %7616 = vmatprep.subr.bf16.mxu1 %v14484_v48  ;;  %v14510_v48 = vld [vmem:[#allocation231_spill] sm:$0xff] }
 0x521   :  { %7258 = vmatpush1.bf16.msra.mxu0 %v14485_v10  ;;  %v14511_v10 = vld [vmem:[#allocation232_spill] sm:$0xff] }
 0x522   :  { %7618 = vmatpush1.bf16.msra.mxu1 %v14486_v56  ;;  %7260 = vmatprep.subr.bf16.mxu0 %v14487_v32  ;;  %v14512_v56 = vld [vmem:[#allocation233_spill] sm:$0xff]  ;;  %v8078_v32 = vunpack.i.h.bf16 %v12732_v57 }
 0x523   :  { %7620 = vmatprep.subr.bf16.mxu1 %v14488_v63  ;;  %v8077_v63 = vunpack.i.l.bf16 %v12732_v57 }
 0x525   :  { %7262 = vmatpush1.bf16.msra.mxu0 %v14489_v30  ;;  %v3314_v30 = vsel %vm426_vm13, %v8072_v11, %v8073_v28 }
 0x526   :  { %7622 = vmatpush1.bf16.msra.mxu1 %v14490_v52  ;;  %7264 = vmatprep.subr.bf16.mxu0 %v14491_v6  ;;  %v14513_v52 = vld [vmem:[#allocation234_spill] sm:$0xff]  ;;  %v14514_v6 = vld [vmem:[#allocation235_spill] sm:$0xff] }
 0x527   :  { %7624 = vmatprep.subr.bf16.mxu1 %v14492_v45  ;;  %v3313_v45 = vsel %vm426_vm13, %v8063_v43, %v8072_v11  ;;  %v14520_v43 = vld [vmem:[#allocation241_spill] sm:$0xff]  ;;  %v14533_v11 = vld [vmem:[#allocation254_spill] sm:$0xff] }
 0x529   :  { %7266 = vmatpush1.bf16.msra.mxu0 %v14493_v27  ;;  %v14515_v27 = vld [vmem:[#allocation236_spill] sm:$0xff] }
 0x52a   :  { %7626 = vmatpush1.bf16.msra.mxu1 %v14494_v3  ;;  %7268 = vmatprep.subr.bf16.mxu0 %v14495_v25  ;;  %v14516_v3 = vld [vmem:[#allocation237_spill] sm:$0xff]  ;;  %v14517_v25 = vld [vmem:[#allocation238_spill] sm:$0xff] }
 0x52b   :  { %7628 = vmatprep.subr.bf16.mxu1 %v14496_v0  ;;  %v14518_v0 = vld [vmem:[#allocation239_spill] sm:$0xff] }
 0x52d   :  { %7270 = vmatpush1.bf16.msra.mxu0 %v14497_v19  ;;  %v14521_v19 = vld [vmem:[#allocation242_spill] sm:$0xff] }
 0x52e   :  { %7630 = vmatpush1.bf16.msra.mxu1 %v14498_v50  ;;  %7272 = vmatprep.subr.bf16.mxu0 %v14499_v36  ;;  %v14522_v50 = vld [vmem:[#allocation243_spill] sm:$0xff]  ;;  %v14523_v36 = vld [vmem:[#allocation244_spill] sm:$0xff] }
 0x52f   :  { %7632 = vmatprep.subr.bf16.mxu1 %v14500_v24  ;;  %v14524_v24 = vld [vmem:[#allocation245_spill] sm:$0xff] }
 0x531   :  { %7274 = vmatpush1.bf16.msra.mxu0 %v14501_v51  ;;  %v14525_v51 = vld [vmem:[#allocation246_spill] sm:$0xff] }
 0x532   :  { %7634 = vmatpush1.bf16.msra.mxu1 %v14502_v21  ;;  %7276 = vmatprep.subr.bf16.mxu0 %v14503_v13  ;;  %v14526_v21 = vld [vmem:[#allocation247_spill] sm:$0xff]  ;;  %v14527_v13 = vld [vmem:[#allocation248_spill] sm:$0xff] }
 0x533   :  { %7636 = vmatprep.subr.bf16.mxu1 %v14504_v34  ;;  %v14528_v34 = vld [vmem:[#allocation249_spill] sm:$0xff] }
 0x535   :  { %7278 = vmatpush1.bf16.msra.mxu0 %v14505_v8  ;;  %v14529_v8 = vld [vmem:[#allocation250_spill] sm:$0xff] }
 0x536   :  { %7638 = vmatpush1.bf16.msra.mxu1 %v14506_v1  ;;  %7280 = vmatprep.subr.bf16.mxu0 %v14507_v41  ;;  %v14530_v1 = vld [vmem:[#allocation251_spill] sm:$0xff]  ;;  %v14531_v41 = vld [vmem:[#allocation252_spill] sm:$0xff] }
 0x537   :  { %7640 = vmatprep.subr.bf16.mxu1 %v14508_v17  ;;  %v14532_v17 = vld [vmem:[#allocation253_spill] sm:$0xff] }
 0x539   :  { %7282 = vmatpush1.bf16.msra.mxu0 %v14509_v61  ;;  %v14538_v61 = vld [vmem:[#allocation259_spill] sm:$0xff] }
 0x53a   :  { %7642 = vmatpush1.bf16.msra.mxu1 %v14510_v48  ;;  %7284 = vmatprep.subr.bf16.mxu0 %v14511_v10  ;;  %v14539_v48 = vld [vmem:[#allocation260_spill] sm:$0xff]  ;;  %v14540_v10 = vld [vmem:[#allocation261_spill] sm:$0xff] }
 0x53b   :  { %7644 = vmatprep.subr.bf16.mxu1 %v14512_v56  ;;  %v14541_v56 = vld [vmem:[#allocation262_spill] sm:$0xff] }
 0x53c   :  { %3640 = vmatmul.mubr.f32.vlgmr.msra.gmra.mrb[20].mxu0 %v12422_v29 }
 0x53d   :  { %4106 = vmatmul.mubr.f32.vlgmr.msra.gmra.mrb[20].mxu1 %v12422_v29  ;;  %3645 = vmatprep.mubr.f32.mxu0 %v3314_v30  ;;  %v3305_v29 = vsel %vm426_vm13, %v8077_v63, %v8078_v32 }
 0x53e   :  { %7286 = vmatpush1.bf16.msra.mxu0 %v14513_v52  ;;  %4111 = vmatprep.mubr.f32.mxu1 %v3314_v30  ;;  %v14545_v30 = vld [vmem:[#allocation266_spill] sm:$0xff]  ;;  %v14546_v52 = vld [vmem:[#allocation267_spill] sm:$0xff] }
 0x53f   :  { %7646 = vmatpush1.bf16.msra.mxu1 %v14514_v6  ;;  %7288 = vmatprep.subr.bf16.mxu0 %v14515_v27  ;;  %v14547_v6 = vld [vmem:[#allocation268_spill] sm:$0xff]  ;;  %v14549_v27 = vld [vmem:[#allocation270_spill] sm:$0xff] }
 0x540   :  { %3646 = vmatmul.mubr.f32.gmra.mrb[22].mxu0 %v3313_v45  ;;  %7648 = vmatprep.subr.bf16.mxu1 %v14516_v3  ;;  %v14550_v3 = vld [vmem:[#allocation271_spill] sm:$0xff] }
 0x541   :  { %4112 = vmatmul.mubr.f32.gmra.mrb[22].mxu1 %v3313_v45  ;;  %3716 = vmatprep.mubr.f32.mxu0 %v3305_v29  ;;  %v14548_v45 = vld [vmem:[#allocation269_spill] sm:$0xff] }
 0x542   :  { %7290 = vmatpush1.bf16.msra.mxu0 %v14517_v25  ;;  %4182 = vmatprep.mubr.f32.mxu1 %v3305_v29  ;;  %v14551_v29 = vld [vmem:[#allocation272_spill] sm:$0xff]  ;;  %v14552_v25 = vld [vmem:[#allocation273_spill] sm:$0xff] }
 0x543   :  { %7650 = vmatpush1.bf16.msra.mxu1 %v14518_v0  ;;  %7292 = vmatprep.subr.bf16.mxu0 %v14519_v31  ;;  %v14553_v0 = vld [vmem:[#allocation274_spill] sm:$0xff]  ;;  %v14554_v31 = vld [vmem:[#allocation275_spill] sm:$0xff] }
 0x544   :  { %7652 = vmatprep.subr.bf16.mxu1 %v14520_v43  ;;  %v14555_v43 = vld [vmem:[#allocation276_spill] sm:$0xff] }
 0x546   :  { %7294 = vmatpush1.bf16.msra.mxu0 %v14521_v19  ;;  %v14556_v19 = vld [vmem:[#allocation277_spill] sm:$0xff] }
 0x547   :  { %7654 = vmatpush1.bf16.msra.mxu1 %v14522_v50  ;;  %7296 = vmatprep.subr.bf16.mxu0 %v14523_v36  ;;  %v14557_v50 = vld [vmem:[#allocation278_spill] sm:$0xff]  ;;  %v14558_v36 = vld [vmem:[#allocation279_spill] sm:$0xff] }
 0x548   :  { %7656 = vmatprep.subr.bf16.mxu1 %v14524_v24  ;;  %v14559_v24 = vld [vmem:[#allocation280_spill] sm:$0xff] }
 0x54a   :  { %7298 = vmatpush1.bf16.msra.mxu0 %v14525_v51  ;;  %v14560_v51 = vld [vmem:[#allocation281_spill] sm:$0xff] }
 0x54b   :  { %7658 = vmatpush1.bf16.msra.mxu1 %v14526_v21  ;;  %7300 = vmatprep.subr.bf16.mxu0 %v14527_v13  ;;  %v14561_v21 = vld [vmem:[#allocation282_spill] sm:$0xff]  ;;  %v12809_v13 = vpop.permute.xlu0 %8080 }
 0x54c   :  { %7660 = vmatprep.subr.bf16.mxu1 %v14528_v34  ;;  %v14562_v34 = vld [vmem:[#allocation283_spill] sm:$0xff] }
 0x54e   :  { %7302 = vmatpush1.bf16.msra.mxu0 %v11547_v9  ;;  %v14534_v9 = vld [vmem:[#allocation255_spill] sm:$0xff] }
 0x54f   :  { %7662 = vmatpush1.bf16.msra.mxu1 %v14529_v8  ;;  %7304 = vmatprep.subr.bf16.mxu0 %v11558_v59  ;;  %v14535_v59 = vld [vmem:[#allocation256_spill] sm:$0xff] }
 0x550   :  { %7664 = vmatprep.subr.bf16.mxu1 %v11570_v22  ;;  %v14536_v22 = vld [vmem:[#allocation257_spill] sm:$0xff]  ;;  %v14563_v8 = vld [vmem:[#allocation284_spill] sm:$0xff] }
 0x552   :  { %7306 = vmatpush1.bf16.msra.mxu0 %v11589_v55  ;;  %v14537_v55 = vld [vmem:[#allocation258_spill] sm:$0xff] }
 0x553   :  { %7666 = vmatpush1.bf16.msra.mxu1 %v14530_v1  ;;  %7308 = vmatprep.subr.bf16.mxu0 %v14531_v41  ;;  %v14564_v1 = vld [vmem:[#allocation285_spill] sm:$0xff]  ;;  %v14565_v41 = vld [vmem:[#allocation286_spill] sm:$0xff] }
 0x554   :  { %7668 = vmatprep.subr.bf16.mxu1 %v14532_v17  ;;  %v8083_v17 = vunpack.i.h.bf16 %v12809_v13 }
 0x556   :  { %7310 = vmatpush1.bf16.msra.mxu0 %v14533_v11  ;;  %v8082_v11 = vunpack.i.l.bf16 %v12809_v13  ;;  %v4527_v13 = vld [vmem:[%s13639_s3 + $0x100] sm:$0xff] }
 0x557   :  { %7670 = vmatpush1.bf16.msra.mxu1 %v11631_v39  ;;  %7312 = vmatprep.subr.bf16.mxu0 %v11641_v2  ;;  %v14542_v39 = vld [vmem:[#allocation263_spill] sm:$0xff]  ;;  %v14543_v2 = vld [vmem:[#allocation264_spill] sm:$0xff] }
 0x558   :  { %7672 = vmatprep.subr.bf16.mxu1 %v11654_v46  ;;  %v14544_v46 = vld [vmem:[#allocation265_spill] sm:$0xff]  ;;  %v3315_v40 = vsel %vm426_vm13, %v8073_v28, %v8082_v11  ;;  %v14578_v28 = vld [vmem:[#allocation299_spill] sm:$0xff] }
 0x55a   :  { %7314 = vmatpush1.bf16.msra.mxu0 %v14534_v9  ;;  %v14566_v9 = vld [vmem:[#allocation287_spill] sm:$0xff] }
 0x55b   :  { %7674 = vmatpush1.bf16.msra.mxu1 %v14535_v59  ;;  %7316 = vmatprep.subr.bf16.mxu0 %v14536_v22  ;;  %v14567_v59 = vld [vmem:[#allocation288_spill] sm:$0xff]  ;;  %v14568_v22 = vld [vmem:[#allocation289_spill] sm:$0xff] }
 0x55c   :  { %7676 = vmatprep.subr.bf16.mxu1 %v14537_v55  ;;  %v3304_v55 = vsel %vm426_vm13, %v8068_v49, %v8077_v63  ;;  %v3271_v49 = vpop.permute.xlu1 %3270  ;;  %v14573_v63 = vld [vmem:[#allocation294_spill] sm:$0xff] }
 0x55e   :  { %7318 = vmatpush1.bf16.msra.mxu0 %v14538_v61  ;;  %v14569_v61 = vld [vmem:[#allocation290_spill] sm:$0xff] }
 0x55f   :  { %7678 = vmatpush1.bf16.msra.mxu1 %v14539_v48  ;;  %7320 = vmatprep.subr.bf16.mxu0 %v14540_v10  ;;  %v3316_v48 = vsel %vm426_vm13, %v8082_v11, %v8083_v17  ;;  %v14570_v10 = vld [vmem:[#allocation291_spill] sm:$0xff] }
 0x560   :  { %7680 = vmatprep.subr.bf16.mxu1 %v14541_v56  ;;  %v14571_v56 = vld [vmem:[#allocation292_spill] sm:$0xff] }
 0x562   :  { %7322 = vmatpush1.bf16.msra.mxu0 %v14542_v39  ;;  %v14572_v39 = vld [vmem:[#allocation293_spill] sm:$0xff] }
 0x563   :  { %7682 = vmatpush1.bf16.msra.mxu1 %v14543_v2  ;;  %7324 = vmatprep.subr.bf16.mxu0 %v14544_v46  ;;  %v14574_v2 = vld [vmem:[#allocation295_spill] sm:$0xff]  ;;  %v14575_v46 = vld [vmem:[#allocation296_spill] sm:$0xff] }
 0x564   :  { %7684 = vmatprep.subr.bf16.mxu1 %v14545_v30  ;;  %v14576_v30 = vld [vmem:[#allocation297_spill] sm:$0xff] }
 0x566   :  { %7326 = vmatpush1.bf16.msra.mxu0 %v14546_v52  ;;  %v14579_v52 = vld [vmem:[#allocation300_spill] sm:$0xff] }
 0x567   :  { %7686 = vmatpush1.bf16.msra.mxu1 %v14547_v6  ;;  %7328 = vmatprep.subr.bf16.mxu0 %v14548_v45  ;;  %v14580_v6 = vld [vmem:[#allocation301_spill] sm:$0xff]  ;;  %v14581_v45 = vld [vmem:[#allocation302_spill] sm:$0xff] }
 0x568   :  { %7688 = vmatprep.subr.bf16.mxu1 %v14549_v27  ;;  %v14582_v27 = vld [vmem:[#allocation303_spill] sm:$0xff] }
 0x56a   :  { %7330 = vmatpush1.bf16.msra.mxu0 %v14550_v3  ;;  %v14583_v3 = vld [vmem:[#allocation304_spill] sm:$0xff] }
 0x56b   :  { %7690 = vmatpush1.bf16.msra.mxu1 %v14551_v29  ;;  %7332 = vmatprep.subr.bf16.mxu0 %v14552_v25  ;;  %v14584_v29 = vld [vmem:[#allocation305_spill] sm:$0xff]  ;;  %v14585_v25 = vld [vmem:[#allocation306_spill] sm:$0xff] }
 0x56c   :  { %7692 = vmatprep.subr.bf16.mxu1 %v14553_v0  ;;  %v14586_v0 = vld [vmem:[#allocation307_spill] sm:$0xff] }
 0x56e   :  { %7334 = vmatpush1.bf16.msra.mxu0 %v14554_v31  ;;  %v14587_v31 = vld [vmem:[#allocation308_spill] sm:$0xff] }
 0x56f   :  { %7694 = vmatpush1.bf16.msra.mxu1 %v14555_v43  ;;  %7336 = vmatprep.subr.bf16.mxu0 %v14556_v19  ;;  %v14588_v43 = vld [vmem:[#allocation309_spill] sm:$0xff]  ;;  %v14589_v19 = vld [vmem:[#allocation310_spill] sm:$0xff] }
 0x570   :  { %7696 = vmatprep.subr.bf16.mxu1 %v14557_v50  ;;  %v14590_v50 = vld [vmem:[#allocation311_spill] sm:$0xff] }
 0x572   :  { %7338 = vmatpush1.bf16.msra.mxu0 %v14558_v36  ;;  %v14591_v36 = vld [vmem:[#allocation312_spill] sm:$0xff] }
 0x573   :  { %7698 = vmatpush1.bf16.msra.mxu1 %v14559_v24  ;;  %7340 = vmatprep.subr.bf16.mxu0 %v14560_v51  ;;  %v14592_v24 = vld [vmem:[#allocation313_spill] sm:$0xff]  ;;  %v14593_v51 = vld [vmem:[#allocation314_spill] sm:$0xff] }
 0x574   :  { %7700 = vmatprep.subr.bf16.mxu1 %v14561_v21  ;;  %v14594_v21 = vld [vmem:[#allocation315_spill] sm:$0xff] }
 0x576   :  { %7342 = vmatpush1.bf16.msra.mxu0 %v14562_v34  ;;  %v14595_v34 = vld [vmem:[#allocation316_spill] sm:$0xff] }
 0x577   :  { %7702 = vmatpush1.bf16.msra.mxu1 %v14563_v8  ;;  %7344 = vmatprep.subr.bf16.mxu0 %v14564_v1  ;;  %v14596_v8 = vld [vmem:[#allocation317_spill] sm:$0xff]  ;;  %v14597_v1 = vld [vmem:[#allocation318_spill] sm:$0xff] }
 0x578   :  { %7704 = vmatprep.subr.bf16.mxu1 %v14565_v41  ;;  %v4528_v41 = vld [vmem:[%s13639_s3 + $0x108] sm:$0xff] }
 0x579   :  { %v7781_v11 = vpack.c.bf16 %v4528_v41, %v4527_v13  ;;  %v4501_v13 = vld [vmem:[%s13639_s3 + $0x30] sm:$0xff]  ;;  %v4502_v41 = vld [vmem:[%s13639_s3 + $0x38] sm:$0xff] }
 0x57a   :  { %7346 = vmatpush1.bf16.msra.mxu0 %v14566_v9  ;;  %v4514_v9 = vld [vmem:[%s13639_s3 + $0x98] sm:$0xff] }
 0x57b   :  { %7706 = vmatpush1.bf16.msra.mxu1 %v14567_v59  ;;  %7348 = vmatprep.subr.bf16.mxu0 %v14568_v22  ;;  %v4497_v59 = vld [vmem:[%s13639_s3 + $0x10] sm:$0xff]  ;;  %v4498_v22 = vld [vmem:[%s13639_s3 + $0x18] sm:$0xff] }
 0x57c   :  { %7708 = vmatprep.subr.bf16.mxu1 %v14569_v61  ;;  %v7753_v61 = vpack.c.bf16 %v4498_v22, %v4497_v59  ;;  %v4550_v59 = vld [vmem:[%s13639_s3 + $0x1b8] sm:$0xff] }
 0x57d   :  { %3717 = vmatmul.mubr.f32.vlgmr.msra.gmra.mrb[20].mxu0 %v3304_v55 }
 0x57e   :  { %4183 = vmatmul.mubr.f32.vlgmr.msra.gmra.mrb[20].mxu1 %v3304_v55  ;;  %3722 = vmatprep.mubr.f32.mxu0 %v3316_v48 }
 0x57f   :  { %7350 = vmatpush1.bf16.msra.mxu0 %v14570_v10  ;;  %4188 = vmatprep.mubr.f32.mxu1 %v3316_v48  ;;  %v4545_v48 = vld [vmem:[%s13639_s3 + $0x190] sm:$0xff]  ;;  %v4546_v10 = vld [vmem:[%s13639_s3 + $0x198] sm:$0xff] }
 0x580   :  { %7710 = vmatpush1.bf16.msra.mxu1 %v14571_v56  ;;  %7352 = vmatprep.subr.bf16.mxu0 %v14572_v39  ;;  %v4529_v56 = vld [vmem:[%s13639_s3 + $0x110] sm:$0xff]  ;;  %v4530_v39 = vld [vmem:[%s13639_s3 + $0x118] sm:$0xff] }
 0x581   :  { %3723 = vmatmul.mubr.f32.gmra.mrb[22].mxu0 %v3315_v40  ;;  %7712 = vmatprep.subr.bf16.mxu1 %v14573_v63  ;;  %v4516_v63 = vld [vmem:[%s13639_s3 + $0xa8] sm:$0xff] }
 0x582   :  { %4189 = vmatmul.mubr.f32.gmra.mrb[22].mxu1 %v3315_v40  ;;  %5754 = vmatprep.mubr.msk.f32.mxu0 %vm148_vm12, %v3271_v49  ;;  %v7783_v40 = vpack.c.bf16 %v4546_v10, %v4545_v48  ;;  %v4533_v10 = vld [vmem:[%s13639_s3 + $0x130] sm:$0xff] }
 0x583   :  { %7354 = vmatpush1.bf16.msra.mxu0 %v14574_v2  ;;  %5756 = vmatprep.mubr.msk.f32.mxu1 %vm148_vm12, %v3271_v49  ;;  %v7785_v2 = vpack.c.bf16 %v4530_v39, %v4529_v56  ;;  %v4534_v56 = vld [vmem:[%s13639_s3 + $0x138] sm:$0xff]  ;;  %v4557_v39 = vld [vmem:[%s13639_s3 + $0x1f0] sm:$0xff] }
 0x584   :  { %7714 = vmatpush1.bf16.msra.mxu1 %v14575_v46  ;;  %7356 = vmatprep.subr.bf16.mxu0 %v14576_v30  ;;  %v4499_v30 = vld [vmem:[%s13639_s3 + $0x20] sm:$0xff] }
 0x585   :  { %7716 = vmatprep.subr.bf16.mxu1 %v14577_v5  ;;  %v4500_v5 = vld [vmem:[%s13639_s3 + $0x28] sm:$0xff] }
 0x587   :  { %7358 = vmatpush1.bf16.msra.mxu0 %v14578_v28  ;;  %v4547_v28 = vld [vmem:[%s13639_s3 + $0x1a0] sm:$0xff] }
 0x588   :  { %7718 = vmatpush1.bf16.msra.mxu1 %v14579_v52  ;;  %7360 = vmatprep.subr.bf16.mxu0 %v14580_v6  ;;  %v4548_v52 = vld [vmem:[%s13639_s3 + $0x1a8] sm:$0xff]  ;;  %v7757_v6 = vpack.c.bf16 %v4500_v5, %v4499_v30 }
 0x589   :  { %7720 = vmatprep.subr.bf16.mxu1 %v14581_v45  ;;  %v7787_v45 = vpack.c.bf16 %v4548_v52, %v4547_v28  ;;  %v4503_v52 = vld [vmem:[%s13639_s3 + $0x40] sm:$0xff] }
 0x58b   :  { %7362 = vmatpush1.bf16.msra.mxu0 %v14582_v27  ;;  %v1520_v27 = vld [vmem:[%s13641_s5] sm:$0x3] }
 0x58c   :  { %7722 = vmatpush1.bf16.msra.mxu1 %v14583_v3  ;;  %7364 = vmatprep.subr.bf16.mxu0 %v14584_v29  ;;  %v8115_v3 = vmov 1966171168  }
 0x58d   :  { %7724 = vmatprep.subr.bf16.mxu1 %v14585_v25  ;;  %v4299_v29 = vunpack.c.l.s4 %v8115_v3 }
 0x58f   :  { %7366 = vmatpush1.bf16.msra.mxu0 %v14586_v0 }
 0x590   :  { %7726 = vmatpush1.bf16.msra.mxu1 %v14587_v31  ;;  %7368 = vmatprep.subr.bf16.mxu0 %v14588_v43  ;;  %v14598_v43 = vld [vmem:[#allocation16_spill] sm:$0xff] }
 0x591   :  { %7728 = vmatprep.subr.bf16.mxu1 %v14589_v19  ;;  %v14599_v19 = vsub.s32 0, %v14598_v43 }
 0x593   :  { %7370 = vmatpush1.bf16.msra.mxu0 %v14590_v50  ;;  %v4280_v50 = vrot.slane %v1520_v27, %v14599_v19 }
 0x594   :  { %7730 = vmatpush1.bf16.msra.mxu1 %v14591_v36  ;;  %7372 = vmatprep.subr.bf16.mxu0 %v14592_v24 }
 0x595   :  { %7732 = vmatprep.subr.bf16.mxu1 %v14593_v51 }
 0x597   :  { %7374 = vmatpush1.bf16.msra.mxu0 %v14594_v21  ;;  %v14600_v21 = vsub.s32 1, %v14598_v43 }
 0x598   :  { %7734 = vmatpush1.bf16.msra.mxu1 %v14595_v34  ;;  %7376 = vmatprep.subr.bf16.mxu0 %v14596_v8 }
 0x599   :  { %7736 = vmatprep.subr.bf16.mxu1 %v14597_v1  ;;  %v4284_v34 = vrot.slane %v1520_v27, %v14600_v21  ;;  %v4300_v1 = vunpack.c.0.s8 %v4299_v29  ;;  %v4521_v21 = vld [vmem:[%s13639_s3 + $0xd0] sm:$0xff] }
 0x59b   :  { %7378 = vmatpush1.bf16.msra.mxu0 %v12253_v53  ;;  %v3295_v53 = vpop.permute.xlu0 %3294 }
 0x59c   :  { %7738 = vmatpush1.bf16.msra.mxu1 %v12257_v44  ;;  %7380 = vmatprep.subr.bf16.mxu0 %v12259_v15  ;;  %v3306_v44 = vsel %vm426_vm13, %v8078_v32, %v3271_v49  ;;  %v3317_v15 = vsel %vm426_vm13, %v8083_v17, %v3295_v53  ;;  %v4513_v17 = vld [vmem:[%s13639_s3 + $0x90] sm:$0xff]  ;;  %v4515_v49 = vld [vmem:[%s13639_s3 + $0xa0] sm:$0xff] }
 0x59d   :  { %7740 = vmatprep.subr.bf16.mxu1 %v12271_v60  ;;  %v4495_v60 = vld [vmem:[%s13639_s3] sm:$0xff]  ;;  %v7751_v55 = vpack.c.bf16 %v4514_v9, %v4513_v17  ;;  %v7755_v46 = vpack.c.bf16 %v4516_v63, %v4515_v49  ;;  %v4549_v17 = vld [vmem:[%s13639_s3 + $0x1b0] sm:$0xff]  ;;  %v7761_v9 = vpack.c.bf16 %v4502_v41, %v4501_v13  ;;  %v7793_v49 = vpack.c.bf16 %v4534_v56, %v4533_v10  ;;  %v4510_v56 = vld [vmem:[%s13639_s3 + $0x78] sm:$0xff] }
 0x59e   :  { %v7791_v48 = vpack.c.bf16 %v4550_v59, %v4549_v17  ;;  %v4519_v63 = vld [vmem:[%s13639_s3 + $0xc0] sm:$0xff]  ;;  %v4509_v10 = vld [vmem:[%s13639_s3 + $0x70] sm:$0xff] }
 0x59f   :  { %7382 = vmatpush1.bf16.msra.mxu0 %v12289_v35  ;;  %v4539_v17 = vld [vmem:[%s13639_s3 + $0x160] sm:$0xff] }
 0x5a0   :  { %7742 = vmatpush1.bf16.msra.mxu1 %v12293_v38  ;;  %7384 = vmatprep.subr.bf16.mxu0 %v12295_v14  ;;  %v4511_v14 = vld [vmem:[%s13639_s3 + $0x80] sm:$0xff]  ;;  %v4512_v38 = vld [vmem:[%s13639_s3 + $0x88] sm:$0xff] }
 0x5a1   :  { %7744 = vmatprep.subr.bf16.mxu1 %v12304_v20  ;;  %v7747_v35 = vpack.c.bf16 %v4512_v38, %v4511_v14  ;;  %v4496_v20 = vld [vmem:[%s13639_s3 + $0x8] sm:$0xff] }
 0x5a2   :  { %v7749_v57 = vpack.c.bf16 %v4496_v20, %v4495_v60  ;;  %v12966_v60 = vsub.s32 %v4300_v1, %v14598_v43 }
 0x5a3   :  { %7386 = vmatpush1.bf16.msra.mxu0 %v12313_v37  ;;  %v4543_v37 = vld [vmem:[%s13639_s3 + $0x180] sm:$0xff] }
 0x5a4   :  { %7746 = vmatpush1.bf16.msra.mxu1 %v12317_v18  ;;  %v4544_v18 = vld [vmem:[%s13639_s3 + $0x188] sm:$0xff]  ;;  %7748 = vmatprep.subr.bf16.mxu0 %v7747_v35 }
 0x5a5   :  { %v7779_v32 = vpack.c.bf16 %v4544_v18, %v4543_v37 }
 0x5a6   :  { %3794 = vmatmul.mubr.f32.vlgmr.msra.gmra.mrb[20].mxu0 %v3306_v44 }
 0x5a7   :  { %4260 = vmatmul.mubr.f32.vlgmr.msra.gmra.mrb[20].mxu1 %v3306_v44  ;;  %5755 = vmatprep.mubr.msk.f32.mxu0 %vm148_vm12, %v3295_v53 }
 0x5a8   :  { %5757 = vmatprep.mubr.msk.f32.mxu1 %vm148_vm12, %v3295_v53  ;;  %7750 = vmatpush3.bf16.msra.mxu0 %v7749_v57 }
 0x5a9   :  { %7780 = vmatprep.subr.bf16.mxu1 %v7779_v32  ;;  %7752 = vmatprep.subr.bf16.mxu0 %v7751_v55 }
 0x5aa   :  { %3800 = vmatmul.mubr.f32.gmra.mrb[22].mxu0 %v3317_v15  ;;  %7782 = vmatpush3.bf16.msra.mxu1 %v7781_v11 }
 0x5ab   :  { %4266 = vmatmul.mubr.f32.gmra.mrb[22].mxu1 %v3317_v15  ;;  %7784 = vmatprep.subr.bf16.mxu1 %v7783_v40  ;;  %v14601_v40 = vlaneseq }
 0x5ac   :  { %7754 = vmatpush3.bf16.msra.mxu0 %v7753_v61 }
 0x5ad   :  { %7756 = vmatprep.subr.bf16.mxu0 %v7755_v46  ;;  %vm13001_vm8 = vcmp.lt.s32.totalorder %v14601_v40, 224  ;;  %vm4331_vm15 = vcmp.ge.s32.totalorder %v14601_v40, 96  ;;  %vm4332_vm3 = vcmp.lt.s32.totalorder %v14601_v40, 320  ;;  %vm4342_vm6 = vcmp.ge.s32.totalorder %v14601_v40, 64 }
 0x5ae   :  { %7786 = vmatpush3.bf16.msra.mxu1 %v7785_v2  ;;  %v4520_v2 = vld [vmem:[%s13639_s3 + $0xc8] sm:$0xff]  ;;  %vm13156_vm4 = vmand %vm4331_vm15, %vm4332_vm3  ;;  %vm4343_vm0 = vcmp.lt.s32.totalorder %v14601_v40, 288  ;;  %vm13173_vm2 = vcmp.ge.s32.totalorder %v14601_v40, 32  ;;  %vm13178_vm9 = vcmp.lt.s32.totalorder %v14601_v40, 256 }
 0x5af   :  { %7788 = vmatprep.subr.bf16.mxu1 %v7787_v45  ;;  %v4551_v45 = vld [vmem:[%s13639_s3 + $0x1c0] sm:$0xff]  ;;  %v7763_v29 = vpack.c.bf16 %v4520_v2, %v4519_v63  ;;  %v4558_v63 = vld [vmem:[%s13639_s3 + $0x1f8] sm:$0xff]  ;;  %v4541_v2 = vld [vmem:[%s13639_s3 + $0x170] sm:$0xff] }
 0x5b0   :  { %7758 = vmatpush3.bf16.msra.mxu0 %v7757_v6  ;;  %v4504_v6 = vld [vmem:[%s13639_s3 + $0x48] sm:$0xff]  ;;  %vm13166_vm1 = vmand %vm4342_vm6, %vm4343_vm0 }
 0x5b1   :  { %vm4355_vm10 = vmand %vm13173_vm2, %vm13178_vm9 }
 0x5b2   :  { %7790 = vmatpush3.bf16.msra.mxu1 %v7789_v23 }
 0x5b3   :  { %7792 = vmatprep.subr.bf16.mxu1 %v7791_v48 }
 0x5b6   :  { %7794 = vmatpush3.bf16.msra.mxu1 %v7793_v49  ;;  %v7777_v49 = vpack.c.bf16 %v4510_v56, %v4509_v10  ;;  %v4592_v10 = vld [vmem:[%s13639_s3 + $0x308] sm:$0xff] }
 0x679   :  { %v3795_v25 = vpop.f32.mrb[20].mxu0 }
 0x67a   :  { %v3806_v0 = vmax.f32 %v3196_v12, %v3795_v25  ;;  %v4261_v31 = vpop.f32.mrb[20].mxu1  ;;  %v3797_v36 = vpop.f32.mrb[21].mxu0  ;;  %v7765_v25 = vpack.c.bf16 %v4504_v6, %v4503_v52 }
 0x67b   :  { %v3807_v24 = vmax.f32 %v3197_v62, %v3797_v36  ;;  %v4263_v51 = vpop.f32.mrb[21].mxu1  ;;  %v4536_v36 = vld [vmem:[%s13639_s3 + $0x148] sm:$0xff] }
 0x67c   :  { %v4272_v8 = vmax.f32 %v3806_v0, %v4261_v31  ;;  %v4552_v0 = vld [vmem:[%s13639_s3 + $0x1c8] sm:$0xff] }
 0x67d   :  { %v4273_v44 = vmax.f32 %v3807_v24, %v4263_v51  ;;  %v3801_v53 = vpop.f32.mrb[22].mxu0  ;;  %v7795_v51 = vpack.c.bf16 %v4552_v0, %v4551_v45  ;;  %v4607_v45 = vld [vmem:[%s13639_s3 + $0x380] sm:$0xff] }
 0x67e   :  { %v4287_v15 = vadd.f32 %v4280_v50, %v4272_v8  ;;  %v3808_v33 = vmax.f32 %v3198_v4, %v3801_v53  ;;  %v4267_v16 = vpop.f32.mrb[22].mxu1  ;;  %v3803_v12 = vpop.f32.mrb[23].mxu0  ;;  %v4506_v53 = vld [vmem:[%s13639_s3 + $0x58] sm:$0xff] }
 0x67f   :  { %v4288_v14 = vadd.f32 %v4284_v34, %v4273_v44  ;;  %v3809_v42 = vmax.f32 %v3199_v7, %v3803_v12  ;;  %v4269_v58 = vpop.f32.mrb[23].mxu1  ;;  %v4518_v7 = vld [vmem:[%s13639_s3 + $0xb8] sm:$0xff]  ;;  %v4505_v44 = vld [vmem:[%s13639_s3 + $0x50] sm:$0xff]  ;;  %7796 = vmatprep.subr.bf16.mxu1 %v7795_v51 }
 0x680   :  { %v4291_v62 = vmax.f32 %v4287_v15, 0.0  ;;  %v4274_v38 = vmax.f32 %v3808_v33, %v4267_v16  ;;  %v7759_v32 = vpack.c.bf16 %v4518_v7, %v4517_v26  ;;  %v4553_v15 = vld [vmem:[%s13639_s3 + $0x1d0] sm:$0xff]  ;;  %v4554_v12 = vld [vmem:[%s13639_s3 + $0x1d8] sm:$0xff]  ;;  %v4524_v26 = vld [vmem:[%s13639_s3 + $0xe8] sm:$0xff] }
 0x681   :  { %v4292_v35 = vmax.f32 %v4288_v14, 0.0  ;;  %v4275_v20 = vmax.f32 %v3809_v42, %v4269_v58  ;;  %v7771_v23 = vpack.c.bf16 %v4524_v26, %v4523_v54  ;;  %v4507_v7 = vld [vmem:[%s13639_s3 + $0x60] sm:$0xff] }
 0x682   :  { %v4289_v4 = vadd.f32 %v4280_v50, %v4274_v38  ;;  %7760 = vmatprep.subr.bf16.mxu0 %v7759_v32  ;;  %v4535_v50 = vld [vmem:[%s13639_s3 + $0x140] sm:$0xff]  ;;  %v4537_v38 = vld [vmem:[%s13639_s3 + $0x150] sm:$0xff]  ;;  %v4556_v32 = vld [vmem:[%s13639_s3 + $0x1e8] sm:$0xff] }
 0x683   :  { %v4297_v37 = vcombine.low %v4291_v62, %v4292_v35  ;;  %v4358_v18 = vcombine.high %v4291_v62, %v4292_v35  ;;  %v4290_v57 = vadd.f32 %v4284_v34, %v4275_v20  ;;  %7762 = vmatpush3.bf16.msra.mxu0 %v7761_v9  ;;  %v4522_v34 = vld [vmem:[%s13639_s3 + $0xd8] sm:$0xff]  ;;  %v7797_v16 = vpack.c.bf16 %v4536_v36, %v4535_v50  ;;  %v4525_v9 = vld [vmem:[%s13639_s3 + $0xf0] sm:$0xff] }
 0x684   :  { %v4293_v11 = vmax.f32 %v4289_v4, 0.0  ;;  %7764 = vmatprep.subr.bf16.mxu0 %v7763_v29  ;;  %v7767_v58 = vpack.c.bf16 %v4522_v34, %v4521_v21  ;;  %v7769_v62 = vpack.c.bf16 %v4506_v53, %v4505_v44  ;;  %v4538_v35 = vld [vmem:[%s13639_s3 + $0x158] sm:$0xff]  ;;  %v7799_v20 = vpack.c.bf16 %v4554_v12, %v4553_v15  ;;  %v4581_v53 = vld [vmem:[%s13639_s3 + $0x2b0] sm:$0xff] }
 0x685   :  { %v4304_v22 = vrot.slane %v4297_v37, %v12966_v60  ;;  %v4365_v55 = vrot.slane %v4358_v18, %v12966_v60  ;;  %v4294_v61 = vmax.f32 %v4290_v57, 0.0  ;;  %7798 = vmatpush3.bf16.msra.mxu1 %v7797_v16  ;;  %v7801_v47 = vpack.c.bf16 %v4538_v35, %v4537_v38  ;;  %v4508_v37 = vld [vmem:[%s13639_s3 + $0x68] sm:$0xff]  ;;  %v4555_v18 = vld [vmem:[%s13639_s3 + $0x1e0] sm:$0xff]  ;;  %v4582_v15 = vld [vmem:[%s13639_s3 + $0x2b8] sm:$0xff] }
 0x686   :  { %7800 = vmatprep.subr.bf16.mxu1 %v7799_v20  ;;  %v7773_v57 = vpack.c.bf16 %v4508_v37, %v4507_v7  ;;  %v7803_v41 = vpack.c.bf16 %v4556_v32, %v4555_v18 }
 0x687   :  { %v4405_v46 = vcombine.low %v4293_v11, %v4294_v61  ;;  %v13011_v30 = vcombine.high %v4293_v11, %v4294_v61  ;;  %v4318_v5 = vcombine.high %v4304_v22, %v4304_v22  ;;  %v4311_v28 = vrot.slane %v4304_v22, %v12966_v60  ;;  %7766 = vmatpush3.bf16.msra.mxu0 %v7765_v25  ;;  %v4540_v11 = vld [vmem:[%s13639_s3 + $0x168] sm:$0xff]  ;;  %v4526_v22 = vld [vmem:[%s13639_s3 + $0xf8] sm:$0xff] }
 0x688   :  { %v4376_v27 = vcombine.high %v4365_v55, %v4365_v55  ;;  %v13024_v3 = vrot.slane %v4365_v55, %v12966_v60  ;;  %7768 = vmatprep.subr.bf16.mxu0 %v7767_v58  ;;  %v7805_v59 = vpack.c.bf16 %v4540_v11, %v4539_v17  ;;  %v7775_v48 = vpack.c.bf16 %v4526_v22, %v4525_v9  ;;  %v4578_v22 = vld [vmem:[%s13639_s3 + $0x298] sm:$0xff] }
 0x689   :  { %v4325_v31 = vrot.slane %v4318_v5, %v12966_v60  ;;  %v4412_v19 = vrot.slane %v4405_v46, %v12966_v60  ;;  %4317 = vst.msk [vmem:[#allocation6] ss:$2 sm:$0x3] %vm13001_vm8, %v4311_v28  ;;  %v4336_v14 = vcombine.high %v4311_v28, %v4311_v28  ;;  %7802 = vmatpush3.bf16.msra.mxu1 %v7801_v47  ;;  %v4542_v46 = vld [vmem:[%s13639_s3 + $0x178] sm:$0xff]  ;;  %v4575_v5 = vld [vmem:[%s13639_s3 + $0x280] sm:$0xff]  ;;  %v4576_v28 = vld [vmem:[%s13639_s3 + $0x288] sm:$0xff] }
 0x68a   :  { %v13040_v24 = vrot.slane %v4376_v27, %v12966_v60  ;;  %4375 = vst.msk [vmem:[#allocation6 + $0xe] ss:$2 sm:$0x3] %vm13001_vm8, %v13024_v3  ;;  %v4461_v61 = vrot.slane %v13011_v30, %v12966_v60  ;;  %7804 = vmatprep.subr.bf16.mxu1 %v7803_v41  ;;  %v7807_v30 = vpack.c.bf16 %v4558_v63, %v4557_v39  ;;  %v4608_v27 = vld [vmem:[%s13639_s3 + $0x388] sm:$0xff]  ;;  %v4559_v41 = vld [vmem:[%s13639_s3 + $0x200] sm:$0xff]  ;;  %v4609_v63 = vld [vmem:[%s13639_s3 + $0x390] sm:$0xff] }
 0x68b   :  { %4326 = vrot.lane.b32.xlu1 %v4325_v31, %s8113_s13  ;;  %v4419_v8 = vrot.slane %v4412_v19, %v12966_v60  ;;  %v4427_v1 = vcombine.high %v4412_v19, %v4412_v19  ;;  %7770 = vmatpush3.bf16.msra.mxu0 %v7769_v62  ;;  %v4347_v13 = vcombine.high %v4325_v31, %v4325_v31 }
 0x68c   :  { %v4399_v33 = vcombine.high %v13040_v24, %v13040_v24  ;;  %7772 = vmatprep.subr.bf16.mxu0 %v7771_v23  ;;  %v7809_v52 = vpack.c.bf16 %v4542_v46, %v4541_v2  ;;  %v7811_v6 = vpack.c.bf16 %v4576_v28, %v4575_v5  ;;  %v4468_v29 = vrot.slane %v4461_v61, %v12966_v60  ;;  %v4610_v2 = vld [vmem:[%s13639_s3 + $0x398] sm:$0xff]  ;;  %v4561_v28 = vld [vmem:[%s13639_s3 + $0x210] sm:$0xff] }
 0x68d   :  { %4420 = vrot.lane.b32.xlu0 %v4419_v8, %s8113_s13  ;;  %v4434_v42 = vrot.slane %v4427_v1, %v12966_v60  ;;  %v4442_v55 = vcombine.high %v4419_v8, %v4419_v8  ;;  %7806 = vmatpush3.bf16.msra.mxu1 %v7805_v59  ;;  %v4476_v25 = vcombine.high %v4461_v61, %v4461_v61  ;;  %v4577_v59 = vld [vmem:[%s13639_s3 + $0x290] sm:$0xff]  ;;  %v4564_v8 = vld [vmem:[%s13639_s3 + $0x228] sm:$0xff] }
 0x68e   :  { %4402 = vst.msk [vmem:[#allocation6 + $0x1] ss:$2 sm:$0x3] %vm13001_vm8, %v4399_v33  ;;  %7808 = vmatprep.subr.bf16.mxu1 %v7807_v30  ;;  %v7843_v0 = vpack.c.bf16 %v4608_v27, %v4607_v45  ;;  %v4391_v31 = vcombine.high %v13024_v3, %v13024_v3  ;;  %v8116_v33 = vmov 1983009808   ;;  %v7815_v30 = vpack.c.bf16 %v4578_v22, %v4577_v59  ;;  %v4600_v59 = vld [vmem:[%s13639_s3 + $0x348] sm:$0xff] }
 0x68f   :  { %4337 = vrot.lane.b32.xlu1 %v4336_v14, %s8112_s20  ;;  %v4450_v4 = vcombine.high %v4434_v42, %v4434_v42  ;;  %7774 = vmatpush3.bf16.msra.mxu0 %v7773_v57  ;;  %v4483_v19 = vrot.slane %v4476_v25, %v12966_v60  ;;  %v4704_v16 = vunpack.c.l.s4 %v8116_v33  ;;  %v4579_v25 = vld [vmem:[%s13639_s3 + $0x2a0] sm:$0xff] }
 0x690   :  { %7776 = vmatprep.subr.bf16.mxu0 %v7775_v48  ;;  %v4591_v48 = vld [vmem:[%s13639_s3 + $0x300] sm:$0xff] }
 0x691   :  { %4435 = vrot.lane.b32.xlu0 %v4434_v42, %s8112_s20  ;;  %4453 = vst.msk [vmem:[#allocation6 + $0xf] ss:$2 sm:$0x3] %vm13001_vm8, %v4450_v4  ;;  %7810 = vmatpush3.bf16.msra.mxu1 %v7809_v52  ;;  %v4705_v38 = vunpack.c.0.s8 %v4704_v16  ;;  %v4562_v52 = vld [vmem:[%s13639_s3 + $0x218] sm:$0xff]  ;;  %v7845_v45 = vpack.c.bf16 %v4592_v10, %v4591_v48  ;;  %v4595_v16 = vld [vmem:[%s13639_s3 + $0x320] sm:$0xff]  ;;  %v4569_v10 = vld [vmem:[%s13639_s3 + $0x250] sm:$0xff] }
 0x692   :  { %7844 = vmatprep.subr.bf16.mxu1 %v7843_v0  ;;  %v4580_v0 = vld [vmem:[%s13639_s3 + $0x2a8] sm:$0xff] }
 0x693   :  { %4348 = vrot.lane.b32.xlu1 %v4347_v13, %s8111_s28  ;;  %7778 = vmatpush3.bf16.msra.mxu0 %v7777_v49  ;;  %v13195_v23 = vsub.s32 %v4705_v38, %v14598_v43  ;;  %v4560_v43 = vld [vmem:[%s13639_s3 + $0x208] sm:$0xff]  ;;  %v4566_v38 = vld [vmem:[%s13639_s3 + $0x238] sm:$0xff] }
 0x694   :  { %7812 = vmatprep.subr.bf16.mxu0 %v7811_v6  ;;  %v7813_v39 = vpack.c.bf16 %v4560_v43, %v4559_v41  ;;  %v4585_v43 = vld [vmem:[%s13639_s3 + $0x2d0] sm:$0xff] }
 0x695   :  { %4443 = vrot.lane.b32.xlu0 %v4442_v55, %s8111_s28 }
 0x697   :  { %4384 = vrot.lane.b32.xlu1 %v13040_v24, %s8113_s13 }
 0x699   :  { %4469 = vrot.lane.b32.xlu0 %v4468_v29, %s8113_s13 }
 0x69b   :  { %4392 = vrot.lane.b32.xlu1 %v4391_v31, %s8112_s20  ;;  %v7847_v31 = vpack.c.bf16 %v4610_v2, %v4609_v63  ;;  %v4588_v63 = vld [vmem:[%s13639_s3 + $0x2e8] sm:$0xff] }
 0x69d   :  { %4484 = vrot.lane.b32.xlu0 %v4483_v19, %s8112_s20  ;;  %v4593_v19 = vld [vmem:[%s13639_s3 + $0x310] sm:$0xff] }
 0x6fd   :  { %v4327_v50 = vpop.permute.xlu1 %4326 }
 0x6fe   :  { %v4328_v24 = vrot.slane %v4327_v50, 7 }
 0x6ff   :  { %v4421_v3 = vpop.permute.xlu0 %4420 }
 0x700   :  { %v4329_v60 = vsel %vm426_vm13, %v4328_v24, %v4327_v50  ;;  %v4422_v51 = vrot.slane %v4421_v3, 7  ;;  %v4594_v50 = vld [vmem:[%s13639_s3 + $0x318] sm:$0xff]  ;;  %v7817_v24 = vpack.c.bf16 %v4562_v52, %v4561_v28  ;;  %v4619_v28 = vld [vmem:[%s13639_s3 + $0x3e0] sm:$0xff]  ;;  %v4620_v52 = vld [vmem:[%s13639_s3 + $0x3e8] sm:$0xff] }
 0x701   :  { %4335 = vst.msk [vmem:[#allocation6 + $0x2] ss:$2 sm:$0x7] %vm13156_vm4, %v4329_v60  ;;  %v4338_v21 = vpop.permute.xlu1 %4337  ;;  %v4611_v60 = vld [vmem:[%s13639_s3 + $0x3a0] sm:$0xff] }
 0x702   :  { %v4423_v34 = vsel %vm426_vm13, %v4422_v51, %v4421_v3  ;;  %v4339_v1 = vrot.slane %v4338_v21, 7  ;;  %v4612_v51 = vld [vmem:[%s13639_s3 + $0x3a8] sm:$0xff] }
 0x703   :  { %4426 = vst.msk [vmem:[#allocation6 + $0x3] ss:$2 sm:$0x7] %vm13156_vm4, %v4423_v34  ;;  %v4436_v44 = vpop.permute.xlu0 %4435  ;;  %v4563_v34 = vld [vmem:[%s13639_s3 + $0x220] sm:$0xff]  ;;  %v7851_v33 = vpack.c.bf16 %v4612_v51, %v4611_v60  ;;  %v4621_v60 = vld [vmem:[%s13639_s3 + $0x3f0] sm:$0xff]  ;;  %v4622_v51 = vld [vmem:[%s13639_s3 + $0x3f8] sm:$0xff] }
 0x704   :  { %v4340_v12 = vsel %vm715_vm14, %v4339_v1, %v4338_v21  ;;  %v4437_v14 = vrot.slane %v4436_v44, 7  ;;  %v7819_v21 = vpack.c.bf16 %v4580_v0, %v4579_v25  ;;  %v4589_v0 = vld [vmem:[%s13639_s3 + $0x2f0] sm:$0xff] }
 0x705   :  { %4346 = vst.msk [vmem:[#allocation6 + $0x6] ss:$2 sm:$0x7] %vm13166_vm1, %v4340_v12  ;;  %v4349_v42 = vpop.permute.xlu1 %4348  ;;  %v4596_v12 = vld [vmem:[%s13639_s3 + $0x328] sm:$0xff] }
 0x706   :  { %v4438_v58 = vsel %vm715_vm14, %v4437_v14, %v4436_v44  ;;  %v4350_v40 = vrot.slane %v4349_v42, 7  ;;  %v7849_v44 = vpack.c.bf16 %v4594_v50, %v4593_v19  ;;  %v7821_v14 = vpack.c.bf16 %v4564_v8, %v4563_v34  ;;  %v4603_v50 = vld [vmem:[%s13639_s3 + $0x360] sm:$0xff]  ;;  %v4573_v34 = vld [vmem:[%s13639_s3 + $0x270] sm:$0xff]  ;;  %v4574_v8 = vld [vmem:[%s13639_s3 + $0x278] sm:$0xff] }
 0x707   :  { %4441 = vst.msk [vmem:[#allocation6 + $0x7] ss:$2 sm:$0x7] %vm13166_vm1, %v4438_v58  ;;  %v4444_v62 = vpop.permute.xlu0 %4443  ;;  %v4614_v58 = vld [vmem:[%s13639_s3 + $0x3b8] sm:$0xff]  ;;  %v7867_v19 = vpack.c.bf16 %v4620_v52, %v4619_v28  ;;  %v4660_v28 = vld [vmem:[%s13639_s3 + $0x528] sm:$0xff] }
 0x708   :  { %v4351_v35 = vsel %vm148_vm12, %v4350_v40, %v4349_v42  ;;  %v4445_v20 = vrot.slane %v4444_v62, 7  ;;  %v4613_v42 = vld [vmem:[%s13639_s3 + $0x3b0] sm:$0xff]  ;;  %v7823_v40 = vpack.c.bf16 %v4582_v15, %v4581_v53  ;;  %v4639_v53 = vld [vmem:[%s13639_s3 + $0x480] sm:$0xff]  ;;  %v4640_v15 = vld [vmem:[%s13639_s3 + $0x488] sm:$0xff] }
 0x709   :  { %4357 = vst.msk [vmem:[#allocation6 + $0xa] ss:$2 sm:$0x3] %vm4355_vm10, %v4351_v35  ;;  %v4385_v47 = vpop.permute.xlu1 %4384  ;;  %v7853_v35 = vpack.c.bf16 %v4596_v12, %v4595_v16  ;;  %v4605_v16 = vld [vmem:[%s13639_s3 + $0x370] sm:$0xff]  ;;  %v4606_v12 = vld [vmem:[%s13639_s3 + $0x378] sm:$0xff] }
 0x70a   :  { %v4446_v54 = vsel %vm148_vm12, %v4445_v20, %v4444_v62  ;;  %v4386_v26 = vrot.slane %v4385_v47, 7  ;;  %v4565_v62 = vld [vmem:[%s13639_s3 + $0x230] sm:$0xff]  ;;  %v4583_v20 = vld [vmem:[%s13639_s3 + $0x2c0] sm:$0xff] }
 0x70b   :  { %4449 = vst.msk [vmem:[#allocation6 + $0xb] ss:$2 sm:$0x3] %vm4355_vm10, %v4446_v54  ;;  %v4470_v4 = vpop.permute.xlu0 %4469  ;;  %v7855_v54 = vpack.c.bf16 %v4614_v58, %v4613_v42  ;;  %v4671_v42 = vld [vmem:[%s13639_s3 + $0x580] sm:$0xff]  ;;  %v4672_v58 = vld [vmem:[%s13639_s3 + $0x588] sm:$0xff] }
 0x70c   :  { %v4387_v7 = vsel %vm426_vm13, %v4386_v26, %v4385_v47  ;;  %v4471_v37 = vrot.slane %v4470_v4, 7  ;;  %v4584_v47 = vld [vmem:[%s13639_s3 + $0x2c8] sm:$0xff]  ;;  %v4597_v26 = vld [vmem:[%s13639_s3 + $0x330] sm:$0xff] }
 0x70d   :  { %4390 = vst.msk [vmem:[#allocation6 + $0x10] ss:$2 sm:$0x7] %vm13156_vm4, %v4387_v7  ;;  %v4393_v18 = vpop.permute.xlu1 %4392  ;;  %v7825_v7 = vpack.c.bf16 %v4566_v38, %v4565_v62  ;;  %v7875_v62 = vpack.c.bf16 %v4640_v15, %v4639_v53  ;;  %v4623_v38 = vld [vmem:[%s13639_s3 + $0x400] sm:$0xff]  ;;  %v4649_v15 = vld [vmem:[%s13639_s3 + $0x4d0] sm:$0xff] }
 0x70e   :  { %v4472_v57 = vsel %vm426_vm13, %v4471_v37, %v4470_v4  ;;  %v4394_v32 = vrot.slane %v4393_v18, 7  ;;  %v4491_v13 = vld [vmem:[#allocation6] sm:$0xff]  ;;  %v4598_v4 = vld [vmem:[%s13639_s3 + $0x338] sm:$0xff]  ;;  %v4615_v37 = vld [vmem:[%s13639_s3 + $0x3c0] sm:$0xff]  ;;  %vm8118_vm13 = vmmov 0  }
 0x70f   :  { %4475 = vst.msk [vmem:[#allocation6 + $0x11] ss:$2 sm:$0x7] %vm13156_vm4, %v4472_v57  ;;  %v4485_v17 = vpop.permute.xlu0 %4484  ;;  %v4709_v11 = vrot.slane %v4491_v13, %v13195_v23  ;;  %v4702_v9 = vcombine.high %v4491_v13, %v4491_v13  ;;  %v7827_v57 = vpack.c.bf16 %v4584_v47, %v4583_v20  ;;  %v4568_v13 = vld [vmem:[%s13639_s3 + $0x248] sm:$0xff]  ;;  %v7857_v41 = vpack.c.bf16 %v4598_v4, %v4597_v26  ;;  %v4642_v26 = vld [vmem:[%s13639_s3 + $0x498] sm:$0xff] }
 0x710   :  { %v4395_v55 = vsel %vm715_vm14, %v4394_v32, %v4393_v18  ;;  %v4486_v61 = vrot.slane %v4485_v17, 7  ;;  %v4616_v18 = vld [vmem:[%s13639_s3 + $0x3c8] sm:$0xff]  ;;  %v4567_v32 = vld [vmem:[%s13639_s3 + $0x240] sm:$0xff]  ;;  %v7873_v20 = vpack.c.bf16 %v4606_v12, %v4605_v16  ;;  %v7907_v4 = vpack.c.bf16 %v4672_v58, %v4671_v42  ;;  %v4681_v58 = vld [vmem:[%s13639_s3 + $0x5d0] sm:$0xff] }
 0x711   :  { %4398 = vst.msk [vmem:[#allocation6 + $0x14] ss:$2 sm:$0x7] %vm13166_vm1, %v4395_v55  ;;  %v4717_v56 = vcombine.high %v4709_v11, %v4709_v11  ;;  %v4716_v49 = vrot.slane %v4702_v9, %v13195_v23  ;;  %v4599_v9 = vld [vmem:[%s13639_s3 + $0x340] sm:$0xff]  ;;  %v7829_v22 = vpack.c.bf16 %v4568_v13, %v4567_v32  ;;  %v4617_v55 = vld [vmem:[%s13639_s3 + $0x3d0] sm:$0xff]  ;;  %v4674_v13 = vld [vmem:[%s13639_s3 + $0x598] sm:$0xff] }
 0x712   :  { %v4487_v46 = vsel %vm715_vm14, %v4486_v61, %v4485_v17  ;;  %v4492_v5 = vld [vmem:[#allocation6 + $0x8] sm:$0xff]  ;;  %v4673_v32 = vld [vmem:[%s13639_s3 + $0x590] sm:$0xff]  ;;  %v4663_v12 = vld [vmem:[%s13639_s3 + $0x540] sm:$0xff] }
 0x713   :  { %4490 = vst.msk [vmem:[#allocation6 + $0x15] ss:$2 sm:$0x7] %vm13166_vm1, %v4487_v46  ;;  %4838 = vmatprep.mubr.f32.mxu0 %v4717_v56  ;;  %v4718_v6 = vcombine.high %v4716_v49, %v4716_v49  ;;  %v13242_v27 = vrot.slane %v4492_v5, %v13195_v23  ;;  %v4719_v29 = vcombine.high %v4492_v5, %v4492_v5  ;;  %v4586_v17 = vld [vmem:[%s13639_s3 + $0x2d8] sm:$0xff]  ;;  %v4601_v46 = vld [vmem:[%s13639_s3 + $0x350] sm:$0xff] }
 0x714   :  { %4839 = vmatmul.mubr.f32.vlgmr.msra.gmra.mrb[24].mxu0 %v4709_v11  ;;  %v7859_v11 = vpack.c.bf16 %v4616_v18, %v4615_v37  ;;  %v4618_v61 = vld [vmem:[%s13639_s3 + $0x3d8] sm:$0xff]  ;;  %v7831_v48 = vpack.c.bf16 %v4586_v17, %v4585_v43  ;;  %v4656_v37 = vld [vmem:[%s13639_s3 + $0x508] sm:$0xff]  ;;  %v4625_v43 = vld [vmem:[%s13639_s3 + $0x410] sm:$0xff] }
 0x715   :  { %7814 = vmatpush3.bf16.msra.mxu0 %v7813_v39  ;;  %4908 = vmatprep.mubr.f32.mxu1 %v4718_v6  ;;  %v4734_v36 = vcombine.high %v13242_v27, %v13242_v27  ;;  %v13259_v3 = vrot.slane %v4719_v29, %v13195_v23  ;;  %v4570_v56 = vld [vmem:[%s13639_s3 + $0x258] sm:$0xff]  ;;  %v7861_v39 = vpack.c.bf16 %v4600_v59, %v4599_v9  ;;  %v4572_v29 = vld [vmem:[%s13639_s3 + $0x268] sm:$0xff]  ;;  %v4643_v9 = vld [vmem:[%s13639_s3 + $0x4a0] sm:$0xff] }
 0x716   :  { %4909 = vmatmul.mubr.f32.vlgmr.msra.gmra.mrb[24].mxu1 %v4716_v49  ;;  %7816 = vmatprep.subr.bf16.mxu0 %v7815_v30  ;;  %v4587_v49 = vld [vmem:[%s13639_s3 + $0x2e0] sm:$0xff]  ;;  %v7863_v2 = vpack.c.bf16 %v4618_v61, %v4617_v55  ;;  %v4602_v30 = vld [vmem:[%s13639_s3 + $0x358] sm:$0xff]  ;;  %v7833_v5 = vpack.c.bf16 %v4570_v56, %v4569_v10  ;;  %v4644_v59 = vld [vmem:[%s13639_s3 + $0x4a8] sm:$0xff] }
 0x717   :  { %7846 = vmatpush3.bf16.msra.mxu1 %v7845_v45  ;;  %4978 = vmatprep.mubr.f32.mxu0 %v4734_v36  ;;  %v4735_v1 = vcombine.high %v13259_v3, %v13259_v3  ;;  %v7835_v6 = vpack.c.bf16 %v4588_v63, %v4587_v49  ;;  %v4571_v45 = vld [vmem:[%s13639_s3 + $0x260] sm:$0xff]  ;;  %v7865_v25 = vpack.c.bf16 %v4602_v30, %v4601_v46  ;;  %v4604_v36 = vld [vmem:[%s13639_s3 + $0x368] sm:$0xff]  ;;  %v4626_v17 = vld [vmem:[%s13639_s3 + $0x418] sm:$0xff] }
 0x718   :  { %7848 = vmatprep.subr.bf16.mxu1 %v7847_v31  ;;  %v4590_v31 = vld [vmem:[%s13639_s3 + $0x2f8] sm:$0xff]  ;;  %v4657_v55 = vld [vmem:[%s13639_s3 + $0x510] sm:$0xff]  ;;  %v7881_v10 = vpack.c.bf16 %v4626_v17, %v4625_v43  ;;  %v4676_v56 = vld [vmem:[%s13639_s3 + $0x5a8] sm:$0xff] }
 0x719   :  { %7818 = vmatpush3.bf16.msra.mxu0 %v7817_v24  ;;  %5048 = vmatprep.mubr.f32.mxu1 %v4735_v1  ;;  %v7837_v24 = vpack.c.bf16 %v4572_v29, %v4571_v45  ;;  %v4658_v61 = vld [vmem:[%s13639_s3 + $0x518] sm:$0xff]  ;;  %v4627_v49 = vld [vmem:[%s13639_s3 + $0x420] sm:$0xff]  ;;  %v4628_v63 = vld [vmem:[%s13639_s3 + $0x428] sm:$0xff] }
 0x71a   :  { %7820 = vmatprep.subr.bf16.mxu0 %v7819_v21  ;;  %v7839_v21 = vpack.c.bf16 %v4590_v31, %v4589_v0  ;;  %v4493_v1 = vld [vmem:[#allocation6 + $0x10] sm:$0xff]  ;;  %v4645_v46 = vld [vmem:[%s13639_s3 + $0x4b0] sm:$0xff]  ;;  %v7885_v52 = vpack.c.bf16 %v4628_v63, %v4627_v49  ;;  %v4678_v45 = vld [vmem:[%s13639_s3 + $0x5b8] sm:$0xff] }
 0x71b   :  { %7850 = vmatpush3.bf16.msra.mxu1 %v7849_v44  ;;  %v7869_v44 = vpack.c.bf16 %v4604_v36, %v4603_v50  ;;  %v13420_v47 = vrot.slane %v4493_v1, %v13195_v23  ;;  %v4630_v0 = vld [vmem:[%s13639_s3 + $0x438] sm:$0xff]  ;;  %v4648_v50 = vld [vmem:[%s13639_s3 + $0x4c8] sm:$0xff]  ;;  %v4635_v43 = vld [vmem:[%s13639_s3 + $0x460] sm:$0xff] }
 0x71c   :  { %7852 = vmatprep.subr.bf16.mxu1 %v7851_v33  ;;  %v7871_v33 = vpack.c.bf16 %v4622_v51, %v4621_v60  ;;  %v4662_v60 = vld [vmem:[%s13639_s3 + $0x538] sm:$0xff]  ;;  %v4636_v17 = vld [vmem:[%s13639_s3 + $0x468] sm:$0xff] }
 0x71d   :  { %7822 = vmatpush3.bf16.msra.mxu0 %v7821_v14  ;;  %v7841_v14 = vpack.c.bf16 %v4574_v8, %v4573_v34  ;;  %v4680_v34 = vld [vmem:[%s13639_s3 + $0x5c8] sm:$0xff] }
 0x71e   :  { %7824 = vmatprep.subr.bf16.mxu0 %v7823_v40  ;;  %v4736_v40 = vcombine.high %v4493_v1, %v4493_v1  ;;  %v4631_v1 = vld [vmem:[%s13639_s3 + $0x440] sm:$0xff] }
 0x71f   :  { %7854 = vmatpush3.bf16.msra.mxu1 %v7853_v35  ;;  %v4624_v35 = vld [vmem:[%s13639_s3 + $0x408] sm:$0xff] }
 0x720   :  { %7856 = vmatprep.subr.bf16.mxu1 %v7855_v54  ;;  %v4641_v54 = vld [vmem:[%s13639_s3 + $0x490] sm:$0xff]  ;;  %v7877_v18 = vpack.c.bf16 %v4624_v35, %v4623_v38  ;;  %v4634_v35 = vld [vmem:[%s13639_s3 + $0x458] sm:$0xff] }
 0x721   :  { %7826 = vmatpush3.bf16.msra.mxu0 %v7825_v7  ;;  %v4655_v7 = vld [vmem:[%s13639_s3 + $0x500] sm:$0xff]  ;;  %v4633_v38 = vld [vmem:[%s13639_s3 + $0x450] sm:$0xff] }
 0x722   :  { %7828 = vmatprep.subr.bf16.mxu0 %v7827_v57  ;;  %v13435_v57 = vrot.slane %v4736_v40, %v13195_v23  ;;  %v4751_v23 = vcombine.high %v13420_v47, %v13420_v47  ;;  %v4682_v40 = vld [vmem:[%s13639_s3 + $0x5d8] sm:$0xff] }
 0x723   :  { %7858 = vmatpush3.bf16.msra.mxu1 %v7857_v41  ;;  %v7879_v41 = vpack.c.bf16 %v4642_v26, %v4641_v54  ;;  %v4651_v54 = vld [vmem:[%s13639_s3 + $0x4e0] sm:$0xff]  ;;  %v4652_v26 = vld [vmem:[%s13639_s3 + $0x4e8] sm:$0xff] }
 0x724   :  { %7860 = vmatprep.subr.bf16.mxu1 %v7859_v11  ;;  %v7909_v11 = vpack.c.bf16 %v4656_v37, %v4655_v7  ;;  %v4665_v7 = vld [vmem:[%s13639_s3 + $0x550] sm:$0xff]  ;;  %v4666_v37 = vld [vmem:[%s13639_s3 + $0x558] sm:$0xff] }
 0x725   :  { %7830 = vmatpush3.bf16.msra.mxu0 %v7829_v22  ;;  %v7911_v22 = vpack.c.bf16 %v4674_v13, %v4673_v32  ;;  %v4683_v32 = vld [vmem:[%s13639_s3 + $0x5e0] sm:$0xff]  ;;  %v4684_v13 = vld [vmem:[%s13639_s3 + $0x5e8] sm:$0xff] }
 0x726   :  { %7832 = vmatprep.subr.bf16.mxu0 %v7831_v48  ;;  %v4752_v48 = vcombine.high %v13435_v57, %v13435_v57 }
 0x727   :  { %7862 = vmatpush3.bf16.msra.mxu1 %v7861_v39  ;;  %v7883_v39 = vpack.c.bf16 %v4644_v59, %v4643_v9  ;;  %v4654_v9 = vld [vmem:[%s13639_s3 + $0x4f8] sm:$0xff]  ;;  %v7931_v59 = vpack.c.bf16 %v4684_v13, %v4683_v32 }
 0x728   :  { %7864 = vmatprep.subr.bf16.mxu1 %v7863_v2  ;;  %v7913_v2 = vpack.c.bf16 %v4658_v61, %v4657_v55  ;;  %v4668_v55 = vld [vmem:[%s13639_s3 + $0x568] sm:$0xff]  ;;  %v7901_v61 = vpack.c.bf16 %v4636_v17, %v4635_v43 }
 0x729   :  { %7834 = vmatpush3.bf16.msra.mxu0 %v7833_v5  ;;  %v4659_v5 = vld [vmem:[%s13639_s3 + $0x520] sm:$0xff] }
 0x72a   :  { %7836 = vmatprep.subr.bf16.mxu0 %v7835_v6  ;;  %v4677_v6 = vld [vmem:[%s13639_s3 + $0x5b0] sm:$0xff]  ;;  %v7917_v31 = vpack.c.bf16 %v4660_v28, %v4659_v5  ;;  %v4688_v5 = vld [vmem:[%s13639_s3 + $0x608] sm:$0xff] }
 0x72b   :  { %7866 = vmatpush3.bf16.msra.mxu1 %v7865_v25  ;;  %v4629_v25 = vld [vmem:[%s13639_s3 + $0x430] sm:$0xff]  ;;  %v7919_v36 = vpack.c.bf16 %v4678_v45, %v4677_v6  ;;  %v8117_v6 = vmov 0.0|0.0  }
 0x72c   :  { %7868 = vmatprep.subr.bf16.mxu1 %v7867_v19  ;;  %v4647_v19 = vld [vmem:[%s13639_s3 + $0x4c0] sm:$0xff]  ;;  %v7889_v51 = vpack.c.bf16 %v4630_v0, %v4629_v25  ;;  %v4689_v45 = vld [vmem:[%s13639_s3 + $0x610] sm:$0xff]  ;;  %v14612_v0 = vmov 0.0  }
 0x72d   :  { %7838 = vmatpush3.bf16.msra.mxu0 %v7837_v24  ;;  %v4661_v24 = vld [vmem:[%s13639_s3 + $0x530] sm:$0xff]  ;;  %v7891_v8 = vpack.c.bf16 %v4648_v50, %v4647_v19  ;;  %v5758_v50 = vld [vmem:[%s13642_s6] ss:$0 sm:$0xff] }
 0x72e   :  { %7840 = vmatprep.subr.bf16.mxu0 %v7839_v21  ;;  %v4679_v21 = vld [vmem:[%s13639_s3 + $0x5c0] sm:$0xff]  ;;  %v7921_v53 = vpack.c.bf16 %v4662_v60, %v4661_v24 }
 0x72f   :  { %7870 = vmatpush3.bf16.msra.mxu1 %v7869_v44  ;;  %v4632_v44 = vld [vmem:[%s13639_s3 + $0x448] sm:$0xff]  ;;  %v7923_v16 = vpack.c.bf16 %v4680_v34, %v4679_v21 }
 0x730   :  { %7872 = vmatprep.subr.bf16.mxu1 %v7871_v33  ;;  %v4650_v33 = vld [vmem:[%s13639_s3 + $0x4d8] sm:$0xff]  ;;  %v7893_v42 = vpack.c.bf16 %v4632_v44, %v4631_v1 }
 0x731   :  { %7842 = vmatpush3.bf16.msra.mxu0 %v7841_v14  ;;  %v4664_v14 = vld [vmem:[%s13639_s3 + $0x548] sm:$0xff] }
 0x732   :  { %7876 = vmatprep.subr.bf16.mxu0 %v7875_v62  ;;  %v7895_v62 = vpack.c.bf16 %v4650_v33, %v4649_v15 }
 0x733   :  { %7874 = vmatpush3.bf16.msra.mxu1 %v7873_v20  ;;  %v7925_v20 = vpack.c.bf16 %v4664_v14, %v4663_v12 }
 0x734   :  { %4979 = vmatmul.mubr.f32.vlgmr.msra.gmra.mrb[26].mxu0 %v13242_v27  ;;  %7908 = vmatprep.subr.bf16.mxu1 %v7907_v4  ;;  %v4675_v27 = vld [vmem:[%s13639_s3 + $0x5a0] sm:$0xff]  ;;  %v7927_v4 = vpack.c.bf16 %v4682_v40, %v4681_v58 }
 0x735   :  { %7878 = vmatpush3.bf16.msra.mxu0 %v7877_v18  ;;  %5118 = vmatprep.mubr.f32.mxu0 %v4751_v23  ;;  %v7915_v30 = vpack.c.bf16 %v4676_v56, %v4675_v27  ;;  %v7897_v18 = vpack.c.bf16 %v4634_v35, %v4633_v38  ;;  %v7929_v23 = vpack.c.bf16 %v4666_v37, %v4665_v7  ;;  %v4637_v56 = vld [vmem:[%s13639_s3 + $0x470] sm:$0xff] }
 0x736   :  { %5049 = vmatmul.mubr.f32.vlgmr.msra.gmra.mrb[26].mxu1 %v13259_v3  ;;  %7880 = vmatprep.subr.bf16.mxu0 %v7879_v41  ;;  %v4646_v3 = vld [vmem:[%s13639_s3 + $0x4b8] sm:$0xff]  ;;  %v7899_v41 = vpack.c.bf16 %v4652_v26, %v4651_v54 }
 0x737   :  { %7910 = vmatpush3.bf16.msra.mxu1 %v7909_v11  ;;  %5188 = vmatprep.mubr.f32.mxu1 %v4752_v48  ;;  %v7887_v29 = vpack.c.bf16 %v4646_v3, %v4645_v46  ;;  %v4653_v11 = vld [vmem:[%s13639_s3 + $0x4f0] sm:$0xff]  ;;  %v4670_v46 = vld [vmem:[%s13639_s3 + $0x578] sm:$0xff] }
 0x738   :  { %7912 = vmatprep.subr.bf16.mxu1 %v7911_v22  ;;  %v4667_v22 = vld [vmem:[%s13639_s3 + $0x560] sm:$0xff]  ;;  %v4685_v48 = vld [vmem:[%s13639_s3 + $0x5f0] sm:$0xff]  ;;  %v7903_v27 = vpack.c.bf16 %v4654_v9, %v4653_v11 }
 0x739   :  { %7882 = vmatpush3.bf16.msra.mxu0 %v7881_v10  ;;  %v4686_v10 = vld [vmem:[%s13639_s3 + $0x5f8] sm:$0xff]  ;;  %v7933_v49 = vpack.c.bf16 %v4668_v55, %v4667_v22 }
 0x73a   :  { %7884 = vmatprep.subr.bf16.mxu0 %v7883_v39  ;;  %v4638_v39 = vld [vmem:[%s13639_s3 + $0x478] sm:$0xff]  ;;  %v7935_v63 = vpack.c.bf16 %v4686_v10, %v4685_v48 }
 0x73b   :  { %7914 = vmatpush3.bf16.msra.mxu1 %v7913_v2  ;;  %v4669_v2 = vld [vmem:[%s13639_s3 + $0x570] sm:$0xff]  ;;  %v7905_v3 = vpack.c.bf16 %v4638_v39, %v4637_v56 }
 0x73c   :  { %7916 = vmatprep.subr.bf16.mxu1 %v7915_v30  ;;  %v4687_v30 = vld [vmem:[%s13639_s3 + $0x600] sm:$0xff]  ;;  %v7937_v28 = vpack.c.bf16 %v4670_v46, %v4669_v2 }
 0x73d   :  { %7886 = vmatpush3.bf16.msra.mxu0 %v7885_v52  ;;  %v7940_v52 = vpack.c.bf16 %v4688_v5, %v4687_v30 }
 0x73e   :  { %7888 = vmatprep.subr.bf16.mxu0 %v7887_v29  ;;  %v4690_v29 = vld [vmem:[%s13639_s3 + $0x618] sm:$0xff]  ;;  %s8119_s3 = smov [#allocation7]  }
 0x73f   :  { %7918 = vmatpush3.bf16.msra.mxu1 %v7917_v31  ;;  %v7943_v25 = vpack.c.bf16 %v4690_v29, %v4689_v45  ;;  %v5759_v31 = vld.sshfl [vmem:[#allocation6 + $0x18] sm:$0x3 pattern:$0x76325410]  ;;  %s5272_s6 = sshll.u32 %s8119_s3, 4  ;;  %s5273_s6 = int_to_ptr.vmem [resolvable:$true] %s5272_s6 }
 0x740   :  { %7920 = vmatprep.subr.bf16.mxu1 %v7919_v36  ;;  %s8087_s19 = scalar_lea.vmem %s5273_s6, 32  ;;  %p8092_p1 = scmp.lt.s32.totalorder %s5273_s6, %s5273_s6 }
 0x741   :  { %7890 = vmatpush3.bf16.msra.mxu0 %v7889_v51  ;;  %p8088_p0 = scmp.ne.s32.totalorder %s5273_s6, %s8087_s19  ;;  %p8093_p2 = scmp.lt.s32.totalorder %s8087_s19, %s8087_s19 }
 0x742   :  { %7892 = vmatprep.subr.bf16.mxu0 %v7891_v8 }
 0x743   :  { %7922 = vmatpush3.bf16.msra.mxu1 %v7921_v53  ;;  %p8094_p3 = por %p8093_p2, %p8092_p1 }
 0x744   :  { %7924 = vmatprep.subr.bf16.mxu1 %v7923_v16 }
 0x745   :  { %7894 = vmatpush3.bf16.msra.mxu0 %v7893_v42  ;;  %p8095_p4 = pnand %p8094_p3, %p8088_p0 }
 0x746   :  { %7896 = vmatprep.subr.bf16.mxu0 %v7895_v62 }
 0x747   :  { %7926 = vmatpush3.bf16.msra.mxu1 %v7925_v20 }
 0x748   :  { %7928 = vmatprep.subr.bf16.mxu1 %v7927_v4 }
 0x749   :  { %7898 = vmatpush3.bf16.msra.mxu0 %v7897_v18 }
 0x74a   :  { %7900 = vmatprep.subr.bf16.mxu0 %v7899_v41 }
 0x74b   :  { %7930 = vmatpush3.bf16.msra.mxu1 %v7929_v23 }
 0x74c   :  { %7932 = vmatprep.subr.bf16.mxu1 %v7931_v59 }
 0x74d   :  { %7902 = vmatpush3.bf16.msra.mxu0 %v7901_v61 }
 0x74e   :  { %7904 = vmatprep.subr.bf16.mxu0 %v7903_v27 }
 0x74f   :  { %7934 = vmatpush3.bf16.msra.mxu1 %v7933_v49 }
 0x750   :  { %7936 = vmatprep.subr.bf16.mxu1 %v7935_v63 }
 0x751   :  { %7906 = vmatpush3.bf16.msra.mxu0 %v7905_v3 }
 0x752   :  { %7939 = vmatprep.subr.bf16.mxu0 %v8117_v6 }
 0x753   :  { %7938 = vmatpush3.bf16.msra.mxu1 %v7937_v28 }
 0x754   :  { %5119 = vmatmul.mubr.f32.vlgmr.msra.gmra.mrb[28].mxu0 %v13420_v47 }
 0x755   :  { %7941 = vmatpush3.bf16.msra.mxu0 %v7940_v52  ;;  %5984 = vmatprep.mubr.msk.f32.mxu0 %vm8118_vm13, %v14612_v0 }
 0x756   :  { %5189 = vmatmul.mubr.f32.vlgmr.msra.gmra.mrb[28].mxu1 %v13435_v57  ;;  %7942 = vmatprep.subr.bf16.mxu0 %v8117_v6 }
 0x759   :  { %7944 = vmatpush3.bf16.msra.mxu0 %v7943_v25 }
 0x75c   :  { %5985 = vmatmul.mubr.msk.f32.vlgmr.msra.gmra.mrb[30].mxu0 %vm148_vm12, %v5759_v31  ;;  %vm5264_vm12 = vcmask 74752  }
 0x7e7   :  { %v5793_v19 = vpop.f32.mrb[24].mxu0 }
 0x7e8   :  { %v5794_v36 = vpop.f32.mrb[25].mxu0 }
 0x7e9   :  { %v5795_v24 = vadd.f32 %v5794_v36, %v5793_v19  ;;  %v5828_v47 = vpop.f32.mrb[24].mxu1 }
 0x7ea   :  { %v5829_v60 = vpop.f32.mrb[25].mxu1 }
 0x7eb   :  { %v4841_v51 = vadd.f32 %v5795_v24, %v5758_v50  ;;  %v5830_v21 = vadd.f32 %v5829_v60, %v5828_v47 }
 0x7ed   :  { %v4911_v34 = vadd.f32 %v5830_v21, %v4841_v51 }
 0x807   :  { %v5863_v8 = vpop.f32.mrb[26].mxu0 }
 0x808   :  { %v5864_v1 = vpop.f32.mrb[27].mxu0 }
 0x809   :  { %v5865_v57 = vadd.f32 %v5864_v1, %v5863_v8  ;;  %v5898_v44 = vpop.f32.mrb[26].mxu1 }
 0x80a   :  { %v5899_v53 = vpop.f32.mrb[27].mxu1 }
 0x80b   :  { %v4981_v15 = vadd.f32 %v5865_v57, %v4911_v34  ;;  %v5900_v33 = vadd.f32 %v5899_v53, %v5898_v44 }
 0x80d   :  { %v5051_v16 = vadd.f32 %v5900_v33, %v4981_v15 }
 0x827   :  { %v5933_v12 = vpop.f32.mrb[28].mxu0 }
 0x828   :  { %v5934_v14 = vpop.f32.mrb[29].mxu0 }
 0x829   :  { %v5935_v42 = vadd.f32 %v5934_v14, %v5933_v12  ;;  %v5968_v58 = vpop.f32.mrb[28].mxu1 }
 0x82a   :  { %v5969_v40 = vpop.f32.mrb[29].mxu1 }
 0x82b   :  { %v5121_v62 = vadd.f32 %v5935_v42, %v5051_v16  ;;  %v5970_v38 = vadd.f32 %v5969_v40, %v5968_v58 }
 0x82d   :  { %v5191_v35 = vadd.f32 %v5970_v38, %v5121_v62 }
 0x82f   :  { %v5260_v20 = vpop.f32.mrb[30].mxu0 }
 0x830   :  { %v5261_v54 = vadd.f32 %v5260_v20, %v5191_v35  ;;  %v5986_v26 = vpop.f32.mrb[31].mxu0 }
 0x832   :  { %5265 = vst.msk [vmem:[#allocation7] sm:$0x3] %vm5264_vm12, %v5261_v54 }
 0x833   :  { %8098 = shalt.err (!%p8095_p4)
}
 0x834   :  { %s8099_s22 = scalar_lea.hbm %s13643_s7, 32 }
 0x835   :  { %p8100_p5 = scmp.ne.s32.totalorder %s13643_s7, %s8099_s22  ;;  %p8103_p6 = scmp.lt.u32.totalorder %s8099_s22, %s13643_s7 }
 0x837   :  { %p8105_p7 = pnand %p8103_p6, %p8100_p5 }
 0x839   :  { %8108 = shalt.err (!%p8105_p7)
}
 0x83a   :  { %5275 = dma.vmem_to_hbm [thread:$0]  %s5273_s6, 32, %s13643_s7, [#allocation8]  }
 0x83b   :  { %8109 = dma.done.wait [#allocation8], 32  }
 0x83c   :  { %8110 = vsyncadd [#allocation8], 4294967264 }
 0x83d   :  { %5279 = vsyncpa [#allocation8], 1 }

</bundles_post_ra>
